<compile_context>
chip_gen: v7x
topology: tpu7x:2x2x1
jax: 0.10.0
libtpu: 0.0.40
codegen_flags: <defaults>
</compile_context>

<pallas_src>
import functools

import jax
import jax.numpy as jnp
from jax.experimental import pallas as pl
from jax.experimental.pallas import tpu as pltpu


_VMEM_LIMIT = 32 * 1024 * 1024


def _apply_act(x, act):
    if act == "relu":
        return jnp.maximum(x, 0.0)
    if act == "tanh":
        return jnp.tanh(x)
    if act == "sigmoid":
        return jax.nn.sigmoid(x)
    return x


# ----------------------------------------------------------------------------
# Pallas kernel 1: fused matmul + bias + activation (shared body).
# Two wrappers pick the orientation so the LARGE axis always lands on the
# output lane dimension.
# ----------------------------------------------------------------------------
def _gemm_bias_act_kernel(a_ref, b_ref, bias_ref, o_ref, *, act):
    acc = jnp.dot(a_ref[...], b_ref[...], preferred_element_type=jnp.float32)
    acc = acc + bias_ref[...]
    o_ref[...] = _apply_act(acc, act).astype(o_ref.dtype)


def _pick_tm(m):
    """Single full block when small/odd; else >=2 lane-aligned blocks (v7x 2-TC)."""
    if m >= 512 and m % 256 == 0:
        tm = m // 2
        while tm > 2048:
            tm //= 2
        return tm
    return m


def gemm_nt(w, x, b, act="none"):
    """Lane-dense GEMM: w (N, K) @ x (K, M) + b -> (N, M), M (large) on lanes."""
    N, K = w.shape
    K2, M = x.shape
    assert K == K2
    tm = _pick_tm(M)
    assert M % tm == 0
    n_trans = N * M if act in ("tanh", "sigmoid") else 0
    return pl.pallas_call(
        functools.partial(_gemm_bias_act_kernel, act=act),
        out_shape=jax.ShapeDtypeStruct((N, M), jnp.float32),
        grid_spec=pltpu.PrefetchScalarGridSpec(
            num_scalar_prefetch=0,
            grid=(M // tm,),
            in_specs=[
                pl.BlockSpec((N, K), lambda i: (0, 0)),
                pl.BlockSpec((K, tm), lambda i: (0, i)),
                pl.BlockSpec((N, 1), lambda i: (0, 0)),
            ],
            out_specs=pl.BlockSpec((N, tm), lambda i: (0, i)),
        ),
        compiler_params=pltpu.CompilerParams(
            dimension_semantics=("parallel",),
            vmem_limit_bytes=_VMEM_LIMIT),
        cost_estimate=pl.CostEstimate(
            flops=2 * N * K * M,
            transcendentals=n_trans,
            bytes_accessed=4 * (N * K + K * M + N * M + N)),
    )(w, x, b.reshape(N, 1))


def linear(x, w, b, act="none"):
    """x (M, K) @ w (K, N) + b -> (M, N); tiny M, N on lanes, single block."""
    M, K = x.shape
    K2, N = w.shape
    assert K == K2
    n_trans = M * N if act in ("tanh", "sigmoid") else 0
    return pl.pallas_call(
        functools.partial(_gemm_bias_act_kernel, act=act),
        out_shape=jax.ShapeDtypeStruct((M, N), jnp.float32),
        grid_spec=pltpu.PrefetchScalarGridSpec(
            num_scalar_prefetch=0,
            grid=(1,),
            in_specs=[
                pl.BlockSpec((M, K), lambda i: (0, 0)),
                pl.BlockSpec((K, N), lambda i: (0, 0)),
                pl.BlockSpec((1, N), lambda i: (0, 0)),
            ],
            out_specs=pl.BlockSpec((M, N), lambda i: (0, 0)),
        ),
        compiler_params=pltpu.CompilerParams(
            dimension_semantics=("arbitrary",),
            vmem_limit_bytes=_VMEM_LIMIT),
        cost_estimate=pl.CostEstimate(
            flops=2 * M * K * N,
            transcendentals=n_trans,
            bytes_accessed=4 * (M * K + K * N + M * N + N)),
    )(x, w, b.reshape(1, N))


# ----------------------------------------------------------------------------
# Pallas kernel 2: fused AudioRNN (input projection + tanh RNN) and NoiseRNN.
# Single invocation; whole (T, B, D) sequences live in VMEM and the time loop
# is fully unrolled with the hidden state carried as a value.
# ----------------------------------------------------------------------------
def _dual_rnn_kernel(a_ref, n_ref, aiw_ref, aib_ref, awx_ref, awh_ref, ab_ref,
                     nwx_ref, nwh_ref, nb_ref, af_ref, nf_ref, *, T):
    B = a_ref.shape[1]
    Ha = awh_ref.shape[0]
    Hn = nwh_ref.shape[0]
    aiw = aiw_ref[...]
    aib = aib_ref[...]
    awx = awx_ref[...]
    awh = awh_ref[...]
    ab = ab_ref[...]
    nwx = nwx_ref[...]
    nwh = nwh_ref[...]
    nb = nb_ref[...]
    h_a = jnp.zeros((B, Ha), jnp.float32)
    h_n = jnp.zeros((B, Hn), jnp.float32)
    for t in range(T):  # T is small & static -> fully unrolled
        a_t = a_ref[t]                                            # (B, Da)
        x_in = jnp.maximum(
            jnp.dot(a_t, aiw, preferred_element_type=jnp.float32) + aib, 0.0)
        h_a = jnp.tanh(
            jnp.dot(x_in, awx, preferred_element_type=jnp.float32)
            + jnp.dot(h_a, awh, preferred_element_type=jnp.float32) + ab)
        af_ref[t] = h_a
        n_t = n_ref[t]                                            # (B, Dn)
        h_n = jnp.tanh(
            jnp.dot(n_t, nwx, preferred_element_type=jnp.float32)
            + jnp.dot(h_n, nwh, preferred_element_type=jnp.float32) + nb)
        nf_ref[t] = h_n


def dual_rnn(a_tm, noise_tm, p):
    """a_tm: (T, B, Da), noise_tm: (T, B, Dn) -> ((T, B, Ha), (T, B, Hn))."""
    T, B, Da = a_tm.shape
    Dn = noise_tm.shape[2]
    Hi = p["ar_in_w"].shape[1]
    Ha = p["ar_wh"].shape[0]
    Hn = p["nr_wh"].shape[0]

    def full(shape):
        return pl.BlockSpec(tuple(shape), lambda i, _n=len(shape): (0,) * _n)

    flops = 2 * T * B * (Da * Hi + Hi * Ha + Ha * Ha + Dn * Hn + Hn * Hn)
    return pl.pallas_call(
        functools.partial(_dual_rnn_kernel, T=T),
        out_shape=(jax.ShapeDtypeStruct((T, B, Ha), jnp.float32),
                   jax.ShapeDtypeStruct((T, B, Hn), jnp.float32)),
        grid_spec=pltpu.PrefetchScalarGridSpec(
            num_scalar_prefetch=0,
            grid=(1,),
            in_specs=[
                full((T, B, Da)), full((T, B, Dn)),
                full(p["ar_in_w"].shape), full((1, Hi)),
                full(p["ar_wx"].shape), full(p["ar_wh"].shape), full((1, Ha)),
                full(p["nr_wx"].shape), full(p["nr_wh"].shape), full((1, Hn)),
            ],
            out_specs=[full((T, B, Ha)), full((T, B, Hn))],
        ),
        compiler_params=pltpu.CompilerParams(
            dimension_semantics=("arbitrary",),
            vmem_limit_bytes=_VMEM_LIMIT),
        cost_estimate=pl.CostEstimate(
            flops=flops,
            transcendentals=T * B * (Ha + Hn),
            bytes_accessed=4 * T * B * (Da + Dn + Ha + Hn)),
    )(a_tm, noise_tm,
      p["ar_in_w"], p["ar_in_b"].reshape(1, Hi),
      p["ar_wx"], p["ar_wh"], p["ar_b"].reshape(1, Ha),
      p["nr_wx"], p["nr_wh"], p["nr_b"].reshape(1, Hn))


# ----------------------------------------------------------------------------
# Conv2d in channel-major (C, B, H, W) layout: im2col glue + lane-dense GEMM.
# ----------------------------------------------------------------------------
def _im2col_cbhw(x, kh, kw, stride, padding):
    """x: (C, B, H, W) -> cols^T (C*kh*kw, B*Ho*Wo). Plain-XLA glue, no transposes."""
    C, B, H, W = x.shape
    Ho = (H + 2 * padding - kh) // stride + 1
    Wo = (W + 2 * padding - kw) // stride + 1
    xp = jnp.pad(x, ((0, 0), (0, 0), (padding, padding), (padding, padding)))
    rows = []
    for di in range(kh):
        for dj in range(kw):
            he = di + stride * (Ho - 1) + 1
            we = dj + stride * (Wo - 1) + 1
            rows.append(xp[:, :, di:he:stride, dj:we:stride])    # (C, B, Ho, Wo)
    cols = jnp.stack(rows, axis=1)                               # (C, kh*kw, B, Ho, Wo)
    return cols.reshape(C * kh * kw, B * Ho * Wo), (Ho, Wo)


def conv2d_cbhw(x, w, b, stride=1, padding=1, act="relu"):
    """x: (Cin, B, H, W), w: (Cout, Cin, kh, kw), b: (Cout,) -> (Cout, B, Ho, Wo)."""
    Cout, Cin, kh, kw = w.shape
    colsT, (Ho, Wo) = _im2col_cbhw(x, kh, kw, stride, padding)
    out = gemm_nt(w.reshape(Cout, Cin * kh * kw), colsT, b, act=act)  # (Cout, B*Ho*Wo)
    return out.reshape(Cout, x.shape[1], Ho, Wo)


def upsample2x_cbhw(x):
    return jnp.repeat(jnp.repeat(x, 2, axis=2), 2, axis=3)


def repeat_time_cbhw(f, t):
    """(C, B, H, W) -> (C, B*t, H, W) with index b*t + tau (matches torch repeat)."""
    C, B, H, W = f.shape
    return jnp.broadcast_to(f[:, :, None], (C, B, t, H, W)).reshape(C, B * t, H, W)


# ----------------------------------------------------------------------------
# Deterministic synthetic parameters
# ----------------------------------------------------------------------------
def init_params():
    key = jax.random.PRNGKey(42)
    ks = iter(jax.random.split(key, 32))

    def w(shape, scale=0.1):
        return scale * jax.random.normal(next(ks), shape, dtype=jnp.float32)

    def zb(n):
        return jnp.zeros((n,), dtype=jnp.float32)

    return {
        # IdentityEncoder: 3->8 (s2), 8->16 (s2), fc 256->64
        "ie_c1_w": w((8, 3, 3, 3)),   "ie_c1_b": zb(8),
        "ie_c2_w": w((16, 8, 3, 3)),  "ie_c2_b": zb(16),
        "ie_fc_w": w((256, 64)),      "ie_fc_b": zb(64),
        # AudioRNN: per-frame linear 16->32, tanh RNN hidden 32
        "ar_in_w": w((16, 32)),       "ar_in_b": zb(32),
        "ar_wx": w((32, 32)), "ar_wh": w((32, 32)), "ar_b": zb(32),
        # NoiseRNN: tanh RNN 10 -> hidden 16
        "nr_wx": w((10, 16)), "nr_wh": w((16, 16)), "nr_b": zb(16),
        # FrameDecoder: fc 112->256, two upsample+conv stages, output conv
        "fd_fc_w": w((112, 256)),     "fd_fc_b": zb(256),
        "fd_c1_w": w((8, 32, 3, 3)),  "fd_c1_b": zb(8),
        "fd_c2_w": w((8, 16, 3, 3)),  "fd_c2_b": zb(8),
        "fd_out_w": w((3, 8, 3, 3)),  "fd_out_b": zb(3),
    }


# ----------------------------------------------------------------------------
# Generator forward (mirrors PyTorch Generator.forward)
# ----------------------------------------------------------------------------
AUDIO_SAMPLES_PER_FRAME = 16
NOISE_MEAN = 0.0
NOISE_STD = 0.33


def generator_forward(params, images, audios, noise_key):
    B = images.shape[0]
    assert images.shape[0] == audios.shape[0], "batch size mismatch"

    # --- IdentityEncoder (activations channel-major: (C, B, H, W)) -----------
    x = jnp.transpose(images, (1, 0, 2, 3))                          # (3, B, 16, 16)
    f1 = conv2d_cbhw(x, params["ie_c1_w"], params["ie_c1_b"],
                     stride=2, padding=1, act="relu")                # (8, B, 8, 8)
    f2 = conv2d_cbhw(f1, params["ie_c2_w"], params["ie_c2_b"],
                     stride=2, padding=1, act="relu")                # (16, B, 4, 4)
    f2_flat = jnp.transpose(f2, (1, 0, 2, 3)).reshape(B, -1)         # (B, 256) NCHW flatten
    id_feature = linear(f2_flat, params["ie_fc_w"], params["ie_fc_b"],
                        act="relu")                                  # (B, 64)

    # --- AudioRNN + NoiseRNN (single fused Pallas call) -----------------------
    Bc, Ca, L = audios.shape
    T = L // AUDIO_SAMPLES_PER_FRAME
    a_tm = audios.reshape(B, T, Ca * AUDIO_SAMPLES_PER_FRAME).transpose(1, 0, 2)
    noise = NOISE_MEAN + NOISE_STD * jax.random.normal(
        noise_key, (B, T, 10), dtype=jnp.float32)
    noise_tm = noise.transpose(1, 0, 2)
    af_tm, nf_tm = dual_rnn(a_tm, noise_tm, params)                  # (T,B,32), (T,B,16)
    audio_feature = af_tm.transpose(1, 0, 2)                         # (B, T, 32)
    noise_feature = nf_tm.transpose(1, 0, 2)                         # (B, T, 16)

    t = audio_feature.shape[1]
    total_batch = t * B

    # --- Repeat / flatten exactly like the PyTorch forward (row = b*t + tau) --
    id_rep = jnp.repeat(id_feature, t, axis=0)                       # (TB, 64)
    audio_flat = audio_feature.reshape(total_batch, -1)              # (TB, 32)
    noise_flat = noise_feature.reshape(total_batch, -1)              # (TB, 16)
    skip1 = repeat_time_cbhw(f1, t)                                  # (8,  TB, 8, 8)
    skip2 = repeat_time_cbhw(f2, t)                                  # (16, TB, 4, 4)

    # --- FrameDecoder (channel-major end to end) ------------------------------
    z = jnp.concatenate([id_rep, audio_flat, noise_flat], axis=-1)   # (TB, 112)
    h = linear(z, params["fd_fc_w"], params["fd_fc_b"], act="relu")  # (TB, 256)
    h = h.reshape(total_batch, 16, 4, 4).transpose(1, 0, 2, 3)       # (16, TB, 4, 4)
    h = jnp.concatenate([h, skip2], axis=0)                          # (32, TB, 4, 4)
    h = upsample2x_cbhw(h)                                           # (32, TB, 8, 8)
    h = conv2d_cbhw(h, params["fd_c1_w"], params["fd_c1_b"],
                    act="relu")                                      # (8, TB, 8, 8)
    h = jnp.concatenate([h, skip1], axis=0)                          # (16, TB, 8, 8)
    h = upsample2x_cbhw(h)                                           # (16, TB, 16, 16)
    h = conv2d_cbhw(h, params["fd_c2_w"], params["fd_c2_b"],
                    act="relu")                                      # (8, TB, 16, 16)
    out = conv2d_cbhw(h, params["fd_out_w"], params["fd_out_b"],
                      act="sigmoid")                                 # (3, TB, 16, 16)

    # --- (C, B*t, H, W) -> (B, C, t, H, W) ------------------------------------
    C_out = out.shape[0]
    out = out.reshape(C_out, B, t, out.shape[2], out.shape[3])
    out = jnp.transpose(out, (1, 0, 2, 3, 4))
    return out


if __name__ == "__main__":
    key = jax.random.PRNGKey(0)
    k_img, k_aud, k_noise = jax.random.split(key, 3)

    B = 2
    images = jax.random.normal(k_img, (B, 3, 16, 16), dtype=jnp.float32)
    # audio length 128 -> T = 8 frames of 16 samples each
    audios = jax.random.normal(k_aud, (B, 1, 128), dtype=jnp.float32)

    params = init_params()

    fwd = jax.jit(generator_forward)
    out = fwd(params, images, audios, k_noise)
    out = jax.block_until_ready(out)

    assert out.shape == (B, 3, 8, 16, 16), out.shape
    assert out.dtype == jnp.float32
    print("KERNEL_OK")
</pallas_src>

<mosaic_0001>
module attributes {stable_mosaic.version = 11 : i64} {
  func.func @_gemm_bias_act_kernel(%arg0: i32, %arg1: memref<8x27xf32, #tpu.memory_space<vmem>>, %arg2: memref<27x128xf32, #tpu.memory_space<vmem>>, %arg3: memref<8x1xf32, #tpu.memory_space<vmem>>, %arg4: memref<8x128xf32, #tpu.memory_space<vmem>>) attributes {dimension_semantics = [#tpu.dimension_semantics<parallel>], iteration_bounds = array<i64: 1>, scalar_prefetch = 0 : i64, scratch_operands = 0 : i64, tpu.core_type = #tpu.core_type<tc>, window_params = [{pipeline_mode = #tpu.pipeline_mode<synchronous>, transform_indices = @transform_0, window_bounds = array<i64: 8, 27>}, {transform_indices = @transform_1, window_bounds = array<i64: 27, 128>}, {pipeline_mode = #tpu.pipeline_mode<synchronous>, transform_indices = @transform_2, window_bounds = array<i64: 8, 1>}, {transform_indices = @transform_3, window_bounds = array<i64: 8, 128>}]} {
    %c0 = arith.constant 0 : index
    %c0_0 = arith.constant 0 : index
    %0 = vector.load %arg1[%c0, %c0_0] : memref<8x27xf32, #tpu.memory_space<vmem>>, vector<8x27xf32>
    %c0_1 = arith.constant 0 : index
    %c0_2 = arith.constant 0 : index
    %1 = vector.load %arg2[%c0_1, %c0_2] : memref<27x128xf32, #tpu.memory_space<vmem>>, vector<27x128xf32>
    %cst = arith.constant dense<0.000000e+00> : vector<8x128xf32>
    %2 = tpu.matmul %0, %1, %cst {dimension_numbers = #tpu.dot_dimension_numbers<[1], [0], [0], [1], [0, 0, 1, 1], [], []>} : vector<8x27xf32>, vector<27x128xf32>, vector<8x128xf32> -> vector<8x128xf32>
    %c0_3 = arith.constant 0 : index
    %c0_4 = arith.constant 0 : index
    %3 = vector.load %arg3[%c0_3, %c0_4] : memref<8x1xf32, #tpu.memory_space<vmem>>, vector<8x1xf32>
    %4 = vector.broadcast %3 : vector<8x1xf32> to vector<8x128xf32>
    %5 = arith.addf %2, %4 : vector<8x128xf32>
    %cst_5 = arith.constant 0.000000e+00 : f32
    %6 = vector.broadcast %cst_5 : f32 to vector<8x128xf32>
    %7 = arith.maximumf %5, %6 : vector<8x128xf32>
    %c0_6 = arith.constant 0 : index
    %c0_7 = arith.constant 0 : index
    %8 = vector.load %arg4[%c0_6, %c0_7] : memref<8x128xf32, #tpu.memory_space<vmem>>, vector<8x128xf32>
    tpu.vector_store %arg4[%c0_6, %c0_7], %7 {strides = array<i32>} : memref<8x128xf32, #tpu.memory_space<vmem>>, vector<8x128xf32>,
    return
  }
  func.func @transform_0(%arg0: i32) -> (i32, i32) {
    %c0_i32 = arith.constant 0 : i32
    %c0_i32_0 = arith.constant 0 : i32
    %c0_i32_1 = arith.constant 0 : i32
    return %c0_i32, %c0_i32_0 : i32, i32
  }
  func.func @transform_1(%arg0: i32) -> (i32, i32) {
    %c0_i32 = arith.constant 0 : i32
    %c0_i32_0 = arith.constant 0 : i32
    return %c0_i32, %arg0 : i32, i32
  }
  func.func @transform_2(%arg0: i32) -> (i32, i32) {
    %c0_i32 = arith.constant 0 : i32
    %c0_i32_0 = arith.constant 0 : i32
    %c0_i32_1 = arith.constant 0 : i32
    return %c0_i32, %c0_i32_0 : i32, i32
  }
  func.func @transform_3(%arg0: i32) -> (i32, i32) {
    %c0_i32 = arith.constant 0 : i32
    %c0_i32_0 = arith.constant 0 : i32
    return %c0_i32, %arg0 : i32, i32
  }
}

module attributes {stable_mosaic.version = 11 : i64} {
  func.func @_gemm_bias_act_kernel(%arg0: i32, %arg1: memref<16x72xf32, #tpu.memory_space<vmem>>, %arg2: memref<72x32xf32, #tpu.memory_space<vmem>>, %arg3: memref<16x1xf32, #tpu.memory_space<vmem>>, %arg4: memref<16x32xf32, #tpu.memory_space<vmem>>) attributes {dimension_semantics = [#tpu.dimension_semantics<parallel>], iteration_bounds = array<i64: 1>, scalar_prefetch = 0 : i64, scratch_operands = 0 : i64, tpu.core_type = #tpu.core_type<tc>, window_params = [{pipeline_mode = #tpu.pipeline_mode<synchronous>, transform_indices = @transform_0, window_bounds = array<i64: 16, 72>}, {transform_indices = @transform_1, window_bounds = array<i64: 72, 32>}, {pipeline_mode = #tpu.pipeline_mode<synchronous>, transform_indices = @transform_2, window_bounds = array<i64: 16, 1>}, {transform_indices = @transform_3, window_bounds = array<i64: 16, 32>}]} {
    %c0 = arith.constant 0 : index
    %c0_0 = arith.constant 0 : index
    %0 = vector.load %arg1[%c0, %c0_0] : memref<16x72xf32, #tpu.memory_space<vmem>>, vector<16x72xf32>
    %c0_1 = arith.constant 0 : index
    %c0_2 = arith.constant 0 : index
    %1 = vector.load %arg2[%c0_1, %c0_2] : memref<72x32xf32, #tpu.memory_space<vmem>>, vector<72x32xf32>
    %cst = arith.constant dense<0.000000e+00> : vector<16x32xf32>
    %2 = tpu.matmul %0, %1, %cst {dimension_numbers = #tpu.dot_dimension_numbers<[1], [0], [0], [1], [0, 0, 1, 1], [], []>} : vector<16x72xf32>, vector<72x32xf32>, vector<16x32xf32> -> vector<16x32xf32>
    %c0_3 = arith.constant 0 : index
    %c0_4 = arith.constant 0 : index
    %3 = vector.load %arg3[%c0_3, %c0_4] : memref<16x1xf32, #tpu.memory_space<vmem>>, vector<16x1xf32>
    %4 = vector.broadcast %3 : vector<16x1xf32> to vector<16x32xf32>
    %5 = arith.addf %2, %4 : vector<16x32xf32>
    %cst_5 = arith.constant 0.000000e+00 : f32
    %6 = vector.broadcast %cst_5 : f32 to vector<16x32xf32>
    %7 = arith.maximumf %5, %6 : vector<16x32xf32>
    %c0_6 = arith.constant 0 : index
    %c0_7 = arith.constant 0 : index
    %8 = vector.load %arg4[%c0_6, %c0_7] : memref<16x32xf32, #tpu.memory_space<vmem>>, vector<16x32xf32>
    tpu.vector_store %arg4[%c0_6, %c0_7], %7 {strides = array<i32>} : memref<16x32xf32, #tpu.memory_space<vmem>>, vector<16x32xf32>,
    return
  }
  func.func @transform_0(%arg0: i32) -> (i32, i32) {
    %c0_i32 = arith.constant 0 : i32
    %c0_i32_0 = arith.constant 0 : i32
    %c0_i32_1 = arith.constant 0 : i32
    return %c0_i32, %c0_i32_0 : i32, i32
  }
  func.func @transform_1(%arg0: i32) -> (i32, i32) {
    %c0_i32 = arith.constant 0 : i32
    %c0_i32_0 = arith.constant 0 : i32
    return %c0_i32, %arg0 : i32, i32
  }
  func.func @transform_2(%arg0: i32) -> (i32, i32) {
    %c0_i32 = arith.constant 0 : i32
    %c0_i32_0 = arith.constant 0 : i32
    %c0_i32_1 = arith.constant 0 : i32
    return %c0_i32, %c0_i32_0 : i32, i32
  }
  func.func @transform_3(%arg0: i32) -> (i32, i32) {
    %c0_i32 = arith.constant 0 : i32
    %c0_i32_0 = arith.constant 0 : i32
    return %c0_i32, %arg0 : i32, i32
  }
}

module attributes {stable_mosaic.version = 11 : i64} {
  func.func @_gemm_bias_act_kernel(%arg0: i32, %arg1: memref<2x256xf32, #tpu.memory_space<vmem>>, %arg2: memref<256x64xf32, #tpu.memory_space<vmem>>, %arg3: memref<1x64xf32, #tpu.memory_space<vmem>>, %arg4: memref<2x64xf32, #tpu.memory_space<vmem>>) attributes {dimension_semantics = [#tpu.dimension_semantics<arbitrary>], iteration_bounds = array<i64: 1>, scalar_prefetch = 0 : i64, scratch_operands = 0 : i64, tpu.core_type = #tpu.core_type<tc>, window_params = [{pipeline_mode = #tpu.pipeline_mode<synchronous>, transform_indices = @transform_0, window_bounds = array<i64: 2, 256>}, {pipeline_mode = #tpu.pipeline_mode<synchronous>, transform_indices = @transform_1, window_bounds = array<i64: 256, 64>}, {pipeline_mode = #tpu.pipeline_mode<synchronous>, transform_indices = @transform_2, window_bounds = array<i64: 1, 64>}, {pipeline_mode = #tpu.pipeline_mode<synchronous>, transform_indices = @transform_3, window_bounds = array<i64: 2, 64>}]} {
    %c0 = arith.constant 0 : index
    %c0_0 = arith.constant 0 : index
    %0 = vector.load %arg1[%c0, %c0_0] : memref<2x256xf32, #tpu.memory_space<vmem>>, vector<2x256xf32>
    %c0_1 = arith.constant 0 : index
    %c0_2 = arith.constant 0 : index
    %1 = vector.load %arg2[%c0_1, %c0_2] : memref<256x64xf32, #tpu.memory_space<vmem>>, vector<256x64xf32>
    %cst = arith.constant dense<0.000000e+00> : vector<2x64xf32>
    %2 = tpu.matmul %0, %1, %cst {dimension_numbers = #tpu.dot_dimension_numbers<[1], [0], [0], [1], [0, 0, 1, 1], [], []>} : vector<2x256xf32>, vector<256x64xf32>, vector<2x64xf32> -> vector<2x64xf32>
    %c0_3 = arith.constant 0 : index
    %c0_4 = arith.constant 0 : index
    %3 = vector.load %arg3[%c0_3, %c0_4] : memref<1x64xf32, #tpu.memory_space<vmem>>, vector<1x64xf32>
    %4 = vector.broadcast %3 : vector<1x64xf32> to vector<2x64xf32>
    %5 = arith.addf %2, %4 : vector<2x64xf32>
    %cst_5 = arith.constant 0.000000e+00 : f32
    %6 = vector.broadcast %cst_5 : f32 to vector<2x64xf32>
    %7 = arith.maximumf %5, %6 : vector<2x64xf32>
    %c0_6 = arith.constant 0 : index
    %c0_7 = arith.constant 0 : index
    %8 = vector.load %arg4[%c0_6, %c0_7] : memref<2x64xf32, #tpu.memory_space<vmem>>, vector<2x64xf32>
    tpu.vector_store %arg4[%c0_6, %c0_7], %7 {strides = array<i32>} : memref<2x64xf32, #tpu.memory_space<vmem>>, vector<2x64xf32>,
    return
  }
  func.func @transform_0(%arg0: i32) -> (i32, i32) {
    %c0_i32 = arith.constant 0 : i32
    %c0_i32_0 = arith.constant 0 : i32
    %c0_i32_1 = arith.constant 0 : i32
    return %c0_i32, %c0_i32_0 : i32, i32
  }
  func.func @transform_1(%arg0: i32) -> (i32, i32) {
    %c0_i32 = arith.constant 0 : i32
    %c0_i32_0 = arith.constant 0 : i32
    %c0_i32_1 = arith.constant 0 : i32
    return %c0_i32, %c0_i32_0 : i32, i32
  }
  func.func @transform_2(%arg0: i32) -> (i32, i32) {
    %c0_i32 = arith.constant 0 : i32
    %c0_i32_0 = arith.constant 0 : i32
    %c0_i32_1 = arith.constant 0 : i32
    return %c0_i32, %c0_i32_0 : i32, i32
  }
  func.func @transform_3(%arg0: i32) -> (i32, i32) {
    %c0_i32 = arith.constant 0 : i32
    %c0_i32_0 = arith.constant 0 : i32
    %c0_i32_1 = arith.constant 0 : i32
    return %c0_i32, %c0_i32_0 : i32, i32
  }
}

module attributes {stable_mosaic.version = 11 : i64} {
  func.func @_dual_rnn_kernel(%arg0: i32, %arg1: memref<8x2x16xf32, #tpu.memory_space<vmem>>, %arg2: memref<8x2x10xf32, #tpu.memory_space<vmem>>, %arg3: memref<16x32xf32, #tpu.memory_space<vmem>>, %arg4: memref<1x32xf32, #tpu.memory_space<vmem>>, %arg5: memref<32x32xf32, #tpu.memory_space<vmem>>, %arg6: memref<32x32xf32, #tpu.memory_space<vmem>>, %arg7: memref<1x32xf32, #tpu.memory_space<vmem>>, %arg8: memref<10x16xf32, #tpu.memory_space<vmem>>, %arg9: memref<16x16xf32, #tpu.memory_space<vmem>>, %arg10: memref<1x16xf32, #tpu.memory_space<vmem>>, %arg11: memref<8x2x32xf32, #tpu.memory_space<vmem>>, %arg12: memref<8x2x16xf32, #tpu.memory_space<vmem>>) attributes {dimension_semantics = [#tpu.dimension_semantics<arbitrary>], iteration_bounds = array<i64: 1>, scalar_prefetch = 0 : i64, scratch_operands = 0 : i64, tpu.core_type = #tpu.core_type<tc>, window_params = [{pipeline_mode = #tpu.pipeline_mode<synchronous>, transform_indices = @transform_0, window_bounds = array<i64: 8, 2, 16>}, {pipeline_mode = #tpu.pipeline_mode<synchronous>, transform_indices = @transform_1, window_bounds = array<i64: 8, 2, 10>}, {pipeline_mode = #tpu.pipeline_mode<synchronous>, transform_indices = @transform_2, window_bounds = array<i64: 16, 32>}, {pipeline_mode = #tpu.pipeline_mode<synchronous>, transform_indices = @transform_3, window_bounds = array<i64: 1, 32>}, {pipeline_mode = #tpu.pipeline_mode<synchronous>, transform_indices = @transform_4, window_bounds = array<i64: 32, 32>}, {pipeline_mode = #tpu.pipeline_mode<synchronous>, transform_indices = @transform_5, window_bounds = array<i64: 32, 32>}, {pipeline_mode = #tpu.pipeline_mode<synchronous>, transform_indices = @transform_6, window_bounds = array<i64: 1, 32>}, {pipeline_mode = #tpu.pipeline_mode<synchronous>, transform_indices = @transform_7, window_bounds = array<i64: 10, 16>}, {pipeline_mode = #tpu.pipeline_mode<synchronous>, transform_indices = @transform_8, window_bounds = array<i64: 16, 16>}, {pipeline_mode = #tpu.pipeline_mode<synchronous>, transform_indices = @transform_9, window_bounds = array<i64: 1, 16>}, {pipeline_mode = #tpu.pipeline_mode<synchronous>, transform_indices = @transform_10, window_bounds = array<i64: 8, 2, 32>}, {pipeline_mode = #tpu.pipeline_mode<synchronous>, transform_indices = @transform_11, window_bounds = array<i64: 8, 2, 16>}]} {
    %c0 = arith.constant 0 : index
    %c0_0 = arith.constant 0 : index
    %0 = vector.load %arg3[%c0, %c0_0] : memref<16x32xf32, #tpu.memory_space<vmem>>, vector<16x32xf32>
    %c0_1 = arith.constant 0 : index
    %c0_2 = arith.constant 0 : index
    %1 = vector.load %arg4[%c0_1, %c0_2] : memref<1x32xf32, #tpu.memory_space<vmem>>, vector<1x32xf32>
    %c0_3 = arith.constant 0 : index
    %c0_4 = arith.constant 0 : index
    %2 = vector.load %arg5[%c0_3, %c0_4] : memref<32x32xf32, #tpu.memory_space<vmem>>, vector<32x32xf32>
    %c0_5 = arith.constant 0 : index
    %c0_6 = arith.constant 0 : index
    %3 = vector.load %arg6[%c0_5, %c0_6] : memref<32x32xf32, #tpu.memory_space<vmem>>, vector<32x32xf32>
    %c0_7 = arith.constant 0 : index
    %c0_8 = arith.constant 0 : index
    %4 = vector.load %arg7[%c0_7, %c0_8] : memref<1x32xf32, #tpu.memory_space<vmem>>, vector<1x32xf32>
    %c0_9 = arith.constant 0 : index
    %c0_10 = arith.constant 0 : index
    %5 = vector.load %arg8[%c0_9, %c0_10] : memref<10x16xf32, #tpu.memory_space<vmem>>, vector<10x16xf32>
    %c0_11 = arith.constant 0 : index
    %c0_12 = arith.constant 0 : index
    %6 = vector.load %arg9[%c0_11, %c0_12] : memref<16x16xf32, #tpu.memory_space<vmem>>, vector<16x16xf32>
    %c0_13 = arith.constant 0 : index
    %c0_14 = arith.constant 0 : index
    %7 = vector.load %arg10[%c0_13, %c0_14] : memref<1x16xf32, #tpu.memory_space<vmem>>, vector<1x16xf32>
    %cst = arith.constant 0.000000e+00 : f32
    %8 = vector.broadcast %cst : f32 to vector<2x32xf32>
    %cst_15 = arith.constant 0.000000e+00 : f32
    %9 = vector.broadcast %cst_15 : f32 to vector<2x16xf32>
    %c0_16 = arith.constant 0 : index
    %c0_17 = arith.constant 0 : index
    %c0_18 = arith.constant 0 : index
    %10 = vector.load %arg1[%c0_16, %c0_17, %c0_18] : memref<8x2x16xf32, #tpu.memory_space<vmem>>, vector<1x2x16xf32>
    %11 = vector.shape_cast %10 : vector<1x2x16xf32> to vector<2x16xf32>
    %cst_19 = arith.constant dense<0.000000e+00> : vector<2x32xf32>
    %12 = tpu.matmul %11, %0, %cst_19 {dimension_numbers = #tpu.dot_dimension_numbers<[1], [0], [0], [1], [0, 0, 1, 1], [], []>} : vector<2x16xf32>, vector<16x32xf32>, vector<2x32xf32> -> vector<2x32xf32>
    %13 = vector.broadcast %1 : vector<1x32xf32> to vector<2x32xf32>
    %14 = arith.addf %12, %13 : vector<2x32xf32>
    %cst_20 = arith.constant 0.000000e+00 : f32
    %15 = vector.broadcast %cst_20 : f32 to vector<2x32xf32>
    %16 = arith.maximumf %14, %15 : vector<2x32xf32>
    %cst_21 = arith.constant dense<0.000000e+00> : vector<2x32xf32>
    %17 = tpu.matmul %16, %2, %cst_21 {dimension_numbers = #tpu.dot_dimension_numbers<[1], [0], [0], [1], [0, 0, 1, 1], [], []>} : vector<2x32xf32>, vector<32x32xf32>, vector<2x32xf32> -> vector<2x32xf32>
    %cst_22 = arith.constant dense<0.000000e+00> : vector<2x32xf32>
    %18 = tpu.matmul %8, %3, %cst_22 {dimension_numbers = #tpu.dot_dimension_numbers<[1], [0], [0], [1], [0, 0, 1, 1], [], []>} : vector<2x32xf32>, vector<32x32xf32>, vector<2x32xf32> -> vector<2x32xf32>
    %19 = arith.addf %17, %18 : vector<2x32xf32>
    %20 = vector.broadcast %4 : vector<1x32xf32> to vector<2x32xf32>
    %21 = arith.addf %19, %20 : vector<2x32xf32>
    %22 = math.tanh %21 : vector<2x32xf32>
    %c0_23 = arith.constant 0 : index
    %c0_24 = arith.constant 0 : index
    %c0_25 = arith.constant 0 : index
    %23 = vector.load %arg11[%c0_23, %c0_24, %c0_25] : memref<8x2x32xf32, #tpu.memory_space<vmem>>, vector<1x2x32xf32>
    %24 = vector.shape_cast %23 : vector<1x2x32xf32> to vector<2x32xf32>
    %25 = vector.shape_cast %22 : vector<2x32xf32> to vector<1x2x32xf32>
    tpu.vector_store %arg11[%c0_23, %c0_24, %c0_25], %25 {strides = array<i32>} : memref<8x2x32xf32, #tpu.memory_space<vmem>>, vector<1x2x32xf32>,
    %c0_26 = arith.constant 0 : index
    %c0_27 = arith.constant 0 : index
    %c0_28 = arith.constant 0 : index
    %26 = vector.load %arg2[%c0_26, %c0_27, %c0_28] : memref<8x2x10xf32, #tpu.memory_space<vmem>>, vector<1x2x10xf32>
    %27 = vector.shape_cast %26 : vector<1x2x10xf32> to vector<2x10xf32>
    %cst_29 = arith.constant dense<0.000000e+00> : vector<2x16xf32>
    %28 = tpu.matmul %27, %5, %cst_29 {dimension_numbers = #tpu.dot_dimension_numbers<[1], [0], [0], [1], [0, 0, 1, 1], [], []>} : vector<2x10xf32>, vector<10x16xf32>, vector<2x16xf32> -> vector<2x16xf32>
    %cst_30 = arith.constant dense<0.000000e+00> : vector<2x16xf32>
    %29 = tpu.matmul %9, %6, %cst_30 {dimension_numbers = #tpu.dot_dimension_numbers<[1], [0], [0], [1], [0, 0, 1, 1], [], []>} : vector<2x16xf32>, vector<16x16xf32>, vector<2x16xf32> -> vector<2x16xf32>
    %30 = arith.addf %28, %29 : vector<2x16xf32>
    %31 = vector.broadcast %7 : vector<1x16xf32> to vector<2x16xf32>
    %32 = arith.addf %30, %31 : vector<2x16xf32>
    %33 = math.tanh %32 : vector<2x16xf32>
    %c0_31 = arith.constant 0 : index
    %c0_32 = arith.constant 0 : index
    %c0_33 = arith.constant 0 : index
    %34 = vector.load %arg12[%c0_31, %c0_32, %c0_33] : memref<8x2x16xf32, #tpu.memory_space<vmem>>, vector<1x2x16xf32>
    %35 = vector.shape_cast %34 : vector<1x2x16xf32> to vector<2x16xf32>
    %36 = vector.shape_cast %33 : vector<2x16xf32> to vector<1x2x16xf32>
    tpu.vector_store %arg12[%c0_31, %c0_32, %c0_33], %36 {strides = array<i32>} : memref<8x2x16xf32, #tpu.memory_space<vmem>>, vector<1x2x16xf32>,
    %c1 = arith.constant 1 : index
    %c0_34 = arith.constant 0 : index
    %c0_35 = arith.constant 0 : index
    %37 = vector.load %arg1[%c1, %c0_34, %c0_35] : memref<8x2x16xf32, #tpu.memory_space<vmem>>, vector<1x2x16xf32>
    %38 = vector.shape_cast %37 : vector<1x2x16xf32> to vector<2x16xf32>
    %cst_36 = arith.constant dense<0.000000e+00> : vector<2x32xf32>
    %39 = tpu.matmul %38, %0, %cst_36 {dimension_numbers = #tpu.dot_dimension_numbers<[1], [0], [0], [1], [0, 0, 1, 1], [], []>} : vector<2x16xf32>, vector<16x32xf32>, vector<2x32xf32> -> vector<2x32xf32>
    %40 = vector.broadcast %1 : vector<1x32xf32> to vector<2x32xf32>
    %41 = arith.addf %39, %40 : vector<2x32xf32>
    %cst_37 = arith.constant 0.000000e+00 : f32
    %42 = vector.broadcast %cst_37 : f32 to vector<2x32xf32>
    %43 = arith.maximumf %41, %42 : vector<2x32xf32>
    %cst_38 = arith.constant dense<0.000000e+00> : vector<2x32xf32>
    %44 = tpu.matmul %43, %2, %cst_38 {dimension_numbers = #tpu.dot_dimension_numbers<[1], [0], [0], [1], [0, 0, 1, 1], [], []>} : vector<2x32xf32>, vector<32x32xf32>, vector<2x32xf32> -> vector<2x32xf32>
    %cst_39 = arith.constant dense<0.000000e+00> : vector<2x32xf32>
    %45 = tpu.matmul %22, %3, %cst_39 {dimension_numbers = #tpu.dot_dimension_numbers<[1], [0], [0], [1], [0, 0, 1, 1], [], []>} : vector<2x32xf32>, vector<32x32xf32>, vector<2x32xf32> -> vector<2x32xf32>
    %46 = arith.addf %44, %45 : vector<2x32xf32>
    %47 = vector.broadcast %4 : vector<1x32xf32> to vector<2x32xf32>
    %48 = arith.addf %46, %47 : vector<2x32xf32>
    %49 = math.tanh %48 : vector<2x32xf32>
    %c1_40 = arith.constant 1 : index
    %c0_41 = arith.constant 0 : index
    %c0_42 = arith.constant 0 : index
    %50 = vector.load %arg11[%c1_40, %c0_41, %c0_42] : memref<8x2x32xf32, #tpu.memory_space<vmem>>, vector<1x2x32xf32>
    %51 = vector.shape_cast %50 : vector<1x2x32xf32> to vector<2x32xf32>
    %52 = vector.shape_cast %49 : vector<2x32xf32> to vector<1x2x32xf32>
    tpu.vector_store %arg11[%c1_40, %c0_41, %c0_42], %52 {strides = array<i32>} : memref<8x2x32xf32, #tpu.memory_space<vmem>>, vector<1x2x32xf32>,
    %c1_43 = arith.constant 1 : index
    %c0_44 = arith.constant 0 : index
    %c0_45 = arith.constant 0 : index
    %53 = vector.load %arg2[%c1_43, %c0_44, %c0_45] : memref<8x2x10xf32, #tpu.memory_space<vmem>>, vector<1x2x10xf32>
    %54 = vector.shape_cast %53 : vector<1x2x10xf32> to vector<2x10xf32>
    %cst_46 = arith.constant dense<0.000000e+00> : vector<2x16xf32>
    %55 = tpu.matmul %54, %5, %cst_46 {dimension_numbers = #tpu.dot_dimension_numbers<[1], [0], [0], [1], [0, 0, 1, 1], [], []>} : vector<2x10xf32>, vector<10x16xf32>, vector<2x16xf32> -> vector<2x16xf32>
    %cst_47 = arith.constant dense<0.000000e+00> : vector<2x16xf32>
    %56 = tpu.matmul %33, %6, %cst_47 {dimension_numbers = #tpu.dot_dimension_numbers<[1], [0], [0], [1], [0, 0, 1, 1], [], []>} : vector<2x16xf32>, vector<16x16xf32>, vector<2x16xf32> -> vector<2x16xf32>
    %57 = arith.addf %55, %56 : vector<2x16xf32>
    %58 = vector.broadcast %7 : vector<1x16xf32> to vector<2x16xf32>
    %59 = arith.addf %57, %58 : vector<2x16xf32>
    %60 = math.tanh %59 : vector<2x16xf32>
    %c1_48 = arith.constant 1 : index
    %c0_49 = arith.constant 0 : index
    %c0_50 = arith.constant 0 : index
    %61 = vector.load %arg12[%c1_48, %c0_49, %c0_50] : memref<8x2x16xf32, #tpu.memory_space<vmem>>, vector<1x2x16xf32>
    %62 = vector.shape_cast %61 : vector<1x2x16xf32> to vector<2x16xf32>
    %63 = vector.shape_cast %60 : vector<2x16xf32> to vector<1x2x16xf32>
    tpu.vector_store %arg12[%c1_48, %c0_49, %c0_50], %63 {strides = array<i32>} : memref<8x2x16xf32, #tpu.memory_space<vmem>>, vector<1x2x16xf32>,
    %c2 = arith.constant 2 : index
    %c0_51 = arith.constant 0 : index
    %c0_52 = arith.constant 0 : index
    %64 = vector.load %arg1[%c2, %c0_51, %c0_52] : memref<8x2x16xf32, #tpu.memory_space<vmem>>, vector<1x2x16xf32>
    %65 = vector.shape_cast %64 : vector<1x2x16xf32> to vector<2x16xf32>
    %cst_53 = arith.constant dense<0.000000e+00> : vector<2x32xf32>
    %66 = tpu.matmul %65, %0, %cst_53 {dimension_numbers = #tpu.dot_dimension_numbers<[1], [0], [0], [1], [0, 0, 1, 1], [], []>} : vector<2x16xf32>, vector<16x32xf32>, vector<2x32xf32> -> vector<2x32xf32>
    %67 = vector.broadcast %1 : vector<1x32xf32> to vector<2x32xf32>
    %68 = arith.addf %66, %67 : vector<2x32xf32>
    %cst_54 = arith.constant 0.000000e+00 : f32
    %69 = vector.broadcast %cst_54 : f32 to vector<2x32xf32>
    %70 = arith.maximumf %68, %69 : vector<2x32xf32>
    %cst_55 = arith.constant dense<0.000000e+00> : vector<2x32xf32>
    %71 = tpu.matmul %70, %2, %cst_55 {dimension_numbers = #tpu.dot_dimension_numbers<[1], [0], [0], [1], [0, 0, 1, 1], [], []>} : vector<2x32xf32>, vector<32x32xf32>, vector<2x32xf32> -> vector<2x32xf32>
    %cst_56 = arith.constant dense<0.000000e+00> : vector<2x32xf32>
    %72 = tpu.matmul %49, %3, %cst_56 {dimension_numbers = #tpu.dot_dimension_numbers<[1], [0], [0], [1], [0, 0, 1, 1], [], []>} : vector<2x32xf32>, vector<32x32xf32>, vector<2x32xf32> -> vector<2x32xf32>
    %73 = arith.addf %71, %72 : vector<2x32xf32>
    %74 = vector.broadcast %4 : vector<1x32xf32> to vector<2x32xf32>
    %75 = arith.addf %73, %74 : vector<2x32xf32>
    %76 = math.tanh %75 : vector<2x32xf32>
    %c2_57 = arith.constant 2 : index
    %c0_58 = arith.constant 0 : index
    %c0_59 = arith.constant 0 : index
    %77 = vector.load %arg11[%c2_57, %c0_58, %c0_59] : memref<8x2x32xf32, #tpu.memory_space<vmem>>, vector<1x2x32xf32>
    %78 = vector.shape_cast %77 : vector<1x2x32xf32> to vector<2x32xf32>
    %79 = vector.shape_cast %76 : vector<2x32xf32> to vector<1x2x32xf32>
    tpu.vector_store %arg11[%c2_57, %c0_58, %c0_59], %79 {strides = array<i32>} : memref<8x2x32xf32, #tpu.memory_space<vmem>>, vector<1x2x32xf32>,
    %c2_60 = arith.constant 2 : index
    %c0_61 = arith.constant 0 : index
    %c0_62 = arith.constant 0 : index
    %80 = vector.load %arg2[%c2_60, %c0_61, %c0_62] : memref<8x2x10xf32, #tpu.memory_space<vmem>>, vector<1x2x10xf32>
    %81 = vector.shape_cast %80 : vector<1x2x10xf32> to vector<2x10xf32>
    %cst_63 = arith.constant dense<0.000000e+00> : vector<2x16xf32>
    %82 = tpu.matmul %81, %5, %cst_63 {dimension_numbers = #tpu.dot_dimension_numbers<[1], [0], [0], [1], [0, 0, 1, 1], [], []>} : vector<2x10xf32>, vector<10x16xf32>, vector<2x16xf32> -> vector<2x16xf32>
    %cst_64 = arith.constant dense<0.000000e+00> : vector<2x16xf32>
    %83 = tpu.matmul %60, %6, %cst_64 {dimension_numbers = #tpu.dot_dimension_numbers<[1], [0], [0], [1], [0, 0, 1, 1], [], []>} : vector<2x16xf32>, vector<16x16xf32>, vector<2x16xf32> -> vector<2x16xf32>
    %84 = arith.addf %82, %83 : vector<2x16xf32>
    %85 = vector.broadcast %7 : vector<1x16xf32> to vector<2x16xf32>
    %86 = arith.addf %84, %85 : vector<2x16xf32>
    %87 = math.tanh %86 : vector<2x16xf32>
    %c2_65 = arith.constant 2 : index
    %c0_66 = arith.constant 0 : index
    %c0_67 = arith.constant 0 : index
    %88 = vector.load %arg12[%c2_65, %c0_66, %c0_67] : memref<8x2x16xf32, #tpu.memory_space<vmem>>, vector<1x2x16xf32>
    %89 = vector.shape_cast %88 : vector<1x2x16xf32> to vector<2x16xf32>
    %90 = vector.shape_cast %87 : vector<2x16xf32> to vector<1x2x16xf32>
    tpu.vector_store %arg12[%c2_65, %c0_66, %c0_67], %90 {strides = array<i32>} : memref<8x2x16xf32, #tpu.memory_space<vmem>>, vector<1x2x16xf32>,
    %c3 = arith.constant 3 : index
    %c0_68 = arith.constant 0 : index
    %c0_69 = arith.constant 0 : index
    %91 = vector.load %arg1[%c3, %c0_68, %c0_69] : memref<8x2x16xf32, #tpu.memory_space<vmem>>, vector<1x2x16xf32>
    %92 = vector.shape_cast %91 : vector<1x2x16xf32> to vector<2x16xf32>
    %cst_70 = arith.constant dense<0.000000e+00> : vector<2x32xf32>
    %93 = tpu.matmul %92, %0, %cst_70 {dimension_numbers = #tpu.dot_dimension_numbers<[1], [0], [0], [1], [0, 0, 1, 1], [], []>} : vector<2x16xf32>, vector<16x32xf32>, vector<2x32xf32> -> vector<2x32xf32>
    %94 = vector.broadcast %1 : vector<1x32xf32> to vector<2x32xf32>
    %95 = arith.addf %93, %94 : vector<2x32xf32>
    %cst_71 = arith.constant 0.000000e+00 : f32
    %96 = vector.broadcast %cst_71 : f32 to vector<2x32xf32>
    %97 = arith.maximumf %95, %96 : vector<2x32xf32>
    %cst_72 = arith.constant dense<0.000000e+00> : vector<2x32xf32>
    %98 = tpu.matmul %97, %2, %cst_72 {dimension_numbers = #tpu.dot_dimension_numbers<[1], [0], [0], [1], [0, 0, 1, 1], [], []>} : vector<2x32xf32>, vector<32x32xf32>, vector<2x32xf32> -> vector<2x32xf32>
    %cst_73 = arith.constant dense<0.000000e+00> : vector<2x32xf32>
    %99 = tpu.matmul %76, %3, %cst_73 {dimension_numbers = #tpu.dot_dimension_numbers<[1], [0], [0], [1], [0, 0, 1, 1], [], []>} : vector<2x32xf32>, vector<32x32xf32>, vector<2x32xf32> -> vector<2x32xf32>
    %100 = arith.addf %98, %99 : vector<2x32xf32>
    %101 = vector.broadcast %4 : vector<1x32xf32> to vector<2x32xf32>
    %102 = arith.addf %100, %101 : vector<2x32xf32>
    %103 = math.tanh %102 : vector<2x32xf32>
    %c3_74 = arith.constant 3 : index
    %c0_75 = arith.constant 0 : index
    %c0_76 = arith.constant 0 : index
    %104 = vector.load %arg11[%c3_74, %c0_75, %c0_76] : memref<8x2x32xf32, #tpu.memory_space<vmem>>, vector<1x2x32xf32>
    %105 = vector.shape_cast %104 : vector<1x2x32xf32> to vector<2x32xf32>
    %106 = vector.shape_cast %103 : vector<2x32xf32> to vector<1x2x32xf32>
    tpu.vector_store %arg11[%c3_74, %c0_75, %c0_76], %106 {strides = array<i32>} : memref<8x2x32xf32, #tpu.memory_space<vmem>>, vector<1x2x32xf32>,
    %c3_77 = arith.constant 3 : index
    %c0_78 = arith.constant 0 : index
    %c0_79 = arith.constant 0 : index
    %107 = vector.load %arg2[%c3_77, %c0_78, %c0_79] : memref<8x2x10xf32, #tpu.memory_space<vmem>>, vector<1x2x10xf32>
    %108 = vector.shape_cast %107 : vector<1x2x10xf32> to vector<2x10xf32>
    %cst_80 = arith.constant dense<0.000000e+00> : vector<2x16xf32>
    %109 = tpu.matmul %108, %5, %cst_80 {dimension_numbers = #tpu.dot_dimension_numbers<[1], [0], [0], [1], [0, 0, 1, 1], [], []>} : vector<2x10xf32>, vector<10x16xf32>, vector<2x16xf32> -> vector<2x16xf32>
    %cst_81 = arith.constant dense<0.000000e+00> : vector<2x16xf32>
    %110 = tpu.matmul %87, %6, %cst_81 {dimension_numbers = #tpu.dot_dimension_numbers<[1], [0], [0], [1], [0, 0, 1, 1], [], []>} : vector<2x16xf32>, vector<16x16xf32>, vector<2x16xf32> -> vector<2x16xf32>
    %111 = arith.addf %109, %110 : vector<2x16xf32>
    %112 = vector.broadcast %7 : vector<1x16xf32> to vector<2x16xf32>
    %113 = arith.addf %111, %112 : vector<2x16xf32>
    %114 = math.tanh %113 : vector<2x16xf32>
    %c3_82 = arith.constant 3 : index
    %c0_83 = arith.constant 0 : index
    %c0_84 = arith.constant 0 : index
    %115 = vector.load %arg12[%c3_82, %c0_83, %c0_84] : memref<8x2x16xf32, #tpu.memory_space<vmem>>, vector<1x2x16xf32>
    %116 = vector.shape_cast %115 : vector<1x2x16xf32> to vector<2x16xf32>
    %117 = vector.shape_cast %114 : vector<2x16xf32> to vector<1x2x16xf32>
    tpu.vector_store %arg12[%c3_82, %c0_83, %c0_84], %117 {strides = array<i32>} : memref<8x2x16xf32, #tpu.memory_space<vmem>>, vector<1x2x16xf32>,
    %c4 = arith.constant 4 : index
    %c0_85 = arith.constant 0 : index
    %c0_86 = arith.constant 0 : index
    %118 = vector.load %arg1[%c4, %c0_85, %c0_86] : memref<8x2x16xf32, #tpu.memory_space<vmem>>, vector<1x2x16xf32>
    %119 = vector.shape_cast %118 : vector<1x2x16xf32> to vector<2x16xf32>
    %cst_87 = arith.constant dense<0.000000e+00> : vector<2x32xf32>
    %120 = tpu.matmul %119, %0, %cst_87 {dimension_numbers = #tpu.dot_dimension_numbers<[1], [0], [0], [1], [0, 0, 1, 1], [], []>} : vector<2x16xf32>, vector<16x32xf32>, vector<2x32xf32> -> vector<2x32xf32>
    %121 = vector.broadcast %1 : vector<1x32xf32> to vector<2x32xf32>
    %122 = arith.addf %120, %121 : vector<2x32xf32>
    %cst_88 = arith.constant 0.000000e+00 : f32
    %123 = vector.broadcast %cst_88 : f32 to vector<2x32xf32>
    %124 = arith.maximumf %122, %123 : vector<2x32xf32>
    %cst_89 = arith.constant dense<0.000000e+00> : vector<2x32xf32>
    %125 = tpu.matmul %124, %2, %cst_89 {dimension_numbers = #tpu.dot_dimension_numbers<[1], [0], [0], [1], [0, 0, 1, 1], [], []>} : vector<2x32xf32>, vector<32x32xf32>, vector<2x32xf32> -> vector<2x32xf32>
    %cst_90 = arith.constant dense<0.000000e+00> : vector<2x32xf32>
    %126 = tpu.matmul %103, %3, %cst_90 {dimension_numbers = #tpu.dot_dimension_numbers<[1], [0], [0], [1], [0, 0, 1, 1], [], []>} : vector<2x32xf32>, vector<32x32xf32>, vector<2x32xf32> -> vector<2x32xf32>
    %127 = arith.addf %125, %126 : vector<2x32xf32>
    %128 = vector.broadcast %4 : vector<1x32xf32> to vector<2x32xf32>
    %129 = arith.addf %127, %128 : vector<2x32xf32>
    %130 = math.tanh %129 : vector<2x32xf32>
    %c4_91 = arith.constant 4 : index
    %c0_92 = arith.constant 0 : index
    %c0_93 = arith.constant 0 : index
    %131 = vector.load %arg11[%c4_91, %c0_92, %c0_93] : memref<8x2x32xf32, #tpu.memory_space<vmem>>, vector<1x2x32xf32>
    %132 = vector.shape_cast %131 : vector<1x2x32xf32> to vector<2x32xf32>
    %133 = vector.shape_cast %130 : vector<2x32xf32> to vector<1x2x32xf32>
    tpu.vector_store %arg11[%c4_91, %c0_92, %c0_93], %133 {strides = array<i32>} : memref<8x2x32xf32, #tpu.memory_space<vmem>>, vector<1x2x32xf32>,
    %c4_94 = arith.constant 4 : index
    %c0_95 = arith.constant 0 : index
    %c0_96 = arith.constant 0 : index
    %134 = vector.load %arg2[%c4_94, %c0_95, %c0_96] : memref<8x2x10xf32, #tpu.memory_space<vmem>>, vector<1x2x10xf32>
    %135 = vector.shape_cast %134 : vector<1x2x10xf32> to vector<2x10xf32>
    %cst_97 = arith.constant dense<0.000000e+00> : vector<2x16xf32>
    %136 = tpu.matmul %135, %5, %cst_97 {dimension_numbers = #tpu.dot_dimension_numbers<[1], [0], [0], [1], [0, 0, 1, 1], [], []>} : vector<2x10xf32>, vector<10x16xf32>, vector<2x16xf32> -> vector<2x16xf32>
    %cst_98 = arith.constant dense<0.000000e+00> : vector<2x16xf32>
    %137 = tpu.matmul %114, %6, %cst_98 {dimension_numbers = #tpu.dot_dimension_numbers<[1], [0], [0], [1], [0, 0, 1, 1], [], []>} : vector<2x16xf32>, vector<16x16xf32>, vector<2x16xf32> -> vector<2x16xf32>
    %138 = arith.addf %136, %137 : vector<2x16xf32>
    %139 = vector.broadcast %7 : vector<1x16xf32> to vector<2x16xf32>
    %140 = arith.addf %138, %139 : vector<2x16xf32>
    %141 = math.tanh %140 : vector<2x16xf32>
    %c4_99 = arith.constant 4 : index
    %c0_100 = arith.constant 0 : index
    %c0_101 = arith.constant 0 : index
    %142 = vector.load %arg12[%c4_99, %c0_100, %c0_101] : memref<8x2x16xf32, #tpu.memory_space<vmem>>, vector<1x2x16xf32>
    %143 = vector.shape_cast %142 : vector<1x2x16xf32> to vector<2x16xf32>
    %144 = vector.shape_cast %141 : vector<2x16xf32> to vector<1x2x16xf32>
    tpu.vector_store %arg12[%c4_99, %c0_100, %c0_101], %144 {strides = array<i32>} : memref<8x2x16xf32, #tpu.memory_space<vmem>>, vector<1x2x16xf32>,
    %c5 = arith.constant 5 : index
    %c0_102 = arith.constant 0 : index
    %c0_103 = arith.constant 0 : index
    %145 = vector.load %arg1[%c5, %c0_102, %c0_103] : memref<8x2x16xf32, #tpu.memory_space<vmem>>, vector<1x2x16xf32>
    %146 = vector.shape_cast %145 : vector<1x2x16xf32> to vector<2x16xf32>
    %cst_104 = arith.constant dense<0.000000e+00> : vector<2x32xf32>
    %147 = tpu.matmul %146, %0, %cst_104 {dimension_numbers = #tpu.dot_dimension_numbers<[1], [0], [0], [1], [0, 0, 1, 1], [], []>} : vector<2x16xf32>, vector<16x32xf32>, vector<2x32xf32> -> vector<2x32xf32>
    %148 = vector.broadcast %1 : vector<1x32xf32> to vector<2x32xf32>
    %149 = arith.addf %147, %148 : vector<2x32xf32>
    %cst_105 = arith.constant 0.000000e+00 : f32
    %150 = vector.broadcast %cst_105 : f32 to vector<2x32xf32>
    %151 = arith.maximumf %149, %150 : vector<2x32xf32>
    %cst_106 = arith.constant dense<0.000000e+00> : vector<2x32xf32>
    %152 = tpu.matmul %151, %2, %cst_106 {dimension_numbers = #tpu.dot_dimension_numbers<[1], [0], [0], [1], [0, 0, 1, 1], [], []>} : vector<2x32xf32>, vector<32x32xf32>, vector<2x32xf32> -> vector<2x32xf32>
    %cst_107 = arith.constant dense<0.000000e+00> : vector<2x32xf32>
    %153 = tpu.matmul %130, %3, %cst_107 {dimension_numbers = #tpu.dot_dimension_numbers<[1], [0], [0], [1], [0, 0, 1, 1], [], []>} : vector<2x32xf32>, vector<32x32xf32>, vector<2x32xf32> -> vector<2x32xf32>
    %154 = arith.addf %152, %153 : vector<2x32xf32>
    %155 = vector.broadcast %4 : vector<1x32xf32> to vector<2x32xf32>
    %156 = arith.addf %154, %155 : vector<2x32xf32>
    %157 = math.tanh %156 : vector<2x32xf32>
    %c5_108 = arith.constant 5 : index
    %c0_109 = arith.constant 0 : index
    %c0_110 = arith.constant 0 : index
    %158 = vector.load %arg11[%c5_108, %c0_109, %c0_110] : memref<8x2x32xf32, #tpu.memory_space<vmem>>, vector<1x2x32xf32>
    %159 = vector.shape_cast %158 : vector<1x2x32xf32> to vector<2x32xf32>
    %160 = vector.shape_cast %157 : vector<2x32xf32> to vector<1x2x32xf32>
    tpu.vector_store %arg11[%c5_108, %c0_109, %c0_110], %160 {strides = array<i32>} : memref<8x2x32xf32, #tpu.memory_space<vmem>>, vector<1x2x32xf32>,
    %c5_111 = arith.constant 5 : index
    %c0_112 = arith.constant 0 : index
    %c0_113 = arith.constant 0 : index
    %161 = vector.load %arg2[%c5_111, %c0_112, %c0_113] : memref<8x2x10xf32, #tpu.memory_space<vmem>>, vector<1x2x10xf32>
    %162 = vector.shape_cast %161 : vector<1x2x10xf32> to vector<2x10xf32>
    %cst_114 = arith.constant dense<0.000000e+00> : vector<2x16xf32>
    %163 = tpu.matmul %162, %5, %cst_114 {dimension_numbers = #tpu.dot_dimension_numbers<[1], [0], [0], [1], [0, 0, 1, 1], [], []>} : vector<2x10xf32>, vector<10x16xf32>, vector<2x16xf32> -> vector<2x16xf32>
    %cst_115 = arith.constant dense<0.000000e+00> : vector<2x16xf32>
    %164 = tpu.matmul %141, %6, %cst_115 {dimension_numbers = #tpu.dot_dimension_numbers<[1], [0], [0], [1], [0, 0, 1, 1], [], []>} : vector<2x16xf32>, vector<16x16xf32>, vector<2x16xf32> -> vector<2x16xf32>
    %165 = arith.addf %163, %164 : vector<2x16xf32>
    %166 = vector.broadcast %7 : vector<1x16xf32> to vector<2x16xf32>
    %167 = arith.addf %165, %166 : vector<2x16xf32>
    %168 = math.tanh %167 : vector<2x16xf32>
    %c5_116 = arith.constant 5 : index
    %c0_117 = arith.constant 0 : index
    %c0_118 = arith.constant 0 : index
    %169 = vector.load %arg12[%c5_116, %c0_117, %c0_118] : memref<8x2x16xf32, #tpu.memory_space<vmem>>, vector<1x2x16xf32>
    %170 = vector.shape_cast %169 : vector<1x2x16xf32> to vector<2x16xf32>
    %171 = vector.shape_cast %168 : vector<2x16xf32> to vector<1x2x16xf32>
    tpu.vector_store %arg12[%c5_116, %c0_117, %c0_118], %171 {strides = array<i32>} : memref<8x2x16xf32, #tpu.memory_space<vmem>>, vector<1x2x16xf32>,
    %c6 = arith.constant 6 : index
    %c0_119 = arith.constant 0 : index
    %c0_120 = arith.constant 0 : index
    %172 = vector.load %arg1[%c6, %c0_119, %c0_120] : memref<8x2x16xf32, #tpu.memory_space<vmem>>, vector<1x2x16xf32>
    %173 = vector.shape_cast %172 : vector<1x2x16xf32> to vector<2x16xf32>
    %cst_121 = arith.constant dense<0.000000e+00> : vector<2x32xf32>
    %174 = tpu.matmul %173, %0, %cst_121 {dimension_numbers = #tpu.dot_dimension_numbers<[1], [0], [0], [1], [0, 0, 1, 1], [], []>} : vector<2x16xf32>, vector<16x32xf32>, vector<2x32xf32> -> vector<2x32xf32>
    %175 = vector.broadcast %1 : vector<1x32xf32> to vector<2x32xf32>
    %176 = arith.addf %174, %175 : vector<2x32xf32>
    %cst_122 = arith.constant 0.000000e+00 : f32
    %177 = vector.broadcast %cst_122 : f32 to vector<2x32xf32>
    %178 = arith.maximumf %176, %177 : vector<2x32xf32>
    %cst_123 = arith.constant dense<0.000000e+00> : vector<2x32xf32>
    %179 = tpu.matmul %178, %2, %cst_123 {dimension_numbers = #tpu.dot_dimension_numbers<[1], [0], [0], [1], [0, 0, 1, 1], [], []>} : vector<2x32xf32>, vector<32x32xf32>, vector<2x32xf32> -> vector<2x32xf32>
    %cst_124 = arith.constant dense<0.000000e+00> : vector<2x32xf32>
    %180 = tpu.matmul %157, %3, %cst_124 {dimension_numbers = #tpu.dot_dimension_numbers<[1], [0], [0], [1], [0, 0, 1, 1], [], []>} : vector<2x32xf32>, vector<32x32xf32>, vector<2x32xf32> -> vector<2x32xf32>
    %181 = arith.addf %179, %180 : vector<2x32xf32>
    %182 = vector.broadcast %4 : vector<1x32xf32> to vector<2x32xf32>
    %183 = arith.addf %181, %182 : vector<2x32xf32>
    %184 = math.tanh %183 : vector<2x32xf32>
    %c6_125 = arith.constant 6 : index
    %c0_126 = arith.constant 0 : index
    %c0_127 = arith.constant 0 : index
    %185 = vector.load %arg11[%c6_125, %c0_126, %c0_127] : memref<8x2x32xf32, #tpu.memory_space<vmem>>, vector<1x2x32xf32>
    %186 = vector.shape_cast %185 : vector<1x2x32xf32> to vector<2x32xf32>
    %187 = vector.shape_cast %184 : vector<2x32xf32> to vector<1x2x32xf32>
    tpu.vector_store %arg11[%c6_125, %c0_126, %c0_127], %187 {strides = array<i32>} : memref<8x2x32xf32, #tpu.memory_space<vmem>>, vector<1x2x32xf32>,
    %c6_128 = arith.constant 6 : index
    %c0_129 = arith.constant 0 : index
    %c0_130 = arith.constant 0 : index
    %188 = vector.load %arg2[%c6_128, %c0_129, %c0_130] : memref<8x2x10xf32, #tpu.memory_space<vmem>>, vector<1x2x10xf32>
    %189 = vector.shape_cast %188 : vector<1x2x10xf32> to vector<2x10xf32>
    %cst_131 = arith.constant dense<0.000000e+00> : vector<2x16xf32>
    %190 = tpu.matmul %189, %5, %cst_131 {dimension_numbers = #tpu.dot_dimension_numbers<[1], [0], [0], [1], [0, 0, 1, 1], [], []>} : vector<2x10xf32>, vector<10x16xf32>, vector<2x16xf32> -> vector<2x16xf32>
    %cst_132 = arith.constant dense<0.000000e+00> : vector<2x16xf32>
    %191 = tpu.matmul %168, %6, %cst_132 {dimension_numbers = #tpu.dot_dimension_numbers<[1], [0], [0], [1], [0, 0, 1, 1], [], []>} : vector<2x16xf32>, vector<16x16xf32>, vector<2x16xf32> -> vector<2x16xf32>
    %192 = arith.addf %190, %191 : vector<2x16xf32>
    %193 = vector.broadcast %7 : vector<1x16xf32> to vector<2x16xf32>
    %194 = arith.addf %192, %193 : vector<2x16xf32>
    %195 = math.tanh %194 : vector<2x16xf32>
    %c6_133 = arith.constant 6 : index
    %c0_134 = arith.constant 0 : index
    %c0_135 = arith.constant 0 : index
    %196 = vector.load %arg12[%c6_133, %c0_134, %c0_135] : memref<8x2x16xf32, #tpu.memory_space<vmem>>, vector<1x2x16xf32>
    %197 = vector.shape_cast %196 : vector<1x2x16xf32> to vector<2x16xf32>
    %198 = vector.shape_cast %195 : vector<2x16xf32> to vector<1x2x16xf32>
    tpu.vector_store %arg12[%c6_133, %c0_134, %c0_135], %198 {strides = array<i32>} : memref<8x2x16xf32, #tpu.memory_space<vmem>>, vector<1x2x16xf32>,
    %c7 = arith.constant 7 : index
    %c0_136 = arith.constant 0 : index
    %c0_137 = arith.constant 0 : index
    %199 = vector.load %arg1[%c7, %c0_136, %c0_137] : memref<8x2x16xf32, #tpu.memory_space<vmem>>, vector<1x2x16xf32>
    %200 = vector.shape_cast %199 : vector<1x2x16xf32> to vector<2x16xf32>
    %cst_138 = arith.constant dense<0.000000e+00> : vector<2x32xf32>
    %201 = tpu.matmul %200, %0, %cst_138 {dimension_numbers = #tpu.dot_dimension_numbers<[1], [0], [0], [1], [0, 0, 1, 1], [], []>} : vector<2x16xf32>, vector<16x32xf32>, vector<2x32xf32> -> vector<2x32xf32>
    %202 = vector.broadcast %1 : vector<1x32xf32> to vector<2x32xf32>
    %203 = arith.addf %201, %202 : vector<2x32xf32>
    %cst_139 = arith.constant 0.000000e+00 : f32
    %204 = vector.broadcast %cst_139 : f32 to vector<2x32xf32>
    %205 = arith.maximumf %203, %204 : vector<2x32xf32>
    %cst_140 = arith.constant dense<0.000000e+00> : vector<2x32xf32>
    %206 = tpu.matmul %205, %2, %cst_140 {dimension_numbers = #tpu.dot_dimension_numbers<[1], [0], [0], [1], [0, 0, 1, 1], [], []>} : vector<2x32xf32>, vector<32x32xf32>, vector<2x32xf32> -> vector<2x32xf32>
    %cst_141 = arith.constant dense<0.000000e+00> : vector<2x32xf32>
    %207 = tpu.matmul %184, %3, %cst_141 {dimension_numbers = #tpu.dot_dimension_numbers<[1], [0], [0], [1], [0, 0, 1, 1], [], []>} : vector<2x32xf32>, vector<32x32xf32>, vector<2x32xf32> -> vector<2x32xf32>
    %208 = arith.addf %206, %207 : vector<2x32xf32>
    %209 = vector.broadcast %4 : vector<1x32xf32> to vector<2x32xf32>
    %210 = arith.addf %208, %209 : vector<2x32xf32>
    %211 = math.tanh %210 : vector<2x32xf32>
    %c7_142 = arith.constant 7 : index
    %c0_143 = arith.constant 0 : index
    %c0_144 = arith.constant 0 : index
    %212 = vector.load %arg11[%c7_142, %c0_143, %c0_144] : memref<8x2x32xf32, #tpu.memory_space<vmem>>, vector<1x2x32xf32>
    %213 = vector.shape_cast %212 : vector<1x2x32xf32> to vector<2x32xf32>
    %214 = vector.shape_cast %211 : vector<2x32xf32> to vector<1x2x32xf32>
    tpu.vector_store %arg11[%c7_142, %c0_143, %c0_144], %214 {strides = array<i32>} : memref<8x2x32xf32, #tpu.memory_space<vmem>>, vector<1x2x32xf32>,
    %c7_145 = arith.constant 7 : index
    %c0_146 = arith.constant 0 : index
    %c0_147 = arith.constant 0 : index
    %215 = vector.load %arg2[%c7_145, %c0_146, %c0_147] : memref<8x2x10xf32, #tpu.memory_space<vmem>>, vector<1x2x10xf32>
    %216 = vector.shape_cast %215 : vector<1x2x10xf32> to vector<2x10xf32>
    %cst_148 = arith.constant dense<0.000000e+00> : vector<2x16xf32>
    %217 = tpu.matmul %216, %5, %cst_148 {dimension_numbers = #tpu.dot_dimension_numbers<[1], [0], [0], [1], [0, 0, 1, 1], [], []>} : vector<2x10xf32>, vector<10x16xf32>, vector<2x16xf32> -> vector<2x16xf32>
    %cst_149 = arith.constant dense<0.000000e+00> : vector<2x16xf32>
    %218 = tpu.matmul %195, %6, %cst_149 {dimension_numbers = #tpu.dot_dimension_numbers<[1], [0], [0], [1], [0, 0, 1, 1], [], []>} : vector<2x16xf32>, vector<16x16xf32>, vector<2x16xf32> -> vector<2x16xf32>
    %219 = arith.addf %217, %218 : vector<2x16xf32>
    %220 = vector.broadcast %7 : vector<1x16xf32> to vector<2x16xf32>
    %221 = arith.addf %219, %220 : vector<2x16xf32>
    %222 = math.tanh %221 : vector<2x16xf32>
    %c7_150 = arith.constant 7 : index
    %c0_151 = arith.constant 0 : index
    %c0_152 = arith.constant 0 : index
    %223 = vector.load %arg12[%c7_150, %c0_151, %c0_152] : memref<8x2x16xf32, #tpu.memory_space<vmem>>, vector<1x2x16xf32>
    %224 = vector.shape_cast %223 : vector<1x2x16xf32> to vector<2x16xf32>
    %225 = vector.shape_cast %222 : vector<2x16xf32> to vector<1x2x16xf32>
    tpu.vector_store %arg12[%c7_150, %c0_151, %c0_152], %225 {strides = array<i32>} : memref<8x2x16xf32, #tpu.memory_space<vmem>>, vector<1x2x16xf32>,
    return
  }
  func.func @transform_0(%arg0: i32) -> (i32, i32, i32) {
    %c0_i32 = arith.constant 0 : i32
    %c0_i32_0 = arith.constant 0 : i32
    %c0_i32_1 = arith.constant 0 : i32
    %c0_i32_2 = arith.constant 0 : i32
    return %c0_i32, %c0_i32_0, %c0_i32_1 : i32, i32, i32
  }
  func.func @transform_1(%arg0: i32) -> (i32, i32, i32) {
    %c0_i32 = arith.constant 0 : i32
    %c0_i32_0 = arith.constant 0 : i32
    %c0_i32_1 = arith.constant 0 : i32
    %c0_i32_2 = arith.constant 0 : i32
    return %c0_i32, %c0_i32_0, %c0_i32_1 : i32, i32, i32
  }
  func.func @transform_2(%arg0: i32) -> (i32, i32) {
    %c0_i32 = arith.constant 0 : i32
    %c0_i32_0 = arith.constant 0 : i32
    %c0_i32_1 = arith.constant 0 : i32
    return %c0_i32, %c0_i32_0 : i32, i32
  }
  func.func @transform_3(%arg0: i32) -> (i32, i32) {
    %c0_i32 = arith.constant 0 : i32
    %c0_i32_0 = arith.constant 0 : i32
    %c0_i32_1 = arith.constant 0 : i32
    return %c0_i32, %c0_i32_0 : i32, i32
  }
  func.func @transform_4(%arg0: i32) -> (i32, i32) {
    %c0_i32 = arith.constant 0 : i32
    %c0_i32_0 = arith.constant 0 : i32
    %c0_i32_1 = arith.constant 0 : i32
    return %c0_i32, %c0_i32_0 : i32, i32
  }
  func.func @transform_5(%arg0: i32) -> (i32, i32) {
    %c0_i32 = arith.constant 0 : i32
    %c0_i32_0 = arith.constant 0 : i32
    %c0_i32_1 = arith.constant 0 : i32
    return %c0_i32, %c0_i32_0 : i32, i32
  }
  func.func @transform_6(%arg0: i32) -> (i32, i32) {
    %c0_i32 = arith.constant 0 : i32
    %c0_i32_0 = arith.constant 0 : i32
    %c0_i32_1 = arith.constant 0 : i32
    return %c0_i32, %c0_i32_0 : i32, i32
  }
  func.func @transform_7(%arg0: i32) -> (i32, i32) {
    %c0_i32 = arith.constant 0 : i32
    %c0_i32_0 = arith.constant 0 : i32
    %c0_i32_1 = arith.constant 0 : i32
    return %c0_i32, %c0_i32_0 : i32, i32
  }
  func.func @transform_8(%arg0: i32) -> (i32, i32) {
    %c0_i32 = arith.constant 0 : i32
    %c0_i32_0 = arith.constant 0 : i32
    %c0_i32_1 = arith.constant 0 : i32
    return %c0_i32, %c0_i32_0 : i32, i32
  }
  func.func @transform_9(%arg0: i32) -> (i32, i32) {
    %c0_i32 = arith.constant 0 : i32
    %c0_i32_0 = arith.constant 0 : i32
    %c0_i32_1 = arith.constant 0 : i32
    return %c0_i32, %c0_i32_0 : i32, i32
  }
  func.func @transform_10(%arg0: i32) -> (i32, i32, i32) {
    %c0_i32 = arith.constant 0 : i32
    %c0_i32_0 = arith.constant 0 : i32
    %c0_i32_1 = arith.constant 0 : i32
    %c0_i32_2 = arith.constant 0 : i32
    return %c0_i32, %c0_i32_0, %c0_i32_1 : i32, i32, i32
  }
  func.func @transform_11(%arg0: i32) -> (i32, i32, i32) {
    %c0_i32 = arith.constant 0 : i32
    %c0_i32_0 = arith.constant 0 : i32
    %c0_i32_1 = arith.constant 0 : i32
    %c0_i32_2 = arith.constant 0 : i32
    return %c0_i32, %c0_i32_0, %c0_i32_1 : i32, i32, i32
  }
}

module attributes {stable_mosaic.version = 11 : i64} {
  func.func @_gemm_bias_act_kernel(%arg0: i32, %arg1: memref<16x112xf32, #tpu.memory_space<vmem>>, %arg2: memref<112x256xf32, #tpu.memory_space<vmem>>, %arg3: memref<1x256xf32, #tpu.memory_space<vmem>>, %arg4: memref<16x256xf32, #tpu.memory_space<vmem>>) attributes {dimension_semantics = [#tpu.dimension_semantics<arbitrary>], iteration_bounds = array<i64: 1>, scalar_prefetch = 0 : i64, scratch_operands = 0 : i64, tpu.core_type = #tpu.core_type<tc>, window_params = [{pipeline_mode = #tpu.pipeline_mode<synchronous>, transform_indices = @transform_0, window_bounds = array<i64: 16, 112>}, {pipeline_mode = #tpu.pipeline_mode<synchronous>, transform_indices = @transform_1, window_bounds = array<i64: 112, 256>}, {pipeline_mode = #tpu.pipeline_mode<synchronous>, transform_indices = @transform_2, window_bounds = array<i64: 1, 256>}, {pipeline_mode = #tpu.pipeline_mode<synchronous>, transform_indices = @transform_3, window_bounds = array<i64: 16, 256>}]} {
    %c0 = arith.constant 0 : index
    %c0_0 = arith.constant 0 : index
    %0 = vector.load %arg1[%c0, %c0_0] : memref<16x112xf32, #tpu.memory_space<vmem>>, vector<16x112xf32>
    %c0_1 = arith.constant 0 : index
    %c0_2 = arith.constant 0 : index
    %1 = vector.load %arg2[%c0_1, %c0_2] : memref<112x256xf32, #tpu.memory_space<vmem>>, vector<112x256xf32>
    %cst = arith.constant dense<0.000000e+00> : vector<16x256xf32>
    %2 = tpu.matmul %0, %1, %cst {dimension_numbers = #tpu.dot_dimension_numbers<[1], [0], [0], [1], [0, 0, 1, 1], [], []>} : vector<16x112xf32>, vector<112x256xf32>, vector<16x256xf32> -> vector<16x256xf32>
    %c0_3 = arith.constant 0 : index
    %c0_4 = arith.constant 0 : index
    %3 = vector.load %arg3[%c0_3, %c0_4] : memref<1x256xf32, #tpu.memory_space<vmem>>, vector<1x256xf32>
    %4 = vector.broadcast %3 : vector<1x256xf32> to vector<16x256xf32>
    %5 = arith.addf %2, %4 : vector<16x256xf32>
    %cst_5 = arith.constant 0.000000e+00 : f32
    %6 = vector.broadcast %cst_5 : f32 to vector<16x256xf32>
    %7 = arith.maximumf %5, %6 : vector<16x256xf32>
    %c0_6 = arith.constant 0 : index
    %c0_7 = arith.constant 0 : index
    %8 = vector.load %arg4[%c0_6, %c0_7] : memref<16x256xf32, #tpu.memory_space<vmem>>, vector<16x256xf32>
    tpu.vector_store %arg4[%c0_6, %c0_7], %7 {strides = array<i32>} : memref<16x256xf32, #tpu.memory_space<vmem>>, vector<16x256xf32>,
    return
  }
  func.func @transform_0(%arg0: i32) -> (i32, i32) {
    %c0_i32 = arith.constant 0 : i32
    %c0_i32_0 = arith.constant 0 : i32
    %c0_i32_1 = arith.constant 0 : i32
    return %c0_i32, %c0_i32_0 : i32, i32
  }
  func.func @transform_1(%arg0: i32) -> (i32, i32) {
    %c0_i32 = arith.constant 0 : i32
    %c0_i32_0 = arith.constant 0 : i32
    %c0_i32_1 = arith.constant 0 : i32
    return %c0_i32, %c0_i32_0 : i32, i32
  }
  func.func @transform_2(%arg0: i32) -> (i32, i32) {
    %c0_i32 = arith.constant 0 : i32
    %c0_i32_0 = arith.constant 0 : i32
    %c0_i32_1 = arith.constant 0 : i32
    return %c0_i32, %c0_i32_0 : i32, i32
  }
  func.func @transform_3(%arg0: i32) -> (i32, i32) {
    %c0_i32 = arith.constant 0 : i32
    %c0_i32_0 = arith.constant 0 : i32
    %c0_i32_1 = arith.constant 0 : i32
    return %c0_i32, %c0_i32_0 : i32, i32
  }
}

module attributes {stable_mosaic.version = 11 : i64} {
  func.func @_gemm_bias_act_kernel(%arg0: i32, %arg1: memref<8x288xf32, #tpu.memory_space<vmem>>, %arg2: memref<288x512xf32, #tpu.memory_space<vmem>>, %arg3: memref<8x1xf32, #tpu.memory_space<vmem>>, %arg4: memref<8x512xf32, #tpu.memory_space<vmem>>) attributes {dimension_semantics = [#tpu.dimension_semantics<parallel>], iteration_bounds = array<i64: 2>, scalar_prefetch = 0 : i64, scratch_operands = 0 : i64, tpu.core_type = #tpu.core_type<tc>, window_params = [{pipeline_mode = #tpu.pipeline_mode<synchronous>, transform_indices = @transform_0, window_bounds = array<i64: 8, 288>}, {transform_indices = @transform_1, window_bounds = array<i64: 288, 512>}, {pipeline_mode = #tpu.pipeline_mode<synchronous>, transform_indices = @transform_2, window_bounds = array<i64: 8, 1>}, {transform_indices = @transform_3, window_bounds = array<i64: 8, 512>}]} {
    %c0 = arith.constant 0 : index
    %c0_0 = arith.constant 0 : index
    %0 = vector.load %arg1[%c0, %c0_0] : memref<8x288xf32, #tpu.memory_space<vmem>>, vector<8x288xf32>
    %c0_1 = arith.constant 0 : index
    %c0_2 = arith.constant 0 : index
    %1 = vector.load %arg2[%c0_1, %c0_2] : memref<288x512xf32, #tpu.memory_space<vmem>>, vector<288x512xf32>
    %cst = arith.constant dense<0.000000e+00> : vector<8x512xf32>
    %2 = tpu.matmul %0, %1, %cst {dimension_numbers = #tpu.dot_dimension_numbers<[1], [0], [0], [1], [0, 0, 1, 1], [], []>} : vector<8x288xf32>, vector<288x512xf32>, vector<8x512xf32> -> vector<8x512xf32>
    %c0_3 = arith.constant 0 : index
    %c0_4 = arith.constant 0 : index
    %3 = vector.load %arg3[%c0_3, %c0_4] : memref<8x1xf32, #tpu.memory_space<vmem>>, vector<8x1xf32>
    %4 = vector.broadcast %3 : vector<8x1xf32> to vector<8x512xf32>
    %5 = arith.addf %2, %4 : vector<8x512xf32>
    %cst_5 = arith.constant 0.000000e+00 : f32
    %6 = vector.broadcast %cst_5 : f32 to vector<8x512xf32>
    %7 = arith.maximumf %5, %6 : vector<8x512xf32>
    %c0_6 = arith.constant 0 : index
    %c0_7 = arith.constant 0 : index
    %8 = vector.load %arg4[%c0_6, %c0_7] : memref<8x512xf32, #tpu.memory_space<vmem>>, vector<8x512xf32>
    tpu.vector_store %arg4[%c0_6, %c0_7], %7 {strides = array<i32>} : memref<8x512xf32, #tpu.memory_space<vmem>>, vector<8x512xf32>,
    return
  }
  func.func @transform_0(%arg0: i32) -> (i32, i32) {
    %c0_i32 = arith.constant 0 : i32
    %c0_i32_0 = arith.constant 0 : i32
    %c0_i32_1 = arith.constant 0 : i32
    return %c0_i32, %c0_i32_0 : i32, i32
  }
  func.func @transform_1(%arg0: i32) -> (i32, i32) {
    %c0_i32 = arith.constant 0 : i32
    %c0_i32_0 = arith.constant 0 : i32
    return %c0_i32, %arg0 : i32, i32
  }
  func.func @transform_2(%arg0: i32) -> (i32, i32) {
    %c0_i32 = arith.constant 0 : i32
    %c0_i32_0 = arith.constant 0 : i32
    %c0_i32_1 = arith.constant 0 : i32
    return %c0_i32, %c0_i32_0 : i32, i32
  }
  func.func @transform_3(%arg0: i32) -> (i32, i32) {
    %c0_i32 = arith.constant 0 : i32
    %c0_i32_0 = arith.constant 0 : i32
    return %c0_i32, %arg0 : i32, i32
  }
}

module attributes {stable_mosaic.version = 11 : i64} {
  func.func @_gemm_bias_act_kernel(%arg0: i32, %arg1: memref<8x144xf32, #tpu.memory_space<vmem>>, %arg2: memref<144x2048xf32, #tpu.memory_space<vmem>>, %arg3: memref<8x1xf32, #tpu.memory_space<vmem>>, %arg4: memref<8x2048xf32, #tpu.memory_space<vmem>>) attributes {dimension_semantics = [#tpu.dimension_semantics<parallel>], iteration_bounds = array<i64: 2>, scalar_prefetch = 0 : i64, scratch_operands = 0 : i64, tpu.core_type = #tpu.core_type<tc>, window_params = [{pipeline_mode = #tpu.pipeline_mode<synchronous>, transform_indices = @transform_0, window_bounds = array<i64: 8, 144>}, {transform_indices = @transform_1, window_bounds = array<i64: 144, 2048>}, {pipeline_mode = #tpu.pipeline_mode<synchronous>, transform_indices = @transform_2, window_bounds = array<i64: 8, 1>}, {transform_indices = @transform_3, window_bounds = array<i64: 8, 2048>}]} {
    %c0 = arith.constant 0 : index
    %c0_0 = arith.constant 0 : index
    %0 = vector.load %arg1[%c0, %c0_0] : memref<8x144xf32, #tpu.memory_space<vmem>>, vector<8x144xf32>
    %c0_1 = arith.constant 0 : index
    %c0_2 = arith.constant 0 : index
    %1 = vector.load %arg2[%c0_1, %c0_2] : memref<144x2048xf32, #tpu.memory_space<vmem>>, vector<144x2048xf32>
    %cst = arith.constant dense<0.000000e+00> : vector<8x2048xf32>
    %2 = tpu.matmul %0, %1, %cst {dimension_numbers = #tpu.dot_dimension_numbers<[1], [0], [0], [1], [0, 0, 1, 1], [], []>} : vector<8x144xf32>, vector<144x2048xf32>, vector<8x2048xf32> -> vector<8x2048xf32>
    %c0_3 = arith.constant 0 : index
    %c0_4 = arith.constant 0 : index
    %3 = vector.load %arg3[%c0_3, %c0_4] : memref<8x1xf32, #tpu.memory_space<vmem>>, vector<8x1xf32>
    %4 = vector.broadcast %3 : vector<8x1xf32> to vector<8x2048xf32>
    %5 = arith.addf %2, %4 : vector<8x2048xf32>
    %cst_5 = arith.constant 0.000000e+00 : f32
    %6 = vector.broadcast %cst_5 : f32 to vector<8x2048xf32>
    %7 = arith.maximumf %5, %6 : vector<8x2048xf32>
    %c0_6 = arith.constant 0 : index
    %c0_7 = arith.constant 0 : index
    %8 = vector.load %arg4[%c0_6, %c0_7] : memref<8x2048xf32, #tpu.memory_space<vmem>>, vector<8x2048xf32>
    tpu.vector_store %arg4[%c0_6, %c0_7], %7 {strides = array<i32>} : memref<8x2048xf32, #tpu.memory_space<vmem>>, vector<8x2048xf32>,
    return
  }
  func.func @transform_0(%arg0: i32) -> (i32, i32) {
    %c0_i32 = arith.constant 0 : i32
    %c0_i32_0 = arith.constant 0 : i32
    %c0_i32_1 = arith.constant 0 : i32
    return %c0_i32, %c0_i32_0 : i32, i32
  }
  func.func @transform_1(%arg0: i32) -> (i32, i32) {
    %c0_i32 = arith.constant 0 : i32
    %c0_i32_0 = arith.constant 0 : i32
    return %c0_i32, %arg0 : i32, i32
  }
  func.func @transform_2(%arg0: i32) -> (i32, i32) {
    %c0_i32 = arith.constant 0 : i32
    %c0_i32_0 = arith.constant 0 : i32
    %c0_i32_1 = arith.constant 0 : i32
    return %c0_i32, %c0_i32_0 : i32, i32
  }
  func.func @transform_3(%arg0: i32) -> (i32, i32) {
    %c0_i32 = arith.constant 0 : i32
    %c0_i32_0 = arith.constant 0 : i32
    return %c0_i32, %arg0 : i32, i32
  }
}

module attributes {stable_mosaic.version = 11 : i64} {
  func.func @_gemm_bias_act_kernel(%arg0: i32, %arg1: memref<3x72xf32, #tpu.memory_space<vmem>>, %arg2: memref<72x2048xf32, #tpu.memory_space<vmem>>, %arg3: memref<3x1xf32, #tpu.memory_space<vmem>>, %arg4: memref<3x2048xf32, #tpu.memory_space<vmem>>) attributes {dimension_semantics = [#tpu.dimension_semantics<parallel>], iteration_bounds = array<i64: 2>, scalar_prefetch = 0 : i64, scratch_operands = 0 : i64, tpu.core_type = #tpu.core_type<tc>, window_params = [{pipeline_mode = #tpu.pipeline_mode<synchronous>, transform_indices = @transform_0, window_bounds = array<i64: 3, 72>}, {transform_indices = @transform_1, window_bounds = array<i64: 72, 2048>}, {pipeline_mode = #tpu.pipeline_mode<synchronous>, transform_indices = @transform_2, window_bounds = array<i64: 3, 1>}, {transform_indices = @transform_3, window_bounds = array<i64: 3, 2048>}]} {
    %c0 = arith.constant 0 : index
    %c0_0 = arith.constant 0 : index
    %0 = vector.load %arg1[%c0, %c0_0] : memref<3x72xf32, #tpu.memory_space<vmem>>, vector<3x72xf32>
    %c0_1 = arith.constant 0 : index
    %c0_2 = arith.constant 0 : index
    %1 = vector.load %arg2[%c0_1, %c0_2] : memref<72x2048xf32, #tpu.memory_space<vmem>>, vector<72x2048xf32>
    %cst = arith.constant dense<0.000000e+00> : vector<3x2048xf32>
    %2 = tpu.matmul %0, %1, %cst {dimension_numbers = #tpu.dot_dimension_numbers<[1], [0], [0], [1], [0, 0, 1, 1], [], []>} : vector<3x72xf32>, vector<72x2048xf32>, vector<3x2048xf32> -> vector<3x2048xf32>
    %c0_3 = arith.constant 0 : index
    %c0_4 = arith.constant 0 : index
    %3 = vector.load %arg3[%c0_3, %c0_4] : memref<3x1xf32, #tpu.memory_space<vmem>>, vector<3x1xf32>
    %4 = vector.broadcast %3 : vector<3x1xf32> to vector<3x2048xf32>
    %5 = arith.addf %2, %4 : vector<3x2048xf32>
    %6 = arith.negf %5 : vector<3x2048xf32>
    %7 = math.exp %6 : vector<3x2048xf32>
    %cst_5 = arith.constant 1.000000e+00 : f32
    %8 = vector.broadcast %cst_5 : f32 to vector<3x2048xf32>
    %9 = arith.addf %8, %7 : vector<3x2048xf32>
    %10 = arith.divf %8, %9 : vector<3x2048xf32>
    %c0_6 = arith.constant 0 : index
    %c0_7 = arith.constant 0 : index
    %11 = vector.load %arg4[%c0_6, %c0_7] : memref<3x2048xf32, #tpu.memory_space<vmem>>, vector<3x2048xf32>
    tpu.vector_store %arg4[%c0_6, %c0_7], %10 {strides = array<i32>} : memref<3x2048xf32, #tpu.memory_space<vmem>>, vector<3x2048xf32>,
    return
  }
  func.func @transform_0(%arg0: i32) -> (i32, i32) {
    %c0_i32 = arith.constant 0 : i32
    %c0_i32_0 = arith.constant 0 : i32
    %c0_i32_1 = arith.constant 0 : i32
    return %c0_i32, %c0_i32_0 : i32, i32
  }
  func.func @transform_1(%arg0: i32) -> (i32, i32) {
    %c0_i32 = arith.constant 0 : i32
    %c0_i32_0 = arith.constant 0 : i32
    return %c0_i32, %arg0 : i32, i32
  }
  func.func @transform_2(%arg0: i32) -> (i32, i32) {
    %c0_i32 = arith.constant 0 : i32
    %c0_i32_0 = arith.constant 0 : i32
    %c0_i32_1 = arith.constant 0 : i32
    return %c0_i32, %c0_i32_0 : i32, i32
  }
  func.func @transform_3(%arg0: i32) -> (i32, i32) {
    %c0_i32 = arith.constant 0 : i32
    %c0_i32_0 = arith.constant 0 : i32
    return %c0_i32, %arg0 : i32, i32
  }
}

</mosaic_0001>

<bundles_post_ra>
// kernel: generator_forward.8
= control target key start
LH: loop header
LB: loop body
LE: loop exit
PB: predicated region body
PF: predicated region fallthrough
CT: control target
= control target key end

     0   :  { %v140_v0 = vmov 0.0|0.0   ;;  %vm29_vm0 = vcmask 1042432   ;;  %vm141_vm1 = vmmov 0   ;;  %v142_v6 = vmov 0.0   ;;  %s186_s1 = inlined_call_operand.vmem [shape: f32[27,128], index: 1, kind: input, shape index: {}]   ;;  %s187_s2 = inlined_call_operand.vmem [shape: f32[8,1], index: 2, kind: input, shape index: {}]   ;;  %s188_s0 = inlined_call_operand.vmem [shape: f32[8,27], index: 0, kind: input, shape index: {}]   ;;  %s189_s3 = inlined_call_operand.vmem [shape: f32[8,128], index: 3, kind: output, shape index: {}]  }
   0x1   :  { %127 = vmatprep.subr.bf16.mxu0 %v140_v0  ;;  %v15_v1 = vld [vmem:[%s186_s1] sm:$0xff]  ;;  %v16_v2 = vld [vmem:[%s186_s1 + $0x8] sm:$0xff]  ;;  %v17_v3 = vld [vmem:[%s186_s1 + $0x10] sm:$0xff]  ;;  %124 = vmatprep.mubr.msk.f32.mxu0 %vm141_vm1, %v142_v6  ;;  %v143_v7 = vmov 0   ;;  %vm144_vm2 = vmmov 1   ;;  %vm25_vm4 = vcmask 220160  }
   0x2   :  { %v128_v4 = vpack.c.bf16 %v16_v2, %v15_v1  ;;  %v18_v5 = vld [vmem:[%s186_s1 + $0x18] sm:$0x7]  ;;  %139 = vset.pattern.permute.xlu0 %v143_v7  ;;  %v19_v8 = vld [vmem:[%s187_s2] sm:$0xff]  ;;  %vm132_vm3 = vmpackc.low %vm29_vm0, %vm144_vm2 }
   0x3   :  { %v131_v9 = vpack.c.bf16 %v18_v5, %v17_v3  ;;  %22 = vperm.xlu0 %139, %v19_v8   ;;  %v14_v10 = vld [vmem:[%s188_s0] sm:$0xff] }
   0x4   :  { %129 = vmatpush3.bf16.msra.mxu0 %v128_v4 }
   0x5   :  { %130 = vmatprep.subr.bf16.mxu0 %v140_v0 }
   0x8   :  { %133 = vmatpush3.bf16.msk.msra.mxu0 %vm132_vm3, %v131_v9 }
   0xb   :  { %125 = vmatmul.mubr.msk.f32.vlgmr.msra.gmra.mrb[0].mxu0 %vm25_vm4, %v14_v10 }
  0x82   :  { %v23_v11 = vpop.permute.xlu0 %22 }
  0xde   :  { %v99_v12 = vpop.f32.mrb[0].mxu0 }
  0xdf   :  { %v100_v13 = vadd.f32 %v99_v12, %v23_v11  ;;  %v126_v14 = vpop.f32.mrb[1].mxu0 }
  0xe1   :  { %v103_v15 = vmax.f32 %v100_v13, 0.0 }
  0xe3   :  { %104 = vst [vmem:[%s189_s3] sm:$0xff] %v103_v15 }

// kernel: generator_forward.9
= control target key start
LH: loop header
LB: loop body
LE: loop exit
PB: predicated region body
PF: predicated region fallthrough
CT: control target
= control target key end

     0   :  { %v180_v3 = vmov 0   ;;  %vm37_vm0 = vcmask 588800   ;;  %vm121_vm1 = vcmask 261120   ;;  %s248_s1 = inlined_call_operand.vmem [shape: f32[72,32], index: 1, kind: input, shape index: {}]   ;;  %s249_s0 = inlined_call_operand.vmem [shape: f32[16,72], index: 0, kind: input, shape index: {}]   ;;  %s250_s2 = inlined_call_operand.vmem [shape: f32[16,1], index: 2, kind: input, shape index: {}]   ;;  %s251_s3 = inlined_call_operand.vmem [shape: f32[16,32], index: 3, kind: output, shape index: {}]  }
   0x1   :  { %v16_v0 = vld [vmem:[%s248_s1] sm:$0xff]  ;;  %v17_v1 = vld [vmem:[%s248_s1 + $0x8] sm:$0xff]  ;;  %v18_v2 = vld [vmem:[%s248_s1 + $0x10] sm:$0xff]  ;;  %179 = vset.pattern.permute.xlu0 %v180_v3 }
   0x2   :  { %v162_v4 = vpack.c.bf16 %v17_v1, %v16_v0  ;;  %v19_v5 = vld [vmem:[%s248_s1 + $0x18] sm:$0xff]  ;;  %v20_v7 = vld [vmem:[%s248_s1 + $0x20] sm:$0xff]  ;;  %v21_v8 = vld [vmem:[%s248_s1 + $0x28] sm:$0xff] }
   0x3   :  { %v166_v6 = vpack.c.bf16 %v19_v5, %v18_v2  ;;  %v14_v9 = vld [vmem:[%s249_s0] sm:$0xff]  ;;  %v170_v11 = vpack.c.bf16 %v21_v8, %v20_v7  ;;  %v22_v12 = vld [vmem:[%s248_s1 + $0x30] sm:$0xff]  ;;  %v23_v13 = vld [vmem:[%s248_s1 + $0x38] sm:$0xff] }
   0x4   :  { %163 = vmatprep.subr.bf16.mxu0 %v162_v4  ;;  %v25_v10 = vld [vmem:[%s250_s2] sm:$0xff]  ;;  %159 = vmatprep.mubr.msk.f32.mxu0 %vm37_vm0, %v14_v9  ;;  %v26_v14 = vld [vmem:[%s250_s2 + $0x8] sm:$0xff]  ;;  %v174_v15 = vpack.c.bf16 %v23_v13, %v22_v12 }
   0x5   :  { %165 = vmatpush3.bf16.msra.mxu0 %v162_v4  ;;  %29 = vperm.xlu0 %179, %v25_v10   ;;  %v24_v16 = vld [vmem:[%s248_s1 + $0x40] sm:$0xff]  ;;  %v15_v17 = vld [vmem:[%s249_s0 + $0x8] sm:$0xff] }
   0x6   :  { %167 = vmatprep.subr.bf16.mxu0 %v166_v6 }
   0x9   :  { %169 = vmatpush3.bf16.msra.mxu0 %v166_v6  ;;  %34 = vperm.xlu0 %179, %v26_v14  }
   0xa   :  { %171 = vmatprep.subr.bf16.mxu0 %v170_v11 }
   0xd   :  { %173 = vmatpush3.bf16.msra.mxu0 %v170_v11 }
   0xe   :  { %175 = vmatprep.subr.bf16.mxu0 %v174_v15 }
  0x11   :  { %177 = vmatpush3.bf16.msra.mxu0 %v174_v15 }
  0x12   :  { %157 = vmatprep.subr.mxu0 %v24_v16 }
  0x15   :  { %158 = vmatpush3.msra.mxu0 %v24_v16 }
  0x16   :  { %160 = vmatmul.mubr.msk.f32.vlgmr.msra.gmra.mrb[0].mxu0 %vm37_vm0, %v15_v17 }
  0x84   :  { %v30_v18 = vpop.permute.xlu0 %29 }
  0x88   :  { %v35_v19 = vpop.permute.xlu0 %34 }
  0xe9   :  { %v161_v20 = vpop.f32.mrb[0].mxu0 }
  0xea   :  { %v116_v21 = vadd.f32 %v161_v20, %v35_v19  ;;  %v110_v22 = vpop.f32.mrb[1].mxu0 }
  0xeb   :  { %v111_v23 = vadd.f32 %v110_v22, %v30_v18 }
  0xec   :  { %v120_v24 = vmax.f32 %v116_v21, 0.0 }
  0xed   :  { %v119_v25 = vmax.f32 %v111_v23, 0.0 }
  0xee   :  { %123 = vst.msk [vmem:[%s251_s3 + $0x8] sm:$0xff] %vm121_vm1, %v120_v24 }
  0xef   :  { %122 = vst.msk [vmem:[%s251_s3] sm:$0xff] %vm121_vm1, %v119_v25 }

// kernel: generator_forward.10
= control target key start
LH: loop header
LB: loop body
LE: loop exit
PB: predicated region body
PF: predicated region fallthrough
CT: control target
= control target key end

     0   :  { %8 = vsyncpa [#allocation3], 0  ;;  %s249_s12 = smov [#allocation2]   ;;  %s384_s0 = inlined_call_operand.vmem [shape: f32[2,256], index: 0, kind: input, shape index: {}]   ;;  %s385_s1 = inlined_call_operand.vmem [shape: f32[256,64], index: 1, kind: input, shape index: {}]   ;;  %s386_s2 = inlined_call_operand.hbm [shape: f32[1,64], index: 2, kind: input, shape index: {}]   ;;  %s387_s3 = inlined_call_operand.vmem [shape: f32[2,64], index: 3, kind: output, shape index: {}]  }
   0x1   :  { %s19_s13 = sshll.u32 %s249_s12, 4  ;;  %s225_s16 = scalar_lea.hbm %s386_s2, 16  ;;  %s20_s13 = int_to_ptr.vmem [resolvable:$true] %s19_s13 }
   0x2   :  { %p226_p0 = scmp.ne.s32.totalorder %s386_s2, %s225_s16  ;;  %p229_p1 = scmp.lt.u32.totalorder %s225_s16, %s386_s2 }
   0x4   :  { %p231_p2 = pnand %p229_p1, %p226_p0 }
   0x6   :  { %234 = shalt.err (!%p231_p2)
}
   0x7   :  { %s235_s21 = scalar_lea.vmem %s20_s13, 16  ;;  %s239_s22 = scalar_lea.vmem %s20_s13, 32 }
   0x8   :  { %p236_p3 = scmp.ne.s32.totalorder %s20_s13, %s235_s21  ;;  %p240_p4 = scmp.lt.s32.totalorder %s20_s13, %s20_s13 }
   0x9   :  { %p241_p5 = scmp.lt.s32.totalorder %s239_s22, %s235_s21 }
   0xb   :  { %p242_p6 = por %p241_p5, %p240_p4 }
   0xd   :  { %p243_p7 = pnand %p242_p6, %p236_p3 }
   0xf   :  { %246 = shalt.err (!%p243_p7)
}
  0x10   :  { %22 = dma.hbm_to_vmem [thread:$0]  %s386_s2, 16, %s20_s13, [#allocation3]  }
  0x11   :  { %247 = dma.done.wait [#allocation3], 16  }
  0x12   :  { %248 = vsyncadd [#allocation3], 4294967280  ;;  %v43_v0 = vld [vmem:[%s385_s1 + $0x80] sm:$0xff]  ;;  %v44_v1 = vld [vmem:[%s385_s1 + $0x88] sm:$0xff]  ;;  %vm148_vm0 = vcmask 517120  }
  0x13   :  { %v27_v2 = vld [vmem:[%s385_s1] sm:$0xff]  ;;  %v192_v3 = vpack.c.bf16 %v44_v1, %v43_v0  ;;  %v28_v4 = vld [vmem:[%s385_s1 + $0x8] sm:$0xff]  ;;  %v45_v5 = vld [vmem:[%s385_s1 + $0x90] sm:$0xff] }
  0x14   :  { %v46_v6 = vld [vmem:[%s385_s1 + $0x98] sm:$0xff]  ;;  %v194_v7 = vpack.c.bf16 %v28_v4, %v27_v2  ;;  %v29_v9 = vld [vmem:[%s385_s1 + $0x10] sm:$0xff]  ;;  %v47_v11 = vld [vmem:[%s385_s1 + $0xa0] sm:$0xff] }
  0x15   :  { %v196_v8 = vpack.c.bf16 %v46_v6, %v45_v5  ;;  %v30_v10 = vld [vmem:[%s385_s1 + $0x18] sm:$0xff]  ;;  %193 = vmatprep.subr.bf16.mxu0 %v192_v3  ;;  %v48_v12 = vld [vmem:[%s385_s1 + $0xa8] sm:$0xff]  ;;  %v31_v15 = vld [vmem:[%s385_s1 + $0x20] sm:$0xff] }
  0x16   :  { %195 = vmatpush3.bf16.msra.mxu0 %v194_v7  ;;  %v198_v13 = vpack.c.bf16 %v30_v10, %v29_v9  ;;  %v200_v14 = vpack.c.bf16 %v48_v12, %v47_v11  ;;  %v32_v16 = vld [vmem:[%s385_s1 + $0x28] sm:$0xff]  ;;  %v49_v17 = vld [vmem:[%s385_s1 + $0xb0] sm:$0xff]  ;;  %v50_v18 = vld [vmem:[%s385_s1 + $0xb8] sm:$0xff] }
  0x17   :  { %197 = vmatprep.subr.bf16.mxu0 %v196_v8  ;;  %v202_v19 = vpack.c.bf16 %v32_v16, %v31_v15  ;;  %v204_v20 = vpack.c.bf16 %v50_v18, %v49_v17  ;;  %v33_v21 = vld [vmem:[%s385_s1 + $0x30] sm:$0xff]  ;;  %v34_v22 = vld [vmem:[%s385_s1 + $0x38] sm:$0xff]  ;;  %v51_v23 = vld [vmem:[%s385_s1 + $0xc0] sm:$0xff] }
  0x18   :  { %v52_v24 = vld [vmem:[%s385_s1 + $0xc8] sm:$0xff]  ;;  %v156_v25 = vld.sshfl [vmem:[%s384_s0] sm:$0x33 pattern:$0x76325410]  ;;  %v206_v27 = vpack.c.bf16 %v34_v22, %v33_v21  ;;  %v53_v31 = vld [vmem:[%s385_s1 + $0xd0] sm:$0xff] }
  0x19   :  { %v74_v26 = vcombine.high %v156_v25, %v156_v25  ;;  %v208_v28 = vpack.c.bf16 %v52_v24, %v51_v23  ;;  %v35_v29 = vld [vmem:[%s385_s1 + $0x40] sm:$0xff]  ;;  %v36_v30 = vld [vmem:[%s385_s1 + $0x48] sm:$0xff]  ;;  %v54_v32 = vld [vmem:[%s385_s1 + $0xd8] sm:$0xff] }
  0x1a   :  { %199 = vmatpush3.bf16.msra.mxu0 %v198_v13  ;;  %v210_v33 = vpack.c.bf16 %v36_v30, %v35_v29  ;;  %v212_v34 = vpack.c.bf16 %v54_v32, %v53_v31  ;;  %v37_v35 = vld [vmem:[%s385_s1 + $0x50] sm:$0xff]  ;;  %v38_v36 = vld [vmem:[%s385_s1 + $0x58] sm:$0xff]  ;;  %v55_v37 = vld [vmem:[%s385_s1 + $0xe0] sm:$0xff] }
  0x1b   :  { %201 = vmatprep.subr.bf16.mxu0 %v200_v14  ;;  %141 = vmatprep.mubr.f32.mxu0 %v74_v26  ;;  %v56_v38 = vld [vmem:[%s385_s1 + $0xe8] sm:$0xff]  ;;  %v214_v39 = vpack.c.bf16 %v38_v36, %v37_v35  ;;  %v39_v41 = vld [vmem:[%s385_s1 + $0x60] sm:$0xff]  ;;  %v57_v43 = vld [vmem:[%s385_s1 + $0xf0] sm:$0xff] }
  0x1c   :  { %v216_v40 = vpack.c.bf16 %v56_v38, %v55_v37  ;;  %v40_v42 = vld [vmem:[%s385_s1 + $0x68] sm:$0xff]  ;;  %v58_v44 = vld [vmem:[%s385_s1 + $0xf8] sm:$0xff]  ;;  %v41_v47 = vld [vmem:[%s385_s1 + $0x70] sm:$0xff] }
  0x1d   :  { %v218_v45 = vpack.c.bf16 %v40_v42, %v39_v41  ;;  %v220_v46 = vpack.c.bf16 %v58_v44, %v57_v43  ;;  %v42_v48 = vld [vmem:[%s385_s1 + $0x78] sm:$0xff]  ;;  %v155_v51 = vld [vmem:[#allocation2] ss:$0 sm:$0xff] }
  0x1e   :  { %203 = vmatpush3.bf16.msra.mxu0 %v202_v19  ;;  %v222_v49 = vpack.c.bf16 %v42_v48, %v41_v47 }
  0x1f   :  { %205 = vmatprep.subr.bf16.mxu0 %v204_v20 }
  0x22   :  { %207 = vmatpush3.bf16.msra.mxu0 %v206_v27 }
  0x23   :  { %209 = vmatprep.subr.bf16.mxu0 %v208_v28 }
  0x26   :  { %211 = vmatpush3.bf16.msra.mxu0 %v210_v33 }
  0x27   :  { %213 = vmatprep.subr.bf16.mxu0 %v212_v34 }
  0x2a   :  { %215 = vmatpush3.bf16.msra.mxu0 %v214_v39 }
  0x2b   :  { %217 = vmatprep.subr.bf16.mxu0 %v216_v40 }
  0x2e   :  { %219 = vmatpush3.bf16.msra.mxu0 %v218_v45 }
  0x2f   :  { %221 = vmatprep.subr.bf16.mxu0 %v220_v46 }
  0x32   :  { %223 = vmatpush3.bf16.msra.mxu0 %v222_v49 }
  0x35   :  { %142 = vmatmul.mubr.f32.vlgmr.msra.gmra.mrb[0].mxu0 %v156_v25 }
 0x108   :  { %v189_v50 = vpop.f32.mrb[0].mxu0 }
 0x109   :  { %v190_v52 = vpop.f32.mrb[1].mxu0 }
 0x10a   :  { %v191_v53 = vadd.f32 %v190_v52, %v189_v50 }
 0x10c   :  { %v144_v54 = vadd.f32 %v191_v53, %v155_v51 }
 0x10e   :  { %v147_v55 = vmax.f32 %v144_v54, 0.0 }
 0x110   :  { %149 = vst.msk [vmem:[%s387_s3] sm:$0x3] %vm148_vm0, %v147_v55 }
 0x111   :  { %154 = vsyncpa [#allocation3], 1 }

// kernel: generator_forward.12
= control target key start
LH: loop header
LB: loop body
LE: loop exit
PB: predicated region body
PF: predicated region fallthrough
CT: control target
= control target key end

     0   :  { %8 = vsyncpa [#allocation3], 0  ;;  %s344_s0 = inlined_call_operand.vmem [shape: f32[16,112], index: 0, kind: input, shape index: {}]   ;;  %s345_s1 = inlined_call_operand.hbm [shape: f32[112,256], index: 1, kind: input, shape index: {}]   ;;  %s346_s2 = inlined_call_operand.hbm [shape: f32[1,256], index: 2, kind: input, shape index: {}]   ;;  %s347_s3 = inlined_call_operand.vmem [shape: f32[16,256], index: 3, kind: output, shape index: {}]  }
   0x1   :  { %9 = vsyncpa [#allocation5], 0  ;;  %s277_s12 = smov [#allocation2]   ;;  %s229_s16 = scalar_lea.hbm %s345_s1, 3584 }
   0x2   :  { %s17_s13 = sshll.u32 %s277_s12, 4  ;;  %p230_p0 = scmp.ne.s32.totalorder %s345_s1, %s229_s16  ;;  %s18_s13 = int_to_ptr.vmem [resolvable:$true] %s17_s13 }
   0x3   :  { %p233_p1 = scmp.lt.u32.totalorder %s229_s16, %s345_s1 }
   0x5   :  { %p235_p2 = pnand %p233_p1, %p230_p0 }
   0x7   :  { %238 = shalt.err (!%p235_p2)
}
   0x8   :  { %s239_s21 = scalar_lea.vmem %s18_s13, 3584  ;;  %p244_p4 = scmp.lt.s32.totalorder %s18_s13, %s18_s13 }
   0x9   :  { %p240_p3 = scmp.ne.s32.totalorder %s18_s13, %s239_s21  ;;  %p245_p5 = scmp.lt.s32.totalorder %s239_s21, %s239_s21 }
   0xb   :  { %p246_p6 = por %p245_p5, %p244_p4 }
   0xd   :  { %p247_p7 = pnand %p246_p6, %p240_p3 }
   0xf   :  { %250 = shalt.err (!%p247_p7)
}
  0x10   :  { %s278_s22 = smov 256   ;;  %s279_s23 = smov 16  }
  0x11   :  { %23 = dma.hbm_to_vmem [thread:$0]  %s345_s1, 3584, %s18_s13, [#allocation3], %s278_s22, %s278_s22, %s279_s23  }
  0x12   :  { %s280_s26 = smov [#allocation4]   ;;  %s251_s30 = scalar_lea.hbm %s346_s2, 32 }
  0x13   :  { %s30_s27 = sshll.u32 %s280_s26, 4  ;;  %p252_p8 = scmp.ne.s32.totalorder %s346_s2, %s251_s30  ;;  %s31_s27 = int_to_ptr.vmem [resolvable:$true] %s30_s27 }
  0x14   :  { %p255_p9 = scmp.lt.u32.totalorder %s251_s30, %s346_s2 }
  0x16   :  { %p257_p10 = pnand %p255_p9, %p252_p8 }
  0x18   :  { %260 = shalt.err (!%p257_p10)
}
  0x19   :  { %s261_s8 = scalar_lea.vmem %s31_s27, 32  ;;  %p266_p12 = scmp.lt.s32.totalorder %s31_s27, %s31_s27 }
  0x1a   :  { %p262_p11 = scmp.ne.s32.totalorder %s31_s27, %s261_s8  ;;  %p267_p13 = scmp.lt.s32.totalorder %s261_s8, %s261_s8 }
  0x1c   :  { %p268_p0 = por %p267_p13, %p266_p12 }
  0x1e   :  { %p269_p1 = pnand %p268_p0, %p262_p11 }
  0x20   :  { %272 = shalt.err (!%p269_p1)
}
  0x21   :  { %33 = dma.hbm_to_vmem [thread:$0]  %s346_s2, 32, %s31_s27, [#allocation5]  }
  0x22   :  { %273 = dma.done.wait [#allocation3], 3584  }
  0x23   :  { %274 = vsyncadd [#allocation3], 4294963712 }
  0x24   :  { %275 = dma.done.wait [#allocation5], 32  }
  0x25   :  { %276 = vsyncadd [#allocation5], 4294967264  ;;  %v281_v0 = vmov 0.0   ;;  %v43_v1 = vld [vmem:[#allocation2 + $0x8] sm:$0xff]  ;;  %v45_v2 = vld [vmem:[#allocation2 + $0x18] sm:$0xff]  ;;  %vm82_vm0 = vcmask 916480   ;;  %v72_v45 = vlaneseq }
  0x26   :  { %153 = vmatprep.mubr.f32.mxu0 %v281_v0  ;;  %159 = vmatprep.mubr.f32.mxu1 %v281_v0  ;;  %v42_v3 = vld [vmem:[#allocation2] sm:$0xff]  ;;  %v182_v4 = vpack.c.bf16 %v45_v2, %v43_v1  ;;  %v44_v5 = vld [vmem:[#allocation2 + $0x10] sm:$0xff]  ;;  %v47_v6 = vld [vmem:[#allocation2 + $0x28] sm:$0xff] }
  0x27   :  { %v49_v7 = vld [vmem:[#allocation2 + $0x38] sm:$0xff]  ;;  %v184_v8 = vpack.c.bf16 %v44_v5, %v42_v3  ;;  %v46_v10 = vld [vmem:[#allocation2 + $0x20] sm:$0xff]  ;;  %v48_v11 = vld [vmem:[#allocation2 + $0x30] sm:$0xff]  ;;  %v73_v46 = vshrl.u32 %v72_v45, 7 }
  0x28   :  { %v186_v9 = vpack.c.bf16 %v49_v7, %v47_v6  ;;  %v51_v12 = vld [vmem:[#allocation2 + $0x48] sm:$0xff]  ;;  %183 = vmatprep.subr.bf16.mxu0 %v182_v4  ;;  %210 = vmatprep.subr.bf16.mxu1 %v182_v4  ;;  %v53_v13 = vld [vmem:[#allocation2 + $0x58] sm:$0xff]  ;;  %v188_v14 = vpack.c.bf16 %v48_v11, %v46_v10  ;;  %v50_v16 = vld [vmem:[#allocation2 + $0x40] sm:$0xff] }
  0x29   :  { %185 = vmatpush1.bf16.msra.mxu0 %v184_v8  ;;  %217 = vmatpush1.bf16.msra.mxu1 %v184_v8  ;;  %v190_v15 = vpack.c.bf16 %v53_v13, %v51_v12  ;;  %v52_v17 = vld [vmem:[#allocation2 + $0x50] sm:$0xff]  ;;  %v55_v18 = vld [vmem:[#allocation2 + $0x68] sm:$0xff]  ;;  %v57_v19 = vld [vmem:[#allocation2 + $0x78] sm:$0xff]  ;;  %v74_v47 = vsub.s32 0, %v73_v46  ;;  %v78_v49 = vsub.s32 1, %v73_v46 }
  0x2a   :  { %187 = vmatprep.subr.bf16.mxu0 %v186_v9  ;;  %211 = vmatprep.subr.bf16.mxu1 %v186_v9  ;;  %v192_v20 = vpack.c.bf16 %v52_v17, %v50_v16  ;;  %v194_v21 = vpack.c.bf16 %v57_v19, %v55_v18  ;;  %v54_v22 = vld [vmem:[#allocation2 + $0x60] sm:$0xff]  ;;  %v56_v23 = vld [vmem:[#allocation2 + $0x70] sm:$0xff]  ;;  %v59_v24 = vld [vmem:[#allocation2 + $0x88] sm:$0xff] }
  0x2b   :  { %v61_v25 = vld [vmem:[#allocation2 + $0x98] sm:$0xff]  ;;  %v196_v26 = vpack.c.bf16 %v56_v23, %v54_v22  ;;  %v58_v28 = vld [vmem:[#allocation2 + $0x80] sm:$0xff]  ;;  %v60_v29 = vld [vmem:[#allocation2 + $0x90] sm:$0xff] }
  0x2c   :  { %v198_v27 = vpack.c.bf16 %v61_v25, %v59_v24  ;;  %v63_v30 = vld [vmem:[#allocation2 + $0xa8] sm:$0xff]  ;;  %v65_v31 = vld [vmem:[#allocation2 + $0xb8] sm:$0xff]  ;;  %v200_v32 = vpack.c.bf16 %v60_v29, %v58_v28  ;;  %v62_v34 = vld [vmem:[#allocation2 + $0xa0] sm:$0xff] }
  0x2d   :  { %189 = vmatpush1.bf16.msra.mxu0 %v188_v14  ;;  %218 = vmatpush1.bf16.msra.mxu1 %v188_v14  ;;  %v202_v33 = vpack.c.bf16 %v65_v31, %v63_v30  ;;  %v64_v35 = vld [vmem:[#allocation2 + $0xb0] sm:$0xff]  ;;  %v67_v36 = vld [vmem:[#allocation2 + $0xc8] sm:$0xff]  ;;  %v69_v37 = vld [vmem:[#allocation2 + $0xd8] sm:$0xff] }
  0x2e   :  { %191 = vmatprep.subr.bf16.mxu0 %v190_v15  ;;  %212 = vmatprep.subr.bf16.mxu1 %v190_v15  ;;  %v204_v38 = vpack.c.bf16 %v64_v35, %v62_v34  ;;  %v206_v39 = vpack.c.bf16 %v69_v37, %v67_v36  ;;  %v66_v40 = vld [vmem:[#allocation2 + $0xc0] sm:$0xff]  ;;  %v68_v41 = vld [vmem:[#allocation2 + $0xd0] sm:$0xff]  ;;  %v41_v44 = vld [vmem:[%s344_s0 + $0x8] sm:$0xff] }
  0x2f   :  { %v208_v42 = vpack.c.bf16 %v68_v41, %v66_v40  ;;  %v40_v43 = vld [vmem:[%s344_s0] sm:$0xff] }
  0x30   :  { %v70_v48 = vld [vmem:[#allocation4] sm:$0x3] }
  0x31   :  { %193 = vmatpush1.bf16.msra.mxu0 %v192_v20  ;;  %219 = vmatpush1.bf16.msra.mxu1 %v192_v20  ;;  %v75_v50 = vrot.slane %v70_v48, %v74_v47  ;;  %v79_v51 = vrot.slane %v70_v48, %v78_v49 }
  0x32   :  { %195 = vmatprep.subr.bf16.mxu0 %v194_v21  ;;  %213 = vmatprep.subr.bf16.mxu1 %v194_v21 }
  0x35   :  { %197 = vmatpush1.bf16.msra.mxu0 %v196_v26  ;;  %220 = vmatpush1.bf16.msra.mxu1 %v196_v26 }
  0x36   :  { %199 = vmatprep.subr.bf16.mxu0 %v198_v27  ;;  %214 = vmatprep.subr.bf16.mxu1 %v198_v27 }
  0x39   :  { %201 = vmatpush1.bf16.msra.mxu0 %v200_v32  ;;  %221 = vmatpush1.bf16.msra.mxu1 %v200_v32 }
  0x3a   :  { %203 = vmatprep.subr.bf16.mxu0 %v202_v33  ;;  %215 = vmatprep.subr.bf16.mxu1 %v202_v33 }
  0x3d   :  { %205 = vmatpush1.bf16.msra.mxu0 %v204_v38  ;;  %222 = vmatpush1.bf16.msra.mxu1 %v204_v38 }
  0x3e   :  { %207 = vmatprep.subr.bf16.mxu0 %v206_v39  ;;  %216 = vmatprep.subr.bf16.mxu1 %v206_v39 }
  0x41   :  { %209 = vmatpush1.bf16.msra.mxu0 %v208_v42  ;;  %223 = vmatpush1.bf16.msra.mxu1 %v208_v42 }
  0x44   :  { %180 = vmatmul.mubr.msk.f32.vlgmr.msra.gmra.mrb[0].mxu0 %vm82_vm0, %v40_v43  ;;  %181 = vmatmul.mubr.msk.f32.vlgmr.msra.gmra.mrb[0].mxu1 %vm82_vm0, %v41_v44 }
 0x117   :  { %v155_v52 = vpop.f32.mrb[0].mxu0  ;;  %v161_v53 = vpop.f32.mrb[0].mxu1 }
 0x118   :  { %v156_v54 = vadd.f32 %v155_v52, %v75_v50  ;;  %v162_v55 = vadd.f32 %v161_v53, %v75_v50  ;;  %v157_v56 = vpop.f32.mrb[1].mxu0  ;;  %v163_v57 = vpop.f32.mrb[1].mxu1 }
 0x119   :  { %v158_v58 = vadd.f32 %v157_v56, %v79_v51  ;;  %v164_v59 = vadd.f32 %v163_v57, %v79_v51 }
 0x11a   :  { %v166_v60 = vmax.f32 %v156_v54, 0.0  ;;  %v168_v61 = vmax.f32 %v162_v55, 0.0 }
 0x11b   :  { %v167_v62 = vmax.f32 %v158_v58, 0.0  ;;  %v169_v63 = vmax.f32 %v164_v59, 0.0 }
 0x11c   :  { %170 = vst [vmem:[%s347_s3] sm:$0xff] %v166_v60  ;;  %172 = vst [vmem:[%s347_s3 + $0x10] sm:$0xff] %v168_v61 }
 0x11d   :  { %171 = vst [vmem:[%s347_s3 + $0x8] sm:$0xff] %v167_v62  ;;  %173 = vst [vmem:[%s347_s3 + $0x18] sm:$0xff] %v169_v63 }
 0x11e   :  { %178 = vsyncpa [#allocation3], 1 }
 0x11f   :  { %179 = vsyncpa [#allocation5], 1 }

// kernel: generator_forward.11
= control target key start
LH: loop header
LB: loop body
LE: loop exit
PB: predicated region body
PF: predicated region fallthrough
CT: control target
= control target key end

     0   :  { %17 = vsyncpa [#allocation3], 0  ;;  %s4790_s0 = inlined_call_operand.vmem [shape: f32[8,2,16], index: 0, kind: input, shape index: {}]   ;;  %s4791_s1 = inlined_call_operand.vmem [shape: f32[8,2,10], index: 1, kind: input, shape index: {}]   ;;  %s4792_s2 = inlined_call_operand.hbm [shape: f32[16,32], index: 2, kind: input, shape index: {}]   ;;  %s4793_s3 = inlined_call_operand.hbm [shape: f32[1,32], index: 3, kind: input, shape index: {}]   ;;  %s4794_s4 = inlined_call_operand.hbm [shape: f32[32,32], index: 4, kind: input, shape index: {}]   ;;  %s4795_s5 = inlined_call_operand.hbm [shape: f32[32,32], index: 5, kind: input, shape index: {}]   ;;  %s4796_s6 = inlined_call_operand.hbm [shape: f32[1,32], index: 6, kind: input, shape index: {}]   ;;  %s4797_s7 = inlined_call_operand.hbm [shape: f32[10,16], index: 7, kind: input, shape index: {}]   ;;  %s4798_s8 = inlined_call_operand.hbm [shape: f32[16,16], index: 8, kind: input, shape index: {}]   ;;  %s4799_s9 = inlined_call_operand.hbm [shape: f32[1,16], index: 9, kind: input, shape index: {}]   ;;  %s4800_s10 = inlined_call_operand.vmem [shape: f32[8,2,32], index: 10, kind: output, shape index: {0}]   ;;  %s4801_s11 = inlined_call_operand.vmem [shape: f32[8,2,16], index: 11, kind: output, shape index: {1}]  }
   0x1   :  { %18 = vsyncpa [#allocation5], 0 }
   0x2   :  { %19 = vsyncpa [#allocation8], 0 }
   0x3   :  { %20 = vsyncpa [#allocation11], 0 }
   0x4   :  { %21 = vsyncpa [#allocation14], 0  ;;  %s4197_s17 = smov [#allocation4]   ;;  %s4011_s21 = scalar_lea.hbm %s4793_s3, 16 }
   0x5   :  { %s44_s18 = sshll.u32 %s4197_s17, 4  ;;  %p4012_p0 = scmp.ne.s32.totalorder %s4793_s3, %s4011_s21  ;;  %s45_s18 = int_to_ptr.vmem [resolvable:$true] %s44_s18 }
   0x6   :  { %p4015_p1 = scmp.lt.u32.totalorder %s4011_s21, %s4793_s3 }
   0x8   :  { %p4017_p2 = pnand %p4015_p1, %p4012_p0 }
   0xa   :  { %4020 = shalt.err (!%p4017_p2)
}
   0xb   :  { %s4021_s26 = scalar_lea.vmem %s45_s18, 16  ;;  %s4025_s27 = scalar_lea.vmem %s45_s18, 32 }
   0xc   :  { %p4022_p3 = scmp.ne.s32.totalorder %s45_s18, %s4021_s26  ;;  %p4026_p4 = scmp.lt.s32.totalorder %s45_s18, %s45_s18 }
   0xd   :  { %p4027_p5 = scmp.lt.s32.totalorder %s4025_s27, %s4021_s26 }
   0xf   :  { %p4028_p6 = por %p4027_p5, %p4026_p4 }
  0x11   :  { %p4029_p7 = pnand %p4028_p6, %p4022_p3 }
  0x13   :  { %4032 = shalt.err (!%p4029_p7)
}
  0x14   :  { %47 = dma.hbm_to_vmem [thread:$0]  %s4793_s3, 16, %s45_s18, [#allocation5]  }
  0x15   :  { %s4198_s30 = smov [#allocation7]   ;;  %s4199_s13 = smov [#allocation10]  }
  0x16   :  { %s65_s12 = sshll.u32 %s4198_s30, 4  ;;  %s87_s14 = sshll.u32 %s4199_s13, 4  ;;  %s66_s12 = int_to_ptr.vmem [resolvable:$true] %s65_s12  ;;  %s88_s14 = int_to_ptr.vmem [resolvable:$true] %s87_s14 }
  0x17   :  { %s4033_s17 = scalar_lea.hbm %s4795_s5, 512 }
  0x18   :  { %p4034_p8 = scmp.ne.s32.totalorder %s4795_s5, %s4033_s17  ;;  %p4037_p9 = scmp.lt.u32.totalorder %s4033_s17, %s4795_s5 }
  0x1a   :  { %p4039_p10 = pnand %p4037_p9, %p4034_p8 }
  0x1c   :  { %4042 = shalt.err (!%p4039_p10)
}
  0x1d   :  { %s4043_s3 = scalar_lea.vmem %s66_s12, 512  ;;  %p4048_p12 = scmp.lt.s32.totalorder %s66_s12, %s66_s12 }
  0x1e   :  { %p4044_p11 = scmp.ne.s32.totalorder %s66_s12, %s4043_s3  ;;  %p4049_p13 = scmp.lt.s32.totalorder %s4043_s3, %s4043_s3 }
  0x20   :  { %p4050_p0 = por %p4049_p13, %p4048_p12 }
  0x22   :  { %p4051_p1 = pnand %p4050_p0, %p4044_p11 }
  0x24   :  { %4054 = shalt.err (!%p4051_p1)
}
  0x25   :  { %s4200_s18 = smov 128   ;;  %s4201_s23 = smov 8  }
  0x26   :  { %71 = dma.hbm_to_vmem [thread:$0]  %s4795_s5, 512, %s66_s12, [#allocation8], %s4200_s18, %s4200_s18, %s4201_s23  }
  0x27   :  { %s4055_s28 = scalar_lea.hbm %s4797_s7, 256 }
  0x28   :  { %p4056_p2 = scmp.ne.s32.totalorder %s4797_s7, %s4055_s28  ;;  %p4059_p3 = scmp.lt.u32.totalorder %s4055_s28, %s4797_s7 }
  0x2a   :  { %p4061_p4 = pnand %p4059_p3, %p4056_p2 }
  0x2c   :  { %4064 = shalt.err (!%p4061_p4)
}
  0x2d   :  { %s4065_s16 = scalar_lea.vmem %s88_s14, 256  ;;  %p4070_p6 = scmp.lt.s32.totalorder %s88_s14, %s88_s14 }
  0x2e   :  { %p4066_p5 = scmp.ne.s32.totalorder %s88_s14, %s4065_s16  ;;  %p4071_p7 = scmp.lt.s32.totalorder %s4065_s16, %s4065_s16 }
  0x30   :  { %p4072_p8 = por %p4071_p7, %p4070_p6 }
  0x32   :  { %p4073_p9 = pnand %p4072_p8, %p4066_p5 }
  0x34   :  { %4076 = shalt.err (!%p4073_p9)
}
  0x35   :  { %93 = dma.hbm_to_vmem [thread:$0]  %s4797_s7, 256, %s88_s14, [#allocation11], %s4200_s18, %s4200_s18, %s4201_s23  }
  0x36   :  { %s4202_s17 = smov [#allocation2]   ;;  %s4203_s20 = smov [#allocation6]  }
  0x37   :  { %s31_s19 = sshll.u32 %s4202_s17, 4  ;;  %s53_s21 = sshll.u32 %s4203_s20, 4  ;;  %s32_s19 = int_to_ptr.vmem [resolvable:$true] %s31_s19  ;;  %s54_s21 = int_to_ptr.vmem [resolvable:$true] %s53_s21 }
  0x38   :  { %s4077_s24 = scalar_lea.hbm %s4792_s2, 256 }
  0x39   :  { %p4078_p10 = scmp.ne.s32.totalorder %s4792_s2, %s4077_s24  ;;  %p4081_p11 = scmp.lt.u32.totalorder %s4077_s24, %s4792_s2 }
  0x3b   :  { %p4083_p12 = pnand %p4081_p11, %p4078_p10 }
  0x3d   :  { %4086 = shalt.err (!%p4083_p12)
}
  0x3e   :  { %s4087_s7 = scalar_lea.vmem %s32_s19, 256  ;;  %p4092_p0 = scmp.lt.s32.totalorder %s32_s19, %s32_s19 }
  0x3f   :  { %p4088_p13 = scmp.ne.s32.totalorder %s32_s19, %s4087_s7  ;;  %p4093_p1 = scmp.lt.s32.totalorder %s4087_s7, %s4087_s7 }
  0x41   :  { %p4094_p2 = por %p4093_p1, %p4092_p0 }
  0x43   :  { %p4095_p3 = pnand %p4094_p2, %p4088_p13 }
  0x45   :  { %4098 = shalt.err (!%p4095_p3)
}
  0x46   :  { %37 = dma.hbm_to_vmem [thread:$0]  %s4792_s2, 256, %s32_s19, [#allocation3], %s4200_s18, %s4200_s18, %s4201_s23  }
  0x47   :  { %s4099_s15 = scalar_lea.hbm %s4794_s4, 512 }
  0x48   :  { %p4100_p4 = scmp.ne.s32.totalorder %s4794_s4, %s4099_s15  ;;  %p4103_p5 = scmp.lt.u32.totalorder %s4099_s15, %s4794_s4 }
  0x4a   :  { %p4105_p6 = pnand %p4103_p5, %p4100_p4 }
  0x4c   :  { %4108 = shalt.err (!%p4105_p6)
}
  0x4d   :  { %s4109_s20 = scalar_lea.vmem %s54_s21, 512  ;;  %p4114_p8 = scmp.lt.s32.totalorder %s54_s21, %s54_s21 }
  0x4e   :  { %p4110_p7 = scmp.ne.s32.totalorder %s54_s21, %s4109_s20  ;;  %p4115_p9 = scmp.lt.s32.totalorder %s4109_s20, %s4109_s20 }
  0x50   :  { %p4116_p10 = por %p4115_p9, %p4114_p8 }
  0x52   :  { %p4117_p11 = pnand %p4116_p10, %p4110_p7 }
  0x54   :  { %4120 = shalt.err (!%p4117_p11)
}
  0x55   :  { %59 = dma.hbm_to_vmem [thread:$0]  %s4794_s4, 512, %s54_s21, [#allocation5], %s4200_s18, %s4200_s18, %s4201_s23  }
  0x56   :  { %s4204_s22 = smov [#allocation9]   ;;  %s4205_s24 = smov [#allocation12]  }
  0x57   :  { %s78_s3 = sshll.u32 %s4204_s22, 4  ;;  %s99_s25 = sshll.u32 %s4205_s24, 4  ;;  %s79_s3 = int_to_ptr.vmem [resolvable:$true] %s78_s3  ;;  %s100_s25 = int_to_ptr.vmem [resolvable:$true] %s99_s25 }
  0x58   :  { %s4121_s28 = scalar_lea.hbm %s4796_s6, 16 }
  0x59   :  { %p4122_p12 = scmp.ne.s32.totalorder %s4796_s6, %s4121_s28  ;;  %p4125_p13 = scmp.lt.u32.totalorder %s4121_s28, %s4796_s6 }
  0x5b   :  { %p4127_p0 = pnand %p4125_p13, %p4122_p12 }
  0x5d   :  { %4130 = shalt.err (!%p4127_p0)
}
  0x5e   :  { %s4131_s4 = scalar_lea.vmem %s79_s3, 16  ;;  %s4135_s21 = scalar_lea.vmem %s79_s3, 32 }
  0x5f   :  { %p4132_p1 = scmp.ne.s32.totalorder %s79_s3, %s4131_s4  ;;  %p4136_p2 = scmp.lt.s32.totalorder %s79_s3, %s79_s3 }
  0x60   :  { %p4137_p3 = scmp.lt.s32.totalorder %s4135_s21, %s4131_s4 }
  0x62   :  { %p4138_p4 = por %p4137_p3, %p4136_p2 }
  0x64   :  { %p4139_p5 = pnand %p4138_p4, %p4132_p1 }
  0x66   :  { %4142 = shalt.err (!%p4139_p5)
}
  0x67   :  { %81 = dma.hbm_to_vmem [thread:$0]  %s4796_s6, 16, %s79_s3, [#allocation8]  }
  0x68   :  { %s4143_s12 = scalar_lea.hbm %s4798_s8, 256 }
  0x69   :  { %p4144_p6 = scmp.ne.s32.totalorder %s4798_s8, %s4143_s12  ;;  %p4147_p7 = scmp.lt.u32.totalorder %s4143_s12, %s4798_s8 }
  0x6b   :  { %p4149_p8 = pnand %p4147_p7, %p4144_p6 }
  0x6d   :  { %4152 = shalt.err (!%p4149_p8)
}
  0x6e   :  { %s4153_s22 = scalar_lea.vmem %s100_s25, 256  ;;  %p4158_p10 = scmp.lt.s32.totalorder %s100_s25, %s100_s25 }
  0x6f   :  { %p4154_p9 = scmp.ne.s32.totalorder %s100_s25, %s4153_s22  ;;  %p4159_p11 = scmp.lt.s32.totalorder %s4153_s22, %s4153_s22 }
  0x71   :  { %p4160_p12 = por %p4159_p11, %p4158_p10 }
  0x73   :  { %p4161_p13 = pnand %p4160_p12, %p4154_p9 }
  0x75   :  { %4164 = shalt.err (!%p4161_p13)
}
  0x76   :  { %105 = dma.hbm_to_vmem [thread:$0]  %s4798_s8, 256, %s100_s25, [#allocation11], %s4200_s18, %s4200_s18, %s4201_s23  }
  0x77   :  { %s4206_s24 = smov [#allocation13]   ;;  %s4165_s7 = scalar_lea.hbm %s4799_s9, 16 }
  0x78   :  { %s112_s26 = sshll.u32 %s4206_s24, 4  ;;  %p4166_p0 = scmp.ne.s32.totalorder %s4799_s9, %s4165_s7  ;;  %s113_s26 = int_to_ptr.vmem [resolvable:$true] %s112_s26 }
  0x79   :  { %p4169_p1 = scmp.lt.u32.totalorder %s4165_s7, %s4799_s9 }
  0x7b   :  { %p4171_p2 = pnand %p4169_p1, %p4166_p0 }
  0x7d   :  { %4174 = shalt.err (!%p4171_p2)
}
  0x7e   :  { %s4175_s21 = scalar_lea.vmem %s113_s26, 16  ;;  %s4179_s8 = scalar_lea.vmem %s113_s26, 32 }
  0x7f   :  { %p4176_p3 = scmp.ne.s32.totalorder %s113_s26, %s4175_s21  ;;  %p4180_p4 = scmp.lt.s32.totalorder %s113_s26, %s113_s26 }
  0x80   :  { %p4181_p5 = scmp.lt.s32.totalorder %s4179_s8, %s4175_s21 }
  0x82   :  { %p4182_p6 = por %p4181_p5, %p4180_p4 }
  0x84   :  { %p4183_p7 = pnand %p4182_p6, %p4176_p3 }
  0x86   :  { %4186 = shalt.err (!%p4183_p7)
}
  0x87   :  { %115 = dma.hbm_to_vmem [thread:$0]  %s4799_s9, 16, %s113_s26, [#allocation14]  }
  0x88   :  { %4187 = dma.done.wait [#allocation3], 256  }
  0x89   :  { %4188 = vsyncadd [#allocation3], 4294967040 }
  0x8a   :  { %4189 = dma.done.wait [#allocation5], 528  }
  0x8b   :  { %4190 = vsyncadd [#allocation5], 4294966768 }
  0x8c   :  { %4191 = dma.done.wait [#allocation8], 528  }
  0x8d   :  { %4192 = vsyncadd [#allocation8], 4294966768 }
  0x8e   :  { %4193 = dma.done.wait [#allocation11], 512  }
  0x8f   :  { %4194 = vsyncadd [#allocation11], 4294966784 }
  0x90   :  { %4195 = dma.done.wait [#allocation14], 16  }
  0x91   :  { %4196 = vsyncadd [#allocation14], 4294967280  ;;  %v4207_v0 = vmov 0.0|0.0   ;;  %vm4208_vm0 = vmmov 0   ;;  %v4209_v1 = vmov 0.0   ;;  %v140_v2 = vld [vmem:[#allocation2] sm:$0xff] }
  0x92   :  { %3789 = vmatprep.subr.bf16.mxu0 %v4207_v0  ;;  %3449 = vmatprep.mubr.msk.f32.mxu0 %vm4208_vm0, %v4209_v1  ;;  %v141_v3 = vld [vmem:[#allocation2 + $0x8] sm:$0xff]  ;;  %v147_v5 = vld [vmem:[#allocation7] sm:$0xff]  ;;  %v148_v6 = vld [vmem:[#allocation7 + $0x8] sm:$0xff]  ;;  %vm164_vm1 = vcmask 130048   ;;  %vm473_vm2 = vcmask 1041408   ;;  %vm239_vm3 = vcmask 261120  }
  0x93   :  { %3792 = vmatprep.subr.bf16.mxu1 %v4207_v0  ;;  %3460 = vmatprep.mubr.msk.f32.mxu1 %vm4208_vm0, %v4209_v1  ;;  %v4388_v4 = vpack.c.bf16 %v141_v3, %v140_v2  ;;  %v143_v7 = vld [vmem:[#allocation6] sm:$0xff]  ;;  %v4390_v8 = vpack.c.bf16 %v148_v6, %v147_v5  ;;  %v144_v9 = vld [vmem:[#allocation6 + $0x8] sm:$0xff]  ;;  %v149_v12 = vld [vmem:[#allocation7 + $0x10] sm:$0xff]  ;;  %vm4210_vm4 = vmmov 1   ;;  %vm469_vm6 = vcmask 80896  }
  0x94   :  { %v157_v10 = vld [vmem:[%s4790_s0] sm:$0x3]  ;;  %v4396_v11 = vpack.c.bf16 %v144_v9, %v143_v7  ;;  %v150_v13 = vld [vmem:[#allocation7 + $0x18] sm:$0xff]  ;;  %v145_v15 = vld [vmem:[#allocation6 + $0x10] sm:$0xff]  ;;  %vm394_vm7 = vcmask 254976   ;;  %vm555_vm8 = vcmask 123904  }
  0x95   :  { %3791 = vmatpush3.bf16.msra.mxu0 %v4388_v4  ;;  %3794 = vmatpush3.bf16.msra.mxu1 %v4390_v8  ;;  %v4406_v14 = vpack.c.bf16 %v150_v13, %v149_v12  ;;  %v146_v16 = vld [vmem:[#allocation6 + $0x18] sm:$0xff]  ;;  %v3223_v21 = vld [vmem:[%s4790_s0 + $0x2] sm:$0x3]  ;;  %v152_v23 = vld [vmem:[#allocation10] sm:$0xff] }
  0x96   :  { %3798 = vmatprep.subr.bf16.mxu0 %v4207_v0  ;;  %3795 = vmatprep.subr.bf16.mxu1 %v4207_v0  ;;  %v4408_v17 = vpack.c.bf16 %v146_v16, %v145_v15  ;;  %v154_v18 = vld [vmem:[#allocation12] sm:$0xff]  ;;  %v155_v19 = vld [vmem:[#allocation12 + $0x8] sm:$0xff]  ;;  %v153_v24 = vld [vmem:[#allocation10 + $0x8] sm:$0x3] }
  0x97   :  { %v4414_v20 = vpack.c.bf16 %v155_v19, %v154_v18  ;;  %v4436_v22 = vld [vmem:[#allocation4] ss:$0 sm:$0xff]  ;;  %v4439_v28 = vpack.c.bf16 %v153_v24, %v152_v23  ;;  %vm4441_vm5 = vmpackc.low %vm473_vm2, %vm4210_vm4  ;;  %v396_v31 = vld [vmem:[%s4791_s1] sm:$0x3] }
  0x98   :  { %3450 = vmatmul.mubr.msk.f32.vlgmr.msra.gmra.mrb[0].mxu0 %vm164_vm1, %v157_v10  ;;  %v3228_v40 = vld [vmem:[%s4791_s1 + $0x2] sm:$0x3]  ;;  %v4480_v41 = vld [vmem:[#allocation9] ss:$0 sm:$0xff]  ;;  %v4483_v46 = vld [vmem:[#allocation13] ss:$0 sm:$0xff] }
  0x99   :  { %3800 = vmatpush3.bf16.msra.mxu0 %v4396_v11  ;;  %3471 = vmatprep.mubr.msk.f32.mxu0 %vm4208_vm0, %v4209_v1  ;;  %v3233_v53 = vld [vmem:[%s4790_s0 + $0x4] sm:$0x3]  ;;  %v3243_v15 = vld [vmem:[%s4790_s0 + $0x6] sm:$0x3] }
  0x9a   :  { %3801 = vmatprep.subr.bf16.mxu0 %v4207_v0  ;;  %3797 = vmatpush3.bf16.msra.mxu1 %v4406_v14  ;;  %v3238_v12 = vld [vmem:[%s4791_s1 + $0x4] sm:$0x3] }
  0x9b   :  { %3804 = vmatprep.subr.bf16.mxu1 %v4207_v0 }
  0x9d   :  { %3803 = vmatpush3.bf16.msra.mxu0 %v4408_v17  ;;  %3461 = vmatmul.mubr.f32.vlgmr.msra.gmra.mrb[0].mxu1 %v4209_v1 }
  0x9e   :  { %3807 = vmatprep.subr.bf16.mxu0 %v4207_v0  ;;  %3806 = vmatpush3.bf16.msra.mxu1 %v4414_v20 }
  0x9f   :  { %3478 = vmatprep.mubr.msk.f32.mxu1 %vm4208_vm0, %v4209_v1  ;;  %3811 = vmatprep.subr.bf16.mxu1 %v4207_v0 }
  0xa1   :  { %3479 = vmatmul.mubr.f32.vlgmr.msra.gmra.mrb[2].mxu1 %v4209_v1 }
  0xa2   :  { %3813 = vmatpush3.bf16.msra.mxu1 %v4388_v4  ;;  %3492 = vmatprep.mubr.msk.f32.mxu1 %vm4208_vm0, %v4209_v1 }
  0xa3   :  { %3820 = vmatprep.subr.bf16.mxu1 %v4207_v0 }
  0xa5   :  { %3493 = vmatmul.mubr.msk.f32.vlgmr.msra.gmra.mrb[4].mxu1 %vm164_vm1, %v3223_v21 }
  0xa6   :  { %3822 = vmatpush3.bf16.msra.mxu1 %v4396_v11  ;;  %3514 = vmatprep.mubr.msk.f32.mxu1 %vm4208_vm0, %v4209_v1 }
  0xa7   :  { %3823 = vmatprep.subr.bf16.mxu1 %v4207_v0 }
  0xaa   :  { %3825 = vmatpush3.bf16.msra.mxu1 %v4408_v17 }
  0xab   :  { %3829 = vmatprep.subr.bf16.mxu1 %v4207_v0 }
 0x16b   :  { %v234_v25 = vpop.f32.mrb[0].mxu0 }
 0x16c   :  { %v235_v26 = vadd.f32 %v4436_v22, %v234_v25  ;;  %v3451_v27 = vpop.f32.mrb[1].mxu0 }
 0x16e   :  { %v238_v29 = vmax.f32 %v235_v26, 0.0 }
 0x170   :  { %3472 = vmatmul.mubr.msk.f32.vlgmr.msra.gmra.mrb[2].mxu0 %vm239_vm3, %v238_v29  ;;  %v309_v32 = vpop.f32.mrb[0].mxu1 }
 0x171   :  { %3810 = vmatpush3.bf16.msk.msra.mxu0 %vm4441_vm5, %v4439_v28  ;;  %3485 = vmatprep.mubr.msk.f32.mxu0 %vm4208_vm0, %v4209_v1  ;;  %v3462_v33 = vpop.f32.mrb[1].mxu1 }
 0x172   :  { %3814 = vmatprep.subr.bf16.mxu0 %v4207_v0 }
 0x174   :  { %3486 = vmatmul.mubr.msk.f32.vlgmr.msra.gmra.mrb[4].mxu0 %vm469_vm6, %v396_v31  ;;  %v465_v34 = vpop.f32.mrb[2].mxu1 }
 0x175   :  { %3816 = vmatpush3.bf16.msra.mxu0 %v4390_v8  ;;  %3503 = vmatprep.mubr.msk.f32.mxu0 %vm4208_vm0, %v4209_v1  ;;  %v3480_v35 = vpop.f32.mrb[3].mxu1 }
 0x176   :  { %3817 = vmatprep.subr.bf16.mxu0 %v4207_v0 }
 0x178   :  { %v628_v36 = vpop.f32.mrb[4].mxu1 }
 0x179   :  { %3819 = vmatpush3.bf16.msra.mxu0 %v4406_v14  ;;  %v629_v37 = vadd.f32 %v4436_v22, %v628_v36  ;;  %v3494_v38 = vpop.f32.mrb[5].mxu1 }
 0x17a   :  { %3826 = vmatprep.subr.bf16.mxu0 %v4207_v0  ;;  %v3248_v38 = vld [vmem:[%s4791_s1 + $0x6] sm:$0x3] }
 0x17b   :  { %v632_v39 = vmax.f32 %v629_v37, 0.0 }
 0x17d   :  { %3515 = vmatmul.mubr.msk.f32.vlgmr.msra.gmra.mrb[6].mxu1 %vm239_vm3, %v632_v39 }
 0x17e   :  { %3832 = vmatpush3.bf16.msk.msra.mxu1 %vm4441_vm5, %v4439_v28  ;;  %3528 = vmatprep.mubr.msk.f32.mxu1 %vm4208_vm0, %v4209_v1 }
 0x17f   :  { %3836 = vmatprep.subr.bf16.mxu1 %v4207_v0 }
 0x181   :  { %3529 = vmatmul.mubr.msk.f32.vlgmr.msra.gmra.mrb[8].mxu1 %vm469_vm6, %v3228_v40  ;;  %v3253_v40 = vld [vmem:[%s4790_s0 + $0x8] sm:$0x3] }
 0x182   :  { %3838 = vmatpush3.bf16.msra.mxu1 %v4390_v8  ;;  %3546 = vmatprep.mubr.msk.f32.mxu1 %vm4208_vm0, %v4209_v1 }
 0x183   :  { %3839 = vmatprep.subr.bf16.mxu1 %v4207_v0 }
 0x186   :  { %3841 = vmatpush3.bf16.msra.mxu1 %v4406_v14 }
 0x187   :  { %3848 = vmatprep.subr.bf16.mxu1 %v4207_v0 }
 0x243   :  { %v382_v42 = vpop.f32.mrb[2].mxu0 }
 0x244   :  { %v383_v43 = vadd.f32 %v382_v42, %v309_v32  ;;  %v3473_v44 = vpop.f32.mrb[3].mxu0 }
 0x246   :  { %v392_v45 = vadd.f32 %v4480_v41, %v383_v43 }
 0x247   :  { %v543_v47 = vpop.f32.mrb[4].mxu0 }
 0x248   :  { %3979 = vtanh.f32 %v392_v45  ;;  %v544_v48 = vadd.f32 %v543_v47, %v465_v34  ;;  %v3487_v49 = vpop.f32.mrb[5].mxu0 }
 0x24a   :  { %v553_v50 = vadd.f32 %v4483_v46, %v544_v48 }
 0x24c   :  { %3981 = vtanh.f32 %v553_v50 }
 0x250   :  { %v775_v54 = vpop.f32.mrb[6].mxu1 }
 0x251   :  { %v3516_v55 = vpop.f32.mrb[7].mxu1 }
 0x252   :  { %v3980_v51 = vpop.eup %3979 }
 0x253   :  { %395 = vst.msk [vmem:[%s4800_s10] sm:$0x3] %vm394_vm7, %v3980_v51  ;;  %3504 = vmatmul.mubr.msk.f32.vlgmr.msra.gmra.mrb[6].mxu0 %vm239_vm3, %v3980_v51 }
 0x254   :  { %3828 = vmatpush3.bf16.msra.mxu0 %v4414_v20  ;;  %3521 = vmatprep.mubr.msk.f32.mxu0 %vm4208_vm0, %v4209_v1  ;;  %v927_v56 = vpop.f32.mrb[8].mxu1 }
 0x255   :  { %3833 = vmatprep.subr.bf16.mxu0 %v4207_v0  ;;  %v3530_v57 = vpop.f32.mrb[9].mxu1 }
 0x256   :  { %v3982_v52 = vpop.eup %3981 }
 0x257   :  { %556 = vst.msk [vmem:[%s4801_s11] sm:$0x3] %vm555_vm8, %v3982_v52  ;;  %3522 = vmatmul.mubr.msk.f32.vlgmr.msra.gmra.mrb[8].mxu0 %vm164_vm1, %v3982_v52 }
 0x258   :  { %3835 = vmatpush3.bf16.msra.mxu0 %v4388_v4  ;;  %3535 = vmatprep.mubr.msk.f32.mxu0 %vm4208_vm0, %v4209_v1 }
 0x259   :  { %3842 = vmatprep.subr.bf16.mxu0 %v4207_v0 }
 0x25b   :  { %3536 = vmatmul.mubr.msk.f32.vlgmr.msra.gmra.mrb[10].mxu0 %vm164_vm1, %v3233_v53 }
 0x25c   :  { %3844 = vmatpush3.bf16.msra.mxu0 %v4396_v11  ;;  %3557 = vmatprep.mubr.msk.f32.mxu0 %vm4208_vm0, %v4209_v1 }
 0x25d   :  { %3845 = vmatprep.subr.bf16.mxu0 %v4207_v0 }
 0x260   :  { %3847 = vmatpush3.bf16.msra.mxu0 %v4408_v17 }
 0x261   :  { %3851 = vmatprep.subr.bf16.mxu0 %v4207_v0 }
 0x326   :  { %v702_v58 = vpop.f32.mrb[6].mxu0 }
 0x327   :  { %v776_v59 = vadd.f32 %v775_v54, %v702_v58  ;;  %v3505_v60 = vpop.f32.mrb[7].mxu0 }
 0x328   :  { %v3258_v60 = vld [vmem:[%s4791_s1 + $0x8] sm:$0x3] }
 0x329   :  { %v779_v61 = vadd.f32 %v4480_v41, %v776_v59 }
 0x32a   :  { %v854_v62 = vpop.f32.mrb[8].mxu0 }
 0x32b   :  { %3983 = vtanh.f32 %v779_v61  ;;  %v928_v63 = vadd.f32 %v927_v56, %v854_v62  ;;  %v3523_v2 = vpop.f32.mrb[9].mxu0  ;;  %v3263_v62 = vld [vmem:[%s4790_s0 + $0xa] sm:$0x3] }
 0x32d   :  { %v931_v3 = vadd.f32 %v4483_v46, %v928_v63 }
 0x32e   :  { %v1006_v5 = vpop.f32.mrb[10].mxu0 }
 0x32f   :  { %3985 = vtanh.f32 %v931_v3  ;;  %v1007_v6 = vadd.f32 %v4436_v22, %v1006_v5  ;;  %v3537_v7 = vpop.f32.mrb[11].mxu0 }
 0x331   :  { %v1010_v9 = vmax.f32 %v1007_v6, 0.0 }
 0x333   :  { %3558 = vmatmul.mubr.msk.f32.vlgmr.msra.gmra.mrb[12].mxu0 %vm239_vm3, %v1010_v9 }
 0x334   :  { %3854 = vmatpush3.bf16.msk.msra.mxu0 %vm4441_vm5, %v4439_v28  ;;  %3571 = vmatprep.mubr.msk.f32.mxu0 %vm4208_vm0, %v4209_v1 }
 0x335   :  { %v3984_v10 = vpop.eup %3983  ;;  %3858 = vmatprep.subr.bf16.mxu0 %v4207_v0 }
 0x336   :  { %3227 = vst.msk [vmem:[%s4800_s10 + $0x2] sm:$0x3] %vm394_vm7, %v3984_v10  ;;  %3547 = vmatmul.mubr.msk.f32.vlgmr.msra.gmra.mrb[10].mxu1 %vm239_vm3, %v3984_v10 }
 0x337   :  { %3850 = vmatpush3.bf16.msra.mxu1 %v4414_v20  ;;  %3564 = vmatprep.mubr.msk.f32.mxu1 %vm4208_vm0, %v4209_v1 }
 0x338   :  { %3572 = vmatmul.mubr.msk.f32.vlgmr.msra.gmra.mrb[14].mxu0 %vm469_vm6, %v3238_v12  ;;  %3855 = vmatprep.subr.bf16.mxu1 %v4207_v0 }
 0x339   :  { %v3986_v13 = vpop.eup %3985  ;;  %3860 = vmatpush3.bf16.msra.mxu0 %v4390_v8  ;;  %3589 = vmatprep.mubr.msk.f32.mxu0 %vm4208_vm0, %v4209_v1 }
 0x33a   :  { %3232 = vst.msk [vmem:[%s4801_s11 + $0x2] sm:$0x3] %vm555_vm8, %v3986_v13  ;;  %3565 = vmatmul.mubr.msk.f32.vlgmr.msra.gmra.mrb[12].mxu1 %vm164_vm1, %v3986_v13  ;;  %3861 = vmatprep.subr.bf16.mxu0 %v4207_v0 }
 0x33b   :  { %3857 = vmatpush3.bf16.msra.mxu1 %v4388_v4  ;;  %3578 = vmatprep.mubr.msk.f32.mxu1 %vm4208_vm0, %v4209_v1 }
 0x33c   :  { %3864 = vmatprep.subr.bf16.mxu1 %v4207_v0 }
 0x33d   :  { %3863 = vmatpush3.bf16.msra.mxu0 %v4406_v14 }
 0x33e   :  { %3579 = vmatmul.mubr.msk.f32.vlgmr.msra.gmra.mrb[14].mxu1 %vm164_vm1, %v3243_v15  ;;  %3870 = vmatprep.subr.bf16.mxu0 %v4207_v0 }
 0x33f   :  { %3866 = vmatpush3.bf16.msra.mxu1 %v4396_v11  ;;  %3600 = vmatprep.mubr.msk.f32.mxu1 %vm4208_vm0, %v4209_v1 }
 0x340   :  { %3867 = vmatprep.subr.bf16.mxu1 %v4207_v0 }
 0x343   :  { %3869 = vmatpush3.bf16.msra.mxu1 %v4408_v17 }
 0x344   :  { %3873 = vmatprep.subr.bf16.mxu1 %v4207_v0 }
 0x406   :  { %v1153_v16 = vpop.f32.mrb[12].mxu0 }
 0x407   :  { %v3559_v18 = vpop.f32.mrb[13].mxu0 }
 0x409   :  { %v1080_v19 = vpop.f32.mrb[10].mxu1 }
 0x40a   :  { %v1154_v21 = vadd.f32 %v1153_v16, %v1080_v19  ;;  %v3548_v23 = vpop.f32.mrb[11].mxu1 }
 0x40b   :  { %v1305_v24 = vpop.f32.mrb[14].mxu0 }
 0x40c   :  { %v1157_v25 = vadd.f32 %v4480_v41, %v1154_v21  ;;  %v3573_v26 = vpop.f32.mrb[15].mxu0 }
 0x40d   :  { %v1232_v27 = vpop.f32.mrb[12].mxu1 }
 0x40e   :  { %3987 = vtanh.f32 %v1157_v25  ;;  %v1306_v29 = vadd.f32 %v1305_v24, %v1232_v27  ;;  %v3566_v31 = vpop.f32.mrb[13].mxu1  ;;  %v3268_v25 = vld [vmem:[%s4791_s1 + $0xa] sm:$0x3]  ;;  %v3273_v27 = vld [vmem:[%s4790_s0 + $0xc] sm:$0x3] }
 0x410   :  { %v1309_v32 = vadd.f32 %v4483_v46, %v1306_v29 }
 0x411   :  { %v1384_v33 = vpop.f32.mrb[14].mxu1 }
 0x412   :  { %3989 = vtanh.f32 %v1309_v32  ;;  %v1385_v34 = vadd.f32 %v4436_v22, %v1384_v33  ;;  %v3580_v35 = vpop.f32.mrb[15].mxu1 }
 0x414   :  { %v1388_v36 = vmax.f32 %v1385_v34, 0.0 }
 0x416   :  { %3601 = vmatmul.mubr.msk.f32.vlgmr.msra.gmra.mrb[16].mxu1 %vm239_vm3, %v1388_v36 }
 0x417   :  { %3876 = vmatpush3.bf16.msk.msra.mxu1 %vm4441_vm5, %v4439_v28  ;;  %3614 = vmatprep.mubr.msk.f32.mxu1 %vm4208_vm0, %v4209_v1 }
 0x418   :  { %v3988_v37 = vpop.eup %3987  ;;  %3880 = vmatprep.subr.bf16.mxu1 %v4207_v0 }
 0x419   :  { %3237 = vst.msk [vmem:[%s4800_s10 + $0x4] sm:$0x3] %vm394_vm7, %v3988_v37  ;;  %3590 = vmatmul.mubr.msk.f32.vlgmr.msra.gmra.mrb[16].mxu0 %vm239_vm3, %v3988_v37 }
 0x41a   :  { %3872 = vmatpush3.bf16.msra.mxu0 %v4414_v20  ;;  %3607 = vmatprep.mubr.msk.f32.mxu0 %vm4208_vm0, %v4209_v1 }
 0x41b   :  { %3615 = vmatmul.mubr.msk.f32.vlgmr.msra.gmra.mrb[18].mxu1 %vm469_vm6, %v3248_v38  ;;  %3877 = vmatprep.subr.bf16.mxu0 %v4207_v0 }
 0x41c   :  { %v3990_v39 = vpop.eup %3989  ;;  %3882 = vmatpush3.bf16.msra.mxu1 %v4390_v8  ;;  %3632 = vmatprep.mubr.msk.f32.mxu1 %vm4208_vm0, %v4209_v1 }
 0x41d   :  { %3242 = vst.msk [vmem:[%s4801_s11 + $0x4] sm:$0x3] %vm555_vm8, %v3990_v39  ;;  %3608 = vmatmul.mubr.msk.f32.vlgmr.msra.gmra.mrb[18].mxu0 %vm164_vm1, %v3990_v39  ;;  %3883 = vmatprep.subr.bf16.mxu1 %v4207_v0 }
 0x41e   :  { %3879 = vmatpush3.bf16.msra.mxu0 %v4388_v4  ;;  %3621 = vmatprep.mubr.msk.f32.mxu0 %vm4208_vm0, %v4209_v1 }
 0x41f   :  { %3886 = vmatprep.subr.bf16.mxu0 %v4207_v0 }
 0x420   :  { %3885 = vmatpush3.bf16.msra.mxu1 %v4406_v14 }
 0x421   :  { %3622 = vmatmul.mubr.msk.f32.vlgmr.msra.gmra.mrb[20].mxu0 %vm164_vm1, %v3253_v40  ;;  %3892 = vmatprep.subr.bf16.mxu1 %v4207_v0 }
 0x422   :  { %3888 = vmatpush3.bf16.msra.mxu0 %v4396_v11  ;;  %3643 = vmatprep.mubr.msk.f32.mxu0 %vm4208_vm0, %v4209_v1 }
 0x423   :  { %3889 = vmatprep.subr.bf16.mxu0 %v4207_v0 }
 0x426   :  { %3891 = vmatpush3.bf16.msra.mxu0 %v4408_v17 }
 0x427   :  { %3895 = vmatprep.subr.bf16.mxu0 %v4207_v0 }
 0x4e9   :  { %v1531_v42 = vpop.f32.mrb[16].mxu1 }
 0x4ea   :  { %v3602_v43 = vpop.f32.mrb[17].mxu1 }
 0x4ec   :  { %v1458_v44 = vpop.f32.mrb[16].mxu0 }
 0x4ed   :  { %v1532_v45 = vadd.f32 %v1531_v42, %v1458_v44  ;;  %v3591_v47 = vpop.f32.mrb[17].mxu0 }
 0x4ee   :  { %v1683_v48 = vpop.f32.mrb[18].mxu1 }
 0x4ef   :  { %v1535_v49 = vadd.f32 %v4480_v41, %v1532_v45  ;;  %v3616_v50 = vpop.f32.mrb[19].mxu1 }
 0x4f0   :  { %v1610_v51 = vpop.f32.mrb[18].mxu0 }
 0x4f1   :  { %3991 = vtanh.f32 %v1535_v49  ;;  %v1684_v52 = vadd.f32 %v1683_v48, %v1610_v51  ;;  %v3609_v53 = vpop.f32.mrb[19].mxu0  ;;  %v3278_v49 = vld [vmem:[%s4791_s1 + $0xc] sm:$0x3] }
 0x4f3   :  { %v1687_v54 = vadd.f32 %v4483_v46, %v1684_v52 }
 0x4f4   :  { %v1762_v55 = vpop.f32.mrb[20].mxu0 }
 0x4f5   :  { %3993 = vtanh.f32 %v1687_v54  ;;  %v1763_v56 = vadd.f32 %v4436_v22, %v1762_v55  ;;  %v3623_v57 = vpop.f32.mrb[21].mxu0 }
 0x4f7   :  { %v1766_v58 = vmax.f32 %v1763_v56, 0.0 }
 0x4f9   :  { %3644 = vmatmul.mubr.msk.f32.vlgmr.msra.gmra.mrb[22].mxu0 %vm239_vm3, %v1766_v58 }
 0x4fa   :  { %3898 = vmatpush3.bf16.msk.msra.mxu0 %vm4441_vm5, %v4439_v28  ;;  %3657 = vmatprep.mubr.msk.f32.mxu0 %vm4208_vm0, %v4209_v1 }
 0x4fb   :  { %v3992_v59 = vpop.eup %3991  ;;  %3902 = vmatprep.subr.bf16.mxu0 %v4207_v0 }
 0x4fc   :  { %3247 = vst.msk [vmem:[%s4800_s10 + $0x6] sm:$0x3] %vm394_vm7, %v3992_v59  ;;  %3633 = vmatmul.mubr.msk.f32.vlgmr.msra.gmra.mrb[20].mxu1 %vm239_vm3, %v3992_v59 }
 0x4fd   :  { %3894 = vmatpush3.bf16.msra.mxu1 %v4414_v20  ;;  %3650 = vmatprep.mubr.msk.f32.mxu1 %vm4208_vm0, %v4209_v1 }
 0x4fe   :  { %3658 = vmatmul.mubr.msk.f32.vlgmr.msra.gmra.mrb[24].mxu0 %vm469_vm6, %v3258_v60  ;;  %3899 = vmatprep.subr.bf16.mxu1 %v4207_v0 }
 0x4ff   :  { %v3994_v61 = vpop.eup %3993  ;;  %3904 = vmatpush3.bf16.msra.mxu0 %v4390_v8  ;;  %3675 = vmatprep.mubr.msk.f32.mxu0 %vm4208_vm0, %v4209_v1 }
 0x500   :  { %3252 = vst.msk [vmem:[%s4801_s11 + $0x6] sm:$0x3] %vm555_vm8, %v3994_v61  ;;  %3651 = vmatmul.mubr.msk.f32.vlgmr.msra.gmra.mrb[22].mxu1 %vm164_vm1, %v3994_v61  ;;  %3905 = vmatprep.subr.bf16.mxu0 %v4207_v0 }
 0x501   :  { %3901 = vmatpush3.bf16.msra.mxu1 %v4388_v4  ;;  %3664 = vmatprep.mubr.msk.f32.mxu1 %vm4208_vm0, %v4209_v1 }
 0x502   :  { %3908 = vmatprep.subr.bf16.mxu1 %v4207_v0 }
 0x503   :  { %3907 = vmatpush3.bf16.msra.mxu0 %v4406_v14 }
 0x504   :  { %3665 = vmatmul.mubr.msk.f32.vlgmr.msra.gmra.mrb[24].mxu1 %vm164_vm1, %v3263_v62  ;;  %3914 = vmatprep.subr.bf16.mxu0 %v4207_v0 }
 0x505   :  { %3910 = vmatpush3.bf16.msra.mxu1 %v4396_v11  ;;  %3686 = vmatprep.mubr.msk.f32.mxu1 %vm4208_vm0, %v4209_v1 }
 0x506   :  { %3911 = vmatprep.subr.bf16.mxu1 %v4207_v0 }
 0x509   :  { %3913 = vmatpush3.bf16.msra.mxu1 %v4408_v17 }
 0x50a   :  { %3917 = vmatprep.subr.bf16.mxu1 %v4207_v0 }
 0x5cc   :  { %v1909_v63 = vpop.f32.mrb[22].mxu0 }
 0x5cd   :  { %v3645_v2 = vpop.f32.mrb[23].mxu0 }
 0x5cf   :  { %v1836_v3 = vpop.f32.mrb[20].mxu1 }
 0x5d0   :  { %v1910_v5 = vadd.f32 %v1909_v63, %v1836_v3  ;;  %v3634_v6 = vpop.f32.mrb[21].mxu1  ;;  %v3288_v63 = vld [vmem:[%s4791_s1 + $0xe] sm:$0x3] }
 0x5d1   :  { %v2061_v7 = vpop.f32.mrb[24].mxu0 }
 0x5d2   :  { %v1913_v9 = vadd.f32 %v4480_v41, %v1910_v5  ;;  %v3659_v10 = vpop.f32.mrb[25].mxu0 }
 0x5d3   :  { %v1988_v12 = vpop.f32.mrb[22].mxu1 }
 0x5d4   :  { %3995 = vtanh.f32 %v1913_v9  ;;  %v2062_v13 = vadd.f32 %v2061_v7, %v1988_v12  ;;  %v3652_v15 = vpop.f32.mrb[23].mxu1 }
 0x5d6   :  { %v2065_v16 = vadd.f32 %v4483_v46, %v2062_v13 }
 0x5d7   :  { %v2140_v18 = vpop.f32.mrb[24].mxu1 }
 0x5d8   :  { %3997 = vtanh.f32 %v2065_v16  ;;  %v2141_v19 = vadd.f32 %v4436_v22, %v2140_v18  ;;  %v3666_v21 = vpop.f32.mrb[25].mxu1 }
 0x5da   :  { %v2144_v23 = vmax.f32 %v2141_v19, 0.0 }
 0x5dc   :  { %3687 = vmatmul.mubr.msk.f32.vlgmr.msra.gmra.mrb[26].mxu1 %vm239_vm3, %v2144_v23 }
 0x5dd   :  { %3920 = vmatpush3.bf16.msk.msra.mxu1 %vm4441_vm5, %v4439_v28  ;;  %3700 = vmatprep.mubr.msk.f32.mxu1 %vm4208_vm0, %v4209_v1 }
 0x5de   :  { %v3996_v24 = vpop.eup %3995  ;;  %3924 = vmatprep.subr.bf16.mxu1 %v4207_v0 }
 0x5df   :  { %3257 = vst.msk [vmem:[%s4800_s10 + $0x8] sm:$0x3] %vm394_vm7, %v3996_v24  ;;  %3676 = vmatmul.mubr.msk.f32.vlgmr.msra.gmra.mrb[26].mxu0 %vm239_vm3, %v3996_v24 }
 0x5e0   :  { %3916 = vmatpush3.bf16.msra.mxu0 %v4414_v20  ;;  %3693 = vmatprep.mubr.msk.f32.mxu0 %vm4208_vm0, %v4209_v1 }
 0x5e1   :  { %3701 = vmatmul.mubr.msk.f32.vlgmr.msra.gmra.mrb[28].mxu1 %vm469_vm6, %v3268_v25  ;;  %3921 = vmatprep.subr.bf16.mxu0 %v4207_v0 }
 0x5e2   :  { %v3998_v26 = vpop.eup %3997  ;;  %3926 = vmatpush3.bf16.msra.mxu1 %v4390_v8  ;;  %3718 = vmatprep.mubr.msk.f32.mxu1 %vm4208_vm0, %v4209_v1 }
 0x5e3   :  { %3262 = vst.msk [vmem:[%s4801_s11 + $0x8] sm:$0x3] %vm555_vm8, %v3998_v26  ;;  %3694 = vmatmul.mubr.msk.f32.vlgmr.msra.gmra.mrb[28].mxu0 %vm164_vm1, %v3998_v26  ;;  %3927 = vmatprep.subr.bf16.mxu1 %v4207_v0 }
 0x5e4   :  { %3923 = vmatpush3.bf16.msra.mxu0 %v4388_v4  ;;  %3707 = vmatprep.mubr.msk.f32.mxu0 %vm4208_vm0, %v4209_v1 }
 0x5e5   :  { %3930 = vmatprep.subr.bf16.mxu0 %v4207_v0 }
 0x5e6   :  { %3929 = vmatpush3.bf16.msra.mxu1 %v4406_v14 }
 0x5e7   :  { %3708 = vmatmul.mubr.msk.f32.vlgmr.msra.gmra.mrb[30].mxu0 %vm164_vm1, %v3273_v27  ;;  %3936 = vmatprep.subr.bf16.mxu1 %v4207_v0 }
 0x5e8   :  { %3932 = vmatpush3.bf16.msra.mxu0 %v4396_v11  ;;  %3729 = vmatprep.mubr.msk.f32.mxu0 %vm4208_vm0, %v4209_v1 }
 0x5e9   :  { %3933 = vmatprep.subr.bf16.mxu0 %v4207_v0 }
 0x5ec   :  { %3935 = vmatpush3.bf16.msra.mxu0 %v4408_v17 }
 0x5ed   :  { %3939 = vmatprep.subr.bf16.mxu0 %v4207_v0 }
 0x6af   :  { %v2287_v29 = vpop.f32.mrb[26].mxu1 }
 0x6b0   :  { %v3688_v31 = vpop.f32.mrb[27].mxu1 }
 0x6b2   :  { %v2214_v32 = vpop.f32.mrb[26].mxu0 }
 0x6b3   :  { %v2288_v33 = vadd.f32 %v2287_v29, %v2214_v32  ;;  %v3677_v34 = vpop.f32.mrb[27].mxu0 }
 0x6b4   :  { %v2439_v35 = vpop.f32.mrb[28].mxu1 }
 0x6b5   :  { %v2291_v36 = vadd.f32 %v4480_v41, %v2288_v33  ;;  %v3702_v37 = vpop.f32.mrb[29].mxu1 }
 0x6b6   :  { %v2366_v38 = vpop.f32.mrb[28].mxu0 }
 0x6b7   :  { %3999 = vtanh.f32 %v2291_v36  ;;  %v2440_v39 = vadd.f32 %v2439_v35, %v2366_v38  ;;  %v3695_v40 = vpop.f32.mrb[29].mxu0 }
 0x6b9   :  { %v2443_v42 = vadd.f32 %v4483_v46, %v2440_v39 }
 0x6ba   :  { %v2518_v43 = vpop.f32.mrb[30].mxu0 }
 0x6bb   :  { %4001 = vtanh.f32 %v2443_v42  ;;  %v2519_v44 = vadd.f32 %v4436_v22, %v2518_v43  ;;  %v3709_v45 = vpop.f32.mrb[31].mxu0 }
 0x6bd   :  { %v2522_v47 = vmax.f32 %v2519_v44, 0.0 }
 0x6bf   :  { %3730 = vmatmul.mubr.msk.f32.vlgmr.msra.gmra.mrb[32].mxu0 %vm239_vm3, %v2522_v47 }
 0x6c0   :  { %3942 = vmatpush3.bf16.msk.msra.mxu0 %vm4441_vm5, %v4439_v28  ;;  %3743 = vmatprep.mubr.msk.f32.mxu0 %vm4208_vm0, %v4209_v1 }
 0x6c1   :  { %v4000_v48 = vpop.eup %3999  ;;  %3946 = vmatprep.subr.bf16.mxu0 %v4207_v0 }
 0x6c2   :  { %3267 = vst.msk [vmem:[%s4800_s10 + $0xa] sm:$0x3] %vm394_vm7, %v4000_v48  ;;  %3719 = vmatmul.mubr.msk.f32.vlgmr.msra.gmra.mrb[30].mxu1 %vm239_vm3, %v4000_v48 }
 0x6c3   :  { %3938 = vmatpush3.bf16.msra.mxu1 %v4414_v20  ;;  %3736 = vmatprep.mubr.msk.f32.mxu1 %vm4208_vm0, %v4209_v1 }
 0x6c4   :  { %3744 = vmatmul.mubr.msk.f32.vlgmr.msra.gmra.mrb[34].mxu0 %vm469_vm6, %v3278_v49  ;;  %3943 = vmatprep.subr.bf16.mxu1 %v4207_v0 }
 0x6c5   :  { %v4002_v50 = vpop.eup %4001  ;;  %3948 = vmatpush3.bf16.msra.mxu0 %v4390_v8  ;;  %3761 = vmatprep.mubr.msk.f32.mxu0 %vm4208_vm0, %v4209_v1  ;;  %v3283_v8 = vld [vmem:[%s4790_s0 + $0xe] sm:$0x3] }
 0x6c6   :  { %3272 = vst.msk [vmem:[%s4801_s11 + $0xa] sm:$0x3] %vm555_vm8, %v4002_v50  ;;  %3737 = vmatmul.mubr.msk.f32.vlgmr.msra.gmra.mrb[32].mxu1 %vm164_vm1, %v4002_v50  ;;  %3949 = vmatprep.subr.bf16.mxu0 %v4207_v0 }
 0x6c7   :  { %3945 = vmatpush3.bf16.msra.mxu1 %v4388_v4  ;;  %3750 = vmatprep.mubr.msk.f32.mxu1 %vm4208_vm0, %v4209_v1 }
 0x6c8   :  { %3952 = vmatprep.subr.bf16.mxu1 %v4207_v0 }
 0x6c9   :  { %3951 = vmatpush3.bf16.msra.mxu0 %v4406_v14 }
 0x6ca   :  { %3751 = vmatmul.mubr.msk.f32.vlgmr.msra.gmra.mrb[34].mxu1 %vm164_vm1, %v3283_v8  ;;  %3958 = vmatprep.subr.bf16.mxu0 %v4207_v0 }
 0x6cb   :  { %3954 = vmatpush3.bf16.msra.mxu1 %v4396_v11  ;;  %3772 = vmatprep.mubr.msk.f32.mxu1 %vm4208_vm0, %v4209_v1 }
 0x6cc   :  { %3955 = vmatprep.subr.bf16.mxu1 %v4207_v0 }
 0x6cf   :  { %3957 = vmatpush3.bf16.msra.mxu1 %v4408_v17 }
 0x6d0   :  { %3961 = vmatprep.subr.bf16.mxu1 %v4207_v0 }
 0x792   :  { %v2665_v4 = vpop.f32.mrb[32].mxu0 }
 0x793   :  { %v3731_v51 = vpop.f32.mrb[33].mxu0 }
 0x795   :  { %v2592_v52 = vpop.f32.mrb[30].mxu1 }
 0x796   :  { %v2666_v53 = vadd.f32 %v2665_v4, %v2592_v52  ;;  %v3720_v14 = vpop.f32.mrb[31].mxu1 }
 0x797   :  { %v2817_v54 = vpop.f32.mrb[34].mxu0 }
 0x798   :  { %v2669_v55 = vadd.f32 %v4480_v41, %v2666_v53  ;;  %v3745_v56 = vpop.f32.mrb[35].mxu0 }
 0x799   :  { %v2744_v57 = vpop.f32.mrb[32].mxu1 }
 0x79a   :  { %4003 = vtanh.f32 %v2669_v55  ;;  %v2818_v11 = vadd.f32 %v2817_v54, %v2744_v57  ;;  %v3738_v58 = vpop.f32.mrb[33].mxu1 }
 0x79c   :  { %v2821_v59 = vadd.f32 %v4483_v46, %v2818_v11 }
 0x79d   :  { %v2896_v60 = vpop.f32.mrb[34].mxu1 }
 0x79e   :  { %4005 = vtanh.f32 %v2821_v59  ;;  %v2897_v17 = vadd.f32 %v4436_v22, %v2896_v60  ;;  %v3752_v0 = vpop.f32.mrb[35].mxu1 }
 0x7a0   :  { %v2900_v61 = vmax.f32 %v2897_v17, 0.0 }
 0x7a2   :  { %3773 = vmatmul.mubr.msk.f32.vlgmr.msra.gmra.mrb[36].mxu1 %vm239_vm3, %v2900_v61 }
 0x7a3   :  { %3964 = vmatpush3.bf16.msk.msra.mxu1 %vm4441_vm5, %v4439_v28  ;;  %3786 = vmatprep.mubr.msk.f32.mxu1 %vm4208_vm0, %v4209_v1 }
 0x7a4   :  { %v4004_v62 = vpop.eup %4003 }
 0x7a5   :  { %3277 = vst.msk [vmem:[%s4800_s10 + $0xc] sm:$0x3] %vm394_vm7, %v4004_v62  ;;  %3762 = vmatmul.mubr.msk.f32.vlgmr.msra.gmra.mrb[36].mxu0 %vm239_vm3, %v4004_v62 }
 0x7a6   :  { %3960 = vmatpush3.bf16.msra.mxu0 %v4414_v20  ;;  %3779 = vmatprep.mubr.msk.f32.mxu0 %vm4208_vm0, %v4209_v1 }
 0x7a7   :  { %3787 = vmatmul.mubr.msk.f32.vlgmr.msra.gmra.mrb[38].mxu1 %vm469_vm6, %v3288_v63 }
 0x7a8   :  { %v4006_v22 = vpop.eup %4005 }
 0x7a9   :  { %3282 = vst.msk [vmem:[%s4801_s11 + $0xc] sm:$0x3] %vm555_vm8, %v4006_v22  ;;  %3780 = vmatmul.mubr.msk.f32.vlgmr.msra.gmra.mrb[38].mxu0 %vm164_vm1, %v4006_v22 }
 0x875   :  { %v3043_v28 = vpop.f32.mrb[36].mxu1 }
 0x876   :  { %v3774_v30 = vpop.f32.mrb[37].mxu1 }
 0x878   :  { %v2970_v2 = vpop.f32.mrb[36].mxu0 }
 0x879   :  { %v3044_v3 = vadd.f32 %v3043_v28, %v2970_v2  ;;  %v3763_v5 = vpop.f32.mrb[37].mxu0 }
 0x87a   :  { %v3195_v6 = vpop.f32.mrb[38].mxu1 }
 0x87b   :  { %v3047_v20 = vadd.f32 %v4480_v41, %v3044_v3  ;;  %v3788_v7 = vpop.f32.mrb[39].mxu1 }
 0x87c   :  { %v3122_v1 = vpop.f32.mrb[38].mxu0 }
 0x87d   :  { %4007 = vtanh.f32 %v3047_v20  ;;  %v3196_v9 = vadd.f32 %v3195_v6, %v3122_v1  ;;  %v3781_v10 = vpop.f32.mrb[39].mxu0 }
 0x87f   :  { %v3199_v12 = vadd.f32 %v4483_v46, %v3196_v9 }
 0x881   :  { %4009 = vtanh.f32 %v3199_v12 }
 0x887   :  { %v4008_v13 = vpop.eup %4007 }
 0x888   :  { %3287 = vst.msk [vmem:[%s4800_s10 + $0xe] sm:$0x3] %vm394_vm7, %v4008_v13 }
 0x88b   :  { %v4010_v15 = vpop.eup %4009 }
 0x88c   :  { %3292 = vst.msk [vmem:[%s4801_s11 + $0xe] sm:$0x3] %vm555_vm8, %v4010_v15 }
 0x88d   :  { %3211 = vsyncpa [#allocation3], 1 }
 0x88e   :  { %3212 = vsyncpa [#allocation5], 1 }
 0x88f   :  { %3213 = vsyncpa [#allocation8], 1 }
 0x890   :  { %3214 = vsyncpa [#allocation11], 1 }
 0x891   :  { %3215 = vsyncpa [#allocation14], 1 }

// kernel: generator_forward.13
= control target key start
LH: loop header
LB: loop body
LE: loop exit
PB: predicated region body
PF: predicated region fallthrough
CT: control target
= control target key end

     0   :  { %s1231_s12 = smov 0   ;;  %s1233_s13 = smov 0   ;;  %s1733_s0 = inlined_call_operand.vmem [shape: f32[8,288], index: 0, kind: input, shape index: {}]   ;;  %s1734_s1 = inlined_call_operand.vmem [shape: f32[288,1024], index: 1, kind: input, shape index: {}]   ;;  %s1735_s2 = inlined_call_operand.vmem [shape: f32[8,1], index: 2, kind: input, shape index: {}]   ;;  %s1736_s3 = inlined_call_operand.vmem [shape: f32[8,1024], index: 3, kind: output, shape index: {}]  }
   0x1   :  { %s1235_s14 = smov 0  }
   0x2 LB: > { %s990_s15 = sadd.s32 4294967295, %s1207_s14   ;;  %s1248_s16 = sadd.s32 1, %s1207_s14   ;;  %s1207_s14 = sphi %s1235_s14, %s1739_s14   ;;  %s1203_s13 = sphi %s1233_s13, %s1738_s13   ;;  %s1199_s12 = sphi %s1231_s12, %s1737_s12  }
   0x3   : > { %s38_s17 = ssub.s32 %s1207_s14, %s1248_s16  ;;  %s41_s18 = sadd.s32 1, %s1203_s13 }
   0x4   : > { %p39_p0 = scmp.eq.s32.totalorder %s38_s17, 0  ;;  %p48_p1 = scmp.ne.s32.totalorder %s1203_s13, %s1199_s12 }
   0x5   : > { %p49_p2 = scmp.eq.s32.totalorder %s1207_s14, 0  ;;  %p993_p4 = scmp.ge.s32.totalorder %s1207_s14, 2 }
   0x6   : > { %s1257_s19 = scalar_select %p39_p0, %s1203_s13, %s41_s18  }
   0x7   : > { %p50_p3 = por %p49_p2, %p48_p1  ;;  %127 = sbr.rel (%p993_p4) target bundleno = 91 (0x5b), region = 24 }
   0xe   : > { %130 = sbr.rel (!%p50_p3) target bundleno = 91 (0x5b), region = 28  ;;  %s132_s20 = sand.u32 (%p50_p3), 1, %s1203_s13  }
   0xf   : > { %s1003_s21 = sshll.u32 (%p50_p3), %s1207_s14, 5  ;;  %s1156_s22 = smul.u32 (%p50_p3), 1152, %s132_s20 }
  0x10   : > { %s1265_s25 = scalar_lea.vmem (%p50_p3), %s1734_s1, %s1003_s21 }
  0x11   : > { %v150_v0 = vld [vmem:[%s1265_s25] sm:$0xff] (%p50_p3)  ;;  %v152_v1 = vld [vmem:[%s1265_s25 + $0x8] sm:$0xff] (%p50_p3)  ;;  %v154_v2 = vld [vmem:[%s1265_s25 + $0x10] sm:$0xff] (%p50_p3)  ;;  %s1273_s26 = scalar_lea.vmem (%p50_p3), [#allocation2], %s1156_s22 }
  0x12   : > { %v156_v3 = vld [vmem:[%s1265_s25 + $0x18] sm:$0xff] (%p50_p3)  ;;  %v158_v4 = vld [vmem:[%s1265_s25 + $0x40] sm:$0xff] (%p50_p3)  ;;  %v160_v5 = vld [vmem:[%s1265_s25 + $0x48] sm:$0xff] (%p50_p3)  ;;  %151 = vst [vmem:[%s1273_s26] sm:$0xff] (%p50_p3), %v150_v0 }
  0x13   : > { %153 = vst [vmem:[%s1273_s26 + $0x8] sm:$0xff] (%p50_p3), %v152_v1  ;;  %155 = vst [vmem:[%s1273_s26 + $0x10] sm:$0xff] (%p50_p3), %v154_v2  ;;  %v162_v6 = vld [vmem:[%s1265_s25 + $0x50] sm:$0xff] (%p50_p3)  ;;  %v164_v7 = vld [vmem:[%s1265_s25 + $0x58] sm:$0xff] (%p50_p3) }
  0x14   : > { %157 = vst [vmem:[%s1273_s26 + $0x18] sm:$0xff] (%p50_p3), %v156_v3  ;;  %159 = vst [vmem:[%s1273_s26 + $0x20] sm:$0xff] (%p50_p3), %v158_v4  ;;  %v166_v8 = vld [vmem:[%s1265_s25 + $0x80] sm:$0xff] (%p50_p3)  ;;  %v168_v9 = vld [vmem:[%s1265_s25 + $0x88] sm:$0xff] (%p50_p3) }
  0x15   : > { %161 = vst [vmem:[%s1273_s26 + $0x28] sm:$0xff] %v160_v5  ;;  %163 = vst [vmem:[%s1273_s26 + $0x30] sm:$0xff] %v162_v6  ;;  %v170_v10 = vld [vmem:[%s1265_s25 + $0x90] sm:$0xff]  ;;  %v172_v11 = vld [vmem:[%s1265_s25 + $0x98] sm:$0xff] }
  0x16   : > { %165 = vst [vmem:[%s1273_s26 + $0x38] sm:$0xff] %v164_v7  ;;  %167 = vst [vmem:[%s1273_s26 + $0x40] sm:$0xff] %v166_v8  ;;  %v174_v12 = vld [vmem:[%s1265_s25 + $0xc0] sm:$0xff]  ;;  %v176_v13 = vld [vmem:[%s1265_s25 + $0xc8] sm:$0xff] }
  0x17   : > { %169 = vst [vmem:[%s1273_s26 + $0x48] sm:$0xff] %v168_v9  ;;  %171 = vst [vmem:[%s1273_s26 + $0x50] sm:$0xff] %v170_v10  ;;  %v178_v14 = vld [vmem:[%s1265_s25 + $0xd0] sm:$0xff]  ;;  %v180_v15 = vld [vmem:[%s1265_s25 + $0xd8] sm:$0xff] }
  0x18   : > { %173 = vst [vmem:[%s1273_s26 + $0x58] sm:$0xff] %v172_v11  ;;  %175 = vst [vmem:[%s1273_s26 + $0x60] sm:$0xff] %v174_v12  ;;  %v182_v16 = vld [vmem:[%s1265_s25 + $0x100] sm:$0xff]  ;;  %v184_v17 = vld [vmem:[%s1265_s25 + $0x108] sm:$0xff] }
  0x19   : > { %177 = vst [vmem:[%s1273_s26 + $0x68] sm:$0xff] %v176_v13  ;;  %179 = vst [vmem:[%s1273_s26 + $0x70] sm:$0xff] %v178_v14  ;;  %v186_v18 = vld [vmem:[%s1265_s25 + $0x110] sm:$0xff]  ;;  %v188_v19 = vld [vmem:[%s1265_s25 + $0x118] sm:$0xff] }
  0x1a   : > { %181 = vst [vmem:[%s1273_s26 + $0x78] sm:$0xff] %v180_v15  ;;  %183 = vst [vmem:[%s1273_s26 + $0x80] sm:$0xff] %v182_v16  ;;  %v190_v20 = vld [vmem:[%s1265_s25 + $0x140] sm:$0xff]  ;;  %v192_v21 = vld [vmem:[%s1265_s25 + $0x148] sm:$0xff] }
  0x1b   : > { %185 = vst [vmem:[%s1273_s26 + $0x88] sm:$0xff] %v184_v17  ;;  %187 = vst [vmem:[%s1273_s26 + $0x90] sm:$0xff] %v186_v18  ;;  %v194_v22 = vld [vmem:[%s1265_s25 + $0x150] sm:$0xff]  ;;  %v196_v23 = vld [vmem:[%s1265_s25 + $0x158] sm:$0xff] }
  0x1c   : > { %189 = vst [vmem:[%s1273_s26 + $0x98] sm:$0xff] %v188_v19  ;;  %191 = vst [vmem:[%s1273_s26 + $0xa0] sm:$0xff] %v190_v20  ;;  %v198_v24 = vld [vmem:[%s1265_s25 + $0x180] sm:$0xff]  ;;  %v200_v25 = vld [vmem:[%s1265_s25 + $0x188] sm:$0xff] }
  0x1d   : > { %193 = vst [vmem:[%s1273_s26 + $0xa8] sm:$0xff] %v192_v21  ;;  %195 = vst [vmem:[%s1273_s26 + $0xb0] sm:$0xff] %v194_v22  ;;  %v202_v26 = vld [vmem:[%s1265_s25 + $0x190] sm:$0xff]  ;;  %v204_v27 = vld [vmem:[%s1265_s25 + $0x198] sm:$0xff] }
  0x1e   : > { %197 = vst [vmem:[%s1273_s26 + $0xb8] sm:$0xff] %v196_v23  ;;  %199 = vst [vmem:[%s1273_s26 + $0xc0] sm:$0xff] %v198_v24  ;;  %v206_v28 = vld [vmem:[%s1265_s25 + $0x1c0] sm:$0xff]  ;;  %v208_v29 = vld [vmem:[%s1265_s25 + $0x1c8] sm:$0xff] }
  0x1f   : > { %201 = vst [vmem:[%s1273_s26 + $0xc8] sm:$0xff] %v200_v25  ;;  %203 = vst [vmem:[%s1273_s26 + $0xd0] sm:$0xff] %v202_v26  ;;  %v210_v30 = vld [vmem:[%s1265_s25 + $0x1d0] sm:$0xff]  ;;  %v212_v31 = vld [vmem:[%s1265_s25 + $0x1d8] sm:$0xff] }
  0x20   : > { %205 = vst [vmem:[%s1273_s26 + $0xd8] sm:$0xff] %v204_v27  ;;  %207 = vst [vmem:[%s1273_s26 + $0xe0] sm:$0xff] %v206_v28  ;;  %v214_v32 = vld [vmem:[%s1265_s25 + $0x200] sm:$0xff]  ;;  %v216_v33 = vld [vmem:[%s1265_s25 + $0x208] sm:$0xff] }
  0x21   : > { %209 = vst [vmem:[%s1273_s26 + $0xe8] sm:$0xff] %v208_v29  ;;  %211 = vst [vmem:[%s1273_s26 + $0xf0] sm:$0xff] %v210_v30  ;;  %v218_v34 = vld [vmem:[%s1265_s25 + $0x210] sm:$0xff]  ;;  %v220_v35 = vld [vmem:[%s1265_s25 + $0x218] sm:$0xff] }
  0x22   : > { %213 = vst [vmem:[%s1273_s26 + $0xf8] sm:$0xff] %v212_v31  ;;  %215 = vst [vmem:[%s1273_s26 + $0x100] sm:$0xff] %v214_v32  ;;  %v222_v36 = vld [vmem:[%s1265_s25 + $0x240] sm:$0xff]  ;;  %v224_v37 = vld [vmem:[%s1265_s25 + $0x248] sm:$0xff] }
  0x23   : > { %217 = vst [vmem:[%s1273_s26 + $0x108] sm:$0xff] %v216_v33  ;;  %219 = vst [vmem:[%s1273_s26 + $0x110] sm:$0xff] %v218_v34  ;;  %v226_v38 = vld [vmem:[%s1265_s25 + $0x250] sm:$0xff]  ;;  %v228_v39 = vld [vmem:[%s1265_s25 + $0x258] sm:$0xff] }
  0x24   : > { %221 = vst [vmem:[%s1273_s26 + $0x118] sm:$0xff] %v220_v35  ;;  %223 = vst [vmem:[%s1273_s26 + $0x120] sm:$0xff] %v222_v36  ;;  %v230_v40 = vld [vmem:[%s1265_s25 + $0x280] sm:$0xff]  ;;  %v232_v41 = vld [vmem:[%s1265_s25 + $0x288] sm:$0xff] }
  0x25   : > { %225 = vst [vmem:[%s1273_s26 + $0x128] sm:$0xff] %v224_v37  ;;  %227 = vst [vmem:[%s1273_s26 + $0x130] sm:$0xff] %v226_v38  ;;  %v234_v42 = vld [vmem:[%s1265_s25 + $0x290] sm:$0xff]  ;;  %v236_v43 = vld [vmem:[%s1265_s25 + $0x298] sm:$0xff] }
  0x26   : > { %229 = vst [vmem:[%s1273_s26 + $0x138] sm:$0xff] %v228_v39  ;;  %231 = vst [vmem:[%s1273_s26 + $0x140] sm:$0xff] %v230_v40  ;;  %v238_v44 = vld [vmem:[%s1265_s25 + $0x2c0] sm:$0xff]  ;;  %v240_v45 = vld [vmem:[%s1265_s25 + $0x2c8] sm:$0xff] }
  0x27   : > { %233 = vst [vmem:[%s1273_s26 + $0x148] sm:$0xff] %v232_v41  ;;  %235 = vst [vmem:[%s1273_s26 + $0x150] sm:$0xff] %v234_v42  ;;  %v242_v46 = vld [vmem:[%s1265_s25 + $0x2d0] sm:$0xff]  ;;  %v244_v47 = vld [vmem:[%s1265_s25 + $0x2d8] sm:$0xff] }
  0x28   : > { %237 = vst [vmem:[%s1273_s26 + $0x158] sm:$0xff] %v236_v43  ;;  %239 = vst [vmem:[%s1273_s26 + $0x160] sm:$0xff] %v238_v44  ;;  %v246_v48 = vld [vmem:[%s1265_s25 + $0x300] sm:$0xff]  ;;  %v248_v49 = vld [vmem:[%s1265_s25 + $0x308] sm:$0xff] }
  0x29   : > { %241 = vst [vmem:[%s1273_s26 + $0x168] sm:$0xff] %v240_v45  ;;  %243 = vst [vmem:[%s1273_s26 + $0x170] sm:$0xff] %v242_v46  ;;  %v250_v50 = vld [vmem:[%s1265_s25 + $0x310] sm:$0xff]  ;;  %v252_v51 = vld [vmem:[%s1265_s25 + $0x318] sm:$0xff] }
  0x2a   : > { %245 = vst [vmem:[%s1273_s26 + $0x178] sm:$0xff] %v244_v47  ;;  %247 = vst [vmem:[%s1273_s26 + $0x180] sm:$0xff] %v246_v48  ;;  %v254_v52 = vld [vmem:[%s1265_s25 + $0x340] sm:$0xff]  ;;  %v256_v53 = vld [vmem:[%s1265_s25 + $0x348] sm:$0xff] }
  0x2b   : > { %249 = vst [vmem:[%s1273_s26 + $0x188] sm:$0xff] %v248_v49  ;;  %251 = vst [vmem:[%s1273_s26 + $0x190] sm:$0xff] %v250_v50  ;;  %v258_v54 = vld [vmem:[%s1265_s25 + $0x350] sm:$0xff]  ;;  %v260_v55 = vld [vmem:[%s1265_s25 + $0x358] sm:$0xff] }
  0x2c   : > { %253 = vst [vmem:[%s1273_s26 + $0x198] sm:$0xff] %v252_v51  ;;  %255 = vst [vmem:[%s1273_s26 + $0x1a0] sm:$0xff] %v254_v52  ;;  %v262_v56 = vld [vmem:[%s1265_s25 + $0x380] sm:$0xff]  ;;  %v264_v57 = vld [vmem:[%s1265_s25 + $0x388] sm:$0xff] }
  0x2d   : > { %257 = vst [vmem:[%s1273_s26 + $0x1a8] sm:$0xff] %v256_v53  ;;  %259 = vst [vmem:[%s1273_s26 + $0x1b0] sm:$0xff] %v258_v54  ;;  %v266_v58 = vld [vmem:[%s1265_s25 + $0x390] sm:$0xff]  ;;  %v268_v59 = vld [vmem:[%s1265_s25 + $0x398] sm:$0xff] }
  0x2e   : > { %261 = vst [vmem:[%s1273_s26 + $0x1b8] sm:$0xff] %v260_v55  ;;  %263 = vst [vmem:[%s1273_s26 + $0x1c0] sm:$0xff] %v262_v56  ;;  %v270_v60 = vld [vmem:[%s1265_s25 + $0x3c0] sm:$0xff]  ;;  %v272_v61 = vld [vmem:[%s1265_s25 + $0x3c8] sm:$0xff] }
  0x2f   : > { %265 = vst [vmem:[%s1273_s26 + $0x1c8] sm:$0xff] %v264_v57  ;;  %267 = vst [vmem:[%s1273_s26 + $0x1d0] sm:$0xff] %v266_v58  ;;  %v274_v62 = vld [vmem:[%s1265_s25 + $0x3d0] sm:$0xff]  ;;  %v276_v63 = vld [vmem:[%s1265_s25 + $0x3d8] sm:$0xff] }
  0x30   : > { %269 = vst [vmem:[%s1273_s26 + $0x1d8] sm:$0xff] %v268_v59  ;;  %271 = vst [vmem:[%s1273_s26 + $0x1e0] sm:$0xff] %v270_v60  ;;  %v278_v0 = vld [vmem:[%s1265_s25 + $0x400] sm:$0xff]  ;;  %v280_v1 = vld [vmem:[%s1265_s25 + $0x408] sm:$0xff] }
  0x31   : > { %273 = vst [vmem:[%s1273_s26 + $0x1e8] sm:$0xff] %v272_v61  ;;  %275 = vst [vmem:[%s1273_s26 + $0x1f0] sm:$0xff] %v274_v62  ;;  %v282_v2 = vld [vmem:[%s1265_s25 + $0x410] sm:$0xff]  ;;  %v284_v3 = vld [vmem:[%s1265_s25 + $0x418] sm:$0xff] }
  0x32   : > { %277 = vst [vmem:[%s1273_s26 + $0x1f8] sm:$0xff] %v276_v63  ;;  %279 = vst [vmem:[%s1273_s26 + $0x200] sm:$0xff] %v278_v0  ;;  %v286_v4 = vld [vmem:[%s1265_s25 + $0x440] sm:$0xff]  ;;  %v288_v5 = vld [vmem:[%s1265_s25 + $0x448] sm:$0xff] }
  0x33   : > { %281 = vst [vmem:[%s1273_s26 + $0x208] sm:$0xff] %v280_v1  ;;  %283 = vst [vmem:[%s1273_s26 + $0x210] sm:$0xff] %v282_v2  ;;  %v290_v6 = vld [vmem:[%s1265_s25 + $0x450] sm:$0xff]  ;;  %v292_v7 = vld [vmem:[%s1265_s25 + $0x458] sm:$0xff] }
  0x34   : > { %285 = vst [vmem:[%s1273_s26 + $0x218] sm:$0xff] %v284_v3  ;;  %287 = vst [vmem:[%s1273_s26 + $0x220] sm:$0xff] %v286_v4  ;;  %v294_v8 = vld [vmem:[%s1265_s25 + $0x480] sm:$0xff]  ;;  %v296_v9 = vld [vmem:[%s1265_s25 + $0x488] sm:$0xff] }
  0x35   : > { %289 = vst [vmem:[%s1273_s26 + $0x228] sm:$0xff] %v288_v5  ;;  %291 = vst [vmem:[%s1273_s26 + $0x230] sm:$0xff] %v290_v6  ;;  %v298_v10 = vld [vmem:[%s1265_s25 + $0x490] sm:$0xff]  ;;  %v300_v11 = vld [vmem:[%s1265_s25 + $0x498] sm:$0xff] }
  0x36   : > { %293 = vst [vmem:[%s1273_s26 + $0x238] sm:$0xff] %v292_v7  ;;  %295 = vst [vmem:[%s1273_s26 + $0x240] sm:$0xff] %v294_v8  ;;  %v302_v12 = vld [vmem:[%s1265_s25 + $0x4c0] sm:$0xff]  ;;  %v304_v13 = vld [vmem:[%s1265_s25 + $0x4c8] sm:$0xff] }
  0x37   : > { %297 = vst [vmem:[%s1273_s26 + $0x248] sm:$0xff] %v296_v9  ;;  %299 = vst [vmem:[%s1273_s26 + $0x250] sm:$0xff] %v298_v10  ;;  %v306_v14 = vld [vmem:[%s1265_s25 + $0x4d0] sm:$0xff]  ;;  %v308_v15 = vld [vmem:[%s1265_s25 + $0x4d8] sm:$0xff] }
  0x38   : > { %301 = vst [vmem:[%s1273_s26 + $0x258] sm:$0xff] %v300_v11  ;;  %303 = vst [vmem:[%s1273_s26 + $0x260] sm:$0xff] %v302_v12  ;;  %v310_v16 = vld [vmem:[%s1265_s25 + $0x500] sm:$0xff]  ;;  %v312_v17 = vld [vmem:[%s1265_s25 + $0x508] sm:$0xff] }
  0x39   : > { %305 = vst [vmem:[%s1273_s26 + $0x268] sm:$0xff] %v304_v13  ;;  %307 = vst [vmem:[%s1273_s26 + $0x270] sm:$0xff] %v306_v14  ;;  %v314_v18 = vld [vmem:[%s1265_s25 + $0x510] sm:$0xff]  ;;  %v316_v19 = vld [vmem:[%s1265_s25 + $0x518] sm:$0xff] }
  0x3a   : > { %309 = vst [vmem:[%s1273_s26 + $0x278] sm:$0xff] %v308_v15  ;;  %311 = vst [vmem:[%s1273_s26 + $0x280] sm:$0xff] %v310_v16  ;;  %v318_v20 = vld [vmem:[%s1265_s25 + $0x540] sm:$0xff]  ;;  %v320_v21 = vld [vmem:[%s1265_s25 + $0x548] sm:$0xff] }
  0x3b   : > { %313 = vst [vmem:[%s1273_s26 + $0x288] sm:$0xff] %v312_v17  ;;  %315 = vst [vmem:[%s1273_s26 + $0x290] sm:$0xff] %v314_v18  ;;  %v322_v22 = vld [vmem:[%s1265_s25 + $0x550] sm:$0xff]  ;;  %v324_v23 = vld [vmem:[%s1265_s25 + $0x558] sm:$0xff] }
  0x3c   : > { %317 = vst [vmem:[%s1273_s26 + $0x298] sm:$0xff] %v316_v19  ;;  %319 = vst [vmem:[%s1273_s26 + $0x2a0] sm:$0xff] %v318_v20  ;;  %v326_v24 = vld [vmem:[%s1265_s25 + $0x580] sm:$0xff]  ;;  %v328_v25 = vld [vmem:[%s1265_s25 + $0x588] sm:$0xff] }
  0x3d   : > { %321 = vst [vmem:[%s1273_s26 + $0x2a8] sm:$0xff] %v320_v21  ;;  %323 = vst [vmem:[%s1273_s26 + $0x2b0] sm:$0xff] %v322_v22  ;;  %v330_v26 = vld [vmem:[%s1265_s25 + $0x590] sm:$0xff]  ;;  %v332_v27 = vld [vmem:[%s1265_s25 + $0x598] sm:$0xff] }
  0x3e   : > { %325 = vst [vmem:[%s1273_s26 + $0x2b8] sm:$0xff] %v324_v23  ;;  %327 = vst [vmem:[%s1273_s26 + $0x2c0] sm:$0xff] %v326_v24  ;;  %v334_v28 = vld [vmem:[%s1265_s25 + $0x5c0] sm:$0xff]  ;;  %v336_v29 = vld [vmem:[%s1265_s25 + $0x5c8] sm:$0xff] }
  0x3f   : > { %329 = vst [vmem:[%s1273_s26 + $0x2c8] sm:$0xff] %v328_v25  ;;  %331 = vst [vmem:[%s1273_s26 + $0x2d0] sm:$0xff] %v330_v26  ;;  %v338_v30 = vld [vmem:[%s1265_s25 + $0x5d0] sm:$0xff]  ;;  %v340_v31 = vld [vmem:[%s1265_s25 + $0x5d8] sm:$0xff] }
  0x40   : > { %333 = vst [vmem:[%s1273_s26 + $0x2d8] sm:$0xff] %v332_v27  ;;  %335 = vst [vmem:[%s1273_s26 + $0x2e0] sm:$0xff] %v334_v28  ;;  %v342_v32 = vld [vmem:[%s1265_s25 + $0x600] sm:$0xff]  ;;  %v344_v33 = vld [vmem:[%s1265_s25 + $0x608] sm:$0xff] }
  0x41   : > { %337 = vst [vmem:[%s1273_s26 + $0x2e8] sm:$0xff] %v336_v29  ;;  %339 = vst [vmem:[%s1273_s26 + $0x2f0] sm:$0xff] %v338_v30  ;;  %v346_v34 = vld [vmem:[%s1265_s25 + $0x610] sm:$0xff]  ;;  %v348_v35 = vld [vmem:[%s1265_s25 + $0x618] sm:$0xff] }
  0x42   : > { %341 = vst [vmem:[%s1273_s26 + $0x2f8] sm:$0xff] %v340_v31  ;;  %343 = vst [vmem:[%s1273_s26 + $0x300] sm:$0xff] %v342_v32  ;;  %v350_v36 = vld [vmem:[%s1265_s25 + $0x640] sm:$0xff]  ;;  %v352_v37 = vld [vmem:[%s1265_s25 + $0x648] sm:$0xff] }
  0x43   : > { %345 = vst [vmem:[%s1273_s26 + $0x308] sm:$0xff] %v344_v33  ;;  %347 = vst [vmem:[%s1273_s26 + $0x310] sm:$0xff] %v346_v34  ;;  %v354_v38 = vld [vmem:[%s1265_s25 + $0x650] sm:$0xff]  ;;  %v356_v39 = vld [vmem:[%s1265_s25 + $0x658] sm:$0xff] }
  0x44   : > { %349 = vst [vmem:[%s1273_s26 + $0x318] sm:$0xff] %v348_v35  ;;  %351 = vst [vmem:[%s1273_s26 + $0x320] sm:$0xff] %v350_v36  ;;  %v358_v40 = vld [vmem:[%s1265_s25 + $0x680] sm:$0xff]  ;;  %v360_v41 = vld [vmem:[%s1265_s25 + $0x688] sm:$0xff] }
  0x45   : > { %353 = vst [vmem:[%s1273_s26 + $0x328] sm:$0xff] %v352_v37  ;;  %355 = vst [vmem:[%s1273_s26 + $0x330] sm:$0xff] %v354_v38  ;;  %v362_v42 = vld [vmem:[%s1265_s25 + $0x690] sm:$0xff]  ;;  %v364_v43 = vld [vmem:[%s1265_s25 + $0x698] sm:$0xff] }
  0x46   : > { %357 = vst [vmem:[%s1273_s26 + $0x338] sm:$0xff] %v356_v39  ;;  %359 = vst [vmem:[%s1273_s26 + $0x340] sm:$0xff] %v358_v40  ;;  %v366_v44 = vld [vmem:[%s1265_s25 + $0x6c0] sm:$0xff]  ;;  %v368_v45 = vld [vmem:[%s1265_s25 + $0x6c8] sm:$0xff] }
  0x47   : > { %361 = vst [vmem:[%s1273_s26 + $0x348] sm:$0xff] %v360_v41  ;;  %363 = vst [vmem:[%s1273_s26 + $0x350] sm:$0xff] %v362_v42  ;;  %v370_v46 = vld [vmem:[%s1265_s25 + $0x6d0] sm:$0xff]  ;;  %v372_v47 = vld [vmem:[%s1265_s25 + $0x6d8] sm:$0xff] }
  0x48   : > { %365 = vst [vmem:[%s1273_s26 + $0x358] sm:$0xff] %v364_v43  ;;  %367 = vst [vmem:[%s1273_s26 + $0x360] sm:$0xff] %v366_v44  ;;  %v374_v48 = vld [vmem:[%s1265_s25 + $0x700] sm:$0xff]  ;;  %v376_v49 = vld [vmem:[%s1265_s25 + $0x708] sm:$0xff] }
  0x49   : > { %369 = vst [vmem:[%s1273_s26 + $0x368] sm:$0xff] %v368_v45  ;;  %371 = vst [vmem:[%s1273_s26 + $0x370] sm:$0xff] %v370_v46  ;;  %v378_v50 = vld [vmem:[%s1265_s25 + $0x710] sm:$0xff]  ;;  %v380_v51 = vld [vmem:[%s1265_s25 + $0x718] sm:$0xff] }
  0x4a   : > { %373 = vst [vmem:[%s1273_s26 + $0x378] sm:$0xff] %v372_v47  ;;  %375 = vst [vmem:[%s1273_s26 + $0x380] sm:$0xff] %v374_v48  ;;  %v382_v52 = vld [vmem:[%s1265_s25 + $0x740] sm:$0xff]  ;;  %v384_v53 = vld [vmem:[%s1265_s25 + $0x748] sm:$0xff] }
  0x4b   : > { %377 = vst [vmem:[%s1273_s26 + $0x388] sm:$0xff] %v376_v49  ;;  %379 = vst [vmem:[%s1273_s26 + $0x390] sm:$0xff] %v378_v50  ;;  %v386_v54 = vld [vmem:[%s1265_s25 + $0x750] sm:$0xff]  ;;  %v388_v55 = vld [vmem:[%s1265_s25 + $0x758] sm:$0xff] }
  0x4c   : > { %381 = vst [vmem:[%s1273_s26 + $0x398] sm:$0xff] %v380_v51  ;;  %383 = vst [vmem:[%s1273_s26 + $0x3a0] sm:$0xff] %v382_v52  ;;  %v390_v56 = vld [vmem:[%s1265_s25 + $0x780] sm:$0xff]  ;;  %v392_v57 = vld [vmem:[%s1265_s25 + $0x788] sm:$0xff] }
  0x4d   : > { %385 = vst [vmem:[%s1273_s26 + $0x3a8] sm:$0xff] %v384_v53  ;;  %387 = vst [vmem:[%s1273_s26 + $0x3b0] sm:$0xff] %v386_v54  ;;  %v394_v58 = vld [vmem:[%s1265_s25 + $0x790] sm:$0xff]  ;;  %v396_v59 = vld [vmem:[%s1265_s25 + $0x798] sm:$0xff] }
  0x4e   : > { %389 = vst [vmem:[%s1273_s26 + $0x3b8] sm:$0xff] %v388_v55  ;;  %391 = vst [vmem:[%s1273_s26 + $0x3c0] sm:$0xff] %v390_v56  ;;  %v398_v60 = vld [vmem:[%s1265_s25 + $0x7c0] sm:$0xff]  ;;  %v400_v61 = vld [vmem:[%s1265_s25 + $0x7c8] sm:$0xff] }
  0x4f   : > { %393 = vst [vmem:[%s1273_s26 + $0x3c8] sm:$0xff] %v392_v57  ;;  %395 = vst [vmem:[%s1273_s26 + $0x3d0] sm:$0xff] %v394_v58  ;;  %v402_v62 = vld [vmem:[%s1265_s25 + $0x7d0] sm:$0xff]  ;;  %v404_v63 = vld [vmem:[%s1265_s25 + $0x7d8] sm:$0xff] }
  0x50   : > { %397 = vst [vmem:[%s1273_s26 + $0x3d8] sm:$0xff] %v396_v59  ;;  %399 = vst [vmem:[%s1273_s26 + $0x3e0] sm:$0xff] %v398_v60  ;;  %v406_v0 = vld [vmem:[%s1265_s25 + $0x800] sm:$0xff]  ;;  %v408_v1 = vld [vmem:[%s1265_s25 + $0x808] sm:$0xff] }
  0x51   : > { %401 = vst [vmem:[%s1273_s26 + $0x3e8] sm:$0xff] %v400_v61  ;;  %403 = vst [vmem:[%s1273_s26 + $0x3f0] sm:$0xff] %v402_v62  ;;  %v410_v2 = vld [vmem:[%s1265_s25 + $0x810] sm:$0xff]  ;;  %v412_v3 = vld [vmem:[%s1265_s25 + $0x818] sm:$0xff] }
  0x52   : > { %405 = vst [vmem:[%s1273_s26 + $0x3f8] sm:$0xff] %v404_v63  ;;  %407 = vst [vmem:[%s1273_s26 + $0x400] sm:$0xff] %v406_v0  ;;  %v414_v4 = vld [vmem:[%s1265_s25 + $0x840] sm:$0xff]  ;;  %v416_v5 = vld [vmem:[%s1265_s25 + $0x848] sm:$0xff] }
  0x53   : > { %409 = vst [vmem:[%s1273_s26 + $0x408] sm:$0xff] %v408_v1  ;;  %411 = vst [vmem:[%s1273_s26 + $0x410] sm:$0xff] %v410_v2  ;;  %v418_v6 = vld [vmem:[%s1265_s25 + $0x850] sm:$0xff]  ;;  %v420_v7 = vld [vmem:[%s1265_s25 + $0x858] sm:$0xff] }
  0x54   : > { %413 = vst [vmem:[%s1273_s26 + $0x418] sm:$0xff] %v412_v3  ;;  %415 = vst [vmem:[%s1273_s26 + $0x420] sm:$0xff] %v414_v4  ;;  %v422_v8 = vld [vmem:[%s1265_s25 + $0x880] sm:$0xff]  ;;  %v424_v9 = vld [vmem:[%s1265_s25 + $0x888] sm:$0xff] }
  0x55   : > { %417 = vst [vmem:[%s1273_s26 + $0x428] sm:$0xff] %v416_v5  ;;  %419 = vst [vmem:[%s1273_s26 + $0x430] sm:$0xff] %v418_v6  ;;  %v426_v10 = vld [vmem:[%s1265_s25 + $0x890] sm:$0xff]  ;;  %v428_v11 = vld [vmem:[%s1265_s25 + $0x898] sm:$0xff] }
  0x56   : > { %421 = vst [vmem:[%s1273_s26 + $0x438] sm:$0xff] %v420_v7  ;;  %423 = vst [vmem:[%s1273_s26 + $0x440] sm:$0xff] %v422_v8  ;;  %v430_v12 = vld [vmem:[%s1265_s25 + $0x8c0] sm:$0xff]  ;;  %v432_v13 = vld [vmem:[%s1265_s25 + $0x8c8] sm:$0xff] }
  0x57   : > { %425 = vst [vmem:[%s1273_s26 + $0x448] sm:$0xff] %v424_v9  ;;  %427 = vst [vmem:[%s1273_s26 + $0x450] sm:$0xff] %v426_v10  ;;  %v434_v14 = vld [vmem:[%s1265_s25 + $0x8d0] sm:$0xff]  ;;  %v436_v15 = vld [vmem:[%s1265_s25 + $0x8d8] sm:$0xff] }
  0x58   : > { %429 = vst [vmem:[%s1273_s26 + $0x458] sm:$0xff] %v428_v11  ;;  %431 = vst [vmem:[%s1273_s26 + $0x460] sm:$0xff] %v430_v12 }
  0x59   : > { %433 = vst [vmem:[%s1273_s26 + $0x468] sm:$0xff] %v432_v13  ;;  %435 = vst [vmem:[%s1273_s26 + $0x470] sm:$0xff] %v434_v14 }
  0x5a   : > { %437 = vst [vmem:[%s1273_s26 + $0x478] sm:$0xff] %v436_v15 }
  0x5b PF: > { %p996_p5 = scmp.ge.s32.totalorder %s1207_s14, 1  ;;  %p442_p6 = scmp.lt.s32.totalorder %s1207_s14, 3 }
  0x5d   : > { %p443_p7 = pnand %p996_p5, %p442_p6 }
  0x5e   : > { %s449_s27 = sand.u32 (!%p443_p7), 1, %s1199_s12   ;;  %v480_v16 = vld [vmem:[%s1733_s0 + $0x8] sm:$0xff] (!%p443_p7)  ;;  %v626_v17 = vld [vmem:[%s1735_s2] sm:$0xff] (!%p443_p7)  ;;  %v1209_v18 = vmov (!%p443_p7), 0   ;;  %vm632_vm0 = vcmask (!%p443_p7), 261120   ;;  %s997_s11 = sshll.u32 (!%p443_p7), %s990_s15, 2 }
  0x5f   : > { %446 = sbr.rel (%p443_p7) target bundleno = 394 (0x18a), region = 51  ;;  %700 = vmatprep.mubr.f32.mxu0 (!%p443_p7), %v480_v16  ;;  %842 = vmatprep.mubr.f32.mxu1 (!%p443_p7), %v480_v16  ;;  %p474_p8 = scmp.lt.s32.totalorder (!%p443_p7), %s997_s11, 7 }
  0x60   : > { %s1157_s30 = smul.u32 (!%p443_p7), 1152, %s449_s27  ;;  %1184 = vset.pattern.permute.xlu0 (!%p443_p7), %v1209_v18 }
  0x61   : > { %629 = vperm.xlu0 (!%p443_p7), %1184, %v626_v17  }
  0x62   : > { %s1566_s6 = scalar_lea.vmem (!%p443_p7), [#allocation2], %s1157_s30 }
  0x63   : > { %v483_v19 = vld [vmem:[%s1566_s6 + $0x8] sm:$0xff] (!%p443_p7)  ;;  %v485_v21 = vld [vmem:[%s1566_s6 + $0x18] sm:$0xff] (!%p443_p7)  ;;  %v482_v24 = vld [vmem:[%s1566_s6] sm:$0xff] (!%p443_p7) }
  0x64   : > { %v487_v20 = vld [vmem:[%s1566_s6 + $0x28] sm:$0xff] (!%p443_p7)  ;;  %v489_v23 = vld [vmem:[%s1566_s6 + $0x38] sm:$0xff] (!%p443_p7)  ;;  %v486_v25 = vld [vmem:[%s1566_s6 + $0x20] sm:$0xff] (!%p443_p7) }
  0x65   : > { %v1004_v22 = vpack.c.bf16 (!%p443_p7), %v487_v20, %v483_v19  ;;  %v1076_v26 = vpack.c.bf16 (!%p443_p7), %v489_v23, %v485_v21  ;;  %v1006_v27 = vpack.c.bf16 (!%p443_p7), %v486_v25, %v482_v24  ;;  %v484_v28 = vld [vmem:[%s1566_s6 + $0x10] sm:$0xff] (!%p443_p7)  ;;  %v491_v30 = vld [vmem:[%s1566_s6 + $0x48] sm:$0xff] (!%p443_p7)  ;;  %v493_v33 = vld [vmem:[%s1566_s6 + $0x58] sm:$0xff] (!%p443_p7) }
  0x66   : > { %v488_v29 = vld [vmem:[%s1566_s6 + $0x30] sm:$0xff]  ;;  %v495_v32 = vld [vmem:[%s1566_s6 + $0x68] sm:$0xff]  ;;  %v497_v34 = vld [vmem:[%s1566_s6 + $0x78] sm:$0xff]  ;;  %s1741_s11 = smov (!%p474_p8, %s997_s11), 7 }
  0x67   : > { %1005 = vmatprep.subr.bf16.mxu0 %v1004_v22  ;;  %v1078_v31 = vpack.c.bf16 %v488_v29, %v484_v28  ;;  %1077 = vmatprep.subr.bf16.mxu1 %v1076_v26  ;;  %v1008_v35 = vpack.c.bf16 %v495_v32, %v491_v30  ;;  %v1080_v36 = vpack.c.bf16 %v497_v34, %v493_v33  ;;  %v490_v37 = vld [vmem:[%s1566_s6 + $0x40] sm:$0xff]  ;;  %v492_v39 = vld [vmem:[%s1566_s6 + $0x50] sm:$0xff]  ;;  %v499_v42 = vld [vmem:[%s1566_s6 + $0x88] sm:$0xff]  ;;  %s998_s12 = sshll.u32 %s1741_s11, 3 }
  0x68   : > { %1007 = vmatpush1.bf16.msra.mxu0 %v1006_v27  ;;  %v494_v38 = vld [vmem:[%s1566_s6 + $0x60] sm:$0xff]  ;;  %v496_v41 = vld [vmem:[%s1566_s6 + $0x70] sm:$0xff]  ;;  %v503_v43 = vld [vmem:[%s1566_s6 + $0xa8] sm:$0xff]  ;;  %s477_s20 = scalar_lea.vmem %s1736_s3, %s998_s12 }
  0x69   : > { %1079 = vmatpush1.bf16.msra.mxu1 %v1078_v31  ;;  %v1010_v40 = vpack.c.bf16 %v494_v38, %v490_v37  ;;  %1009 = vmatprep.subr.bf16.mxu0 %v1008_v35  ;;  %v1082_v44 = vpack.c.bf16 %v496_v41, %v492_v39  ;;  %v1012_v45 = vpack.c.bf16 %v503_v43, %v499_v42  ;;  %v501_v46 = vld [vmem:[%s1566_s6 + $0x98] sm:$0xff]  ;;  %v498_v48 = vld [vmem:[%s1566_s6 + $0x80] sm:$0xff]  ;;  %v500_v51 = vld [vmem:[%s1566_s6 + $0x90] sm:$0xff] }
  0x6a   : > { %1081 = vmatprep.subr.bf16.mxu1 %v1080_v36  ;;  %v505_v47 = vld [vmem:[%s1566_s6 + $0xb8] sm:$0xff]  ;;  %v502_v50 = vld [vmem:[%s1566_s6 + $0xa0] sm:$0xff]  ;;  %v504_v52 = vld [vmem:[%s1566_s6 + $0xb0] sm:$0xff] }
  0x6b   : > { %v1084_v49 = vpack.c.bf16 %v505_v47, %v501_v46  ;;  %v1014_v53 = vpack.c.bf16 %v502_v50, %v498_v48  ;;  %v507_v54 = vld [vmem:[%s1566_s6 + $0xc8] sm:$0xff]  ;;  %v509_v56 = vld [vmem:[%s1566_s6 + $0xd8] sm:$0xff]  ;;  %v1086_v57 = vpack.c.bf16 %v504_v52, %v500_v51  ;;  %v506_v60 = vld [vmem:[%s1566_s6 + $0xc0] sm:$0xff] }
  0x6c   : > { %1011 = vmatpush1.bf16.msra.mxu0 %v1010_v40  ;;  %v511_v55 = vld [vmem:[%s1566_s6 + $0xe8] sm:$0xff]  ;;  %v513_v59 = vld [vmem:[%s1566_s6 + $0xf8] sm:$0xff]  ;;  %v510_v61 = vld [vmem:[%s1566_s6 + $0xe0] sm:$0xff] }
  0x6d   : > { %1083 = vmatpush1.bf16.msra.mxu1 %v1082_v44  ;;  %1013 = vmatprep.subr.bf16.mxu0 %v1012_v45  ;;  %v1016_v58 = vpack.c.bf16 %v511_v55, %v507_v54  ;;  %v1088_v62 = vpack.c.bf16 %v513_v59, %v509_v56  ;;  %v508_v63 = vld [vmem:[%s1566_s6 + $0xd0] sm:$0xff]  ;;  %v515_v1 = vld [vmem:[%s1566_s6 + $0x108] sm:$0xff]  ;;  %v517_v3 = vld [vmem:[%s1566_s6 + $0x118] sm:$0xff]  ;;  %v1018_v5 = vpack.c.bf16 %v510_v61, %v506_v60 }
  0x6e   : > { %1085 = vmatprep.subr.bf16.mxu1 %v1084_v49  ;;  %v512_v0 = vld [vmem:[%s1566_s6 + $0xf0] sm:$0xff]  ;;  %v519_v2 = vld [vmem:[%s1566_s6 + $0x128] sm:$0xff]  ;;  %v521_v4 = vld [vmem:[%s1566_s6 + $0x138] sm:$0xff] }
  0x6f   : > { %v1090_v6 = vpack.c.bf16 %v512_v0, %v508_v63  ;;  %v1020_v7 = vpack.c.bf16 %v519_v2, %v515_v1  ;;  %v514_v8 = vld [vmem:[%s1566_s6 + $0x100] sm:$0xff]  ;;  %v516_v10 = vld [vmem:[%s1566_s6 + $0x110] sm:$0xff]  ;;  %v1092_v11 = vpack.c.bf16 %v521_v4, %v517_v3  ;;  %v523_v13 = vld [vmem:[%s1566_s6 + $0x148] sm:$0xff] }
  0x70   : > { %1015 = vmatpush1.bf16.msra.mxu0 %v1014_v53  ;;  %v518_v9 = vld [vmem:[%s1566_s6 + $0x120] sm:$0xff]  ;;  %v520_v12 = vld [vmem:[%s1566_s6 + $0x130] sm:$0xff]  ;;  %v527_v14 = vld [vmem:[%s1566_s6 + $0x168] sm:$0xff] }
  0x71   : > { %1087 = vmatpush1.bf16.msra.mxu1 %v1086_v57  ;;  %1017 = vmatprep.subr.bf16.mxu0 %v1016_v58  ;;  %v525_v15 = vld [vmem:[%s1566_s6 + $0x158] sm:$0xff]  ;;  %v1022_v17 = vpack.c.bf16 %v518_v9, %v514_v8  ;;  %v1094_v18 = vpack.c.bf16 %v520_v12, %v516_v10  ;;  %v1024_v19 = vpack.c.bf16 %v527_v14, %v523_v13  ;;  %v522_v20 = vld [vmem:[%s1566_s6 + $0x140] sm:$0xff]  ;;  %v524_v22 = vld [vmem:[%s1566_s6 + $0x150] sm:$0xff] }
  0x72   : > { %1089 = vmatprep.subr.bf16.mxu1 %v1088_v62  ;;  %v529_v16 = vld [vmem:[%s1566_s6 + $0x178] sm:$0xff]  ;;  %v526_v21 = vld [vmem:[%s1566_s6 + $0x160] sm:$0xff]  ;;  %v528_v24 = vld [vmem:[%s1566_s6 + $0x170] sm:$0xff] }
  0x73   : > { %v1096_v23 = vpack.c.bf16 %v529_v16, %v525_v15  ;;  %v531_v25 = vld [vmem:[%s1566_s6 + $0x188] sm:$0xff]  ;;  %v533_v27 = vld [vmem:[%s1566_s6 + $0x198] sm:$0xff]  ;;  %v1026_v29 = vpack.c.bf16 %v526_v21, %v522_v20  ;;  %v1098_v30 = vpack.c.bf16 %v528_v24, %v524_v22  ;;  %v530_v32 = vld [vmem:[%s1566_s6 + $0x180] sm:$0xff] }
  0x74   : > { %1019 = vmatpush1.bf16.msra.mxu0 %v1018_v5  ;;  %v535_v26 = vld [vmem:[%s1566_s6 + $0x1a8] sm:$0xff]  ;;  %v537_v28 = vld [vmem:[%s1566_s6 + $0x1b8] sm:$0xff]  ;;  %v534_v33 = vld [vmem:[%s1566_s6 + $0x1a0] sm:$0xff] }
  0x75   : > { %1091 = vmatpush1.bf16.msra.mxu1 %v1090_v6  ;;  %1021 = vmatprep.subr.bf16.mxu0 %v1020_v7  ;;  %v1028_v31 = vpack.c.bf16 %v535_v26, %v531_v25  ;;  %v532_v34 = vld [vmem:[%s1566_s6 + $0x190] sm:$0xff]  ;;  %v1100_v35 = vpack.c.bf16 %v537_v28, %v533_v27  ;;  %v539_v37 = vld [vmem:[%s1566_s6 + $0x1c8] sm:$0xff]  ;;  %v541_v39 = vld [vmem:[%s1566_s6 + $0x1d8] sm:$0xff]  ;;  %v1030_v41 = vpack.c.bf16 %v534_v33, %v530_v32 }
  0x76   : > { %1093 = vmatprep.subr.bf16.mxu1 %v1092_v11  ;;  %v536_v36 = vld [vmem:[%s1566_s6 + $0x1b0] sm:$0xff]  ;;  %v543_v38 = vld [vmem:[%s1566_s6 + $0x1e8] sm:$0xff]  ;;  %v545_v40 = vld [vmem:[%s1566_s6 + $0x1f8] sm:$0xff] }
  0x77   : > { %v1102_v42 = vpack.c.bf16 %v536_v36, %v532_v34  ;;  %v1032_v43 = vpack.c.bf16 %v543_v38, %v539_v37  ;;  %v538_v44 = vld [vmem:[%s1566_s6 + $0x1c0] sm:$0xff]  ;;  %v540_v46 = vld [vmem:[%s1566_s6 + $0x1d0] sm:$0xff]  ;;  %v1104_v47 = vpack.c.bf16 %v545_v40, %v541_v39  ;;  %v547_v49 = vld [vmem:[%s1566_s6 + $0x208] sm:$0xff] }
  0x78   : > { %1023 = vmatpush1.bf16.msra.mxu0 %v1022_v17  ;;  %v542_v45 = vld [vmem:[%s1566_s6 + $0x1e0] sm:$0xff]  ;;  %v544_v48 = vld [vmem:[%s1566_s6 + $0x1f0] sm:$0xff]  ;;  %v551_v50 = vld [vmem:[%s1566_s6 + $0x228] sm:$0xff] }
  0x79   : > { %1095 = vmatpush1.bf16.msra.mxu1 %v1094_v18  ;;  %1025 = vmatprep.subr.bf16.mxu0 %v1024_v19  ;;  %v549_v51 = vld [vmem:[%s1566_s6 + $0x218] sm:$0xff]  ;;  %v1034_v53 = vpack.c.bf16 %v542_v45, %v538_v44  ;;  %v1106_v54 = vpack.c.bf16 %v544_v48, %v540_v46  ;;  %v1036_v55 = vpack.c.bf16 %v551_v50, %v547_v49  ;;  %v546_v56 = vld [vmem:[%s1566_s6 + $0x200] sm:$0xff]  ;;  %v548_v58 = vld [vmem:[%s1566_s6 + $0x210] sm:$0xff] }
  0x7a   : > { %1097 = vmatprep.subr.bf16.mxu1 %v1096_v23  ;;  %v553_v52 = vld [vmem:[%s1566_s6 + $0x238] sm:$0xff]  ;;  %v550_v57 = vld [vmem:[%s1566_s6 + $0x220] sm:$0xff]  ;;  %v552_v60 = vld [vmem:[%s1566_s6 + $0x230] sm:$0xff] }
  0x7b   : > { %v1108_v59 = vpack.c.bf16 %v553_v52, %v549_v51  ;;  %v555_v61 = vld [vmem:[%s1566_s6 + $0x248] sm:$0xff]  ;;  %v557_v63 = vld [vmem:[%s1566_s6 + $0x258] sm:$0xff]  ;;  %v1038_v1 = vpack.c.bf16 %v550_v57, %v546_v56  ;;  %v1110_v2 = vpack.c.bf16 %v552_v60, %v548_v58  ;;  %v554_v4 = vld [vmem:[%s1566_s6 + $0x240] sm:$0xff] }
  0x7c   : > { %1027 = vmatpush1.bf16.msra.mxu0 %v1026_v29  ;;  %v559_v62 = vld [vmem:[%s1566_s6 + $0x268] sm:$0xff]  ;;  %v561_v0 = vld [vmem:[%s1566_s6 + $0x278] sm:$0xff]  ;;  %v558_v5 = vld [vmem:[%s1566_s6 + $0x260] sm:$0xff] }
  0x7d   : > { %1099 = vmatpush1.bf16.msra.mxu1 %v1098_v30  ;;  %1029 = vmatprep.subr.bf16.mxu0 %v1028_v31  ;;  %v1040_v3 = vpack.c.bf16 %v559_v62, %v555_v61  ;;  %v556_v6 = vld [vmem:[%s1566_s6 + $0x250] sm:$0xff]  ;;  %v1112_v7 = vpack.c.bf16 %v561_v0, %v557_v63  ;;  %v563_v9 = vld [vmem:[%s1566_s6 + $0x288] sm:$0xff]  ;;  %v565_v11 = vld [vmem:[%s1566_s6 + $0x298] sm:$0xff]  ;;  %v1042_v13 = vpack.c.bf16 %v558_v5, %v554_v4 }
  0x7e   : > { %1101 = vmatprep.subr.bf16.mxu1 %v1100_v35  ;;  %v560_v8 = vld [vmem:[%s1566_s6 + $0x270] sm:$0xff]  ;;  %v567_v10 = vld [vmem:[%s1566_s6 + $0x2a8] sm:$0xff]  ;;  %v569_v12 = vld [vmem:[%s1566_s6 + $0x2b8] sm:$0xff] }
  0x7f   : > { %v1114_v14 = vpack.c.bf16 %v560_v8, %v556_v6  ;;  %v1044_v15 = vpack.c.bf16 %v567_v10, %v563_v9  ;;  %v562_v16 = vld [vmem:[%s1566_s6 + $0x280] sm:$0xff]  ;;  %v564_v18 = vld [vmem:[%s1566_s6 + $0x290] sm:$0xff]  ;;  %v1116_v19 = vpack.c.bf16 %v569_v12, %v565_v11  ;;  %v571_v21 = vld [vmem:[%s1566_s6 + $0x2c8] sm:$0xff] }
  0x80   : > { %1031 = vmatpush1.bf16.msra.mxu0 %v1030_v41  ;;  %v566_v17 = vld [vmem:[%s1566_s6 + $0x2a0] sm:$0xff]  ;;  %v568_v20 = vld [vmem:[%s1566_s6 + $0x2b0] sm:$0xff]  ;;  %v575_v22 = vld [vmem:[%s1566_s6 + $0x2e8] sm:$0xff] }
  0x81   : > { %1103 = vmatpush1.bf16.msra.mxu1 %v1102_v42  ;;  %1033 = vmatprep.subr.bf16.mxu0 %v1032_v43  ;;  %v573_v23 = vld [vmem:[%s1566_s6 + $0x2d8] sm:$0xff]  ;;  %v1046_v25 = vpack.c.bf16 %v566_v17, %v562_v16  ;;  %v1118_v26 = vpack.c.bf16 %v568_v20, %v564_v18  ;;  %v1048_v27 = vpack.c.bf16 %v575_v22, %v571_v21  ;;  %v570_v28 = vld [vmem:[%s1566_s6 + $0x2c0] sm:$0xff]  ;;  %v572_v30 = vld [vmem:[%s1566_s6 + $0x2d0] sm:$0xff] }
  0x82   : > { %1105 = vmatprep.subr.bf16.mxu1 %v1104_v47  ;;  %v577_v24 = vld [vmem:[%s1566_s6 + $0x2f8] sm:$0xff]  ;;  %v574_v29 = vld [vmem:[%s1566_s6 + $0x2e0] sm:$0xff]  ;;  %v576_v32 = vld [vmem:[%s1566_s6 + $0x2f0] sm:$0xff] }
  0x83   : > { %v1120_v31 = vpack.c.bf16 %v577_v24, %v573_v23  ;;  %v579_v33 = vld [vmem:[%s1566_s6 + $0x308] sm:$0xff]  ;;  %v581_v35 = vld [vmem:[%s1566_s6 + $0x318] sm:$0xff]  ;;  %v1050_v37 = vpack.c.bf16 %v574_v29, %v570_v28  ;;  %v1122_v38 = vpack.c.bf16 %v576_v32, %v572_v30  ;;  %v578_v40 = vld [vmem:[%s1566_s6 + $0x300] sm:$0xff] }
  0x84   : > { %1035 = vmatpush1.bf16.msra.mxu0 %v1034_v53  ;;  %v583_v34 = vld [vmem:[%s1566_s6 + $0x328] sm:$0xff]  ;;  %v585_v36 = vld [vmem:[%s1566_s6 + $0x338] sm:$0xff]  ;;  %v582_v41 = vld [vmem:[%s1566_s6 + $0x320] sm:$0xff] }
  0x85   : > { %1107 = vmatpush1.bf16.msra.mxu1 %v1106_v54  ;;  %1037 = vmatprep.subr.bf16.mxu0 %v1036_v55  ;;  %v1052_v39 = vpack.c.bf16 %v583_v34, %v579_v33  ;;  %v580_v42 = vld [vmem:[%s1566_s6 + $0x310] sm:$0xff]  ;;  %v1124_v43 = vpack.c.bf16 %v585_v36, %v581_v35  ;;  %v587_v45 = vld [vmem:[%s1566_s6 + $0x348] sm:$0xff]  ;;  %v589_v47 = vld [vmem:[%s1566_s6 + $0x358] sm:$0xff]  ;;  %v1054_v49 = vpack.c.bf16 %v582_v41, %v578_v40 }
  0x86   : > { %1109 = vmatprep.subr.bf16.mxu1 %v1108_v59  ;;  %v584_v44 = vld [vmem:[%s1566_s6 + $0x330] sm:$0xff]  ;;  %v591_v46 = vld [vmem:[%s1566_s6 + $0x368] sm:$0xff]  ;;  %v593_v48 = vld [vmem:[%s1566_s6 + $0x378] sm:$0xff] }
  0x87   : > { %v1126_v50 = vpack.c.bf16 %v584_v44, %v580_v42  ;;  %v1056_v51 = vpack.c.bf16 %v591_v46, %v587_v45  ;;  %v586_v52 = vld [vmem:[%s1566_s6 + $0x340] sm:$0xff]  ;;  %v588_v54 = vld [vmem:[%s1566_s6 + $0x350] sm:$0xff]  ;;  %v1128_v55 = vpack.c.bf16 %v593_v48, %v589_v47  ;;  %v595_v57 = vld [vmem:[%s1566_s6 + $0x388] sm:$0xff]  ;;  %v1210_v44 = vmov 0.0  }
  0x88   : > { %1039 = vmatpush1.bf16.msra.mxu0 %v1038_v1  ;;  %v590_v53 = vld [vmem:[%s1566_s6 + $0x360] sm:$0xff]  ;;  %v592_v56 = vld [vmem:[%s1566_s6 + $0x370] sm:$0xff]  ;;  %v599_v58 = vld [vmem:[%s1566_s6 + $0x3a8] sm:$0xff] }
  0x89   : > { %1111 = vmatpush1.bf16.msra.mxu1 %v1110_v2  ;;  %1041 = vmatprep.subr.bf16.mxu0 %v1040_v3  ;;  %v597_v59 = vld [vmem:[%s1566_s6 + $0x398] sm:$0xff]  ;;  %v1058_v61 = vpack.c.bf16 %v590_v53, %v586_v52  ;;  %v1130_v62 = vpack.c.bf16 %v592_v56, %v588_v54  ;;  %v1060_v63 = vpack.c.bf16 %v599_v58, %v595_v57  ;;  %v594_v0 = vld [vmem:[%s1566_s6 + $0x380] sm:$0xff]  ;;  %v596_v2 = vld [vmem:[%s1566_s6 + $0x390] sm:$0xff] }
  0x8a   : > { %1113 = vmatprep.subr.bf16.mxu1 %v1112_v7  ;;  %v601_v60 = vld [vmem:[%s1566_s6 + $0x3b8] sm:$0xff]  ;;  %v598_v1 = vld [vmem:[%s1566_s6 + $0x3a0] sm:$0xff]  ;;  %v600_v4 = vld [vmem:[%s1566_s6 + $0x3b0] sm:$0xff] }
  0x8b   : > { %v1132_v3 = vpack.c.bf16 %v601_v60, %v597_v59  ;;  %v603_v5 = vld [vmem:[%s1566_s6 + $0x3c8] sm:$0xff]  ;;  %v605_v7 = vld [vmem:[%s1566_s6 + $0x3d8] sm:$0xff]  ;;  %v1062_v9 = vpack.c.bf16 %v598_v1, %v594_v0  ;;  %v1134_v10 = vpack.c.bf16 %v600_v4, %v596_v2  ;;  %v602_v12 = vld [vmem:[%s1566_s6 + $0x3c0] sm:$0xff] }
  0x8c   : > { %1043 = vmatpush1.bf16.msra.mxu0 %v1042_v13  ;;  %v607_v6 = vld [vmem:[%s1566_s6 + $0x3e8] sm:$0xff]  ;;  %v609_v8 = vld [vmem:[%s1566_s6 + $0x3f8] sm:$0xff]  ;;  %v606_v13 = vld [vmem:[%s1566_s6 + $0x3e0] sm:$0xff] }
  0x8d   : > { %1115 = vmatpush1.bf16.msra.mxu1 %v1114_v14  ;;  %1045 = vmatprep.subr.bf16.mxu0 %v1044_v15  ;;  %v1064_v11 = vpack.c.bf16 %v607_v6, %v603_v5  ;;  %v604_v14 = vld [vmem:[%s1566_s6 + $0x3d0] sm:$0xff]  ;;  %v1136_v15 = vpack.c.bf16 %v609_v8, %v605_v7  ;;  %v611_v17 = vld [vmem:[%s1566_s6 + $0x408] sm:$0xff]  ;;  %v617_v20 = vld [vmem:[%s1566_s6 + $0x438] sm:$0xff]  ;;  %v1066_v21 = vpack.c.bf16 %v606_v13, %v602_v12 }
  0x8e   : > { %1117 = vmatprep.subr.bf16.mxu1 %v1116_v19  ;;  %v608_v16 = vld [vmem:[%s1566_s6 + $0x3f0] sm:$0xff]  ;;  %v615_v18 = vld [vmem:[%s1566_s6 + $0x428] sm:$0xff]  ;;  %v613_v19 = vld [vmem:[%s1566_s6 + $0x418] sm:$0xff] }
  0x8f   : > { %v1138_v22 = vpack.c.bf16 %v608_v16, %v604_v14  ;;  %v1068_v23 = vpack.c.bf16 %v615_v18, %v611_v17  ;;  %v610_v24 = vld [vmem:[%s1566_s6 + $0x400] sm:$0xff]  ;;  %v616_v28 = vld [vmem:[%s1566_s6 + $0x430] sm:$0xff]  ;;  %v619_v29 = vld [vmem:[%s1566_s6 + $0x448] sm:$0xff] }
  0x90   : > { %1047 = vmatpush1.bf16.msra.mxu0 %v1046_v25  ;;  %v614_v25 = vld [vmem:[%s1566_s6 + $0x420] sm:$0xff]  ;;  %v623_v30 = vld [vmem:[%s1566_s6 + $0x468] sm:$0xff]  ;;  %v625_v32 = vld [vmem:[%s1566_s6 + $0x478] sm:$0xff] }
  0x91   : > { %1119 = vmatpush1.bf16.msra.mxu1 %v1118_v26  ;;  %1049 = vmatprep.subr.bf16.mxu0 %v1048_v27  ;;  %v612_v26 = vld [vmem:[%s1566_s6 + $0x410] sm:$0xff]  ;;  %v1140_v27 = vpack.c.bf16 %v617_v20, %v613_v19  ;;  %v479_v33 = vld [vmem:[%s1733_s0] sm:$0xff]  ;;  %v1070_v34 = vpack.c.bf16 %v614_v25, %v610_v24  ;;  %v1072_v36 = vpack.c.bf16 %v623_v30, %v619_v29 }
  0x92   : > { %1121 = vmatprep.subr.bf16.mxu1 %v1120_v31  ;;  %v621_v31 = vld [vmem:[%s1566_s6 + $0x458] sm:$0xff]  ;;  %v1142_v35 = vpack.c.bf16 %v616_v28, %v612_v26  ;;  %v620_v40 = vld [vmem:[%s1566_s6 + $0x450] sm:$0xff] }
  0x93   : > { %v624_v41 = vld [vmem:[%s1566_s6 + $0x470] sm:$0xff] }
  0x94   : > { %1051 = vmatpush1.bf16.msra.mxu0 %v1050_v37  ;;  %v618_v37 = vld [vmem:[%s1566_s6 + $0x440] sm:$0xff]  ;;  %v481_v45 = vld [vmem:[%s1733_s0 + $0x10] sm:$0xff] }
  0x95   : > { %1123 = vmatpush1.bf16.msra.mxu1 %v1122_v38  ;;  %1053 = vmatprep.subr.bf16.mxu0 %v1052_v39  ;;  %v622_v38 = vld [vmem:[%s1566_s6 + $0x460] sm:$0xff]  ;;  %v1144_v39 = vpack.c.bf16 %v625_v32, %v621_v31 }
  0x96   : > { %1125 = vmatprep.subr.bf16.mxu1 %v1124_v43  ;;  %v1074_v42 = vpack.c.bf16 %v622_v38, %v618_v37  ;;  %v1146_v43 = vpack.c.bf16 %v624_v41, %v620_v40 }
  0x98   : > { %1055 = vmatpush1.bf16.msra.mxu0 %v1054_v49 }
  0x99   : > { %1127 = vmatpush1.bf16.msra.mxu1 %v1126_v50  ;;  %1057 = vmatprep.subr.bf16.mxu0 %v1056_v51 }
  0x9a   : > { %1129 = vmatprep.subr.bf16.mxu1 %v1128_v55 }
  0x9c   : > { %1059 = vmatpush1.bf16.msra.mxu0 %v1058_v61 }
  0x9d   : > { %1131 = vmatpush1.bf16.msra.mxu1 %v1130_v62  ;;  %1061 = vmatprep.subr.bf16.mxu0 %v1060_v63 }
  0x9e   : > { %1133 = vmatprep.subr.bf16.mxu1 %v1132_v3 }
  0xa0   : > { %1063 = vmatpush1.bf16.msra.mxu0 %v1062_v9 }
  0xa1   : > { %1135 = vmatpush1.bf16.msra.mxu1 %v1134_v10  ;;  %1065 = vmatprep.subr.bf16.mxu0 %v1064_v11 }
  0xa2   : > { %1137 = vmatprep.subr.bf16.mxu1 %v1136_v15 }
  0xa4   : > { %1067 = vmatpush1.bf16.msra.mxu0 %v1066_v21 }
  0xa5   : > { %1139 = vmatpush1.bf16.msra.mxu1 %v1138_v22  ;;  %1069 = vmatprep.subr.bf16.mxu0 %v1068_v23 }
  0xa6   : > { %1141 = vmatprep.subr.bf16.mxu1 %v1140_v27 }
  0xa7   : > { %701 = vmatmul.mubr.f32.vlgmr.msra.gmra.mrb[0].mxu0 %v479_v33 }
  0xa8   : > { %843 = vmatmul.mubr.f32.vlgmr.msra.gmra.mrb[0].mxu1 %v479_v33  ;;  %1071 = vmatpush1.bf16.msra.mxu0 %v1070_v34 }
  0xa9   : > { %1143 = vmatpush1.bf16.msra.mxu1 %v1142_v35  ;;  %1073 = vmatprep.subr.bf16.mxu0 %v1072_v36 }
  0xaa   : > { %1145 = vmatprep.subr.bf16.mxu1 %v1144_v39  ;;  %771 = vmatprep.mubr.f32.mxu0 %v1210_v44 }
  0xab   : > { %913 = vmatprep.mubr.f32.mxu1 %v1210_v44 }
  0xac   : > { %1075 = vmatpush1.bf16.msra.mxu0 %v1074_v42 }
  0xad   : > { %1147 = vmatpush1.bf16.msra.mxu1 %v1146_v43 }
  0xaf   : > { %999 = vmatmul.mubr.msk.f32.vlgmr.msra.gmra.mrb[0].mxu0 %vm632_vm0, %v481_v45 }
  0xb0   : > { %1000 = vmatmul.mubr.msk.f32.vlgmr.msra.gmra.mrb[0].mxu1 %vm632_vm0, %v481_v45 }
  0xe0   : > { %v630_v46 = vpop.permute.xlu0 %629 }
 0x182   : > { %v773_v47 = vpop.f32.mrb[0].mxu0 }
 0x183   : > { %v1148_v48 = vadd.f32 %v773_v47, %v630_v46  ;;  %v915_v49 = vpop.f32.mrb[0].mxu1  ;;  %v775_v50 = vpop.f32.mrb[1].mxu0 }
 0x184   : > { %v1150_v51 = vadd.f32 %v915_v49, %v630_v46  ;;  %v1149_v52 = vadd.f32 %v775_v50, %v630_v46  ;;  %v917_v53 = vpop.f32.mrb[1].mxu1 }
 0x185   : > { %v920_v54 = vmax.f32 %v1148_v48, 0.0  ;;  %v1151_v55 = vadd.f32 %v917_v53, %v630_v46 }
 0x186   : > { %v921_v56 = vmax.f32 %v1149_v52, 0.0  ;;  %v922_v57 = vmax.f32 %v1150_v51, 0.0 }
 0x187   : > { %924 = vst [vmem:[%s477_s20] sm:$0xff] %v920_v54  ;;  %v923_v58 = vmax.f32 %v1151_v55, 0.0 }
 0x188   : > { %925 = vst [vmem:[%s477_s20 + $0x8] sm:$0xff] %v921_v56  ;;  %926 = vst [vmem:[%s477_s20 + $0x10] sm:$0xff] %v922_v57 }
 0x189   : > { %927 = vst [vmem:[%s477_s20 + $0x18] sm:$0xff] %v923_v58 }
 0x18a PF: > { %p10_p9 = scmp.ge.s32.totalorder %s1248_s16, 4   ;;  %s1737_s12 = smov %s1203_s13 }
 0x18b   : > { %s1738_s13 = smov %s1257_s19  ;;  %s1739_s14 = smov %s1248_s16 }
 0x18c   :  { %12 = sbr.rel (!%p10_p9) target bundleno = 2 (0x2), region = 90 }

// kernel: generator_forward.14
= control target key start
LH: loop header
LB: loop body
LE: loop exit
PB: predicated region body
PF: predicated region fallthrough
CT: control target
= control target key end

     0   :  { %s2110_s12 = smov 0   ;;  %s2112_s13 = smov 0   ;;  %s3087_s0 = inlined_call_operand.vmem [shape: f32[8,144], index: 0, kind: input, shape index: {}]   ;;  %s3088_s1 = inlined_call_operand.vmem [shape: f32[144,4096], index: 1, kind: input, shape index: {}]   ;;  %s3089_s2 = inlined_call_operand.vmem [shape: f32[8,1], index: 2, kind: input, shape index: {}]   ;;  %s3090_s3 = inlined_call_operand.vmem [shape: f32[8,4096], index: 3, kind: output, shape index: {}]  }
   0x1   :  { %s2114_s14 = smov 0  }
   0x2 LB: > { %s1729_s15 = sadd.s32 4294967295, %s2087_s14   ;;  %s2127_s16 = sadd.s32 1, %s2087_s14   ;;  %s2087_s14 = sphi %s2114_s14, %s3093_s14   ;;  %s2083_s13 = sphi %s2112_s13, %s3092_s13   ;;  %s2079_s12 = sphi %s2110_s12, %s3091_s12  }
   0x3   : > { %s38_s17 = ssub.s32 %s2087_s14, %s2127_s16  ;;  %s41_s18 = sadd.s32 1, %s2083_s13 }
   0x4   : > { %p39_p0 = scmp.eq.s32.totalorder %s38_s17, 0  ;;  %p48_p1 = scmp.ne.s32.totalorder %s2083_s13, %s2079_s12 }
   0x5   : > { %p49_p2 = scmp.eq.s32.totalorder %s2087_s14, 0  ;;  %p1732_p4 = scmp.ge.s32.totalorder %s2087_s14, 2 }
   0x6   : > { %s2136_s19 = scalar_select %p39_p0, %s2083_s13, %s41_s18  }
   0x7   : > { %p50_p3 = por %p49_p2, %p48_p1  ;;  %127 = sbr.rel (%p1732_p4) target bundleno = 163 (0xa3), region = 24 }
   0xe   : > { %130 = sbr.rel (!%p50_p3) target bundleno = 163 (0xa3), region = 28  ;;  %s132_s20 = sand.u32 (%p50_p3), 1, %s2083_s13  }
   0xf   : > { %s1748_s21 = sshll.u32 (%p50_p3), %s2087_s14, 7  ;;  %s2037_s22 = smul.u32 (%p50_p3), 2304, %s132_s20 }
  0x10   : > { %s2144_s25 = scalar_lea.vmem (%p50_p3), %s3088_s1, %s1748_s21 }
  0x11   : > { %v150_v0 = vld [vmem:[%s2144_s25] sm:$0xff] (%p50_p3)  ;;  %v152_v1 = vld [vmem:[%s2144_s25 + $0x8] sm:$0xff] (%p50_p3)  ;;  %v154_v2 = vld [vmem:[%s2144_s25 + $0x10] sm:$0xff] (%p50_p3)  ;;  %s2152_s26 = scalar_lea.vmem (%p50_p3), [#allocation2], %s2037_s22 }
  0x12   : > { %v156_v3 = vld [vmem:[%s2144_s25 + $0x18] sm:$0xff] (%p50_p3)  ;;  %v158_v4 = vld [vmem:[%s2144_s25 + $0x20] sm:$0xff] (%p50_p3)  ;;  %v160_v5 = vld [vmem:[%s2144_s25 + $0x28] sm:$0xff] (%p50_p3)  ;;  %151 = vst [vmem:[%s2152_s26] sm:$0xff] (%p50_p3), %v150_v0 }
  0x13   : > { %153 = vst [vmem:[%s2152_s26 + $0x8] sm:$0xff] (%p50_p3), %v152_v1  ;;  %155 = vst [vmem:[%s2152_s26 + $0x10] sm:$0xff] (%p50_p3), %v154_v2  ;;  %v162_v6 = vld [vmem:[%s2144_s25 + $0x30] sm:$0xff] (%p50_p3)  ;;  %v164_v7 = vld [vmem:[%s2144_s25 + $0x38] sm:$0xff] (%p50_p3) }
  0x14   : > { %157 = vst [vmem:[%s2152_s26 + $0x18] sm:$0xff] (%p50_p3), %v156_v3  ;;  %159 = vst [vmem:[%s2152_s26 + $0x20] sm:$0xff] (%p50_p3), %v158_v4  ;;  %v166_v8 = vld [vmem:[%s2144_s25 + $0x40] sm:$0xff] (%p50_p3)  ;;  %v168_v9 = vld [vmem:[%s2144_s25 + $0x48] sm:$0xff] (%p50_p3) }
  0x15   : > { %161 = vst [vmem:[%s2152_s26 + $0x28] sm:$0xff] %v160_v5  ;;  %163 = vst [vmem:[%s2152_s26 + $0x30] sm:$0xff] %v162_v6  ;;  %v170_v10 = vld [vmem:[%s2144_s25 + $0x50] sm:$0xff]  ;;  %v172_v11 = vld [vmem:[%s2144_s25 + $0x58] sm:$0xff] }
  0x16   : > { %165 = vst [vmem:[%s2152_s26 + $0x38] sm:$0xff] %v164_v7  ;;  %167 = vst [vmem:[%s2152_s26 + $0x40] sm:$0xff] %v166_v8  ;;  %v174_v12 = vld [vmem:[%s2144_s25 + $0x60] sm:$0xff]  ;;  %v176_v13 = vld [vmem:[%s2144_s25 + $0x68] sm:$0xff] }
  0x17   : > { %169 = vst [vmem:[%s2152_s26 + $0x48] sm:$0xff] %v168_v9  ;;  %171 = vst [vmem:[%s2152_s26 + $0x50] sm:$0xff] %v170_v10  ;;  %v178_v14 = vld [vmem:[%s2144_s25 + $0x70] sm:$0xff]  ;;  %v180_v15 = vld [vmem:[%s2144_s25 + $0x78] sm:$0xff] }
  0x18   : > { %173 = vst [vmem:[%s2152_s26 + $0x58] sm:$0xff] %v172_v11  ;;  %175 = vst [vmem:[%s2152_s26 + $0x60] sm:$0xff] %v174_v12  ;;  %v182_v16 = vld [vmem:[%s2144_s25 + $0x100] sm:$0xff]  ;;  %v184_v17 = vld [vmem:[%s2144_s25 + $0x108] sm:$0xff] }
  0x19   : > { %177 = vst [vmem:[%s2152_s26 + $0x68] sm:$0xff] %v176_v13  ;;  %179 = vst [vmem:[%s2152_s26 + $0x70] sm:$0xff] %v178_v14  ;;  %v186_v18 = vld [vmem:[%s2144_s25 + $0x110] sm:$0xff]  ;;  %v188_v19 = vld [vmem:[%s2144_s25 + $0x118] sm:$0xff] }
  0x1a   : > { %181 = vst [vmem:[%s2152_s26 + $0x78] sm:$0xff] %v180_v15  ;;  %183 = vst [vmem:[%s2152_s26 + $0x80] sm:$0xff] %v182_v16  ;;  %v190_v20 = vld [vmem:[%s2144_s25 + $0x120] sm:$0xff]  ;;  %v192_v21 = vld [vmem:[%s2144_s25 + $0x128] sm:$0xff] }
  0x1b   : > { %185 = vst [vmem:[%s2152_s26 + $0x88] sm:$0xff] %v184_v17  ;;  %187 = vst [vmem:[%s2152_s26 + $0x90] sm:$0xff] %v186_v18  ;;  %v194_v22 = vld [vmem:[%s2144_s25 + $0x130] sm:$0xff]  ;;  %v196_v23 = vld [vmem:[%s2144_s25 + $0x138] sm:$0xff] }
  0x1c   : > { %189 = vst [vmem:[%s2152_s26 + $0x98] sm:$0xff] %v188_v19  ;;  %191 = vst [vmem:[%s2152_s26 + $0xa0] sm:$0xff] %v190_v20  ;;  %v198_v24 = vld [vmem:[%s2144_s25 + $0x140] sm:$0xff]  ;;  %v200_v25 = vld [vmem:[%s2144_s25 + $0x148] sm:$0xff] }
  0x1d   : > { %193 = vst [vmem:[%s2152_s26 + $0xa8] sm:$0xff] %v192_v21  ;;  %195 = vst [vmem:[%s2152_s26 + $0xb0] sm:$0xff] %v194_v22  ;;  %v202_v26 = vld [vmem:[%s2144_s25 + $0x150] sm:$0xff]  ;;  %v204_v27 = vld [vmem:[%s2144_s25 + $0x158] sm:$0xff] }
  0x1e   : > { %197 = vst [vmem:[%s2152_s26 + $0xb8] sm:$0xff] %v196_v23  ;;  %199 = vst [vmem:[%s2152_s26 + $0xc0] sm:$0xff] %v198_v24  ;;  %v206_v28 = vld [vmem:[%s2144_s25 + $0x160] sm:$0xff]  ;;  %v208_v29 = vld [vmem:[%s2144_s25 + $0x168] sm:$0xff] }
  0x1f   : > { %201 = vst [vmem:[%s2152_s26 + $0xc8] sm:$0xff] %v200_v25  ;;  %203 = vst [vmem:[%s2152_s26 + $0xd0] sm:$0xff] %v202_v26  ;;  %v210_v30 = vld [vmem:[%s2144_s25 + $0x170] sm:$0xff]  ;;  %v212_v31 = vld [vmem:[%s2144_s25 + $0x178] sm:$0xff] }
  0x20   : > { %205 = vst [vmem:[%s2152_s26 + $0xd8] sm:$0xff] %v204_v27  ;;  %207 = vst [vmem:[%s2152_s26 + $0xe0] sm:$0xff] %v206_v28  ;;  %v214_v32 = vld [vmem:[%s2144_s25 + $0x200] sm:$0xff]  ;;  %v216_v33 = vld [vmem:[%s2144_s25 + $0x208] sm:$0xff] }
  0x21   : > { %209 = vst [vmem:[%s2152_s26 + $0xe8] sm:$0xff] %v208_v29  ;;  %211 = vst [vmem:[%s2152_s26 + $0xf0] sm:$0xff] %v210_v30  ;;  %v218_v34 = vld [vmem:[%s2144_s25 + $0x210] sm:$0xff]  ;;  %v220_v35 = vld [vmem:[%s2144_s25 + $0x218] sm:$0xff] }
  0x22   : > { %213 = vst [vmem:[%s2152_s26 + $0xf8] sm:$0xff] %v212_v31  ;;  %215 = vst [vmem:[%s2152_s26 + $0x100] sm:$0xff] %v214_v32  ;;  %v222_v36 = vld [vmem:[%s2144_s25 + $0x220] sm:$0xff]  ;;  %v224_v37 = vld [vmem:[%s2144_s25 + $0x228] sm:$0xff] }
  0x23   : > { %217 = vst [vmem:[%s2152_s26 + $0x108] sm:$0xff] %v216_v33  ;;  %219 = vst [vmem:[%s2152_s26 + $0x110] sm:$0xff] %v218_v34  ;;  %v226_v38 = vld [vmem:[%s2144_s25 + $0x230] sm:$0xff]  ;;  %v228_v39 = vld [vmem:[%s2144_s25 + $0x238] sm:$0xff] }
  0x24   : > { %221 = vst [vmem:[%s2152_s26 + $0x118] sm:$0xff] %v220_v35  ;;  %223 = vst [vmem:[%s2152_s26 + $0x120] sm:$0xff] %v222_v36  ;;  %v230_v40 = vld [vmem:[%s2144_s25 + $0x240] sm:$0xff]  ;;  %v232_v41 = vld [vmem:[%s2144_s25 + $0x248] sm:$0xff] }
  0x25   : > { %225 = vst [vmem:[%s2152_s26 + $0x128] sm:$0xff] %v224_v37  ;;  %227 = vst [vmem:[%s2152_s26 + $0x130] sm:$0xff] %v226_v38  ;;  %v234_v42 = vld [vmem:[%s2144_s25 + $0x250] sm:$0xff]  ;;  %v236_v43 = vld [vmem:[%s2144_s25 + $0x258] sm:$0xff] }
  0x26   : > { %229 = vst [vmem:[%s2152_s26 + $0x138] sm:$0xff] %v228_v39  ;;  %231 = vst [vmem:[%s2152_s26 + $0x140] sm:$0xff] %v230_v40  ;;  %v238_v44 = vld [vmem:[%s2144_s25 + $0x260] sm:$0xff]  ;;  %v240_v45 = vld [vmem:[%s2144_s25 + $0x268] sm:$0xff] }
  0x27   : > { %233 = vst [vmem:[%s2152_s26 + $0x148] sm:$0xff] %v232_v41  ;;  %235 = vst [vmem:[%s2152_s26 + $0x150] sm:$0xff] %v234_v42  ;;  %v242_v46 = vld [vmem:[%s2144_s25 + $0x270] sm:$0xff]  ;;  %v244_v47 = vld [vmem:[%s2144_s25 + $0x278] sm:$0xff] }
  0x28   : > { %237 = vst [vmem:[%s2152_s26 + $0x158] sm:$0xff] %v236_v43  ;;  %239 = vst [vmem:[%s2152_s26 + $0x160] sm:$0xff] %v238_v44  ;;  %v246_v48 = vld [vmem:[%s2144_s25 + $0x300] sm:$0xff]  ;;  %v248_v49 = vld [vmem:[%s2144_s25 + $0x308] sm:$0xff] }
  0x29   : > { %241 = vst [vmem:[%s2152_s26 + $0x168] sm:$0xff] %v240_v45  ;;  %243 = vst [vmem:[%s2152_s26 + $0x170] sm:$0xff] %v242_v46  ;;  %v250_v50 = vld [vmem:[%s2144_s25 + $0x310] sm:$0xff]  ;;  %v252_v51 = vld [vmem:[%s2144_s25 + $0x318] sm:$0xff] }
  0x2a   : > { %245 = vst [vmem:[%s2152_s26 + $0x178] sm:$0xff] %v244_v47  ;;  %247 = vst [vmem:[%s2152_s26 + $0x180] sm:$0xff] %v246_v48  ;;  %v254_v52 = vld [vmem:[%s2144_s25 + $0x320] sm:$0xff]  ;;  %v256_v53 = vld [vmem:[%s2144_s25 + $0x328] sm:$0xff] }
  0x2b   : > { %249 = vst [vmem:[%s2152_s26 + $0x188] sm:$0xff] %v248_v49  ;;  %251 = vst [vmem:[%s2152_s26 + $0x190] sm:$0xff] %v250_v50  ;;  %v258_v54 = vld [vmem:[%s2144_s25 + $0x330] sm:$0xff]  ;;  %v260_v55 = vld [vmem:[%s2144_s25 + $0x338] sm:$0xff] }
  0x2c   : > { %253 = vst [vmem:[%s2152_s26 + $0x198] sm:$0xff] %v252_v51  ;;  %255 = vst [vmem:[%s2152_s26 + $0x1a0] sm:$0xff] %v254_v52  ;;  %v262_v56 = vld [vmem:[%s2144_s25 + $0x340] sm:$0xff]  ;;  %v264_v57 = vld [vmem:[%s2144_s25 + $0x348] sm:$0xff] }
  0x2d   : > { %257 = vst [vmem:[%s2152_s26 + $0x1a8] sm:$0xff] %v256_v53  ;;  %259 = vst [vmem:[%s2152_s26 + $0x1b0] sm:$0xff] %v258_v54  ;;  %v266_v58 = vld [vmem:[%s2144_s25 + $0x350] sm:$0xff]  ;;  %v268_v59 = vld [vmem:[%s2144_s25 + $0x358] sm:$0xff] }
  0x2e   : > { %261 = vst [vmem:[%s2152_s26 + $0x1b8] sm:$0xff] %v260_v55  ;;  %263 = vst [vmem:[%s2152_s26 + $0x1c0] sm:$0xff] %v262_v56  ;;  %v270_v60 = vld [vmem:[%s2144_s25 + $0x360] sm:$0xff]  ;;  %v272_v61 = vld [vmem:[%s2144_s25 + $0x368] sm:$0xff] }
  0x2f   : > { %265 = vst [vmem:[%s2152_s26 + $0x1c8] sm:$0xff] %v264_v57  ;;  %267 = vst [vmem:[%s2152_s26 + $0x1d0] sm:$0xff] %v266_v58  ;;  %v274_v62 = vld [vmem:[%s2144_s25 + $0x370] sm:$0xff]  ;;  %v276_v63 = vld [vmem:[%s2144_s25 + $0x378] sm:$0xff] }
  0x30   : > { %269 = vst [vmem:[%s2152_s26 + $0x1d8] sm:$0xff] %v268_v59  ;;  %271 = vst [vmem:[%s2152_s26 + $0x1e0] sm:$0xff] %v270_v60  ;;  %v278_v0 = vld [vmem:[%s2144_s25 + $0x400] sm:$0xff]  ;;  %v280_v1 = vld [vmem:[%s2144_s25 + $0x408] sm:$0xff] }
  0x31   : > { %273 = vst [vmem:[%s2152_s26 + $0x1e8] sm:$0xff] %v272_v61  ;;  %275 = vst [vmem:[%s2152_s26 + $0x1f0] sm:$0xff] %v274_v62  ;;  %v282_v2 = vld [vmem:[%s2144_s25 + $0x410] sm:$0xff]  ;;  %v284_v3 = vld [vmem:[%s2144_s25 + $0x418] sm:$0xff] }
  0x32   : > { %277 = vst [vmem:[%s2152_s26 + $0x1f8] sm:$0xff] %v276_v63  ;;  %279 = vst [vmem:[%s2152_s26 + $0x200] sm:$0xff] %v278_v0  ;;  %v286_v4 = vld [vmem:[%s2144_s25 + $0x420] sm:$0xff]  ;;  %v288_v5 = vld [vmem:[%s2144_s25 + $0x428] sm:$0xff] }
  0x33   : > { %281 = vst [vmem:[%s2152_s26 + $0x208] sm:$0xff] %v280_v1  ;;  %283 = vst [vmem:[%s2152_s26 + $0x210] sm:$0xff] %v282_v2  ;;  %v290_v6 = vld [vmem:[%s2144_s25 + $0x430] sm:$0xff]  ;;  %v292_v7 = vld [vmem:[%s2144_s25 + $0x438] sm:$0xff] }
  0x34   : > { %285 = vst [vmem:[%s2152_s26 + $0x218] sm:$0xff] %v284_v3  ;;  %287 = vst [vmem:[%s2152_s26 + $0x220] sm:$0xff] %v286_v4  ;;  %v294_v8 = vld [vmem:[%s2144_s25 + $0x440] sm:$0xff]  ;;  %v296_v9 = vld [vmem:[%s2144_s25 + $0x448] sm:$0xff] }
  0x35   : > { %289 = vst [vmem:[%s2152_s26 + $0x228] sm:$0xff] %v288_v5  ;;  %291 = vst [vmem:[%s2152_s26 + $0x230] sm:$0xff] %v290_v6  ;;  %v298_v10 = vld [vmem:[%s2144_s25 + $0x450] sm:$0xff]  ;;  %v300_v11 = vld [vmem:[%s2144_s25 + $0x458] sm:$0xff] }
  0x36   : > { %293 = vst [vmem:[%s2152_s26 + $0x238] sm:$0xff] %v292_v7  ;;  %295 = vst [vmem:[%s2152_s26 + $0x240] sm:$0xff] %v294_v8  ;;  %v302_v12 = vld [vmem:[%s2144_s25 + $0x460] sm:$0xff]  ;;  %v304_v13 = vld [vmem:[%s2144_s25 + $0x468] sm:$0xff] }
  0x37   : > { %297 = vst [vmem:[%s2152_s26 + $0x248] sm:$0xff] %v296_v9  ;;  %299 = vst [vmem:[%s2152_s26 + $0x250] sm:$0xff] %v298_v10  ;;  %v306_v14 = vld [vmem:[%s2144_s25 + $0x470] sm:$0xff]  ;;  %v308_v15 = vld [vmem:[%s2144_s25 + $0x478] sm:$0xff] }
  0x38   : > { %301 = vst [vmem:[%s2152_s26 + $0x258] sm:$0xff] %v300_v11  ;;  %303 = vst [vmem:[%s2152_s26 + $0x260] sm:$0xff] %v302_v12  ;;  %v310_v16 = vld [vmem:[%s2144_s25 + $0x500] sm:$0xff]  ;;  %v312_v17 = vld [vmem:[%s2144_s25 + $0x508] sm:$0xff] }
  0x39   : > { %305 = vst [vmem:[%s2152_s26 + $0x268] sm:$0xff] %v304_v13  ;;  %307 = vst [vmem:[%s2152_s26 + $0x270] sm:$0xff] %v306_v14  ;;  %v314_v18 = vld [vmem:[%s2144_s25 + $0x510] sm:$0xff]  ;;  %v316_v19 = vld [vmem:[%s2144_s25 + $0x518] sm:$0xff] }
  0x3a   : > { %309 = vst [vmem:[%s2152_s26 + $0x278] sm:$0xff] %v308_v15  ;;  %311 = vst [vmem:[%s2152_s26 + $0x280] sm:$0xff] %v310_v16  ;;  %v318_v20 = vld [vmem:[%s2144_s25 + $0x520] sm:$0xff]  ;;  %v320_v21 = vld [vmem:[%s2144_s25 + $0x528] sm:$0xff] }
  0x3b   : > { %313 = vst [vmem:[%s2152_s26 + $0x288] sm:$0xff] %v312_v17  ;;  %315 = vst [vmem:[%s2152_s26 + $0x290] sm:$0xff] %v314_v18  ;;  %v322_v22 = vld [vmem:[%s2144_s25 + $0x530] sm:$0xff]  ;;  %v324_v23 = vld [vmem:[%s2144_s25 + $0x538] sm:$0xff] }
  0x3c   : > { %317 = vst [vmem:[%s2152_s26 + $0x298] sm:$0xff] %v316_v19  ;;  %319 = vst [vmem:[%s2152_s26 + $0x2a0] sm:$0xff] %v318_v20  ;;  %v326_v24 = vld [vmem:[%s2144_s25 + $0x540] sm:$0xff]  ;;  %v328_v25 = vld [vmem:[%s2144_s25 + $0x548] sm:$0xff] }
  0x3d   : > { %321 = vst [vmem:[%s2152_s26 + $0x2a8] sm:$0xff] %v320_v21  ;;  %323 = vst [vmem:[%s2152_s26 + $0x2b0] sm:$0xff] %v322_v22  ;;  %v330_v26 = vld [vmem:[%s2144_s25 + $0x550] sm:$0xff]  ;;  %v332_v27 = vld [vmem:[%s2144_s25 + $0x558] sm:$0xff] }
  0x3e   : > { %325 = vst [vmem:[%s2152_s26 + $0x2b8] sm:$0xff] %v324_v23  ;;  %327 = vst [vmem:[%s2152_s26 + $0x2c0] sm:$0xff] %v326_v24  ;;  %v334_v28 = vld [vmem:[%s2144_s25 + $0x560] sm:$0xff]  ;;  %v336_v29 = vld [vmem:[%s2144_s25 + $0x568] sm:$0xff] }
  0x3f   : > { %329 = vst [vmem:[%s2152_s26 + $0x2c8] sm:$0xff] %v328_v25  ;;  %331 = vst [vmem:[%s2152_s26 + $0x2d0] sm:$0xff] %v330_v26  ;;  %v338_v30 = vld [vmem:[%s2144_s25 + $0x570] sm:$0xff]  ;;  %v340_v31 = vld [vmem:[%s2144_s25 + $0x578] sm:$0xff] }
  0x40   : > { %333 = vst [vmem:[%s2152_s26 + $0x2d8] sm:$0xff] %v332_v27  ;;  %335 = vst [vmem:[%s2152_s26 + $0x2e0] sm:$0xff] %v334_v28  ;;  %v342_v32 = vld [vmem:[%s2144_s25 + $0x600] sm:$0xff]  ;;  %v344_v33 = vld [vmem:[%s2144_s25 + $0x608] sm:$0xff] }
  0x41   : > { %337 = vst [vmem:[%s2152_s26 + $0x2e8] sm:$0xff] %v336_v29  ;;  %339 = vst [vmem:[%s2152_s26 + $0x2f0] sm:$0xff] %v338_v30  ;;  %v346_v34 = vld [vmem:[%s2144_s25 + $0x610] sm:$0xff]  ;;  %v348_v35 = vld [vmem:[%s2144_s25 + $0x618] sm:$0xff] }
  0x42   : > { %341 = vst [vmem:[%s2152_s26 + $0x2f8] sm:$0xff] %v340_v31  ;;  %343 = vst [vmem:[%s2152_s26 + $0x300] sm:$0xff] %v342_v32  ;;  %v350_v36 = vld [vmem:[%s2144_s25 + $0x620] sm:$0xff]  ;;  %v352_v37 = vld [vmem:[%s2144_s25 + $0x628] sm:$0xff] }
  0x43   : > { %345 = vst [vmem:[%s2152_s26 + $0x308] sm:$0xff] %v344_v33  ;;  %347 = vst [vmem:[%s2152_s26 + $0x310] sm:$0xff] %v346_v34  ;;  %v354_v38 = vld [vmem:[%s2144_s25 + $0x630] sm:$0xff]  ;;  %v356_v39 = vld [vmem:[%s2144_s25 + $0x638] sm:$0xff] }
  0x44   : > { %349 = vst [vmem:[%s2152_s26 + $0x318] sm:$0xff] %v348_v35  ;;  %351 = vst [vmem:[%s2152_s26 + $0x320] sm:$0xff] %v350_v36  ;;  %v358_v40 = vld [vmem:[%s2144_s25 + $0x640] sm:$0xff]  ;;  %v360_v41 = vld [vmem:[%s2144_s25 + $0x648] sm:$0xff] }
  0x45   : > { %353 = vst [vmem:[%s2152_s26 + $0x328] sm:$0xff] %v352_v37  ;;  %355 = vst [vmem:[%s2152_s26 + $0x330] sm:$0xff] %v354_v38  ;;  %v362_v42 = vld [vmem:[%s2144_s25 + $0x650] sm:$0xff]  ;;  %v364_v43 = vld [vmem:[%s2144_s25 + $0x658] sm:$0xff] }
  0x46   : > { %357 = vst [vmem:[%s2152_s26 + $0x338] sm:$0xff] %v356_v39  ;;  %359 = vst [vmem:[%s2152_s26 + $0x340] sm:$0xff] %v358_v40  ;;  %v366_v44 = vld [vmem:[%s2144_s25 + $0x660] sm:$0xff]  ;;  %v368_v45 = vld [vmem:[%s2144_s25 + $0x668] sm:$0xff] }
  0x47   : > { %361 = vst [vmem:[%s2152_s26 + $0x348] sm:$0xff] %v360_v41  ;;  %363 = vst [vmem:[%s2152_s26 + $0x350] sm:$0xff] %v362_v42  ;;  %v370_v46 = vld [vmem:[%s2144_s25 + $0x670] sm:$0xff]  ;;  %v372_v47 = vld [vmem:[%s2144_s25 + $0x678] sm:$0xff] }
  0x48   : > { %365 = vst [vmem:[%s2152_s26 + $0x358] sm:$0xff] %v364_v43  ;;  %367 = vst [vmem:[%s2152_s26 + $0x360] sm:$0xff] %v366_v44  ;;  %v374_v48 = vld [vmem:[%s2144_s25 + $0x700] sm:$0xff]  ;;  %v376_v49 = vld [vmem:[%s2144_s25 + $0x708] sm:$0xff] }
  0x49   : > { %369 = vst [vmem:[%s2152_s26 + $0x368] sm:$0xff] %v368_v45  ;;  %371 = vst [vmem:[%s2152_s26 + $0x370] sm:$0xff] %v370_v46  ;;  %v378_v50 = vld [vmem:[%s2144_s25 + $0x710] sm:$0xff]  ;;  %v380_v51 = vld [vmem:[%s2144_s25 + $0x718] sm:$0xff] }
  0x4a   : > { %373 = vst [vmem:[%s2152_s26 + $0x378] sm:$0xff] %v372_v47  ;;  %375 = vst [vmem:[%s2152_s26 + $0x380] sm:$0xff] %v374_v48  ;;  %v382_v52 = vld [vmem:[%s2144_s25 + $0x720] sm:$0xff]  ;;  %v384_v53 = vld [vmem:[%s2144_s25 + $0x728] sm:$0xff] }
  0x4b   : > { %377 = vst [vmem:[%s2152_s26 + $0x388] sm:$0xff] %v376_v49  ;;  %379 = vst [vmem:[%s2152_s26 + $0x390] sm:$0xff] %v378_v50  ;;  %v386_v54 = vld [vmem:[%s2144_s25 + $0x730] sm:$0xff]  ;;  %v388_v55 = vld [vmem:[%s2144_s25 + $0x738] sm:$0xff] }
  0x4c   : > { %381 = vst [vmem:[%s2152_s26 + $0x398] sm:$0xff] %v380_v51  ;;  %383 = vst [vmem:[%s2152_s26 + $0x3a0] sm:$0xff] %v382_v52  ;;  %v390_v56 = vld [vmem:[%s2144_s25 + $0x740] sm:$0xff]  ;;  %v392_v57 = vld [vmem:[%s2144_s25 + $0x748] sm:$0xff] }
  0x4d   : > { %385 = vst [vmem:[%s2152_s26 + $0x3a8] sm:$0xff] %v384_v53  ;;  %387 = vst [vmem:[%s2152_s26 + $0x3b0] sm:$0xff] %v386_v54  ;;  %v394_v58 = vld [vmem:[%s2144_s25 + $0x750] sm:$0xff]  ;;  %v396_v59 = vld [vmem:[%s2144_s25 + $0x758] sm:$0xff] }
  0x4e   : > { %389 = vst [vmem:[%s2152_s26 + $0x3b8] sm:$0xff] %v388_v55  ;;  %391 = vst [vmem:[%s2152_s26 + $0x3c0] sm:$0xff] %v390_v56  ;;  %v398_v60 = vld [vmem:[%s2144_s25 + $0x760] sm:$0xff]  ;;  %v400_v61 = vld [vmem:[%s2144_s25 + $0x768] sm:$0xff] }
  0x4f   : > { %393 = vst [vmem:[%s2152_s26 + $0x3c8] sm:$0xff] %v392_v57  ;;  %395 = vst [vmem:[%s2152_s26 + $0x3d0] sm:$0xff] %v394_v58  ;;  %v402_v62 = vld [vmem:[%s2144_s25 + $0x770] sm:$0xff]  ;;  %v404_v63 = vld [vmem:[%s2144_s25 + $0x778] sm:$0xff] }
  0x50   : > { %397 = vst [vmem:[%s2152_s26 + $0x3d8] sm:$0xff] %v396_v59  ;;  %399 = vst [vmem:[%s2152_s26 + $0x3e0] sm:$0xff] %v398_v60  ;;  %v406_v0 = vld [vmem:[%s2144_s25 + $0x800] sm:$0xff]  ;;  %v408_v1 = vld [vmem:[%s2144_s25 + $0x808] sm:$0xff] }
  0x51   : > { %401 = vst [vmem:[%s2152_s26 + $0x3e8] sm:$0xff] %v400_v61  ;;  %403 = vst [vmem:[%s2152_s26 + $0x3f0] sm:$0xff] %v402_v62  ;;  %v410_v2 = vld [vmem:[%s2144_s25 + $0x810] sm:$0xff]  ;;  %v412_v3 = vld [vmem:[%s2144_s25 + $0x818] sm:$0xff] }
  0x52   : > { %405 = vst [vmem:[%s2152_s26 + $0x3f8] sm:$0xff] %v404_v63  ;;  %407 = vst [vmem:[%s2152_s26 + $0x400] sm:$0xff] %v406_v0  ;;  %v414_v4 = vld [vmem:[%s2144_s25 + $0x820] sm:$0xff]  ;;  %v416_v5 = vld [vmem:[%s2144_s25 + $0x828] sm:$0xff] }
  0x53   : > { %409 = vst [vmem:[%s2152_s26 + $0x408] sm:$0xff] %v408_v1  ;;  %411 = vst [vmem:[%s2152_s26 + $0x410] sm:$0xff] %v410_v2  ;;  %v418_v6 = vld [vmem:[%s2144_s25 + $0x830] sm:$0xff]  ;;  %v420_v7 = vld [vmem:[%s2144_s25 + $0x838] sm:$0xff] }
  0x54   : > { %413 = vst [vmem:[%s2152_s26 + $0x418] sm:$0xff] %v412_v3  ;;  %415 = vst [vmem:[%s2152_s26 + $0x420] sm:$0xff] %v414_v4  ;;  %v422_v8 = vld [vmem:[%s2144_s25 + $0x840] sm:$0xff]  ;;  %v424_v9 = vld [vmem:[%s2144_s25 + $0x848] sm:$0xff] }
  0x55   : > { %417 = vst [vmem:[%s2152_s26 + $0x428] sm:$0xff] %v416_v5  ;;  %419 = vst [vmem:[%s2152_s26 + $0x430] sm:$0xff] %v418_v6  ;;  %v426_v10 = vld [vmem:[%s2144_s25 + $0x850] sm:$0xff]  ;;  %v428_v11 = vld [vmem:[%s2144_s25 + $0x858] sm:$0xff] }
  0x56   : > { %421 = vst [vmem:[%s2152_s26 + $0x438] sm:$0xff] %v420_v7  ;;  %423 = vst [vmem:[%s2152_s26 + $0x440] sm:$0xff] %v422_v8  ;;  %v430_v12 = vld [vmem:[%s2144_s25 + $0x860] sm:$0xff]  ;;  %v432_v13 = vld [vmem:[%s2144_s25 + $0x868] sm:$0xff] }
  0x57   : > { %425 = vst [vmem:[%s2152_s26 + $0x448] sm:$0xff] %v424_v9  ;;  %427 = vst [vmem:[%s2152_s26 + $0x450] sm:$0xff] %v426_v10  ;;  %v434_v14 = vld [vmem:[%s2144_s25 + $0x870] sm:$0xff]  ;;  %v436_v15 = vld [vmem:[%s2144_s25 + $0x878] sm:$0xff] }
  0x58   : > { %429 = vst [vmem:[%s2152_s26 + $0x458] sm:$0xff] %v428_v11  ;;  %431 = vst [vmem:[%s2152_s26 + $0x460] sm:$0xff] %v430_v12  ;;  %v438_v16 = vld [vmem:[%s2144_s25 + $0x900] sm:$0xff]  ;;  %v440_v17 = vld [vmem:[%s2144_s25 + $0x908] sm:$0xff] }
  0x59   : > { %433 = vst [vmem:[%s2152_s26 + $0x468] sm:$0xff] %v432_v13  ;;  %435 = vst [vmem:[%s2152_s26 + $0x470] sm:$0xff] %v434_v14  ;;  %v442_v18 = vld [vmem:[%s2144_s25 + $0x910] sm:$0xff]  ;;  %v444_v19 = vld [vmem:[%s2144_s25 + $0x918] sm:$0xff] }
  0x5a   : > { %437 = vst [vmem:[%s2152_s26 + $0x478] sm:$0xff] %v436_v15  ;;  %439 = vst [vmem:[%s2152_s26 + $0x480] sm:$0xff] %v438_v16  ;;  %v446_v20 = vld [vmem:[%s2144_s25 + $0x920] sm:$0xff]  ;;  %v448_v21 = vld [vmem:[%s2144_s25 + $0x928] sm:$0xff] }
  0x5b   : > { %441 = vst [vmem:[%s2152_s26 + $0x488] sm:$0xff] %v440_v17  ;;  %443 = vst [vmem:[%s2152_s26 + $0x490] sm:$0xff] %v442_v18  ;;  %v450_v22 = vld [vmem:[%s2144_s25 + $0x930] sm:$0xff]  ;;  %v452_v23 = vld [vmem:[%s2144_s25 + $0x938] sm:$0xff] }
  0x5c   : > { %445 = vst [vmem:[%s2152_s26 + $0x498] sm:$0xff] %v444_v19  ;;  %447 = vst [vmem:[%s2152_s26 + $0x4a0] sm:$0xff] %v446_v20  ;;  %v454_v24 = vld [vmem:[%s2144_s25 + $0x940] sm:$0xff]  ;;  %v456_v25 = vld [vmem:[%s2144_s25 + $0x948] sm:$0xff] }
  0x5d   : > { %449 = vst [vmem:[%s2152_s26 + $0x4a8] sm:$0xff] %v448_v21  ;;  %451 = vst [vmem:[%s2152_s26 + $0x4b0] sm:$0xff] %v450_v22  ;;  %v458_v26 = vld [vmem:[%s2144_s25 + $0x950] sm:$0xff]  ;;  %v460_v27 = vld [vmem:[%s2144_s25 + $0x958] sm:$0xff] }
  0x5e   : > { %453 = vst [vmem:[%s2152_s26 + $0x4b8] sm:$0xff] %v452_v23  ;;  %455 = vst [vmem:[%s2152_s26 + $0x4c0] sm:$0xff] %v454_v24  ;;  %v462_v28 = vld [vmem:[%s2144_s25 + $0x960] sm:$0xff]  ;;  %v464_v29 = vld [vmem:[%s2144_s25 + $0x968] sm:$0xff] }
  0x5f   : > { %457 = vst [vmem:[%s2152_s26 + $0x4c8] sm:$0xff] %v456_v25  ;;  %459 = vst [vmem:[%s2152_s26 + $0x4d0] sm:$0xff] %v458_v26  ;;  %v466_v30 = vld [vmem:[%s2144_s25 + $0x970] sm:$0xff]  ;;  %v468_v31 = vld [vmem:[%s2144_s25 + $0x978] sm:$0xff] }
  0x60   : > { %461 = vst [vmem:[%s2152_s26 + $0x4d8] sm:$0xff] %v460_v27  ;;  %463 = vst [vmem:[%s2152_s26 + $0x4e0] sm:$0xff] %v462_v28  ;;  %v470_v32 = vld [vmem:[%s2144_s25 + $0xa00] sm:$0xff]  ;;  %v472_v33 = vld [vmem:[%s2144_s25 + $0xa08] sm:$0xff] }
  0x61   : > { %465 = vst [vmem:[%s2152_s26 + $0x4e8] sm:$0xff] %v464_v29  ;;  %467 = vst [vmem:[%s2152_s26 + $0x4f0] sm:$0xff] %v466_v30  ;;  %v474_v34 = vld [vmem:[%s2144_s25 + $0xa10] sm:$0xff]  ;;  %v476_v35 = vld [vmem:[%s2144_s25 + $0xa18] sm:$0xff] }
  0x62   : > { %469 = vst [vmem:[%s2152_s26 + $0x4f8] sm:$0xff] %v468_v31  ;;  %471 = vst [vmem:[%s2152_s26 + $0x500] sm:$0xff] %v470_v32  ;;  %v478_v36 = vld [vmem:[%s2144_s25 + $0xa20] sm:$0xff]  ;;  %v480_v37 = vld [vmem:[%s2144_s25 + $0xa28] sm:$0xff] }
  0x63   : > { %473 = vst [vmem:[%s2152_s26 + $0x508] sm:$0xff] %v472_v33  ;;  %475 = vst [vmem:[%s2152_s26 + $0x510] sm:$0xff] %v474_v34  ;;  %v482_v38 = vld [vmem:[%s2144_s25 + $0xa30] sm:$0xff]  ;;  %v484_v39 = vld [vmem:[%s2144_s25 + $0xa38] sm:$0xff] }
  0x64   : > { %477 = vst [vmem:[%s2152_s26 + $0x518] sm:$0xff] %v476_v35  ;;  %479 = vst [vmem:[%s2152_s26 + $0x520] sm:$0xff] %v478_v36  ;;  %v486_v40 = vld [vmem:[%s2144_s25 + $0xa40] sm:$0xff]  ;;  %v488_v41 = vld [vmem:[%s2144_s25 + $0xa48] sm:$0xff] }
  0x65   : > { %481 = vst [vmem:[%s2152_s26 + $0x528] sm:$0xff] %v480_v37  ;;  %483 = vst [vmem:[%s2152_s26 + $0x530] sm:$0xff] %v482_v38  ;;  %v490_v42 = vld [vmem:[%s2144_s25 + $0xa50] sm:$0xff]  ;;  %v492_v43 = vld [vmem:[%s2144_s25 + $0xa58] sm:$0xff] }
  0x66   : > { %485 = vst [vmem:[%s2152_s26 + $0x538] sm:$0xff] %v484_v39  ;;  %487 = vst [vmem:[%s2152_s26 + $0x540] sm:$0xff] %v486_v40  ;;  %v494_v44 = vld [vmem:[%s2144_s25 + $0xa60] sm:$0xff]  ;;  %v496_v45 = vld [vmem:[%s2144_s25 + $0xa68] sm:$0xff] }
  0x67   : > { %489 = vst [vmem:[%s2152_s26 + $0x548] sm:$0xff] %v488_v41  ;;  %491 = vst [vmem:[%s2152_s26 + $0x550] sm:$0xff] %v490_v42  ;;  %v498_v46 = vld [vmem:[%s2144_s25 + $0xa70] sm:$0xff]  ;;  %v500_v47 = vld [vmem:[%s2144_s25 + $0xa78] sm:$0xff] }
  0x68   : > { %493 = vst [vmem:[%s2152_s26 + $0x558] sm:$0xff] %v492_v43  ;;  %495 = vst [vmem:[%s2152_s26 + $0x560] sm:$0xff] %v494_v44  ;;  %v502_v48 = vld [vmem:[%s2144_s25 + $0xb00] sm:$0xff]  ;;  %v504_v49 = vld [vmem:[%s2144_s25 + $0xb08] sm:$0xff] }
  0x69   : > { %497 = vst [vmem:[%s2152_s26 + $0x568] sm:$0xff] %v496_v45  ;;  %499 = vst [vmem:[%s2152_s26 + $0x570] sm:$0xff] %v498_v46  ;;  %v506_v50 = vld [vmem:[%s2144_s25 + $0xb10] sm:$0xff]  ;;  %v508_v51 = vld [vmem:[%s2144_s25 + $0xb18] sm:$0xff] }
  0x6a   : > { %501 = vst [vmem:[%s2152_s26 + $0x578] sm:$0xff] %v500_v47  ;;  %503 = vst [vmem:[%s2152_s26 + $0x580] sm:$0xff] %v502_v48  ;;  %v510_v52 = vld [vmem:[%s2144_s25 + $0xb20] sm:$0xff]  ;;  %v512_v53 = vld [vmem:[%s2144_s25 + $0xb28] sm:$0xff] }
  0x6b   : > { %505 = vst [vmem:[%s2152_s26 + $0x588] sm:$0xff] %v504_v49  ;;  %507 = vst [vmem:[%s2152_s26 + $0x590] sm:$0xff] %v506_v50  ;;  %v514_v54 = vld [vmem:[%s2144_s25 + $0xb30] sm:$0xff]  ;;  %v516_v55 = vld [vmem:[%s2144_s25 + $0xb38] sm:$0xff] }
  0x6c   : > { %509 = vst [vmem:[%s2152_s26 + $0x598] sm:$0xff] %v508_v51  ;;  %511 = vst [vmem:[%s2152_s26 + $0x5a0] sm:$0xff] %v510_v52  ;;  %v518_v56 = vld [vmem:[%s2144_s25 + $0xb40] sm:$0xff]  ;;  %v520_v57 = vld [vmem:[%s2144_s25 + $0xb48] sm:$0xff] }
  0x6d   : > { %513 = vst [vmem:[%s2152_s26 + $0x5a8] sm:$0xff] %v512_v53  ;;  %515 = vst [vmem:[%s2152_s26 + $0x5b0] sm:$0xff] %v514_v54  ;;  %v522_v58 = vld [vmem:[%s2144_s25 + $0xb50] sm:$0xff]  ;;  %v524_v59 = vld [vmem:[%s2144_s25 + $0xb58] sm:$0xff] }
  0x6e   : > { %517 = vst [vmem:[%s2152_s26 + $0x5b8] sm:$0xff] %v516_v55  ;;  %519 = vst [vmem:[%s2152_s26 + $0x5c0] sm:$0xff] %v518_v56  ;;  %v526_v60 = vld [vmem:[%s2144_s25 + $0xb60] sm:$0xff]  ;;  %v528_v61 = vld [vmem:[%s2144_s25 + $0xb68] sm:$0xff] }
  0x6f   : > { %521 = vst [vmem:[%s2152_s26 + $0x5c8] sm:$0xff] %v520_v57  ;;  %523 = vst [vmem:[%s2152_s26 + $0x5d0] sm:$0xff] %v522_v58  ;;  %v530_v62 = vld [vmem:[%s2144_s25 + $0xb70] sm:$0xff]  ;;  %v532_v63 = vld [vmem:[%s2144_s25 + $0xb78] sm:$0xff] }
  0x70   : > { %525 = vst [vmem:[%s2152_s26 + $0x5d8] sm:$0xff] %v524_v59  ;;  %527 = vst [vmem:[%s2152_s26 + $0x5e0] sm:$0xff] %v526_v60  ;;  %v534_v0 = vld [vmem:[%s2144_s25 + $0xc00] sm:$0xff]  ;;  %v536_v1 = vld [vmem:[%s2144_s25 + $0xc08] sm:$0xff] }
  0x71   : > { %529 = vst [vmem:[%s2152_s26 + $0x5e8] sm:$0xff] %v528_v61  ;;  %531 = vst [vmem:[%s2152_s26 + $0x5f0] sm:$0xff] %v530_v62  ;;  %v538_v2 = vld [vmem:[%s2144_s25 + $0xc10] sm:$0xff]  ;;  %v540_v3 = vld [vmem:[%s2144_s25 + $0xc18] sm:$0xff] }
  0x72   : > { %533 = vst [vmem:[%s2152_s26 + $0x5f8] sm:$0xff] %v532_v63  ;;  %535 = vst [vmem:[%s2152_s26 + $0x600] sm:$0xff] %v534_v0  ;;  %v542_v4 = vld [vmem:[%s2144_s25 + $0xc20] sm:$0xff]  ;;  %v544_v5 = vld [vmem:[%s2144_s25 + $0xc28] sm:$0xff] }
  0x73   : > { %537 = vst [vmem:[%s2152_s26 + $0x608] sm:$0xff] %v536_v1  ;;  %539 = vst [vmem:[%s2152_s26 + $0x610] sm:$0xff] %v538_v2  ;;  %v546_v6 = vld [vmem:[%s2144_s25 + $0xc30] sm:$0xff]  ;;  %v548_v7 = vld [vmem:[%s2144_s25 + $0xc38] sm:$0xff] }
  0x74   : > { %541 = vst [vmem:[%s2152_s26 + $0x618] sm:$0xff] %v540_v3  ;;  %543 = vst [vmem:[%s2152_s26 + $0x620] sm:$0xff] %v542_v4  ;;  %v550_v8 = vld [vmem:[%s2144_s25 + $0xc40] sm:$0xff]  ;;  %v552_v9 = vld [vmem:[%s2144_s25 + $0xc48] sm:$0xff] }
  0x75   : > { %545 = vst [vmem:[%s2152_s26 + $0x628] sm:$0xff] %v544_v5  ;;  %547 = vst [vmem:[%s2152_s26 + $0x630] sm:$0xff] %v546_v6  ;;  %v554_v10 = vld [vmem:[%s2144_s25 + $0xc50] sm:$0xff]  ;;  %v556_v11 = vld [vmem:[%s2144_s25 + $0xc58] sm:$0xff] }
  0x76   : > { %549 = vst [vmem:[%s2152_s26 + $0x638] sm:$0xff] %v548_v7  ;;  %551 = vst [vmem:[%s2152_s26 + $0x640] sm:$0xff] %v550_v8  ;;  %v558_v12 = vld [vmem:[%s2144_s25 + $0xc60] sm:$0xff]  ;;  %v560_v13 = vld [vmem:[%s2144_s25 + $0xc68] sm:$0xff] }
  0x77   : > { %553 = vst [vmem:[%s2152_s26 + $0x648] sm:$0xff] %v552_v9  ;;  %555 = vst [vmem:[%s2152_s26 + $0x650] sm:$0xff] %v554_v10  ;;  %v562_v14 = vld [vmem:[%s2144_s25 + $0xc70] sm:$0xff]  ;;  %v564_v15 = vld [vmem:[%s2144_s25 + $0xc78] sm:$0xff] }
  0x78   : > { %557 = vst [vmem:[%s2152_s26 + $0x658] sm:$0xff] %v556_v11  ;;  %559 = vst [vmem:[%s2152_s26 + $0x660] sm:$0xff] %v558_v12  ;;  %v566_v16 = vld [vmem:[%s2144_s25 + $0xd00] sm:$0xff]  ;;  %v568_v17 = vld [vmem:[%s2144_s25 + $0xd08] sm:$0xff] }
  0x79   : > { %561 = vst [vmem:[%s2152_s26 + $0x668] sm:$0xff] %v560_v13  ;;  %563 = vst [vmem:[%s2152_s26 + $0x670] sm:$0xff] %v562_v14  ;;  %v570_v18 = vld [vmem:[%s2144_s25 + $0xd10] sm:$0xff]  ;;  %v572_v19 = vld [vmem:[%s2144_s25 + $0xd18] sm:$0xff] }
  0x7a   : > { %565 = vst [vmem:[%s2152_s26 + $0x678] sm:$0xff] %v564_v15  ;;  %567 = vst [vmem:[%s2152_s26 + $0x680] sm:$0xff] %v566_v16  ;;  %v574_v20 = vld [vmem:[%s2144_s25 + $0xd20] sm:$0xff]  ;;  %v576_v21 = vld [vmem:[%s2144_s25 + $0xd28] sm:$0xff] }
  0x7b   : > { %569 = vst [vmem:[%s2152_s26 + $0x688] sm:$0xff] %v568_v17  ;;  %571 = vst [vmem:[%s2152_s26 + $0x690] sm:$0xff] %v570_v18  ;;  %v578_v22 = vld [vmem:[%s2144_s25 + $0xd30] sm:$0xff]  ;;  %v580_v23 = vld [vmem:[%s2144_s25 + $0xd38] sm:$0xff] }
  0x7c   : > { %573 = vst [vmem:[%s2152_s26 + $0x698] sm:$0xff] %v572_v19  ;;  %575 = vst [vmem:[%s2152_s26 + $0x6a0] sm:$0xff] %v574_v20  ;;  %v582_v24 = vld [vmem:[%s2144_s25 + $0xd40] sm:$0xff]  ;;  %v584_v25 = vld [vmem:[%s2144_s25 + $0xd48] sm:$0xff] }
  0x7d   : > { %577 = vst [vmem:[%s2152_s26 + $0x6a8] sm:$0xff] %v576_v21  ;;  %579 = vst [vmem:[%s2152_s26 + $0x6b0] sm:$0xff] %v578_v22  ;;  %v586_v26 = vld [vmem:[%s2144_s25 + $0xd50] sm:$0xff]  ;;  %v588_v27 = vld [vmem:[%s2144_s25 + $0xd58] sm:$0xff] }
  0x7e   : > { %581 = vst [vmem:[%s2152_s26 + $0x6b8] sm:$0xff] %v580_v23  ;;  %583 = vst [vmem:[%s2152_s26 + $0x6c0] sm:$0xff] %v582_v24  ;;  %v590_v28 = vld [vmem:[%s2144_s25 + $0xd60] sm:$0xff]  ;;  %v592_v29 = vld [vmem:[%s2144_s25 + $0xd68] sm:$0xff] }
  0x7f   : > { %585 = vst [vmem:[%s2152_s26 + $0x6c8] sm:$0xff] %v584_v25  ;;  %587 = vst [vmem:[%s2152_s26 + $0x6d0] sm:$0xff] %v586_v26  ;;  %v594_v30 = vld [vmem:[%s2144_s25 + $0xd70] sm:$0xff]  ;;  %v596_v31 = vld [vmem:[%s2144_s25 + $0xd78] sm:$0xff] }
  0x80   : > { %589 = vst [vmem:[%s2152_s26 + $0x6d8] sm:$0xff] %v588_v27  ;;  %591 = vst [vmem:[%s2152_s26 + $0x6e0] sm:$0xff] %v590_v28  ;;  %v598_v32 = vld [vmem:[%s2144_s25 + $0xe00] sm:$0xff]  ;;  %v600_v33 = vld [vmem:[%s2144_s25 + $0xe08] sm:$0xff] }
  0x81   : > { %593 = vst [vmem:[%s2152_s26 + $0x6e8] sm:$0xff] %v592_v29  ;;  %595 = vst [vmem:[%s2152_s26 + $0x6f0] sm:$0xff] %v594_v30  ;;  %v602_v34 = vld [vmem:[%s2144_s25 + $0xe10] sm:$0xff]  ;;  %v604_v35 = vld [vmem:[%s2144_s25 + $0xe18] sm:$0xff] }
  0x82   : > { %597 = vst [vmem:[%s2152_s26 + $0x6f8] sm:$0xff] %v596_v31  ;;  %599 = vst [vmem:[%s2152_s26 + $0x700] sm:$0xff] %v598_v32  ;;  %v606_v36 = vld [vmem:[%s2144_s25 + $0xe20] sm:$0xff]  ;;  %v608_v37 = vld [vmem:[%s2144_s25 + $0xe28] sm:$0xff] }
  0x83   : > { %601 = vst [vmem:[%s2152_s26 + $0x708] sm:$0xff] %v600_v33  ;;  %603 = vst [vmem:[%s2152_s26 + $0x710] sm:$0xff] %v602_v34  ;;  %v610_v38 = vld [vmem:[%s2144_s25 + $0xe30] sm:$0xff]  ;;  %v612_v39 = vld [vmem:[%s2144_s25 + $0xe38] sm:$0xff] }
  0x84   : > { %605 = vst [vmem:[%s2152_s26 + $0x718] sm:$0xff] %v604_v35  ;;  %607 = vst [vmem:[%s2152_s26 + $0x720] sm:$0xff] %v606_v36  ;;  %v614_v40 = vld [vmem:[%s2144_s25 + $0xe40] sm:$0xff]  ;;  %v616_v41 = vld [vmem:[%s2144_s25 + $0xe48] sm:$0xff] }
  0x85   : > { %609 = vst [vmem:[%s2152_s26 + $0x728] sm:$0xff] %v608_v37  ;;  %611 = vst [vmem:[%s2152_s26 + $0x730] sm:$0xff] %v610_v38  ;;  %v618_v42 = vld [vmem:[%s2144_s25 + $0xe50] sm:$0xff]  ;;  %v620_v43 = vld [vmem:[%s2144_s25 + $0xe58] sm:$0xff] }
  0x86   : > { %613 = vst [vmem:[%s2152_s26 + $0x738] sm:$0xff] %v612_v39  ;;  %615 = vst [vmem:[%s2152_s26 + $0x740] sm:$0xff] %v614_v40  ;;  %v622_v44 = vld [vmem:[%s2144_s25 + $0xe60] sm:$0xff]  ;;  %v624_v45 = vld [vmem:[%s2144_s25 + $0xe68] sm:$0xff] }
  0x87   : > { %617 = vst [vmem:[%s2152_s26 + $0x748] sm:$0xff] %v616_v41  ;;  %619 = vst [vmem:[%s2152_s26 + $0x750] sm:$0xff] %v618_v42  ;;  %v626_v46 = vld [vmem:[%s2144_s25 + $0xe70] sm:$0xff]  ;;  %v628_v47 = vld [vmem:[%s2144_s25 + $0xe78] sm:$0xff] }
  0x88   : > { %621 = vst [vmem:[%s2152_s26 + $0x758] sm:$0xff] %v620_v43  ;;  %623 = vst [vmem:[%s2152_s26 + $0x760] sm:$0xff] %v622_v44  ;;  %v630_v48 = vld [vmem:[%s2144_s25 + $0xf00] sm:$0xff]  ;;  %v632_v49 = vld [vmem:[%s2144_s25 + $0xf08] sm:$0xff] }
  0x89   : > { %625 = vst [vmem:[%s2152_s26 + $0x768] sm:$0xff] %v624_v45  ;;  %627 = vst [vmem:[%s2152_s26 + $0x770] sm:$0xff] %v626_v46  ;;  %v634_v50 = vld [vmem:[%s2144_s25 + $0xf10] sm:$0xff]  ;;  %v636_v51 = vld [vmem:[%s2144_s25 + $0xf18] sm:$0xff] }
  0x8a   : > { %629 = vst [vmem:[%s2152_s26 + $0x778] sm:$0xff] %v628_v47  ;;  %631 = vst [vmem:[%s2152_s26 + $0x780] sm:$0xff] %v630_v48  ;;  %v638_v52 = vld [vmem:[%s2144_s25 + $0xf20] sm:$0xff]  ;;  %v640_v53 = vld [vmem:[%s2144_s25 + $0xf28] sm:$0xff] }
  0x8b   : > { %633 = vst [vmem:[%s2152_s26 + $0x788] sm:$0xff] %v632_v49  ;;  %635 = vst [vmem:[%s2152_s26 + $0x790] sm:$0xff] %v634_v50  ;;  %v642_v54 = vld [vmem:[%s2144_s25 + $0xf30] sm:$0xff]  ;;  %v644_v55 = vld [vmem:[%s2144_s25 + $0xf38] sm:$0xff] }
  0x8c   : > { %637 = vst [vmem:[%s2152_s26 + $0x798] sm:$0xff] %v636_v51  ;;  %639 = vst [vmem:[%s2152_s26 + $0x7a0] sm:$0xff] %v638_v52  ;;  %v646_v56 = vld [vmem:[%s2144_s25 + $0xf40] sm:$0xff]  ;;  %v648_v57 = vld [vmem:[%s2144_s25 + $0xf48] sm:$0xff] }
  0x8d   : > { %641 = vst [vmem:[%s2152_s26 + $0x7a8] sm:$0xff] %v640_v53  ;;  %643 = vst [vmem:[%s2152_s26 + $0x7b0] sm:$0xff] %v642_v54  ;;  %v650_v58 = vld [vmem:[%s2144_s25 + $0xf50] sm:$0xff]  ;;  %v652_v59 = vld [vmem:[%s2144_s25 + $0xf58] sm:$0xff] }
  0x8e   : > { %645 = vst [vmem:[%s2152_s26 + $0x7b8] sm:$0xff] %v644_v55  ;;  %647 = vst [vmem:[%s2152_s26 + $0x7c0] sm:$0xff] %v646_v56  ;;  %v654_v60 = vld [vmem:[%s2144_s25 + $0xf60] sm:$0xff]  ;;  %v656_v61 = vld [vmem:[%s2144_s25 + $0xf68] sm:$0xff] }
  0x8f   : > { %649 = vst [vmem:[%s2152_s26 + $0x7c8] sm:$0xff] %v648_v57  ;;  %651 = vst [vmem:[%s2152_s26 + $0x7d0] sm:$0xff] %v650_v58  ;;  %v658_v62 = vld [vmem:[%s2144_s25 + $0xf70] sm:$0xff]  ;;  %v660_v63 = vld [vmem:[%s2144_s25 + $0xf78] sm:$0xff] }
  0x90   : > { %653 = vst [vmem:[%s2152_s26 + $0x7d8] sm:$0xff] %v652_v59  ;;  %655 = vst [vmem:[%s2152_s26 + $0x7e0] sm:$0xff] %v654_v60  ;;  %v662_v0 = vld [vmem:[%s2144_s25 + $0x1000] sm:$0xff]  ;;  %v664_v1 = vld [vmem:[%s2144_s25 + $0x1008] sm:$0xff] }
  0x91   : > { %657 = vst [vmem:[%s2152_s26 + $0x7e8] sm:$0xff] %v656_v61  ;;  %659 = vst [vmem:[%s2152_s26 + $0x7f0] sm:$0xff] %v658_v62  ;;  %v666_v2 = vld [vmem:[%s2144_s25 + $0x1010] sm:$0xff]  ;;  %v668_v3 = vld [vmem:[%s2144_s25 + $0x1018] sm:$0xff] }
  0x92   : > { %661 = vst [vmem:[%s2152_s26 + $0x7f8] sm:$0xff] %v660_v63  ;;  %663 = vst [vmem:[%s2152_s26 + $0x800] sm:$0xff] %v662_v0  ;;  %v670_v4 = vld [vmem:[%s2144_s25 + $0x1020] sm:$0xff]  ;;  %v672_v5 = vld [vmem:[%s2144_s25 + $0x1028] sm:$0xff] }
  0x93   : > { %665 = vst [vmem:[%s2152_s26 + $0x808] sm:$0xff] %v664_v1  ;;  %667 = vst [vmem:[%s2152_s26 + $0x810] sm:$0xff] %v666_v2  ;;  %v674_v6 = vld [vmem:[%s2144_s25 + $0x1030] sm:$0xff]  ;;  %v676_v7 = vld [vmem:[%s2144_s25 + $0x1038] sm:$0xff] }
  0x94   : > { %669 = vst [vmem:[%s2152_s26 + $0x818] sm:$0xff] %v668_v3  ;;  %671 = vst [vmem:[%s2152_s26 + $0x820] sm:$0xff] %v670_v4  ;;  %v678_v8 = vld [vmem:[%s2144_s25 + $0x1040] sm:$0xff]  ;;  %v680_v9 = vld [vmem:[%s2144_s25 + $0x1048] sm:$0xff] }
  0x95   : > { %673 = vst [vmem:[%s2152_s26 + $0x828] sm:$0xff] %v672_v5  ;;  %675 = vst [vmem:[%s2152_s26 + $0x830] sm:$0xff] %v674_v6  ;;  %v682_v10 = vld [vmem:[%s2144_s25 + $0x1050] sm:$0xff]  ;;  %v684_v11 = vld [vmem:[%s2144_s25 + $0x1058] sm:$0xff] }
  0x96   : > { %677 = vst [vmem:[%s2152_s26 + $0x838] sm:$0xff] %v676_v7  ;;  %679 = vst [vmem:[%s2152_s26 + $0x840] sm:$0xff] %v678_v8  ;;  %v686_v12 = vld [vmem:[%s2144_s25 + $0x1060] sm:$0xff]  ;;  %v688_v13 = vld [vmem:[%s2144_s25 + $0x1068] sm:$0xff] }
  0x97   : > { %681 = vst [vmem:[%s2152_s26 + $0x848] sm:$0xff] %v680_v9  ;;  %683 = vst [vmem:[%s2152_s26 + $0x850] sm:$0xff] %v682_v10  ;;  %v690_v14 = vld [vmem:[%s2144_s25 + $0x1070] sm:$0xff]  ;;  %v692_v15 = vld [vmem:[%s2144_s25 + $0x1078] sm:$0xff] }
  0x98   : > { %685 = vst [vmem:[%s2152_s26 + $0x858] sm:$0xff] %v684_v11  ;;  %687 = vst [vmem:[%s2152_s26 + $0x860] sm:$0xff] %v686_v12  ;;  %v694_v16 = vld [vmem:[%s2144_s25 + $0x1100] sm:$0xff]  ;;  %v696_v17 = vld [vmem:[%s2144_s25 + $0x1108] sm:$0xff] }
  0x99   : > { %689 = vst [vmem:[%s2152_s26 + $0x868] sm:$0xff] %v688_v13  ;;  %691 = vst [vmem:[%s2152_s26 + $0x870] sm:$0xff] %v690_v14  ;;  %v698_v18 = vld [vmem:[%s2144_s25 + $0x1110] sm:$0xff]  ;;  %v700_v19 = vld [vmem:[%s2144_s25 + $0x1118] sm:$0xff] }
  0x9a   : > { %693 = vst [vmem:[%s2152_s26 + $0x878] sm:$0xff] %v692_v15  ;;  %695 = vst [vmem:[%s2152_s26 + $0x880] sm:$0xff] %v694_v16  ;;  %v702_v20 = vld [vmem:[%s2144_s25 + $0x1120] sm:$0xff]  ;;  %v704_v21 = vld [vmem:[%s2144_s25 + $0x1128] sm:$0xff] }
  0x9b   : > { %697 = vst [vmem:[%s2152_s26 + $0x888] sm:$0xff] %v696_v17  ;;  %699 = vst [vmem:[%s2152_s26 + $0x890] sm:$0xff] %v698_v18  ;;  %v706_v22 = vld [vmem:[%s2144_s25 + $0x1130] sm:$0xff]  ;;  %v708_v23 = vld [vmem:[%s2144_s25 + $0x1138] sm:$0xff] }
  0x9c   : > { %701 = vst [vmem:[%s2152_s26 + $0x898] sm:$0xff] %v700_v19  ;;  %703 = vst [vmem:[%s2152_s26 + $0x8a0] sm:$0xff] %v702_v20  ;;  %v710_v24 = vld [vmem:[%s2144_s25 + $0x1140] sm:$0xff]  ;;  %v712_v25 = vld [vmem:[%s2144_s25 + $0x1148] sm:$0xff] }
  0x9d   : > { %705 = vst [vmem:[%s2152_s26 + $0x8a8] sm:$0xff] %v704_v21  ;;  %707 = vst [vmem:[%s2152_s26 + $0x8b0] sm:$0xff] %v706_v22  ;;  %v714_v26 = vld [vmem:[%s2144_s25 + $0x1150] sm:$0xff]  ;;  %v716_v27 = vld [vmem:[%s2144_s25 + $0x1158] sm:$0xff] }
  0x9e   : > { %709 = vst [vmem:[%s2152_s26 + $0x8b8] sm:$0xff] %v708_v23  ;;  %711 = vst [vmem:[%s2152_s26 + $0x8c0] sm:$0xff] %v710_v24  ;;  %v718_v28 = vld [vmem:[%s2144_s25 + $0x1160] sm:$0xff]  ;;  %v720_v29 = vld [vmem:[%s2144_s25 + $0x1168] sm:$0xff] }
  0x9f   : > { %713 = vst [vmem:[%s2152_s26 + $0x8c8] sm:$0xff] %v712_v25  ;;  %715 = vst [vmem:[%s2152_s26 + $0x8d0] sm:$0xff] %v714_v26  ;;  %v722_v30 = vld [vmem:[%s2144_s25 + $0x1170] sm:$0xff]  ;;  %v724_v31 = vld [vmem:[%s2144_s25 + $0x1178] sm:$0xff] }
  0xa0   : > { %717 = vst [vmem:[%s2152_s26 + $0x8d8] sm:$0xff] %v716_v27  ;;  %719 = vst [vmem:[%s2152_s26 + $0x8e0] sm:$0xff] %v718_v28 }
  0xa1   : > { %721 = vst [vmem:[%s2152_s26 + $0x8e8] sm:$0xff] %v720_v29  ;;  %723 = vst [vmem:[%s2152_s26 + $0x8f0] sm:$0xff] %v722_v30 }
  0xa2   : > { %725 = vst [vmem:[%s2152_s26 + $0x8f8] sm:$0xff] %v724_v31 }
  0xa3 PF: > { %p1735_p5 = scmp.ge.s32.totalorder %s2087_s14, 1  ;;  %p730_p6 = scmp.lt.s32.totalorder %s2087_s14, 3 }
  0xa5   : > { %p731_p7 = pnand %p1735_p5, %p730_p6 }
  0xa6   : > { %s737_s27 = sand.u32 (!%p731_p7), 1, %s2079_s12   ;;  %v2730_v32 = vld [vmem:[%s3087_s0 + $0x8] sm:$0xff] (!%p731_p7)  ;;  %vm1063_vm0 = vcmask (!%p731_p7), 130048   ;;  %v1057_v33 = vld [vmem:[%s3089_s2] sm:$0xff] (!%p731_p7)  ;;  %v2089_v34 = vmov (!%p731_p7), 0   ;;  %s1736_s9 = sshll.u32 (!%p731_p7), %s1729_s15, 4 }
  0xa7   : > { %734 = sbr.rel (%p731_p7) target bundleno = 538 (0x21a), region = 51  ;;  %1738 = vmatprep.mubr.msk.f32.mxu0 (!%p731_p7), %vm1063_vm0, %v2730_v32  ;;  %1739 = vmatprep.mubr.msk.f32.mxu1 (!%p731_p7), %vm1063_vm0, %v2730_v32  ;;  %p762_p8 = scmp.lt.s32.totalorder (!%p731_p7), %s1736_s9, 31 }
  0xa8   : > { %s2038_s5 = smul.u32 (!%p731_p7), 2304, %s737_s27  ;;  %2064 = vset.pattern.permute.xlu0 (!%p731_p7), %v2089_v34 }
  0xa9   : > { %1060 = vperm.xlu0 (!%p731_p7), %2064, %v1057_v33  }
  0xaa   : > { %s2739_s6 = scalar_lea.vmem (!%p731_p7), [#allocation2], %s2038_s5 }
  0xab   : > { %v770_v35 = vld [vmem:[%s2739_s6 + $0x8] sm:$0xff] (!%p731_p7)  ;;  %v772_v37 = vld [vmem:[%s2739_s6 + $0x18] sm:$0xff] (!%p731_p7)  ;;  %v769_v40 = vld [vmem:[%s2739_s6] sm:$0xff] (!%p731_p7) }
  0xac   : > { %v786_v36 = vld [vmem:[%s2739_s6 + $0x88] sm:$0xff] (!%p731_p7)  ;;  %v788_v39 = vld [vmem:[%s2739_s6 + $0x98] sm:$0xff] (!%p731_p7)  ;;  %v785_v41 = vld [vmem:[%s2739_s6 + $0x80] sm:$0xff] (!%p731_p7) }
  0xad   : > { %v1749_v38 = vpack.c.bf16 (!%p731_p7), %v786_v36, %v770_v35  ;;  %v1785_v42 = vpack.c.bf16 (!%p731_p7), %v788_v39, %v772_v37  ;;  %v1751_v43 = vpack.c.bf16 (!%p731_p7), %v785_v41, %v769_v40  ;;  %v771_v44 = vld [vmem:[%s2739_s6 + $0x10] sm:$0xff] (!%p731_p7)  ;;  %v802_v46 = vld [vmem:[%s2739_s6 + $0x108] sm:$0xff] (!%p731_p7)  ;;  %v804_v49 = vld [vmem:[%s2739_s6 + $0x118] sm:$0xff] (!%p731_p7) }
  0xae   : > { %v787_v45 = vld [vmem:[%s2739_s6 + $0x90] sm:$0xff]  ;;  %v818_v48 = vld [vmem:[%s2739_s6 + $0x188] sm:$0xff]  ;;  %v820_v50 = vld [vmem:[%s2739_s6 + $0x198] sm:$0xff]  ;;  %s3095_s9 = smov (!%p762_p8, %s1736_s9), 31 }
  0xaf   : > { %1750 = vmatprep.subr.bf16.mxu0 %v1749_v38  ;;  %v1787_v47 = vpack.c.bf16 %v787_v45, %v771_v44  ;;  %1786 = vmatprep.subr.bf16.mxu1 %v1785_v42  ;;  %v1753_v51 = vpack.c.bf16 %v818_v48, %v802_v46  ;;  %v1789_v52 = vpack.c.bf16 %v820_v50, %v804_v49  ;;  %v801_v53 = vld [vmem:[%s2739_s6 + $0x100] sm:$0xff]  ;;  %v803_v55 = vld [vmem:[%s2739_s6 + $0x110] sm:$0xff]  ;;  %v834_v58 = vld [vmem:[%s2739_s6 + $0x208] sm:$0xff]  ;;  %s1737_s10 = sshll.u32 %s3095_s9, 3 }
  0xb0   : > { %1752 = vmatpush1.bf16.msra.mxu0 %v1751_v43  ;;  %v817_v54 = vld [vmem:[%s2739_s6 + $0x180] sm:$0xff]  ;;  %v819_v57 = vld [vmem:[%s2739_s6 + $0x190] sm:$0xff]  ;;  %v850_v59 = vld [vmem:[%s2739_s6 + $0x288] sm:$0xff]  ;;  %s3059_s17 = scalar_lea.vmem %s3090_s3, %s1737_s10 }
  0xb1   : > { %1788 = vmatpush1.bf16.msra.mxu1 %v1787_v47  ;;  %v1755_v56 = vpack.c.bf16 %v817_v54, %v801_v53  ;;  %1754 = vmatprep.subr.bf16.mxu0 %v1753_v51  ;;  %v1791_v60 = vpack.c.bf16 %v819_v57, %v803_v55  ;;  %v1757_v61 = vpack.c.bf16 %v850_v59, %v834_v58  ;;  %v836_v62 = vld [vmem:[%s2739_s6 + $0x218] sm:$0xff]  ;;  %v833_v0 = vld [vmem:[%s2739_s6 + $0x200] sm:$0xff]  ;;  %v835_v3 = vld [vmem:[%s2739_s6 + $0x210] sm:$0xff] }
  0xb2   : > { %1790 = vmatprep.subr.bf16.mxu1 %v1789_v52  ;;  %v852_v63 = vld [vmem:[%s2739_s6 + $0x298] sm:$0xff]  ;;  %v849_v2 = vld [vmem:[%s2739_s6 + $0x280] sm:$0xff]  ;;  %v851_v4 = vld [vmem:[%s2739_s6 + $0x290] sm:$0xff] }
  0xb3   : > { %v1793_v1 = vpack.c.bf16 %v852_v63, %v836_v62  ;;  %v1759_v5 = vpack.c.bf16 %v849_v2, %v833_v0  ;;  %v866_v6 = vld [vmem:[%s2739_s6 + $0x308] sm:$0xff]  ;;  %v868_v8 = vld [vmem:[%s2739_s6 + $0x318] sm:$0xff]  ;;  %v1795_v9 = vpack.c.bf16 %v851_v4, %v835_v3  ;;  %v865_v12 = vld [vmem:[%s2739_s6 + $0x300] sm:$0xff] }
  0xb4   : > { %1756 = vmatpush1.bf16.msra.mxu0 %v1755_v56  ;;  %v882_v7 = vld [vmem:[%s2739_s6 + $0x388] sm:$0xff]  ;;  %v884_v11 = vld [vmem:[%s2739_s6 + $0x398] sm:$0xff]  ;;  %v881_v13 = vld [vmem:[%s2739_s6 + $0x380] sm:$0xff] }
  0xb5   : > { %1792 = vmatpush1.bf16.msra.mxu1 %v1791_v60  ;;  %1758 = vmatprep.subr.bf16.mxu0 %v1757_v61  ;;  %v1761_v10 = vpack.c.bf16 %v882_v7, %v866_v6  ;;  %v1797_v14 = vpack.c.bf16 %v884_v11, %v868_v8  ;;  %v867_v15 = vld [vmem:[%s2739_s6 + $0x310] sm:$0xff]  ;;  %v898_v17 = vld [vmem:[%s2739_s6 + $0x408] sm:$0xff]  ;;  %v900_v19 = vld [vmem:[%s2739_s6 + $0x418] sm:$0xff]  ;;  %v1763_v21 = vpack.c.bf16 %v881_v13, %v865_v12 }
  0xb6   : > { %1794 = vmatprep.subr.bf16.mxu1 %v1793_v1  ;;  %v883_v16 = vld [vmem:[%s2739_s6 + $0x390] sm:$0xff]  ;;  %v914_v18 = vld [vmem:[%s2739_s6 + $0x488] sm:$0xff]  ;;  %v916_v20 = vld [vmem:[%s2739_s6 + $0x498] sm:$0xff] }
  0xb7   : > { %v1799_v22 = vpack.c.bf16 %v883_v16, %v867_v15  ;;  %v1765_v23 = vpack.c.bf16 %v914_v18, %v898_v17  ;;  %v897_v24 = vld [vmem:[%s2739_s6 + $0x400] sm:$0xff]  ;;  %v899_v26 = vld [vmem:[%s2739_s6 + $0x410] sm:$0xff]  ;;  %v1801_v27 = vpack.c.bf16 %v916_v20, %v900_v19  ;;  %v930_v29 = vld [vmem:[%s2739_s6 + $0x508] sm:$0xff] }
  0xb8   : > { %1760 = vmatpush1.bf16.msra.mxu0 %v1759_v5  ;;  %v913_v25 = vld [vmem:[%s2739_s6 + $0x480] sm:$0xff]  ;;  %v915_v28 = vld [vmem:[%s2739_s6 + $0x490] sm:$0xff]  ;;  %v946_v30 = vld [vmem:[%s2739_s6 + $0x588] sm:$0xff] }
  0xb9   : > { %1796 = vmatpush1.bf16.msra.mxu1 %v1795_v9  ;;  %1762 = vmatprep.subr.bf16.mxu0 %v1761_v10  ;;  %v932_v31 = vld [vmem:[%s2739_s6 + $0x518] sm:$0xff]  ;;  %v1767_v34 = vpack.c.bf16 %v913_v25, %v897_v24  ;;  %v1803_v35 = vpack.c.bf16 %v915_v28, %v899_v26  ;;  %v1769_v36 = vpack.c.bf16 %v946_v30, %v930_v29  ;;  %v929_v37 = vld [vmem:[%s2739_s6 + $0x500] sm:$0xff]  ;;  %v931_v39 = vld [vmem:[%s2739_s6 + $0x510] sm:$0xff] }
  0xba   : > { %1798 = vmatprep.subr.bf16.mxu1 %v1797_v14  ;;  %v948_v33 = vld [vmem:[%s2739_s6 + $0x598] sm:$0xff]  ;;  %v945_v38 = vld [vmem:[%s2739_s6 + $0x580] sm:$0xff]  ;;  %v947_v41 = vld [vmem:[%s2739_s6 + $0x590] sm:$0xff] }
  0xbb   : > { %v1805_v40 = vpack.c.bf16 %v948_v33, %v932_v31  ;;  %v962_v42 = vld [vmem:[%s2739_s6 + $0x608] sm:$0xff]  ;;  %v964_v44 = vld [vmem:[%s2739_s6 + $0x618] sm:$0xff]  ;;  %v1771_v46 = vpack.c.bf16 %v945_v38, %v929_v37  ;;  %v1807_v47 = vpack.c.bf16 %v947_v41, %v931_v39  ;;  %v961_v49 = vld [vmem:[%s2739_s6 + $0x600] sm:$0xff] }
  0xbc   : > { %1764 = vmatpush1.bf16.msra.mxu0 %v1763_v21  ;;  %v978_v43 = vld [vmem:[%s2739_s6 + $0x688] sm:$0xff]  ;;  %v980_v45 = vld [vmem:[%s2739_s6 + $0x698] sm:$0xff]  ;;  %v977_v50 = vld [vmem:[%s2739_s6 + $0x680] sm:$0xff] }
  0xbd   : > { %1800 = vmatpush1.bf16.msra.mxu1 %v1799_v22  ;;  %1766 = vmatprep.subr.bf16.mxu0 %v1765_v23  ;;  %v1773_v48 = vpack.c.bf16 %v978_v43, %v962_v42  ;;  %v963_v51 = vld [vmem:[%s2739_s6 + $0x610] sm:$0xff]  ;;  %v1809_v52 = vpack.c.bf16 %v980_v45, %v964_v44  ;;  %v994_v54 = vld [vmem:[%s2739_s6 + $0x708] sm:$0xff]  ;;  %v996_v56 = vld [vmem:[%s2739_s6 + $0x718] sm:$0xff]  ;;  %v1775_v58 = vpack.c.bf16 %v977_v50, %v961_v49 }
  0xbe   : > { %1802 = vmatprep.subr.bf16.mxu1 %v1801_v27  ;;  %v979_v53 = vld [vmem:[%s2739_s6 + $0x690] sm:$0xff]  ;;  %v1010_v55 = vld [vmem:[%s2739_s6 + $0x788] sm:$0xff]  ;;  %v1012_v57 = vld [vmem:[%s2739_s6 + $0x798] sm:$0xff] }
  0xbf   : > { %v1811_v59 = vpack.c.bf16 %v979_v53, %v963_v51  ;;  %v1777_v60 = vpack.c.bf16 %v1010_v55, %v994_v54  ;;  %v993_v61 = vld [vmem:[%s2739_s6 + $0x700] sm:$0xff]  ;;  %v995_v63 = vld [vmem:[%s2739_s6 + $0x710] sm:$0xff]  ;;  %v1813_v0 = vpack.c.bf16 %v1012_v57, %v996_v56  ;;  %v1026_v2 = vld [vmem:[%s2739_s6 + $0x808] sm:$0xff] }
  0xc0   : > { %1768 = vmatpush1.bf16.msra.mxu0 %v1767_v34  ;;  %v1009_v62 = vld [vmem:[%s2739_s6 + $0x780] sm:$0xff]  ;;  %v1011_v1 = vld [vmem:[%s2739_s6 + $0x790] sm:$0xff]  ;;  %v1042_v3 = vld [vmem:[%s2739_s6 + $0x888] sm:$0xff] }
  0xc1   : > { %1804 = vmatpush1.bf16.msra.mxu1 %v1803_v35  ;;  %1770 = vmatprep.subr.bf16.mxu0 %v1769_v36  ;;  %v1028_v4 = vld [vmem:[%s2739_s6 + $0x818] sm:$0xff]  ;;  %v1779_v6 = vpack.c.bf16 %v1009_v62, %v993_v61  ;;  %v1815_v7 = vpack.c.bf16 %v1011_v1, %v995_v63  ;;  %v1781_v8 = vpack.c.bf16 %v1042_v3, %v1026_v2  ;;  %v1025_v9 = vld [vmem:[%s2739_s6 + $0x800] sm:$0xff]  ;;  %v1027_v11 = vld [vmem:[%s2739_s6 + $0x810] sm:$0xff] }
  0xc2   : > { %1806 = vmatprep.subr.bf16.mxu1 %v1805_v40  ;;  %v1044_v5 = vld [vmem:[%s2739_s6 + $0x898] sm:$0xff]  ;;  %v1041_v10 = vld [vmem:[%s2739_s6 + $0x880] sm:$0xff]  ;;  %v1043_v13 = vld [vmem:[%s2739_s6 + $0x890] sm:$0xff] }
  0xc3   : > { %v1817_v12 = vpack.c.bf16 %v1044_v5, %v1028_v4  ;;  %v774_v14 = vld [vmem:[%s2739_s6 + $0x28] sm:$0xff]  ;;  %v776_v16 = vld [vmem:[%s2739_s6 + $0x38] sm:$0xff]  ;;  %v1783_v18 = vpack.c.bf16 %v1041_v10, %v1025_v9  ;;  %v1819_v19 = vpack.c.bf16 %v1043_v13, %v1027_v11  ;;  %v773_v21 = vld [vmem:[%s2739_s6 + $0x20] sm:$0xff] }
  0xc4   : > { %1772 = vmatpush1.bf16.msra.mxu0 %v1771_v46  ;;  %v790_v15 = vld [vmem:[%s2739_s6 + $0xa8] sm:$0xff]  ;;  %v792_v17 = vld [vmem:[%s2739_s6 + $0xb8] sm:$0xff]  ;;  %v789_v22 = vld [vmem:[%s2739_s6 + $0xa0] sm:$0xff] }
  0xc5   : > { %1808 = vmatpush1.bf16.msra.mxu1 %v1807_v47  ;;  %1774 = vmatprep.subr.bf16.mxu0 %v1773_v48  ;;  %v1821_v20 = vpack.c.bf16 %v790_v15, %v774_v14  ;;  %v775_v23 = vld [vmem:[%s2739_s6 + $0x30] sm:$0xff]  ;;  %v1857_v24 = vpack.c.bf16 %v792_v17, %v776_v16  ;;  %v806_v26 = vld [vmem:[%s2739_s6 + $0x128] sm:$0xff]  ;;  %v808_v28 = vld [vmem:[%s2739_s6 + $0x138] sm:$0xff]  ;;  %v1823_v31 = vpack.c.bf16 %v789_v22, %v773_v21 }
  0xc6   : > { %1810 = vmatprep.subr.bf16.mxu1 %v1809_v52  ;;  %v791_v25 = vld [vmem:[%s2739_s6 + $0xb0] sm:$0xff]  ;;  %v822_v27 = vld [vmem:[%s2739_s6 + $0x1a8] sm:$0xff]  ;;  %v824_v29 = vld [vmem:[%s2739_s6 + $0x1b8] sm:$0xff] }
  0xc7   : > { %v2828_v30 = vld [vmem:[%s3087_s0] sm:$0xff]  ;;  %v1859_v33 = vpack.c.bf16 %v791_v25, %v775_v23  ;;  %v1825_v34 = vpack.c.bf16 %v822_v27, %v806_v26  ;;  %v807_v37 = vld [vmem:[%s2739_s6 + $0x130] sm:$0xff]  ;;  %v1861_v38 = vpack.c.bf16 %v824_v29, %v808_v28  ;;  %v838_v40 = vld [vmem:[%s2739_s6 + $0x228] sm:$0xff] }
  0xc8   : > { %1776 = vmatpush1.bf16.msra.mxu0 %v1775_v58  ;;  %v805_v35 = vld [vmem:[%s2739_s6 + $0x120] sm:$0xff]  ;;  %v823_v39 = vld [vmem:[%s2739_s6 + $0x1b0] sm:$0xff]  ;;  %v854_v41 = vld [vmem:[%s2739_s6 + $0x2a8] sm:$0xff] }
  0xc9   : > { %1812 = vmatpush1.bf16.msra.mxu1 %v1811_v59  ;;  %1778 = vmatprep.subr.bf16.mxu0 %v1777_v60  ;;  %v821_v36 = vld [vmem:[%s2739_s6 + $0x1a0] sm:$0xff]  ;;  %v840_v42 = vld [vmem:[%s2739_s6 + $0x238] sm:$0xff]  ;;  %v1863_v45 = vpack.c.bf16 %v823_v39, %v807_v37  ;;  %v1829_v46 = vpack.c.bf16 %v854_v41, %v838_v40  ;;  %v839_v49 = vld [vmem:[%s2739_s6 + $0x230] sm:$0xff] }
  0xca   : > { %1814 = vmatprep.subr.bf16.mxu1 %v1813_v0  ;;  %v856_v43 = vld [vmem:[%s2739_s6 + $0x2b8] sm:$0xff]  ;;  %v1827_v44 = vpack.c.bf16 %v821_v36, %v805_v35  ;;  %v837_v47 = vld [vmem:[%s2739_s6 + $0x220] sm:$0xff]  ;;  %v855_v51 = vld [vmem:[%s2739_s6 + $0x2b0] sm:$0xff] }
  0xcb   : > { %v853_v48 = vld [vmem:[%s2739_s6 + $0x2a0] sm:$0xff]  ;;  %v1865_v50 = vpack.c.bf16 %v856_v43, %v840_v42  ;;  %v870_v52 = vld [vmem:[%s2739_s6 + $0x328] sm:$0xff]  ;;  %v872_v54 = vld [vmem:[%s2739_s6 + $0x338] sm:$0xff]  ;;  %v1867_v57 = vpack.c.bf16 %v855_v51, %v839_v49 }
  0xcc   : > { %1780 = vmatpush1.bf16.msra.mxu0 %v1779_v6  ;;  %v886_v53 = vld [vmem:[%s2739_s6 + $0x3a8] sm:$0xff]  ;;  %v888_v55 = vld [vmem:[%s2739_s6 + $0x3b8] sm:$0xff]  ;;  %v1831_v56 = vpack.c.bf16 %v853_v48, %v837_v47  ;;  %v869_v59 = vld [vmem:[%s2739_s6 + $0x320] sm:$0xff] }
  0xcd   : > { %1816 = vmatpush1.bf16.msra.mxu1 %v1815_v7  ;;  %1782 = vmatprep.subr.bf16.mxu0 %v1781_v8  ;;  %v1833_v58 = vpack.c.bf16 %v886_v53, %v870_v52  ;;  %v885_v60 = vld [vmem:[%s2739_s6 + $0x3a0] sm:$0xff]  ;;  %v871_v61 = vld [vmem:[%s2739_s6 + $0x330] sm:$0xff]  ;;  %v1869_v62 = vpack.c.bf16 %v888_v55, %v872_v54  ;;  %v902_v0 = vld [vmem:[%s2739_s6 + $0x428] sm:$0xff] }
  0xce   : > { %1818 = vmatprep.subr.bf16.mxu1 %v1817_v12  ;;  %v887_v63 = vld [vmem:[%s2739_s6 + $0x3b0] sm:$0xff]  ;;  %v918_v1 = vld [vmem:[%s2739_s6 + $0x4a8] sm:$0xff]  ;;  %v904_v2 = vld [vmem:[%s2739_s6 + $0x438] sm:$0xff]  ;;  %v1835_v4 = vpack.c.bf16 %v885_v60, %v869_v59 }
  0xcf   : > { %v920_v3 = vld [vmem:[%s2739_s6 + $0x4b8] sm:$0xff]  ;;  %v1871_v5 = vpack.c.bf16 %v887_v63, %v871_v61  ;;  %v1837_v6 = vpack.c.bf16 %v918_v1, %v902_v0  ;;  %v901_v7 = vld [vmem:[%s2739_s6 + $0x420] sm:$0xff]  ;;  %v903_v9 = vld [vmem:[%s2739_s6 + $0x430] sm:$0xff] }
  0xd0   : > { %1784 = vmatpush1.bf16.msra.mxu0 %v1783_v18  ;;  %v917_v8 = vld [vmem:[%s2739_s6 + $0x4a0] sm:$0xff]  ;;  %v1873_v10 = vpack.c.bf16 %v920_v3, %v904_v2  ;;  %v919_v11 = vld [vmem:[%s2739_s6 + $0x4b0] sm:$0xff]  ;;  %v934_v12 = vld [vmem:[%s2739_s6 + $0x528] sm:$0xff] }
  0xd1   : > { %1820 = vmatpush1.bf16.msra.mxu1 %v1819_v19  ;;  %1822 = vmatprep.subr.bf16.mxu0 %v1821_v20  ;;  %v950_v13 = vld [vmem:[%s2739_s6 + $0x5a8] sm:$0xff]  ;;  %v936_v14 = vld [vmem:[%s2739_s6 + $0x538] sm:$0xff]  ;;  %v1839_v16 = vpack.c.bf16 %v917_v8, %v901_v7  ;;  %v1875_v17 = vpack.c.bf16 %v919_v11, %v903_v9  ;;  %v933_v19 = vld [vmem:[%s2739_s6 + $0x520] sm:$0xff] }
  0xd2   : > { %1858 = vmatprep.subr.bf16.mxu1 %v1857_v24  ;;  %v952_v15 = vld [vmem:[%s2739_s6 + $0x5b8] sm:$0xff]  ;;  %v1841_v18 = vpack.c.bf16 %v950_v13, %v934_v12  ;;  %v949_v20 = vld [vmem:[%s2739_s6 + $0x5a0] sm:$0xff]  ;;  %v935_v21 = vld [vmem:[%s2739_s6 + $0x530] sm:$0xff] }
  0xd3   : > { %1132 = vmatmul.mubr.f32.vlgmr.msra.gmra.mrb[0].mxu0 %v2828_v30  ;;  %v1877_v22 = vpack.c.bf16 %v952_v15, %v936_v14  ;;  %v951_v23 = vld [vmem:[%s2739_s6 + $0x5b0] sm:$0xff]  ;;  %v966_v24 = vld [vmem:[%s2739_s6 + $0x628] sm:$0xff]  ;;  %v968_v26 = vld [vmem:[%s2739_s6 + $0x638] sm:$0xff]  ;;  %v1843_v28 = vpack.c.bf16 %v949_v20, %v933_v19 }
  0xd4   : > { %1203 = vmatmul.mubr.f32.vlgmr.msra.gmra.mrb[0].mxu1 %v2828_v30  ;;  %1824 = vmatpush1.bf16.msra.mxu0 %v1823_v31  ;;  %v982_v25 = vld [vmem:[%s2739_s6 + $0x6a8] sm:$0xff]  ;;  %v984_v27 = vld [vmem:[%s2739_s6 + $0x6b8] sm:$0xff]  ;;  %v1879_v29 = vpack.c.bf16 %v951_v23, %v935_v21  ;;  %v967_v35 = vld [vmem:[%s2739_s6 + $0x630] sm:$0xff] }
  0xd5   : > { %1860 = vmatpush1.bf16.msra.mxu1 %v1859_v33  ;;  %1826 = vmatprep.subr.bf16.mxu0 %v1825_v34  ;;  %v1845_v31 = vpack.c.bf16 %v982_v25, %v966_v24  ;;  %v965_v33 = vld [vmem:[%s2739_s6 + $0x620] sm:$0xff]  ;;  %v1881_v36 = vpack.c.bf16 %v984_v27, %v968_v26  ;;  %v983_v37 = vld [vmem:[%s2739_s6 + $0x6b0] sm:$0xff]  ;;  %v1014_v39 = vld [vmem:[%s2739_s6 + $0x7a8] sm:$0xff] }
  0xd6   : > { %1862 = vmatprep.subr.bf16.mxu1 %v1861_v38  ;;  %1740 = vmatprep.mubr.msk.f32.mxu0 %vm1063_vm0, %v2730_v32  ;;  %v981_v34 = vld [vmem:[%s2739_s6 + $0x6a0] sm:$0xff]  ;;  %v998_v38 = vld [vmem:[%s2739_s6 + $0x728] sm:$0xff]  ;;  %v1000_v40 = vld [vmem:[%s2739_s6 + $0x738] sm:$0xff]  ;;  %v1883_v43 = vpack.c.bf16 %v983_v37, %v967_v35 }
  0xd7   : > { %1741 = vmatprep.mubr.msk.f32.mxu1 %vm1063_vm0, %v2730_v32  ;;  %v1016_v41 = vld [vmem:[%s2739_s6 + $0x7b8] sm:$0xff]  ;;  %v1847_v42 = vpack.c.bf16 %v981_v34, %v965_v33  ;;  %v999_v47 = vld [vmem:[%s2739_s6 + $0x730] sm:$0xff]  ;;  %v1046_v51 = vld [vmem:[%s2739_s6 + $0x8a8] sm:$0xff] }
  0xd8   : > { %1828 = vmatpush1.bf16.msra.mxu0 %v1827_v44  ;;  %v1849_v44 = vpack.c.bf16 %v1014_v39, %v998_v38  ;;  %v1885_v48 = vpack.c.bf16 %v1016_v41, %v1000_v40  ;;  %v1015_v49 = vld [vmem:[%s2739_s6 + $0x7b0] sm:$0xff]  ;;  %v1032_v52 = vld [vmem:[%s2739_s6 + $0x838] sm:$0xff]  ;;  %v794_v63 = vld [vmem:[%s2739_s6 + $0xc8] sm:$0xff] }
  0xd9   : > { %1864 = vmatpush1.bf16.msra.mxu1 %v1863_v45  ;;  %1830 = vmatprep.subr.bf16.mxu0 %v1829_v46  ;;  %v997_v45 = vld [vmem:[%s2739_s6 + $0x720] sm:$0xff]  ;;  %v1048_v53 = vld [vmem:[%s2739_s6 + $0x8b8] sm:$0xff]  ;;  %v1887_v55 = vpack.c.bf16 %v1015_v49, %v999_v47  ;;  %v1031_v59 = vld [vmem:[%s2739_s6 + $0x830] sm:$0xff] }
  0xda   : > { %1866 = vmatprep.subr.bf16.mxu1 %v1865_v50  ;;  %v1013_v46 = vld [vmem:[%s2739_s6 + $0x7a0] sm:$0xff]  ;;  %v1030_v50 = vld [vmem:[%s2739_s6 + $0x828] sm:$0xff]  ;;  %v1889_v60 = vpack.c.bf16 %v1048_v53, %v1032_v52  ;;  %v1047_v61 = vld [vmem:[%s2739_s6 + $0x8b0] sm:$0xff] }
  0xdb   : > { %v1851_v54 = vpack.c.bf16 %v1013_v46, %v997_v45  ;;  %v780_v0 = vld [vmem:[%s2739_s6 + $0x58] sm:$0xff]  ;;  %v1891_v3 = vpack.c.bf16 %v1047_v61, %v1031_v59  ;;  %v779_v7 = vld [vmem:[%s2739_s6 + $0x50] sm:$0xff]  ;;  %v826_v11 = vld [vmem:[%s2739_s6 + $0x1c8] sm:$0xff] }
  0xdc   : > { %1832 = vmatpush1.bf16.msra.mxu0 %v1831_v56  ;;  %v1853_v56 = vpack.c.bf16 %v1046_v51, %v1030_v50  ;;  %v796_v1 = vld [vmem:[%s2739_s6 + $0xd8] sm:$0xff]  ;;  %v795_v9 = vld [vmem:[%s2739_s6 + $0xd0] sm:$0xff]  ;;  %v858_v23 = vld [vmem:[%s2739_s6 + $0x2c8] sm:$0xff] }
  0xdd   : > { %1868 = vmatpush1.bf16.msra.mxu1 %v1867_v57  ;;  %1834 = vmatprep.subr.bf16.mxu0 %v1833_v58  ;;  %v1029_v57 = vld [vmem:[%s2739_s6 + $0x820] sm:$0xff]  ;;  %v1929_v8 = vpack.c.bf16 %v796_v1, %v780_v0  ;;  %v812_v12 = vld [vmem:[%s2739_s6 + $0x158] sm:$0xff]  ;;  %v1931_v15 = vpack.c.bf16 %v795_v9, %v779_v7  ;;  %v811_v19 = vld [vmem:[%s2739_s6 + $0x150] sm:$0xff] }
  0xde   : > { %1870 = vmatprep.subr.bf16.mxu1 %v1869_v62  ;;  %v1045_v58 = vld [vmem:[%s2739_s6 + $0x8a0] sm:$0xff]  ;;  %v778_v62 = vld [vmem:[%s2739_s6 + $0x48] sm:$0xff]  ;;  %v828_v13 = vld [vmem:[%s2739_s6 + $0x1d8] sm:$0xff] }
  0xdf   : > { %v1855_v2 = vpack.c.bf16 %v1045_v58, %v1029_v57  ;;  %v1933_v20 = vpack.c.bf16 %v828_v13, %v812_v12  ;;  %v827_v21 = vld [vmem:[%s2739_s6 + $0x1d0] sm:$0xff]  ;;  %v844_v24 = vld [vmem:[%s2739_s6 + $0x258] sm:$0xff]  ;;  %v890_v37 = vld [vmem:[%s2739_s6 + $0x3c8] sm:$0xff] }
  0xe0   : > { %1836 = vmatpush1.bf16.msra.mxu0 %v1835_v4  ;;  %v1893_v4 = vpack.c.bf16 %v794_v63, %v778_v62  ;;  %v860_v25 = vld [vmem:[%s2739_s6 + $0x2d8] sm:$0xff]  ;;  %v1935_v27 = vpack.c.bf16 %v827_v21, %v811_v19  ;;  %v843_v33 = vld [vmem:[%s2739_s6 + $0x250] sm:$0xff]  ;;  %v922_v49 = vld [vmem:[%s2739_s6 + $0x4c8] sm:$0xff] }
  0xe1   : > { %1872 = vmatpush1.bf16.msra.mxu1 %v1871_v5  ;;  %1838 = vmatprep.subr.bf16.mxu0 %v1837_v6  ;;  %v777_v5 = vld [vmem:[%s2739_s6 + $0x40] sm:$0xff]  ;;  %v1937_v34 = vpack.c.bf16 %v860_v25, %v844_v24  ;;  %v859_v35 = vld [vmem:[%s2739_s6 + $0x2d0] sm:$0xff]  ;;  %v876_v38 = vld [vmem:[%s2739_s6 + $0x358] sm:$0xff] }
  0xe2   : > { %1874 = vmatprep.subr.bf16.mxu1 %v1873_v10  ;;  %v793_v6 = vld [vmem:[%s2739_s6 + $0xc0] sm:$0xff]  ;;  %v810_v10 = vld [vmem:[%s2739_s6 + $0x148] sm:$0xff]  ;;  %v892_v39 = vld [vmem:[%s2739_s6 + $0x3d8] sm:$0xff]  ;;  %v1939_v41 = vpack.c.bf16 %v859_v35, %v843_v33 }
  0xe3   : > { %v1895_v14 = vpack.c.bf16 %v793_v6, %v777_v5  ;;  %v875_v45 = vld [vmem:[%s2739_s6 + $0x350] sm:$0xff]  ;;  %v1941_v46 = vpack.c.bf16 %v892_v39, %v876_v38  ;;  %v908_v50 = vld [vmem:[%s2739_s6 + $0x458] sm:$0xff]  ;;  %v954_v61 = vld [vmem:[%s2739_s6 + $0x5c8] sm:$0xff] }
  0xe4   : > { %1840 = vmatpush1.bf16.msra.mxu0 %v1839_v16  ;;  %v1897_v16 = vpack.c.bf16 %v826_v11, %v810_v10  ;;  %v891_v47 = vld [vmem:[%s2739_s6 + $0x3d0] sm:$0xff]  ;;  %v924_v51 = vld [vmem:[%s2739_s6 + $0x4d8] sm:$0xff]  ;;  %v986_v9 = vld [vmem:[%s2739_s6 + $0x6c8] sm:$0xff] }
  0xe5   : > { %1876 = vmatpush1.bf16.msra.mxu1 %v1875_v17  ;;  %1842 = vmatprep.subr.bf16.mxu0 %v1841_v18  ;;  %v809_v17 = vld [vmem:[%s2739_s6 + $0x140] sm:$0xff]  ;;  %v1943_v53 = vpack.c.bf16 %v891_v47, %v875_v45  ;;  %v907_v57 = vld [vmem:[%s2739_s6 + $0x450] sm:$0xff]  ;;  %v1945_v58 = vpack.c.bf16 %v924_v51, %v908_v50  ;;  %v940_v62 = vld [vmem:[%s2739_s6 + $0x558] sm:$0xff] }
  0xe6   : > { %1878 = vmatprep.subr.bf16.mxu1 %v1877_v22  ;;  %v825_v18 = vld [vmem:[%s2739_s6 + $0x1c0] sm:$0xff]  ;;  %v842_v22 = vld [vmem:[%s2739_s6 + $0x248] sm:$0xff]  ;;  %v923_v59 = vld [vmem:[%s2739_s6 + $0x4d0] sm:$0xff] }
  0xe7   : > { %v1899_v26 = vpack.c.bf16 %v825_v18, %v809_v17  ;;  %v956_v63 = vld [vmem:[%s2739_s6 + $0x5d8] sm:$0xff]  ;;  %v1947_v1 = vpack.c.bf16 %v923_v59, %v907_v57  ;;  %v939_v5 = vld [vmem:[%s2739_s6 + $0x550] sm:$0xff]  ;;  %v1018_v21 = vld [vmem:[%s2739_s6 + $0x7c8] sm:$0xff] }
  0xe8   : > { %1844 = vmatpush1.bf16.msra.mxu0 %v1843_v28  ;;  %v1901_v28 = vpack.c.bf16 %v858_v23, %v842_v22  ;;  %v1949_v6 = vpack.c.bf16 %v956_v63, %v940_v62  ;;  %v955_v7 = vld [vmem:[%s2739_s6 + $0x5d0] sm:$0xff]  ;;  %v972_v10 = vld [vmem:[%s2739_s6 + $0x658] sm:$0xff]  ;;  %v1050_v35 = vld [vmem:[%s2739_s6 + $0x8c8] sm:$0xff] }
  0xe9   : > { %1880 = vmatpush1.bf16.msra.mxu1 %v1879_v29  ;;  %1846 = vmatprep.subr.bf16.mxu0 %v1845_v31  ;;  %v841_v29 = vld [vmem:[%s2739_s6 + $0x240] sm:$0xff]  ;;  %v988_v11 = vld [vmem:[%s2739_s6 + $0x6d8] sm:$0xff]  ;;  %v1951_v13 = vpack.c.bf16 %v955_v7, %v939_v5  ;;  %v971_v17 = vld [vmem:[%s2739_s6 + $0x650] sm:$0xff] }
  0xea   : > { %1882 = vmatprep.subr.bf16.mxu1 %v1881_v36  ;;  %v857_v31 = vld [vmem:[%s2739_s6 + $0x2c0] sm:$0xff]  ;;  %v874_v36 = vld [vmem:[%s2739_s6 + $0x348] sm:$0xff]  ;;  %v1953_v18 = vpack.c.bf16 %v988_v11, %v972_v10  ;;  %v987_v19 = vld [vmem:[%s2739_s6 + $0x6d0] sm:$0xff] }
  0xeb   : > { %v1903_v40 = vpack.c.bf16 %v857_v31, %v841_v29  ;;  %v1004_v22 = vld [vmem:[%s2739_s6 + $0x758] sm:$0xff]  ;;  %v1955_v25 = vpack.c.bf16 %v987_v19, %v971_v17  ;;  %v1003_v29 = vld [vmem:[%s2739_s6 + $0x750] sm:$0xff]  ;;  %v798_v47 = vld [vmem:[%s2739_s6 + $0xe8] sm:$0xff] }
  0xec   : > { %1848 = vmatpush1.bf16.msra.mxu0 %v1847_v42  ;;  %v1905_v42 = vpack.c.bf16 %v890_v37, %v874_v36  ;;  %v1020_v23 = vld [vmem:[%s2739_s6 + $0x7d8] sm:$0xff]  ;;  %v1019_v33 = vld [vmem:[%s2739_s6 + $0x7d0] sm:$0xff]  ;;  %v830_v59 = vld [vmem:[%s2739_s6 + $0x1e8] sm:$0xff] }
  0xed   : > { %1884 = vmatpush1.bf16.msra.mxu1 %v1883_v43  ;;  %1850 = vmatprep.subr.bf16.mxu0 %v1849_v44  ;;  %v873_v43 = vld [vmem:[%s2739_s6 + $0x340] sm:$0xff]  ;;  %v1957_v31 = vpack.c.bf16 %v1020_v23, %v1004_v22  ;;  %v1036_v36 = vld [vmem:[%s2739_s6 + $0x858] sm:$0xff]  ;;  %v1959_v39 = vpack.c.bf16 %v1019_v33, %v1003_v29  ;;  %v1051_v45 = vld [vmem:[%s2739_s6 + $0x8d0] sm:$0xff] }
  0xee   : > { %1886 = vmatprep.subr.bf16.mxu1 %v1885_v48  ;;  %v889_v44 = vld [vmem:[%s2739_s6 + $0x3c0] sm:$0xff]  ;;  %v906_v48 = vld [vmem:[%s2739_s6 + $0x448] sm:$0xff]  ;;  %v1052_v37 = vld [vmem:[%s2739_s6 + $0x8d8] sm:$0xff] }
  0xef   : > { %v1907_v52 = vpack.c.bf16 %v889_v44, %v873_v43  ;;  %v1035_v43 = vld [vmem:[%s2739_s6 + $0x850] sm:$0xff]  ;;  %v1961_v44 = vpack.c.bf16 %v1052_v37, %v1036_v36  ;;  %v862_v7 = vld [vmem:[%s2739_s6 + $0x2e8] sm:$0xff]  ;;  %v912_v33 = vld [vmem:[%s2739_s6 + $0x478] sm:$0xff] }
  0xf0   : > { %1852 = vmatpush1.bf16.msra.mxu0 %v1851_v54  ;;  %v1909_v54 = vpack.c.bf16 %v922_v49, %v906_v48  ;;  %v784_v48 = vld [vmem:[%s2739_s6 + $0x78] sm:$0xff]  ;;  %v1963_v51 = vpack.c.bf16 %v1051_v45, %v1035_v43  ;;  %v799_v57 = vld [vmem:[%s2739_s6 + $0xf0] sm:$0xff]  ;;  %v894_v19 = vld [vmem:[%s2739_s6 + $0x3e8] sm:$0xff] }
  0xf1   : > { %1888 = vmatpush1.bf16.msra.mxu1 %v1887_v55  ;;  %1854 = vmatprep.subr.bf16.mxu0 %v1853_v56  ;;  %v905_v55 = vld [vmem:[%s2739_s6 + $0x440] sm:$0xff]  ;;  %v800_v49 = vld [vmem:[%s2739_s6 + $0xf8] sm:$0xff]  ;;  %v831_v5 = vld [vmem:[%s2739_s6 + $0x1f0] sm:$0xff] }
  0xf2   : > { %1890 = vmatprep.subr.bf16.mxu1 %v1889_v60  ;;  %v921_v56 = vld [vmem:[%s2739_s6 + $0x4c0] sm:$0xff]  ;;  %v938_v60 = vld [vmem:[%s2739_s6 + $0x548] sm:$0xff]  ;;  %v863_v17 = vld [vmem:[%s2739_s6 + $0x2f0] sm:$0xff] }
  0xf3   : > { %v1911_v0 = vpack.c.bf16 %v921_v56, %v905_v55  ;;  %v783_v55 = vld [vmem:[%s2739_s6 + $0x70] sm:$0xff]  ;;  %v2001_v56 = vpack.c.bf16 %v800_v49, %v784_v48  ;;  %v942_v43 = vld [vmem:[%s2739_s6 + $0x568] sm:$0xff]  ;;  %v944_v45 = vld [vmem:[%s2739_s6 + $0x578] sm:$0xff] }
  0xf4   : > { %1856 = vmatpush1.bf16.msra.mxu0 %v1855_v2  ;;  %v1913_v2 = vpack.c.bf16 %v954_v61, %v938_v60  ;;  %v816_v60 = vld [vmem:[%s2739_s6 + $0x178] sm:$0xff]  ;;  %v2003_v63 = vpack.c.bf16 %v799_v57, %v783_v55  ;;  %v895_v29 = vld [vmem:[%s2739_s6 + $0x3f0] sm:$0xff]  ;;  %v974_v55 = vld [vmem:[%s2739_s6 + $0x668] sm:$0xff] }
  0xf5   : > { %1892 = vmatpush1.bf16.msra.mxu1 %v1891_v3  ;;  %1894 = vmatprep.subr.bf16.mxu0 %v1893_v4  ;;  %v937_v3 = vld [vmem:[%s2739_s6 + $0x540] sm:$0xff]  ;;  %v832_v61 = vld [vmem:[%s2739_s6 + $0x1f8] sm:$0xff] }
  0xf6   : > { %1930 = vmatprep.subr.bf16.mxu1 %v1929_v8  ;;  %v953_v4 = vld [vmem:[%s2739_s6 + $0x5c0] sm:$0xff]  ;;  %v970_v8 = vld [vmem:[%s2739_s6 + $0x648] sm:$0xff]  ;;  %v976_v57 = vld [vmem:[%s2739_s6 + $0x678] sm:$0xff] }
  0xf7   : > { %1274 = vmatmul.mubr.f32.vlgmr.msra.gmra.mrb[2].mxu0 %v2828_v30  ;;  %v1915_v12 = vpack.c.bf16 %v953_v4, %v937_v3  ;;  %v815_v3 = vld [vmem:[%s2739_s6 + $0x170] sm:$0xff]  ;;  %v2005_v4 = vpack.c.bf16 %v832_v61, %v816_v60 }
  0xf8   : > { %1345 = vmatmul.mubr.f32.vlgmr.msra.gmra.mrb[2].mxu1 %v2828_v30  ;;  %1896 = vmatpush1.bf16.msra.mxu0 %v1895_v14  ;;  %v1917_v14 = vpack.c.bf16 %v986_v9, %v970_v8  ;;  %v848_v8 = vld [vmem:[%s2739_s6 + $0x278] sm:$0xff]  ;;  %v2007_v11 = vpack.c.bf16 %v831_v5, %v815_v3  ;;  %v1006_v3 = vld [vmem:[%s2739_s6 + $0x768] sm:$0xff] }
  0xf9   : > { %1932 = vmatpush1.bf16.msra.mxu1 %v1931_v15  ;;  %1898 = vmatprep.subr.bf16.mxu0 %v1897_v16  ;;  %v969_v15 = vld [vmem:[%s2739_s6 + $0x640] sm:$0xff]  ;;  %v864_v9 = vld [vmem:[%s2739_s6 + $0x2f8] sm:$0xff] }
  0xfa   : > { %1934 = vmatprep.subr.bf16.mxu1 %v1933_v20  ;;  %1742 = vmatprep.mubr.msk.f32.mxu0 %vm1063_vm0, %v2730_v32  ;;  %v985_v16 = vld [vmem:[%s2739_s6 + $0x6c0] sm:$0xff]  ;;  %v1002_v20 = vld [vmem:[%s2739_s6 + $0x748] sm:$0xff]  ;;  %v1008_v5 = vld [vmem:[%s2739_s6 + $0x778] sm:$0xff] }
  0xfb   : > { %1743 = vmatprep.mubr.msk.f32.mxu1 %vm1063_vm0, %v2730_v32  ;;  %v1919_v24 = vpack.c.bf16 %v985_v16, %v969_v15  ;;  %v847_v15 = vld [vmem:[%s2739_s6 + $0x270] sm:$0xff]  ;;  %v2009_v16 = vpack.c.bf16 %v864_v9, %v848_v8 }
  0xfc   : > { %1900 = vmatpush1.bf16.msra.mxu0 %v1899_v26  ;;  %v1921_v26 = vpack.c.bf16 %v1018_v21, %v1002_v20  ;;  %v880_v20 = vld [vmem:[%s2739_s6 + $0x378] sm:$0xff]  ;;  %v2011_v23 = vpack.c.bf16 %v863_v17, %v847_v15  ;;  %v1038_v15 = vld [vmem:[%s2739_s6 + $0x868] sm:$0xff] }
  0xfd   : > { %1936 = vmatpush1.bf16.msra.mxu1 %v1935_v27  ;;  %1902 = vmatprep.subr.bf16.mxu0 %v1901_v28  ;;  %v1001_v27 = vld [vmem:[%s2739_s6 + $0x740] sm:$0xff]  ;;  %v896_v21 = vld [vmem:[%s2739_s6 + $0x3f8] sm:$0xff] }
  0xfe   : > { %1938 = vmatprep.subr.bf16.mxu1 %v1937_v34  ;;  %v1017_v28 = vld [vmem:[%s2739_s6 + $0x7c0] sm:$0xff]  ;;  %v1034_v34 = vld [vmem:[%s2739_s6 + $0x848] sm:$0xff]  ;;  %v1040_v17 = vld [vmem:[%s2739_s6 + $0x878] sm:$0xff] }
  0xff   : > { %v1923_v38 = vpack.c.bf16 %v1017_v28, %v1001_v27  ;;  %v879_v27 = vld [vmem:[%s2739_s6 + $0x370] sm:$0xff]  ;;  %v2013_v28 = vpack.c.bf16 %v896_v21, %v880_v20 }
 0x100   : > { %1904 = vmatpush1.bf16.msra.mxu0 %v1903_v40  ;;  %v1925_v40 = vpack.c.bf16 %v1050_v35, %v1034_v34  ;;  %v928_v34 = vld [vmem:[%s2739_s6 + $0x4f8] sm:$0xff]  ;;  %v2015_v36 = vpack.c.bf16 %v895_v29, %v879_v27 }
 0x101   : > { %1940 = vmatpush1.bf16.msra.mxu1 %v1939_v41  ;;  %1906 = vmatprep.subr.bf16.mxu0 %v1905_v42  ;;  %v1033_v41 = vld [vmem:[%s2739_s6 + $0x840] sm:$0xff] }
 0x102   : > { %1942 = vmatprep.subr.bf16.mxu1 %v1941_v46  ;;  %v1049_v42 = vld [vmem:[%s2739_s6 + $0x8c0] sm:$0xff]  ;;  %v782_v46 = vld [vmem:[%s2739_s6 + $0x68] sm:$0xff] }
 0x103   : > { %v1927_v50 = vpack.c.bf16 %v1049_v42, %v1033_v41  ;;  %v2017_v41 = vpack.c.bf16 %v928_v34, %v912_v33  ;;  %v927_v42 = vld [vmem:[%s2739_s6 + $0x4f0] sm:$0xff] }
 0x104   : > { %1908 = vmatpush1.bf16.msra.mxu0 %v1907_v52  ;;  %v1965_v52 = vpack.c.bf16 %v798_v47, %v782_v46  ;;  %v960_v46 = vld [vmem:[%s2739_s6 + $0x5f8] sm:$0xff] }
 0x105   : > { %1944 = vmatpush1.bf16.msra.mxu1 %v1943_v53  ;;  %1910 = vmatprep.subr.bf16.mxu0 %v1909_v54  ;;  %v781_v53 = vld [vmem:[%s2739_s6 + $0x60] sm:$0xff] }
 0x106   : > { %1946 = vmatprep.subr.bf16.mxu1 %v1945_v58  ;;  %v797_v54 = vld [vmem:[%s2739_s6 + $0xe0] sm:$0xff]  ;;  %v814_v58 = vld [vmem:[%s2739_s6 + $0x168] sm:$0xff] }
 0x107   : > { %v1967_v62 = vpack.c.bf16 %v797_v54, %v781_v53  ;;  %v2021_v53 = vpack.c.bf16 %v960_v46, %v944_v45  ;;  %v959_v54 = vld [vmem:[%s2739_s6 + $0x5f0] sm:$0xff] }
 0x108   : > { %1912 = vmatpush1.bf16.msra.mxu0 %v1911_v0  ;;  %v1969_v0 = vpack.c.bf16 %v830_v59, %v814_v58  ;;  %v992_v58 = vld [vmem:[%s2739_s6 + $0x6f8] sm:$0xff] }
 0x109   : > { %1948 = vmatpush1.bf16.msra.mxu1 %v1947_v1  ;;  %1914 = vmatprep.subr.bf16.mxu0 %v1913_v2  ;;  %v813_v1 = vld [vmem:[%s2739_s6 + $0x160] sm:$0xff] }
 0x10a   : > { %1950 = vmatprep.subr.bf16.mxu1 %v1949_v6  ;;  %v829_v2 = vld [vmem:[%s2739_s6 + $0x1e0] sm:$0xff]  ;;  %v846_v6 = vld [vmem:[%s2739_s6 + $0x268] sm:$0xff] }
 0x10b   : > { %v1971_v10 = vpack.c.bf16 %v829_v2, %v813_v1  ;;  %v2025_v1 = vpack.c.bf16 %v992_v58, %v976_v57  ;;  %v991_v2 = vld [vmem:[%s2739_s6 + $0x6f0] sm:$0xff] }
 0x10c   : > { %1916 = vmatpush1.bf16.msra.mxu0 %v1915_v12  ;;  %v1973_v12 = vpack.c.bf16 %v862_v7, %v846_v6  ;;  %v1024_v6 = vld [vmem:[%s2739_s6 + $0x7f8] sm:$0xff] }
 0x10d   : > { %1952 = vmatpush1.bf16.msra.mxu1 %v1951_v13  ;;  %1918 = vmatprep.subr.bf16.mxu0 %v1917_v14  ;;  %v845_v13 = vld [vmem:[%s2739_s6 + $0x260] sm:$0xff] }
 0x10e   : > { %1954 = vmatprep.subr.bf16.mxu1 %v1953_v18  ;;  %v861_v14 = vld [vmem:[%s2739_s6 + $0x2e0] sm:$0xff]  ;;  %v878_v18 = vld [vmem:[%s2739_s6 + $0x368] sm:$0xff] }
 0x10f   : > { %v1975_v22 = vpack.c.bf16 %v861_v14, %v845_v13  ;;  %v2029_v13 = vpack.c.bf16 %v1024_v6, %v1008_v5  ;;  %v1023_v14 = vld [vmem:[%s2739_s6 + $0x7f0] sm:$0xff] }
 0x110   : > { %1920 = vmatpush1.bf16.msra.mxu0 %v1919_v24  ;;  %v1977_v24 = vpack.c.bf16 %v894_v19, %v878_v18  ;;  %v1056_v18 = vld [vmem:[%s2739_s6 + $0x8f8] sm:$0xff] }
 0x111   : > { %1956 = vmatpush1.bf16.msra.mxu1 %v1955_v25  ;;  %1922 = vmatprep.subr.bf16.mxu0 %v1921_v26  ;;  %v877_v25 = vld [vmem:[%s2739_s6 + $0x360] sm:$0xff] }
 0x112   : > { %1958 = vmatprep.subr.bf16.mxu1 %v1957_v31  ;;  %v893_v26 = vld [vmem:[%s2739_s6 + $0x3e0] sm:$0xff]  ;;  %v910_v31 = vld [vmem:[%s2739_s6 + $0x468] sm:$0xff] }
 0x113   : > { %v1979_v35 = vpack.c.bf16 %v893_v26, %v877_v25  ;;  %v1039_v25 = vld [vmem:[%s2739_s6 + $0x870] sm:$0xff] }
 0x114   : > { %1924 = vmatpush1.bf16.msra.mxu0 %v1923_v38  ;;  %v909_v38 = vld [vmem:[%s2739_s6 + $0x460] sm:$0xff]  ;;  %v1055_v26 = vld [vmem:[%s2739_s6 + $0x8f0] sm:$0xff] }
 0x115   : > { %1960 = vmatpush1.bf16.msra.mxu1 %v1959_v39  ;;  %1926 = vmatprep.subr.bf16.mxu0 %v1925_v40  ;;  %v925_v39 = vld [vmem:[%s2739_s6 + $0x4e0] sm:$0xff]  ;;  %v911_v40 = vld [vmem:[%s2739_s6 + $0x470] sm:$0xff] }
 0x116   : > { %1962 = vmatprep.subr.bf16.mxu1 %v1961_v44  ;;  %v958_v44 = vld [vmem:[%s2739_s6 + $0x5e8] sm:$0xff]  ;;  %v1983_v47 = vpack.c.bf16 %v925_v39, %v909_v38  ;;  %v2019_v48 = vpack.c.bf16 %v927_v42, %v911_v40 }
 0x117   : > { %v1985_v49 = vpack.c.bf16 %v958_v44, %v942_v43 }
 0x118   : > { %1928 = vmatpush1.bf16.msra.mxu0 %v1927_v50  ;;  %v941_v50 = vld [vmem:[%s2739_s6 + $0x560] sm:$0xff] }
 0x119   : > { %1964 = vmatpush1.bf16.msra.mxu1 %v1963_v51  ;;  %1966 = vmatprep.subr.bf16.mxu0 %v1965_v52  ;;  %v957_v51 = vld [vmem:[%s2739_s6 + $0x5e0] sm:$0xff]  ;;  %v943_v52 = vld [vmem:[%s2739_s6 + $0x570] sm:$0xff] }
 0x11a   : > { %2002 = vmatprep.subr.bf16.mxu1 %v2001_v56  ;;  %v990_v56 = vld [vmem:[%s2739_s6 + $0x6e8] sm:$0xff]  ;;  %v1987_v59 = vpack.c.bf16 %v957_v51, %v941_v50  ;;  %v2023_v60 = vpack.c.bf16 %v959_v54, %v943_v52 }
 0x11b   : > { %1416 = vmatmul.mubr.f32.vlgmr.msra.gmra.mrb[4].mxu0 %v2828_v30  ;;  %v1989_v61 = vpack.c.bf16 %v990_v56, %v974_v55 }
 0x11c   : > { %1487 = vmatmul.mubr.f32.vlgmr.msra.gmra.mrb[4].mxu1 %v2828_v30  ;;  %1968 = vmatpush1.bf16.msra.mxu0 %v1967_v62  ;;  %v973_v62 = vld [vmem:[%s2739_s6 + $0x660] sm:$0xff] }
 0x11d   : > { %2004 = vmatpush1.bf16.msra.mxu1 %v2003_v63  ;;  %1970 = vmatprep.subr.bf16.mxu0 %v1969_v0  ;;  %v989_v63 = vld [vmem:[%s2739_s6 + $0x6e0] sm:$0xff]  ;;  %v975_v0 = vld [vmem:[%s2739_s6 + $0x670] sm:$0xff] }
 0x11e   : > { %2006 = vmatprep.subr.bf16.mxu1 %v2005_v4  ;;  %1744 = vmatprep.mubr.msk.f32.mxu0 %vm1063_vm0, %v2730_v32  ;;  %v1022_v4 = vld [vmem:[%s2739_s6 + $0x7e8] sm:$0xff]  ;;  %v1991_v7 = vpack.c.bf16 %v989_v63, %v973_v62  ;;  %v2027_v8 = vpack.c.bf16 %v991_v2, %v975_v0 }
 0x11f   : > { %1745 = vmatprep.mubr.msk.f32.mxu1 %vm1063_vm0, %v2730_v32  ;;  %v926_v32 = vld [vmem:[%s2739_s6 + $0x4e8] sm:$0xff]  ;;  %v1993_v9 = vpack.c.bf16 %v1022_v4, %v1006_v3 }
 0x120   : > { %1972 = vmatpush1.bf16.msra.mxu0 %v1971_v10  ;;  %v1981_v37 = vpack.c.bf16 %v926_v32, %v910_v31  ;;  %v1005_v10 = vld [vmem:[%s2739_s6 + $0x760] sm:$0xff] }
 0x121   : > { %2008 = vmatpush1.bf16.msra.mxu1 %v2007_v11  ;;  %1974 = vmatprep.subr.bf16.mxu0 %v1973_v12  ;;  %v1021_v11 = vld [vmem:[%s2739_s6 + $0x7e0] sm:$0xff]  ;;  %v1007_v12 = vld [vmem:[%s2739_s6 + $0x770] sm:$0xff] }
 0x122   : > { %2010 = vmatprep.subr.bf16.mxu1 %v2009_v16  ;;  %v1054_v16 = vld [vmem:[%s2739_s6 + $0x8e8] sm:$0xff]  ;;  %v1995_v19 = vpack.c.bf16 %v1021_v11, %v1005_v10  ;;  %v2031_v20 = vpack.c.bf16 %v1023_v14, %v1007_v12 }
 0x123   : > { %v1997_v21 = vpack.c.bf16 %v1054_v16, %v1038_v15 }
 0x124   : > { %1976 = vmatpush1.bf16.msra.mxu0 %v1975_v22  ;;  %v1037_v22 = vld [vmem:[%s2739_s6 + $0x860] sm:$0xff] }
 0x125   : > { %2012 = vmatpush1.bf16.msra.mxu1 %v2011_v23  ;;  %1978 = vmatprep.subr.bf16.mxu0 %v1977_v24  ;;  %v1053_v23 = vld [vmem:[%s2739_s6 + $0x8e0] sm:$0xff]  ;;  %v2033_v24 = vpack.c.bf16 %v1056_v18, %v1040_v17 }
 0x126   : > { %2014 = vmatprep.subr.bf16.mxu1 %v2013_v28  ;;  %v1999_v27 = vpack.c.bf16 %v1053_v23, %v1037_v22  ;;  %v2035_v28 = vpack.c.bf16 %v1055_v26, %v1039_v25 }
 0x128   : > { %1980 = vmatpush1.bf16.msra.mxu0 %v1979_v35  ;;  %v1061_v29 = vpop.permute.xlu0 %1060 }
 0x129   : > { %2016 = vmatpush1.bf16.msra.mxu1 %v2015_v36  ;;  %1982 = vmatprep.subr.bf16.mxu0 %v1981_v37 }
 0x12a   : > { %2018 = vmatprep.subr.bf16.mxu1 %v2017_v41 }
 0x12c   : > { %1984 = vmatpush1.bf16.msra.mxu0 %v1983_v47 }
 0x12d   : > { %2020 = vmatpush1.bf16.msra.mxu1 %v2019_v48  ;;  %1986 = vmatprep.subr.bf16.mxu0 %v1985_v49 }
 0x12e   : > { %2022 = vmatprep.subr.bf16.mxu1 %v2021_v53 }
 0x130   : > { %1988 = vmatpush1.bf16.msra.mxu0 %v1987_v59 }
 0x131   : > { %2024 = vmatpush1.bf16.msra.mxu1 %v2023_v60  ;;  %1990 = vmatprep.subr.bf16.mxu0 %v1989_v61 }
 0x132   : > { %2026 = vmatprep.subr.bf16.mxu1 %v2025_v1 }
 0x134   : > { %1992 = vmatpush1.bf16.msra.mxu0 %v1991_v7 }
 0x135   : > { %2028 = vmatpush1.bf16.msra.mxu1 %v2027_v8  ;;  %1994 = vmatprep.subr.bf16.mxu0 %v1993_v9 }
 0x136   : > { %2030 = vmatprep.subr.bf16.mxu1 %v2029_v13 }
 0x138   : > { %1996 = vmatpush1.bf16.msra.mxu0 %v1995_v19 }
 0x139   : > { %2032 = vmatpush1.bf16.msra.mxu1 %v2031_v20  ;;  %1998 = vmatprep.subr.bf16.mxu0 %v1997_v21 }
 0x13a   : > { %2034 = vmatprep.subr.bf16.mxu1 %v2033_v24 }
 0x13c   : > { %2000 = vmatpush1.bf16.msra.mxu0 %v1999_v27 }
 0x13d   : > { %2036 = vmatpush1.bf16.msra.mxu1 %v2035_v28 }
 0x13f   : > { %1558 = vmatmul.mubr.f32.vlgmr.msra.gmra.mrb[6].mxu0 %v2828_v30 }
 0x140   : > { %1629 = vmatmul.mubr.f32.vlgmr.msra.gmra.mrb[6].mxu1 %v2828_v30 }
 0x1a6   : > { %v1133_v31 = vpop.f32.mrb[0].mxu0 }
 0x1a7   : > { %v1204_v32 = vpop.f32.mrb[0].mxu1  ;;  %v1134_v33 = vadd.f32 %v1133_v31, %v1061_v29  ;;  %v1135_v34 = vpop.f32.mrb[1].mxu0 }
 0x1a8   : > { %v1205_v30 = vadd.f32 %v1204_v32, %v1061_v29  ;;  %v1136_v35 = vadd.f32 %v1135_v34, %v1061_v29  ;;  %v1206_v36 = vpop.f32.mrb[1].mxu1 }
 0x1a9   : > { %v1635_v37 = vmax.f32 %v1134_v33, 0.0  ;;  %v1207_v38 = vadd.f32 %v1206_v36, %v1061_v29 }
 0x1aa   : > { %v1637_v39 = vmax.f32 %v1205_v30, 0.0  ;;  %v1636_v40 = vmax.f32 %v1136_v35, 0.0 }
 0x1ab   : > { %1651 = vst [vmem:[%s3059_s17] sm:$0xff] %v1635_v37  ;;  %v1638_v41 = vmax.f32 %v1207_v38, 0.0 }
 0x1ac   : > { %1653 = vst [vmem:[%s3059_s17 + $0x10] sm:$0xff] %v1637_v39  ;;  %1652 = vst [vmem:[%s3059_s17 + $0x8] sm:$0xff] %v1636_v40 }
 0x1ad   : > { %1654 = vst [vmem:[%s3059_s17 + $0x18] sm:$0xff] %v1638_v41 }
 0x1ca   : > { %v1275_v42 = vpop.f32.mrb[2].mxu0 }
 0x1cb   : > { %v1276_v43 = vadd.f32 %v1275_v42, %v1061_v29  ;;  %v1346_v44 = vpop.f32.mrb[2].mxu1  ;;  %v1277_v45 = vpop.f32.mrb[3].mxu0 }
 0x1cc   : > { %v1347_v46 = vadd.f32 %v1346_v44, %v1061_v29  ;;  %v1278_v47 = vadd.f32 %v1277_v45, %v1061_v29  ;;  %v1348_v48 = vpop.f32.mrb[3].mxu1 }
 0x1cd   : > { %v1639_v49 = vmax.f32 %v1276_v43, 0.0  ;;  %v1349_v50 = vadd.f32 %v1348_v48, %v1061_v29 }
 0x1ce   : > { %v1641_v51 = vmax.f32 %v1347_v46, 0.0  ;;  %v1640_v52 = vmax.f32 %v1278_v47, 0.0 }
 0x1cf   : > { %1655 = vst [vmem:[%s3059_s17 + $0x20] sm:$0xff] %v1639_v49  ;;  %v1642_v53 = vmax.f32 %v1349_v50, 0.0 }
 0x1d0   : > { %1657 = vst [vmem:[%s3059_s17 + $0x30] sm:$0xff] %v1641_v51  ;;  %1656 = vst [vmem:[%s3059_s17 + $0x28] sm:$0xff] %v1640_v52 }
 0x1d1   : > { %1658 = vst [vmem:[%s3059_s17 + $0x38] sm:$0xff] %v1642_v53 }
 0x1ee   : > { %v1417_v54 = vpop.f32.mrb[4].mxu0 }
 0x1ef   : > { %v1418_v55 = vadd.f32 %v1417_v54, %v1061_v29  ;;  %v1488_v56 = vpop.f32.mrb[4].mxu1  ;;  %v1419_v57 = vpop.f32.mrb[5].mxu0 }
 0x1f0   : > { %v1489_v58 = vadd.f32 %v1488_v56, %v1061_v29  ;;  %v1420_v59 = vadd.f32 %v1419_v57, %v1061_v29  ;;  %v1490_v60 = vpop.f32.mrb[5].mxu1 }
 0x1f1   : > { %v1643_v61 = vmax.f32 %v1418_v55, 0.0  ;;  %v1491_v62 = vadd.f32 %v1490_v60, %v1061_v29 }
 0x1f2   : > { %v1645_v63 = vmax.f32 %v1489_v58, 0.0  ;;  %v1644_v0 = vmax.f32 %v1420_v59, 0.0 }
 0x1f3   : > { %1659 = vst [vmem:[%s3059_s17 + $0x40] sm:$0xff] %v1643_v61  ;;  %v1646_v1 = vmax.f32 %v1491_v62, 0.0 }
 0x1f4   : > { %1661 = vst [vmem:[%s3059_s17 + $0x50] sm:$0xff] %v1645_v63  ;;  %1660 = vst [vmem:[%s3059_s17 + $0x48] sm:$0xff] %v1644_v0 }
 0x1f5   : > { %1662 = vst [vmem:[%s3059_s17 + $0x58] sm:$0xff] %v1646_v1 }
 0x212   : > { %v1559_v2 = vpop.f32.mrb[6].mxu0 }
 0x213   : > { %v1560_v3 = vadd.f32 %v1559_v2, %v1061_v29  ;;  %v1630_v4 = vpop.f32.mrb[6].mxu1  ;;  %v1561_v5 = vpop.f32.mrb[7].mxu0 }
 0x214   : > { %v1631_v6 = vadd.f32 %v1630_v4, %v1061_v29  ;;  %v1562_v7 = vadd.f32 %v1561_v5, %v1061_v29  ;;  %v1632_v8 = vpop.f32.mrb[7].mxu1 }
 0x215   : > { %v1647_v9 = vmax.f32 %v1560_v3, 0.0  ;;  %v1633_v10 = vadd.f32 %v1632_v8, %v1061_v29 }
 0x216   : > { %v1649_v11 = vmax.f32 %v1631_v6, 0.0  ;;  %v1648_v12 = vmax.f32 %v1562_v7, 0.0 }
 0x217   : > { %1663 = vst [vmem:[%s3059_s17 + $0x60] sm:$0xff] %v1647_v9  ;;  %v1650_v13 = vmax.f32 %v1633_v10, 0.0 }
 0x218   : > { %1665 = vst [vmem:[%s3059_s17 + $0x70] sm:$0xff] %v1649_v11  ;;  %1664 = vst [vmem:[%s3059_s17 + $0x68] sm:$0xff] %v1648_v12 }
 0x219   : > { %1666 = vst [vmem:[%s3059_s17 + $0x78] sm:$0xff] %v1650_v13 }
 0x21a PF: > { %p10_p9 = scmp.ge.s32.totalorder %s2127_s16, 4   ;;  %s3091_s12 = smov %s2083_s13 }
 0x21b   : > { %s3092_s13 = smov %s2136_s19  ;;  %s3093_s14 = smov %s2127_s16 }
 0x21c   :  { %12 = sbr.rel (!%p10_p9) target bundleno = 2 (0x2), region = 90 }

// kernel: generator_forward.15
= control target key start
LH: loop header
LB: loop body
LE: loop exit
PB: predicated region body
PF: predicated region fallthrough
CT: control target
= control target key end

     0   :  { %s1703_s12 = smov 0   ;;  %s1705_s13 = smov 0   ;;  %s2254_s0 = inlined_call_operand.vmem [shape: f32[3,72], index: 0, kind: input, shape index: {}]   ;;  %s2255_s1 = inlined_call_operand.vmem [shape: f32[72,4096], index: 1, kind: input, shape index: {}]   ;;  %s2256_s2 = inlined_call_operand.vmem [shape: f32[3,1], index: 2, kind: input, shape index: {}]   ;;  %s2257_s3 = inlined_call_operand.vmem [shape: f32[3,4096], index: 3, kind: output, shape index: {}]  }
   0x1   :  { %s1707_s14 = smov 0  }
   0x2 LB: > { %s1400_s15 = sadd.s32 4294967295, %s1679_s14   ;;  %s1720_s16 = sadd.s32 1, %s1679_s14   ;;  %s1679_s14 = sphi %s1707_s14, %s2260_s14   ;;  %s1675_s13 = sphi %s1705_s13, %s2259_s13   ;;  %s1671_s12 = sphi %s1703_s12, %s2258_s12  }
   0x3   : > { %s38_s17 = ssub.s32 %s1679_s14, %s1720_s16  ;;  %s41_s18 = sadd.s32 1, %s1675_s13 }
   0x4   : > { %p39_p0 = scmp.eq.s32.totalorder %s38_s17, 0  ;;  %p48_p1 = scmp.ne.s32.totalorder %s1675_s13, %s1671_s12 }
   0x5   : > { %p49_p2 = scmp.eq.s32.totalorder %s1679_s14, 0  ;;  %p1403_p4 = scmp.ge.s32.totalorder %s1679_s14, 2 }
   0x6   : > { %s1729_s19 = scalar_select %p39_p0, %s1675_s13, %s41_s18  }
   0x7   : > { %p50_p3 = por %p49_p2, %p48_p1  ;;  %127 = sbr.rel (%p1403_p4) target bundleno = 91 (0x5b), region = 24 }
   0xe   : > { %130 = sbr.rel (!%p50_p3) target bundleno = 91 (0x5b), region = 28  ;;  %s132_s20 = sand.u32 (%p50_p3), 1, %s1675_s13  }
   0xf   : > { %s1435_s21 = sshll.u32 (%p50_p3), %s1679_s14, 7  ;;  %s1564_s22 = smul.u32 (%p50_p3), 1152, %s132_s20 }
  0x10   : > { %s1737_s25 = scalar_lea.vmem (%p50_p3), %s2255_s1, %s1435_s21 }
  0x11   : > { %v150_v0 = vld [vmem:[%s1737_s25] sm:$0xff] (%p50_p3)  ;;  %v152_v1 = vld [vmem:[%s1737_s25 + $0x8] sm:$0xff] (%p50_p3)  ;;  %v154_v2 = vld [vmem:[%s1737_s25 + $0x10] sm:$0xff] (%p50_p3)  ;;  %s1745_s26 = scalar_lea.vmem (%p50_p3), [#allocation2], %s1564_s22 }
  0x12   : > { %v156_v3 = vld [vmem:[%s1737_s25 + $0x18] sm:$0xff] (%p50_p3)  ;;  %v158_v4 = vld [vmem:[%s1737_s25 + $0x20] sm:$0xff] (%p50_p3)  ;;  %v160_v5 = vld [vmem:[%s1737_s25 + $0x28] sm:$0xff] (%p50_p3)  ;;  %151 = vst [vmem:[%s1745_s26] sm:$0xff] (%p50_p3), %v150_v0 }
  0x13   : > { %153 = vst [vmem:[%s1745_s26 + $0x8] sm:$0xff] (%p50_p3), %v152_v1  ;;  %155 = vst [vmem:[%s1745_s26 + $0x10] sm:$0xff] (%p50_p3), %v154_v2  ;;  %v162_v6 = vld [vmem:[%s1737_s25 + $0x30] sm:$0xff] (%p50_p3)  ;;  %v164_v7 = vld [vmem:[%s1737_s25 + $0x38] sm:$0xff] (%p50_p3) }
  0x14   : > { %157 = vst [vmem:[%s1745_s26 + $0x18] sm:$0xff] (%p50_p3), %v156_v3  ;;  %159 = vst [vmem:[%s1745_s26 + $0x20] sm:$0xff] (%p50_p3), %v158_v4  ;;  %v166_v8 = vld [vmem:[%s1737_s25 + $0x40] sm:$0xff] (%p50_p3)  ;;  %v168_v9 = vld [vmem:[%s1737_s25 + $0x48] sm:$0xff] (%p50_p3) }
  0x15   : > { %161 = vst [vmem:[%s1745_s26 + $0x28] sm:$0xff] %v160_v5  ;;  %163 = vst [vmem:[%s1745_s26 + $0x30] sm:$0xff] %v162_v6  ;;  %v170_v10 = vld [vmem:[%s1737_s25 + $0x50] sm:$0xff]  ;;  %v172_v11 = vld [vmem:[%s1737_s25 + $0x58] sm:$0xff] }
  0x16   : > { %165 = vst [vmem:[%s1745_s26 + $0x38] sm:$0xff] %v164_v7  ;;  %167 = vst [vmem:[%s1745_s26 + $0x40] sm:$0xff] %v166_v8  ;;  %v174_v12 = vld [vmem:[%s1737_s25 + $0x60] sm:$0xff]  ;;  %v176_v13 = vld [vmem:[%s1737_s25 + $0x68] sm:$0xff] }
  0x17   : > { %169 = vst [vmem:[%s1745_s26 + $0x48] sm:$0xff] %v168_v9  ;;  %171 = vst [vmem:[%s1745_s26 + $0x50] sm:$0xff] %v170_v10  ;;  %v178_v14 = vld [vmem:[%s1737_s25 + $0x70] sm:$0xff]  ;;  %v180_v15 = vld [vmem:[%s1737_s25 + $0x78] sm:$0xff] }
  0x18   : > { %173 = vst [vmem:[%s1745_s26 + $0x58] sm:$0xff] %v172_v11  ;;  %175 = vst [vmem:[%s1745_s26 + $0x60] sm:$0xff] %v174_v12  ;;  %v182_v16 = vld [vmem:[%s1737_s25 + $0x100] sm:$0xff]  ;;  %v184_v17 = vld [vmem:[%s1737_s25 + $0x108] sm:$0xff] }
  0x19   : > { %177 = vst [vmem:[%s1745_s26 + $0x68] sm:$0xff] %v176_v13  ;;  %179 = vst [vmem:[%s1745_s26 + $0x70] sm:$0xff] %v178_v14  ;;  %v186_v18 = vld [vmem:[%s1737_s25 + $0x110] sm:$0xff]  ;;  %v188_v19 = vld [vmem:[%s1737_s25 + $0x118] sm:$0xff] }
  0x1a   : > { %181 = vst [vmem:[%s1745_s26 + $0x78] sm:$0xff] %v180_v15  ;;  %183 = vst [vmem:[%s1745_s26 + $0x80] sm:$0xff] %v182_v16  ;;  %v190_v20 = vld [vmem:[%s1737_s25 + $0x120] sm:$0xff]  ;;  %v192_v21 = vld [vmem:[%s1737_s25 + $0x128] sm:$0xff] }
  0x1b   : > { %185 = vst [vmem:[%s1745_s26 + $0x88] sm:$0xff] %v184_v17  ;;  %187 = vst [vmem:[%s1745_s26 + $0x90] sm:$0xff] %v186_v18  ;;  %v194_v22 = vld [vmem:[%s1737_s25 + $0x130] sm:$0xff]  ;;  %v196_v23 = vld [vmem:[%s1737_s25 + $0x138] sm:$0xff] }
  0x1c   : > { %189 = vst [vmem:[%s1745_s26 + $0x98] sm:$0xff] %v188_v19  ;;  %191 = vst [vmem:[%s1745_s26 + $0xa0] sm:$0xff] %v190_v20  ;;  %v198_v24 = vld [vmem:[%s1737_s25 + $0x140] sm:$0xff]  ;;  %v200_v25 = vld [vmem:[%s1737_s25 + $0x148] sm:$0xff] }
  0x1d   : > { %193 = vst [vmem:[%s1745_s26 + $0xa8] sm:$0xff] %v192_v21  ;;  %195 = vst [vmem:[%s1745_s26 + $0xb0] sm:$0xff] %v194_v22  ;;  %v202_v26 = vld [vmem:[%s1737_s25 + $0x150] sm:$0xff]  ;;  %v204_v27 = vld [vmem:[%s1737_s25 + $0x158] sm:$0xff] }
  0x1e   : > { %197 = vst [vmem:[%s1745_s26 + $0xb8] sm:$0xff] %v196_v23  ;;  %199 = vst [vmem:[%s1745_s26 + $0xc0] sm:$0xff] %v198_v24  ;;  %v206_v28 = vld [vmem:[%s1737_s25 + $0x160] sm:$0xff]  ;;  %v208_v29 = vld [vmem:[%s1737_s25 + $0x168] sm:$0xff] }
  0x1f   : > { %201 = vst [vmem:[%s1745_s26 + $0xc8] sm:$0xff] %v200_v25  ;;  %203 = vst [vmem:[%s1745_s26 + $0xd0] sm:$0xff] %v202_v26  ;;  %v210_v30 = vld [vmem:[%s1737_s25 + $0x170] sm:$0xff]  ;;  %v212_v31 = vld [vmem:[%s1737_s25 + $0x178] sm:$0xff] }
  0x20   : > { %205 = vst [vmem:[%s1745_s26 + $0xd8] sm:$0xff] %v204_v27  ;;  %207 = vst [vmem:[%s1745_s26 + $0xe0] sm:$0xff] %v206_v28  ;;  %v214_v32 = vld [vmem:[%s1737_s25 + $0x200] sm:$0xff]  ;;  %v216_v33 = vld [vmem:[%s1737_s25 + $0x208] sm:$0xff] }
  0x21   : > { %209 = vst [vmem:[%s1745_s26 + $0xe8] sm:$0xff] %v208_v29  ;;  %211 = vst [vmem:[%s1745_s26 + $0xf0] sm:$0xff] %v210_v30  ;;  %v218_v34 = vld [vmem:[%s1737_s25 + $0x210] sm:$0xff]  ;;  %v220_v35 = vld [vmem:[%s1737_s25 + $0x218] sm:$0xff] }
  0x22   : > { %213 = vst [vmem:[%s1745_s26 + $0xf8] sm:$0xff] %v212_v31  ;;  %215 = vst [vmem:[%s1745_s26 + $0x100] sm:$0xff] %v214_v32  ;;  %v222_v36 = vld [vmem:[%s1737_s25 + $0x220] sm:$0xff]  ;;  %v224_v37 = vld [vmem:[%s1737_s25 + $0x228] sm:$0xff] }
  0x23   : > { %217 = vst [vmem:[%s1745_s26 + $0x108] sm:$0xff] %v216_v33  ;;  %219 = vst [vmem:[%s1745_s26 + $0x110] sm:$0xff] %v218_v34  ;;  %v226_v38 = vld [vmem:[%s1737_s25 + $0x230] sm:$0xff]  ;;  %v228_v39 = vld [vmem:[%s1737_s25 + $0x238] sm:$0xff] }
  0x24   : > { %221 = vst [vmem:[%s1745_s26 + $0x118] sm:$0xff] %v220_v35  ;;  %223 = vst [vmem:[%s1745_s26 + $0x120] sm:$0xff] %v222_v36  ;;  %v230_v40 = vld [vmem:[%s1737_s25 + $0x240] sm:$0xff]  ;;  %v232_v41 = vld [vmem:[%s1737_s25 + $0x248] sm:$0xff] }
  0x25   : > { %225 = vst [vmem:[%s1745_s26 + $0x128] sm:$0xff] %v224_v37  ;;  %227 = vst [vmem:[%s1745_s26 + $0x130] sm:$0xff] %v226_v38  ;;  %v234_v42 = vld [vmem:[%s1737_s25 + $0x250] sm:$0xff]  ;;  %v236_v43 = vld [vmem:[%s1737_s25 + $0x258] sm:$0xff] }
  0x26   : > { %229 = vst [vmem:[%s1745_s26 + $0x138] sm:$0xff] %v228_v39  ;;  %231 = vst [vmem:[%s1745_s26 + $0x140] sm:$0xff] %v230_v40  ;;  %v238_v44 = vld [vmem:[%s1737_s25 + $0x260] sm:$0xff]  ;;  %v240_v45 = vld [vmem:[%s1737_s25 + $0x268] sm:$0xff] }
  0x27   : > { %233 = vst [vmem:[%s1745_s26 + $0x148] sm:$0xff] %v232_v41  ;;  %235 = vst [vmem:[%s1745_s26 + $0x150] sm:$0xff] %v234_v42  ;;  %v242_v46 = vld [vmem:[%s1737_s25 + $0x270] sm:$0xff]  ;;  %v244_v47 = vld [vmem:[%s1737_s25 + $0x278] sm:$0xff] }
  0x28   : > { %237 = vst [vmem:[%s1745_s26 + $0x158] sm:$0xff] %v236_v43  ;;  %239 = vst [vmem:[%s1745_s26 + $0x160] sm:$0xff] %v238_v44  ;;  %v246_v48 = vld [vmem:[%s1737_s25 + $0x300] sm:$0xff]  ;;  %v248_v49 = vld [vmem:[%s1737_s25 + $0x308] sm:$0xff] }
  0x29   : > { %241 = vst [vmem:[%s1745_s26 + $0x168] sm:$0xff] %v240_v45  ;;  %243 = vst [vmem:[%s1745_s26 + $0x170] sm:$0xff] %v242_v46  ;;  %v250_v50 = vld [vmem:[%s1737_s25 + $0x310] sm:$0xff]  ;;  %v252_v51 = vld [vmem:[%s1737_s25 + $0x318] sm:$0xff] }
  0x2a   : > { %245 = vst [vmem:[%s1745_s26 + $0x178] sm:$0xff] %v244_v47  ;;  %247 = vst [vmem:[%s1745_s26 + $0x180] sm:$0xff] %v246_v48  ;;  %v254_v52 = vld [vmem:[%s1737_s25 + $0x320] sm:$0xff]  ;;  %v256_v53 = vld [vmem:[%s1737_s25 + $0x328] sm:$0xff] }
  0x2b   : > { %249 = vst [vmem:[%s1745_s26 + $0x188] sm:$0xff] %v248_v49  ;;  %251 = vst [vmem:[%s1745_s26 + $0x190] sm:$0xff] %v250_v50  ;;  %v258_v54 = vld [vmem:[%s1737_s25 + $0x330] sm:$0xff]  ;;  %v260_v55 = vld [vmem:[%s1737_s25 + $0x338] sm:$0xff] }
  0x2c   : > { %253 = vst [vmem:[%s1745_s26 + $0x198] sm:$0xff] %v252_v51  ;;  %255 = vst [vmem:[%s1745_s26 + $0x1a0] sm:$0xff] %v254_v52  ;;  %v262_v56 = vld [vmem:[%s1737_s25 + $0x340] sm:$0xff]  ;;  %v264_v57 = vld [vmem:[%s1737_s25 + $0x348] sm:$0xff] }
  0x2d   : > { %257 = vst [vmem:[%s1745_s26 + $0x1a8] sm:$0xff] %v256_v53  ;;  %259 = vst [vmem:[%s1745_s26 + $0x1b0] sm:$0xff] %v258_v54  ;;  %v266_v58 = vld [vmem:[%s1737_s25 + $0x350] sm:$0xff]  ;;  %v268_v59 = vld [vmem:[%s1737_s25 + $0x358] sm:$0xff] }
  0x2e   : > { %261 = vst [vmem:[%s1745_s26 + $0x1b8] sm:$0xff] %v260_v55  ;;  %263 = vst [vmem:[%s1745_s26 + $0x1c0] sm:$0xff] %v262_v56  ;;  %v270_v60 = vld [vmem:[%s1737_s25 + $0x360] sm:$0xff]  ;;  %v272_v61 = vld [vmem:[%s1737_s25 + $0x368] sm:$0xff] }
  0x2f   : > { %265 = vst [vmem:[%s1745_s26 + $0x1c8] sm:$0xff] %v264_v57  ;;  %267 = vst [vmem:[%s1745_s26 + $0x1d0] sm:$0xff] %v266_v58  ;;  %v274_v62 = vld [vmem:[%s1737_s25 + $0x370] sm:$0xff]  ;;  %v276_v63 = vld [vmem:[%s1737_s25 + $0x378] sm:$0xff] }
  0x30   : > { %269 = vst [vmem:[%s1745_s26 + $0x1d8] sm:$0xff] %v268_v59  ;;  %271 = vst [vmem:[%s1745_s26 + $0x1e0] sm:$0xff] %v270_v60  ;;  %v278_v0 = vld [vmem:[%s1737_s25 + $0x400] sm:$0xff]  ;;  %v280_v1 = vld [vmem:[%s1737_s25 + $0x408] sm:$0xff] }
  0x31   : > { %273 = vst [vmem:[%s1745_s26 + $0x1e8] sm:$0xff] %v272_v61  ;;  %275 = vst [vmem:[%s1745_s26 + $0x1f0] sm:$0xff] %v274_v62  ;;  %v282_v2 = vld [vmem:[%s1737_s25 + $0x410] sm:$0xff]  ;;  %v284_v3 = vld [vmem:[%s1737_s25 + $0x418] sm:$0xff] }
  0x32   : > { %277 = vst [vmem:[%s1745_s26 + $0x1f8] sm:$0xff] %v276_v63  ;;  %279 = vst [vmem:[%s1745_s26 + $0x200] sm:$0xff] %v278_v0  ;;  %v286_v4 = vld [vmem:[%s1737_s25 + $0x420] sm:$0xff]  ;;  %v288_v5 = vld [vmem:[%s1737_s25 + $0x428] sm:$0xff] }
  0x33   : > { %281 = vst [vmem:[%s1745_s26 + $0x208] sm:$0xff] %v280_v1  ;;  %283 = vst [vmem:[%s1745_s26 + $0x210] sm:$0xff] %v282_v2  ;;  %v290_v6 = vld [vmem:[%s1737_s25 + $0x430] sm:$0xff]  ;;  %v292_v7 = vld [vmem:[%s1737_s25 + $0x438] sm:$0xff] }
  0x34   : > { %285 = vst [vmem:[%s1745_s26 + $0x218] sm:$0xff] %v284_v3  ;;  %287 = vst [vmem:[%s1745_s26 + $0x220] sm:$0xff] %v286_v4  ;;  %v294_v8 = vld [vmem:[%s1737_s25 + $0x440] sm:$0xff]  ;;  %v296_v9 = vld [vmem:[%s1737_s25 + $0x448] sm:$0xff] }
  0x35   : > { %289 = vst [vmem:[%s1745_s26 + $0x228] sm:$0xff] %v288_v5  ;;  %291 = vst [vmem:[%s1745_s26 + $0x230] sm:$0xff] %v290_v6  ;;  %v298_v10 = vld [vmem:[%s1737_s25 + $0x450] sm:$0xff]  ;;  %v300_v11 = vld [vmem:[%s1737_s25 + $0x458] sm:$0xff] }
  0x36   : > { %293 = vst [vmem:[%s1745_s26 + $0x238] sm:$0xff] %v292_v7  ;;  %295 = vst [vmem:[%s1745_s26 + $0x240] sm:$0xff] %v294_v8  ;;  %v302_v12 = vld [vmem:[%s1737_s25 + $0x460] sm:$0xff]  ;;  %v304_v13 = vld [vmem:[%s1737_s25 + $0x468] sm:$0xff] }
  0x37   : > { %297 = vst [vmem:[%s1745_s26 + $0x248] sm:$0xff] %v296_v9  ;;  %299 = vst [vmem:[%s1745_s26 + $0x250] sm:$0xff] %v298_v10  ;;  %v306_v14 = vld [vmem:[%s1737_s25 + $0x470] sm:$0xff]  ;;  %v308_v15 = vld [vmem:[%s1737_s25 + $0x478] sm:$0xff] }
  0x38   : > { %301 = vst [vmem:[%s1745_s26 + $0x258] sm:$0xff] %v300_v11  ;;  %303 = vst [vmem:[%s1745_s26 + $0x260] sm:$0xff] %v302_v12  ;;  %v310_v16 = vld [vmem:[%s1737_s25 + $0x500] sm:$0xff]  ;;  %v312_v17 = vld [vmem:[%s1737_s25 + $0x508] sm:$0xff] }
  0x39   : > { %305 = vst [vmem:[%s1745_s26 + $0x268] sm:$0xff] %v304_v13  ;;  %307 = vst [vmem:[%s1745_s26 + $0x270] sm:$0xff] %v306_v14  ;;  %v314_v18 = vld [vmem:[%s1737_s25 + $0x510] sm:$0xff]  ;;  %v316_v19 = vld [vmem:[%s1737_s25 + $0x518] sm:$0xff] }
  0x3a   : > { %309 = vst [vmem:[%s1745_s26 + $0x278] sm:$0xff] %v308_v15  ;;  %311 = vst [vmem:[%s1745_s26 + $0x280] sm:$0xff] %v310_v16  ;;  %v318_v20 = vld [vmem:[%s1737_s25 + $0x520] sm:$0xff]  ;;  %v320_v21 = vld [vmem:[%s1737_s25 + $0x528] sm:$0xff] }
  0x3b   : > { %313 = vst [vmem:[%s1745_s26 + $0x288] sm:$0xff] %v312_v17  ;;  %315 = vst [vmem:[%s1745_s26 + $0x290] sm:$0xff] %v314_v18  ;;  %v322_v22 = vld [vmem:[%s1737_s25 + $0x530] sm:$0xff]  ;;  %v324_v23 = vld [vmem:[%s1737_s25 + $0x538] sm:$0xff] }
  0x3c   : > { %317 = vst [vmem:[%s1745_s26 + $0x298] sm:$0xff] %v316_v19  ;;  %319 = vst [vmem:[%s1745_s26 + $0x2a0] sm:$0xff] %v318_v20  ;;  %v326_v24 = vld [vmem:[%s1737_s25 + $0x540] sm:$0xff]  ;;  %v328_v25 = vld [vmem:[%s1737_s25 + $0x548] sm:$0xff] }
  0x3d   : > { %321 = vst [vmem:[%s1745_s26 + $0x2a8] sm:$0xff] %v320_v21  ;;  %323 = vst [vmem:[%s1745_s26 + $0x2b0] sm:$0xff] %v322_v22  ;;  %v330_v26 = vld [vmem:[%s1737_s25 + $0x550] sm:$0xff]  ;;  %v332_v27 = vld [vmem:[%s1737_s25 + $0x558] sm:$0xff] }
  0x3e   : > { %325 = vst [vmem:[%s1745_s26 + $0x2b8] sm:$0xff] %v324_v23  ;;  %327 = vst [vmem:[%s1745_s26 + $0x2c0] sm:$0xff] %v326_v24  ;;  %v334_v28 = vld [vmem:[%s1737_s25 + $0x560] sm:$0xff]  ;;  %v336_v29 = vld [vmem:[%s1737_s25 + $0x568] sm:$0xff] }
  0x3f   : > { %329 = vst [vmem:[%s1745_s26 + $0x2c8] sm:$0xff] %v328_v25  ;;  %331 = vst [vmem:[%s1745_s26 + $0x2d0] sm:$0xff] %v330_v26  ;;  %v338_v30 = vld [vmem:[%s1737_s25 + $0x570] sm:$0xff]  ;;  %v340_v31 = vld [vmem:[%s1737_s25 + $0x578] sm:$0xff] }
  0x40   : > { %333 = vst [vmem:[%s1745_s26 + $0x2d8] sm:$0xff] %v332_v27  ;;  %335 = vst [vmem:[%s1745_s26 + $0x2e0] sm:$0xff] %v334_v28  ;;  %v342_v32 = vld [vmem:[%s1737_s25 + $0x600] sm:$0xff]  ;;  %v344_v33 = vld [vmem:[%s1737_s25 + $0x608] sm:$0xff] }
  0x41   : > { %337 = vst [vmem:[%s1745_s26 + $0x2e8] sm:$0xff] %v336_v29  ;;  %339 = vst [vmem:[%s1745_s26 + $0x2f0] sm:$0xff] %v338_v30  ;;  %v346_v34 = vld [vmem:[%s1737_s25 + $0x610] sm:$0xff]  ;;  %v348_v35 = vld [vmem:[%s1737_s25 + $0x618] sm:$0xff] }
  0x42   : > { %341 = vst [vmem:[%s1745_s26 + $0x2f8] sm:$0xff] %v340_v31  ;;  %343 = vst [vmem:[%s1745_s26 + $0x300] sm:$0xff] %v342_v32  ;;  %v350_v36 = vld [vmem:[%s1737_s25 + $0x620] sm:$0xff]  ;;  %v352_v37 = vld [vmem:[%s1737_s25 + $0x628] sm:$0xff] }
  0x43   : > { %345 = vst [vmem:[%s1745_s26 + $0x308] sm:$0xff] %v344_v33  ;;  %347 = vst [vmem:[%s1745_s26 + $0x310] sm:$0xff] %v346_v34  ;;  %v354_v38 = vld [vmem:[%s1737_s25 + $0x630] sm:$0xff]  ;;  %v356_v39 = vld [vmem:[%s1737_s25 + $0x638] sm:$0xff] }
  0x44   : > { %349 = vst [vmem:[%s1745_s26 + $0x318] sm:$0xff] %v348_v35  ;;  %351 = vst [vmem:[%s1745_s26 + $0x320] sm:$0xff] %v350_v36  ;;  %v358_v40 = vld [vmem:[%s1737_s25 + $0x640] sm:$0xff]  ;;  %v360_v41 = vld [vmem:[%s1737_s25 + $0x648] sm:$0xff] }
  0x45   : > { %353 = vst [vmem:[%s1745_s26 + $0x328] sm:$0xff] %v352_v37  ;;  %355 = vst [vmem:[%s1745_s26 + $0x330] sm:$0xff] %v354_v38  ;;  %v362_v42 = vld [vmem:[%s1737_s25 + $0x650] sm:$0xff]  ;;  %v364_v43 = vld [vmem:[%s1737_s25 + $0x658] sm:$0xff] }
  0x46   : > { %357 = vst [vmem:[%s1745_s26 + $0x338] sm:$0xff] %v356_v39  ;;  %359 = vst [vmem:[%s1745_s26 + $0x340] sm:$0xff] %v358_v40  ;;  %v366_v44 = vld [vmem:[%s1737_s25 + $0x660] sm:$0xff]  ;;  %v368_v45 = vld [vmem:[%s1737_s25 + $0x668] sm:$0xff] }
  0x47   : > { %361 = vst [vmem:[%s1745_s26 + $0x348] sm:$0xff] %v360_v41  ;;  %363 = vst [vmem:[%s1745_s26 + $0x350] sm:$0xff] %v362_v42  ;;  %v370_v46 = vld [vmem:[%s1737_s25 + $0x670] sm:$0xff]  ;;  %v372_v47 = vld [vmem:[%s1737_s25 + $0x678] sm:$0xff] }
  0x48   : > { %365 = vst [vmem:[%s1745_s26 + $0x358] sm:$0xff] %v364_v43  ;;  %367 = vst [vmem:[%s1745_s26 + $0x360] sm:$0xff] %v366_v44  ;;  %v374_v48 = vld [vmem:[%s1737_s25 + $0x700] sm:$0xff]  ;;  %v376_v49 = vld [vmem:[%s1737_s25 + $0x708] sm:$0xff] }
  0x49   : > { %369 = vst [vmem:[%s1745_s26 + $0x368] sm:$0xff] %v368_v45  ;;  %371 = vst [vmem:[%s1745_s26 + $0x370] sm:$0xff] %v370_v46  ;;  %v378_v50 = vld [vmem:[%s1737_s25 + $0x710] sm:$0xff]  ;;  %v380_v51 = vld [vmem:[%s1737_s25 + $0x718] sm:$0xff] }
  0x4a   : > { %373 = vst [vmem:[%s1745_s26 + $0x378] sm:$0xff] %v372_v47  ;;  %375 = vst [vmem:[%s1745_s26 + $0x380] sm:$0xff] %v374_v48  ;;  %v382_v52 = vld [vmem:[%s1737_s25 + $0x720] sm:$0xff]  ;;  %v384_v53 = vld [vmem:[%s1737_s25 + $0x728] sm:$0xff] }
  0x4b   : > { %377 = vst [vmem:[%s1745_s26 + $0x388] sm:$0xff] %v376_v49  ;;  %379 = vst [vmem:[%s1745_s26 + $0x390] sm:$0xff] %v378_v50  ;;  %v386_v54 = vld [vmem:[%s1737_s25 + $0x730] sm:$0xff]  ;;  %v388_v55 = vld [vmem:[%s1737_s25 + $0x738] sm:$0xff] }
  0x4c   : > { %381 = vst [vmem:[%s1745_s26 + $0x398] sm:$0xff] %v380_v51  ;;  %383 = vst [vmem:[%s1745_s26 + $0x3a0] sm:$0xff] %v382_v52  ;;  %v390_v56 = vld [vmem:[%s1737_s25 + $0x740] sm:$0xff]  ;;  %v392_v57 = vld [vmem:[%s1737_s25 + $0x748] sm:$0xff] }
  0x4d   : > { %385 = vst [vmem:[%s1745_s26 + $0x3a8] sm:$0xff] %v384_v53  ;;  %387 = vst [vmem:[%s1745_s26 + $0x3b0] sm:$0xff] %v386_v54  ;;  %v394_v58 = vld [vmem:[%s1737_s25 + $0x750] sm:$0xff]  ;;  %v396_v59 = vld [vmem:[%s1737_s25 + $0x758] sm:$0xff] }
  0x4e   : > { %389 = vst [vmem:[%s1745_s26 + $0x3b8] sm:$0xff] %v388_v55  ;;  %391 = vst [vmem:[%s1745_s26 + $0x3c0] sm:$0xff] %v390_v56  ;;  %v398_v60 = vld [vmem:[%s1737_s25 + $0x760] sm:$0xff]  ;;  %v400_v61 = vld [vmem:[%s1737_s25 + $0x768] sm:$0xff] }
  0x4f   : > { %393 = vst [vmem:[%s1745_s26 + $0x3c8] sm:$0xff] %v392_v57  ;;  %395 = vst [vmem:[%s1745_s26 + $0x3d0] sm:$0xff] %v394_v58  ;;  %v402_v62 = vld [vmem:[%s1737_s25 + $0x770] sm:$0xff]  ;;  %v404_v63 = vld [vmem:[%s1737_s25 + $0x778] sm:$0xff] }
  0x50   : > { %397 = vst [vmem:[%s1745_s26 + $0x3d8] sm:$0xff] %v396_v59  ;;  %399 = vst [vmem:[%s1745_s26 + $0x3e0] sm:$0xff] %v398_v60  ;;  %v406_v0 = vld [vmem:[%s1737_s25 + $0x800] sm:$0xff]  ;;  %v408_v1 = vld [vmem:[%s1737_s25 + $0x808] sm:$0xff] }
  0x51   : > { %401 = vst [vmem:[%s1745_s26 + $0x3e8] sm:$0xff] %v400_v61  ;;  %403 = vst [vmem:[%s1745_s26 + $0x3f0] sm:$0xff] %v402_v62  ;;  %v410_v2 = vld [vmem:[%s1737_s25 + $0x810] sm:$0xff]  ;;  %v412_v3 = vld [vmem:[%s1737_s25 + $0x818] sm:$0xff] }
  0x52   : > { %405 = vst [vmem:[%s1745_s26 + $0x3f8] sm:$0xff] %v404_v63  ;;  %407 = vst [vmem:[%s1745_s26 + $0x400] sm:$0xff] %v406_v0  ;;  %v414_v4 = vld [vmem:[%s1737_s25 + $0x820] sm:$0xff]  ;;  %v416_v5 = vld [vmem:[%s1737_s25 + $0x828] sm:$0xff] }
  0x53   : > { %409 = vst [vmem:[%s1745_s26 + $0x408] sm:$0xff] %v408_v1  ;;  %411 = vst [vmem:[%s1745_s26 + $0x410] sm:$0xff] %v410_v2  ;;  %v418_v6 = vld [vmem:[%s1737_s25 + $0x830] sm:$0xff]  ;;  %v420_v7 = vld [vmem:[%s1737_s25 + $0x838] sm:$0xff] }
  0x54   : > { %413 = vst [vmem:[%s1745_s26 + $0x418] sm:$0xff] %v412_v3  ;;  %415 = vst [vmem:[%s1745_s26 + $0x420] sm:$0xff] %v414_v4  ;;  %v422_v8 = vld [vmem:[%s1737_s25 + $0x840] sm:$0xff]  ;;  %v424_v9 = vld [vmem:[%s1737_s25 + $0x848] sm:$0xff] }
  0x55   : > { %417 = vst [vmem:[%s1745_s26 + $0x428] sm:$0xff] %v416_v5  ;;  %419 = vst [vmem:[%s1745_s26 + $0x430] sm:$0xff] %v418_v6  ;;  %v426_v10 = vld [vmem:[%s1737_s25 + $0x850] sm:$0xff]  ;;  %v428_v11 = vld [vmem:[%s1737_s25 + $0x858] sm:$0xff] }
  0x56   : > { %421 = vst [vmem:[%s1745_s26 + $0x438] sm:$0xff] %v420_v7  ;;  %423 = vst [vmem:[%s1745_s26 + $0x440] sm:$0xff] %v422_v8  ;;  %v430_v12 = vld [vmem:[%s1737_s25 + $0x860] sm:$0xff]  ;;  %v432_v13 = vld [vmem:[%s1737_s25 + $0x868] sm:$0xff] }
  0x57   : > { %425 = vst [vmem:[%s1745_s26 + $0x448] sm:$0xff] %v424_v9  ;;  %427 = vst [vmem:[%s1745_s26 + $0x450] sm:$0xff] %v426_v10  ;;  %v434_v14 = vld [vmem:[%s1737_s25 + $0x870] sm:$0xff]  ;;  %v436_v15 = vld [vmem:[%s1737_s25 + $0x878] sm:$0xff] }
  0x58   : > { %429 = vst [vmem:[%s1745_s26 + $0x458] sm:$0xff] %v428_v11  ;;  %431 = vst [vmem:[%s1745_s26 + $0x460] sm:$0xff] %v430_v12 }
  0x59   : > { %433 = vst [vmem:[%s1745_s26 + $0x468] sm:$0xff] %v432_v13  ;;  %435 = vst [vmem:[%s1745_s26 + $0x470] sm:$0xff] %v434_v14 }
  0x5a   : > { %437 = vst [vmem:[%s1745_s26 + $0x478] sm:$0xff] %v436_v15 }
  0x5b PF: > { %p1406_p5 = scmp.ge.s32.totalorder %s1679_s14, 1  ;;  %p442_p6 = scmp.lt.s32.totalorder %s1679_s14, 3 }
  0x5d   : > { %p443_p7 = pnand %p1406_p5, %p442_p6 }
  0x5e   : > { %s449_s27 = sand.u32 (!%p443_p7), 1, %s1671_s12   ;;  %v1681_v16 = vmov (!%p443_p7), 0.0   ;;  %v624_v17 = vld [vmem:[%s2256_s2] sm:$0x7] (!%p443_p7)  ;;  %v1682_v18 = vmov (!%p443_p7), 0   ;;  %vm630_vm0 = vcmask (!%p443_p7), 588800  }
  0x5f   : > { %446 = sbr.rel (%p443_p7) target bundleno = 424 (0x1a8), region = 51  ;;  %698 = vmatprep.mubr.f32.mxu0 (!%p443_p7), %v1681_v16  ;;  %769 = vmatprep.mubr.f32.mxu1 (!%p443_p7), %v1681_v16  ;;  %v2081_v10 = vld [vmem:[%s2254_s0] sm:$0x7] (!%p443_p7)  ;;  %s1407_s7 = sshll.u32 (!%p443_p7), %s1400_s15, 4 }
  0x60   : > { %s1565_s28 = smul.u32 (!%p443_p7), 1152, %s449_s27  ;;  %1592 = vset.pattern.permute.xlu0 (!%p443_p7), %v1682_v18  ;;  %p474_p8 = scmp.lt.s32.totalorder (!%p443_p7), %s1407_s7, 31 }
  0x61   : > { %627 = vperm.xlu0 (!%p443_p7), %1592, %v624_v17  }
  0x62   : > { %s2037_s4 = scalar_lea.vmem (!%p443_p7), [#allocation2], %s1565_s28 }
  0x63   : > { %v481_v19 = vld [vmem:[%s2037_s4 + $0x8] sm:$0xff] (!%p443_p7)  ;;  %v483_v21 = vld [vmem:[%s2037_s4 + $0x18] sm:$0xff] (!%p443_p7)  ;;  %v480_v24 = vld [vmem:[%s2037_s4] sm:$0xff] (!%p443_p7) }
  0x64   : > { %v497_v20 = vld [vmem:[%s2037_s4 + $0x88] sm:$0xff] (!%p443_p7)  ;;  %v499_v23 = vld [vmem:[%s2037_s4 + $0x98] sm:$0xff] (!%p443_p7)  ;;  %v496_v25 = vld [vmem:[%s2037_s4 + $0x80] sm:$0xff] (!%p443_p7) }
  0x65   : > { %v1436_v22 = vpack.c.bf16 (!%p443_p7), %v497_v20, %v481_v19  ;;  %v1452_v26 = vpack.c.bf16 (!%p443_p7), %v499_v23, %v483_v21  ;;  %v1438_v27 = vpack.c.bf16 (!%p443_p7), %v496_v25, %v480_v24  ;;  %v482_v28 = vld [vmem:[%s2037_s4 + $0x10] sm:$0xff] (!%p443_p7)  ;;  %v513_v30 = vld [vmem:[%s2037_s4 + $0x108] sm:$0xff] (!%p443_p7)  ;;  %v515_v33 = vld [vmem:[%s2037_s4 + $0x118] sm:$0xff] (!%p443_p7) }
  0x66   : > { %v498_v29 = vld [vmem:[%s2037_s4 + $0x90] sm:$0xff]  ;;  %v529_v32 = vld [vmem:[%s2037_s4 + $0x188] sm:$0xff]  ;;  %v531_v34 = vld [vmem:[%s2037_s4 + $0x198] sm:$0xff]  ;;  %s2262_s7 = smov (!%p474_p8, %s1407_s7), 31 }
  0x67   : > { %1437 = vmatprep.subr.bf16.mxu0 %v1436_v22  ;;  %v1454_v31 = vpack.c.bf16 %v498_v29, %v482_v28  ;;  %1453 = vmatprep.subr.bf16.mxu1 %v1452_v26  ;;  %v1440_v35 = vpack.c.bf16 %v529_v32, %v513_v30  ;;  %v1456_v36 = vpack.c.bf16 %v531_v34, %v515_v33  ;;  %v512_v37 = vld [vmem:[%s2037_s4 + $0x100] sm:$0xff]  ;;  %v514_v39 = vld [vmem:[%s2037_s4 + $0x110] sm:$0xff]  ;;  %v545_v42 = vld [vmem:[%s2037_s4 + $0x208] sm:$0xff]  ;;  %s1408_s8 = sshll.u32 %s2262_s7, 2 }
  0x68   : > { %1439 = vmatpush1.bf16.msra.mxu0 %v1438_v27  ;;  %v528_v38 = vld [vmem:[%s2037_s4 + $0x180] sm:$0xff]  ;;  %v530_v41 = vld [vmem:[%s2037_s4 + $0x190] sm:$0xff]  ;;  %v561_v43 = vld [vmem:[%s2037_s4 + $0x288] sm:$0xff]  ;;  %s2226_s11 = scalar_lea.vmem %s2257_s3, %s1408_s8 }
  0x69   : > { %1455 = vmatpush1.bf16.msra.mxu1 %v1454_v31  ;;  %v1442_v40 = vpack.c.bf16 %v528_v38, %v512_v37  ;;  %1441 = vmatprep.subr.bf16.mxu0 %v1440_v35  ;;  %v1458_v44 = vpack.c.bf16 %v530_v41, %v514_v39  ;;  %v1444_v45 = vpack.c.bf16 %v561_v43, %v545_v42  ;;  %v547_v46 = vld [vmem:[%s2037_s4 + $0x218] sm:$0xff]  ;;  %v544_v48 = vld [vmem:[%s2037_s4 + $0x200] sm:$0xff]  ;;  %v546_v51 = vld [vmem:[%s2037_s4 + $0x210] sm:$0xff] }
  0x6a   : > { %1457 = vmatprep.subr.bf16.mxu1 %v1456_v36  ;;  %v563_v47 = vld [vmem:[%s2037_s4 + $0x298] sm:$0xff]  ;;  %v560_v50 = vld [vmem:[%s2037_s4 + $0x280] sm:$0xff]  ;;  %v562_v52 = vld [vmem:[%s2037_s4 + $0x290] sm:$0xff] }
  0x6b   : > { %v1460_v49 = vpack.c.bf16 %v563_v47, %v547_v46  ;;  %v1446_v53 = vpack.c.bf16 %v560_v50, %v544_v48  ;;  %v577_v54 = vld [vmem:[%s2037_s4 + $0x308] sm:$0xff]  ;;  %v579_v56 = vld [vmem:[%s2037_s4 + $0x318] sm:$0xff]  ;;  %v1462_v57 = vpack.c.bf16 %v562_v52, %v546_v51  ;;  %v576_v60 = vld [vmem:[%s2037_s4 + $0x300] sm:$0xff] }
  0x6c   : > { %1443 = vmatpush1.bf16.msra.mxu0 %v1442_v40  ;;  %v593_v55 = vld [vmem:[%s2037_s4 + $0x388] sm:$0xff]  ;;  %v595_v59 = vld [vmem:[%s2037_s4 + $0x398] sm:$0xff]  ;;  %v592_v61 = vld [vmem:[%s2037_s4 + $0x380] sm:$0xff] }
  0x6d   : > { %1459 = vmatpush1.bf16.msra.mxu1 %v1458_v44  ;;  %1445 = vmatprep.subr.bf16.mxu0 %v1444_v45  ;;  %v1448_v58 = vpack.c.bf16 %v593_v55, %v577_v54  ;;  %v1464_v62 = vpack.c.bf16 %v595_v59, %v579_v56  ;;  %v578_v63 = vld [vmem:[%s2037_s4 + $0x310] sm:$0xff]  ;;  %v1450_v1 = vpack.c.bf16 %v592_v61, %v576_v60  ;;  %v609_v3 = vld [vmem:[%s2037_s4 + $0x408] sm:$0xff]  ;;  %v611_v4 = vld [vmem:[%s2037_s4 + $0x418] sm:$0xff] }
  0x6e   : > { %1461 = vmatprep.subr.bf16.mxu1 %v1460_v49  ;;  %v594_v0 = vld [vmem:[%s2037_s4 + $0x390] sm:$0xff]  ;;  %v485_v5 = vld [vmem:[%s2037_s4 + $0x28] sm:$0xff]  ;;  %v608_v6 = vld [vmem:[%s2037_s4 + $0x400] sm:$0xff] }
  0x6f   : > { %v1466_v2 = vpack.c.bf16 %v594_v0, %v578_v63  ;;  %v501_v7 = vld [vmem:[%s2037_s4 + $0xa8] sm:$0xff]  ;;  %v487_v8 = vld [vmem:[%s2037_s4 + $0x38] sm:$0xff]  ;;  %v484_v11 = vld [vmem:[%s2037_s4 + $0x20] sm:$0xff] }
  0x70   : > { %1447 = vmatpush1.bf16.msra.mxu0 %v1446_v53  ;;  %v503_v9 = vld [vmem:[%s2037_s4 + $0xb8] sm:$0xff]  ;;  %v500_v12 = vld [vmem:[%s2037_s4 + $0xa0] sm:$0xff]  ;;  %v486_v13 = vld [vmem:[%s2037_s4 + $0x30] sm:$0xff]  ;;  %v1468_v19 = vpack.c.bf16 %v501_v7, %v485_v5 }
  0x71   : > { %1463 = vmatpush1.bf16.msra.mxu1 %v1462_v57  ;;  %1449 = vmatprep.subr.bf16.mxu0 %v1448_v58  ;;  %v502_v14 = vld [vmem:[%s2037_s4 + $0xb0] sm:$0xff]  ;;  %v517_v15 = vld [vmem:[%s2037_s4 + $0x128] sm:$0xff]  ;;  %v519_v20 = vld [vmem:[%s2037_s4 + $0x138] sm:$0xff]  ;;  %v1484_v22 = vpack.c.bf16 %v503_v9, %v487_v8  ;;  %v1470_v23 = vpack.c.bf16 %v500_v12, %v484_v11 }
  0x72   : > { %1465 = vmatprep.subr.bf16.mxu1 %v1464_v62  ;;  %v533_v17 = vld [vmem:[%s2037_s4 + $0x1a8] sm:$0xff]  ;;  %v610_v18 = vld [vmem:[%s2037_s4 + $0x410] sm:$0xff]  ;;  %v535_v21 = vld [vmem:[%s2037_s4 + $0x1b8] sm:$0xff]  ;;  %v1486_v24 = vpack.c.bf16 %v502_v14, %v486_v13 }
  0x73   : > { %v1472_v25 = vpack.c.bf16 %v533_v17, %v517_v15  ;;  %v516_v26 = vld [vmem:[%s2037_s4 + $0x120] sm:$0xff]  ;;  %v518_v28 = vld [vmem:[%s2037_s4 + $0x130] sm:$0xff]  ;;  %v1488_v29 = vpack.c.bf16 %v535_v21, %v519_v20  ;;  %v549_v31 = vld [vmem:[%s2037_s4 + $0x228] sm:$0xff] }
  0x74   : > { %1451 = vmatpush1.bf16.msra.mxu0 %v1450_v1  ;;  %v532_v27 = vld [vmem:[%s2037_s4 + $0x1a0] sm:$0xff]  ;;  %v534_v30 = vld [vmem:[%s2037_s4 + $0x1b0] sm:$0xff]  ;;  %v565_v32 = vld [vmem:[%s2037_s4 + $0x2a8] sm:$0xff] }
  0x75   : > { %1467 = vmatpush1.bf16.msra.mxu1 %v1466_v2  ;;  %650 = vmatprep.subr.mxu0 %v609_v3  ;;  %v551_v33 = vld [vmem:[%s2037_s4 + $0x238] sm:$0xff]  ;;  %v1474_v35 = vpack.c.bf16 %v532_v27, %v516_v26  ;;  %v1490_v36 = vpack.c.bf16 %v534_v30, %v518_v28  ;;  %v1476_v37 = vpack.c.bf16 %v565_v32, %v549_v31  ;;  %v548_v38 = vld [vmem:[%s2037_s4 + $0x220] sm:$0xff]  ;;  %v550_v40 = vld [vmem:[%s2037_s4 + $0x230] sm:$0xff] }
  0x76   : > { %721 = vmatprep.subr.mxu1 %v611_v4  ;;  %v567_v34 = vld [vmem:[%s2037_s4 + $0x2b8] sm:$0xff]  ;;  %v564_v39 = vld [vmem:[%s2037_s4 + $0x2a0] sm:$0xff]  ;;  %v566_v42 = vld [vmem:[%s2037_s4 + $0x2b0] sm:$0xff] }
  0x77   : > { %v1492_v41 = vpack.c.bf16 %v567_v34, %v551_v33  ;;  %v581_v43 = vld [vmem:[%s2037_s4 + $0x328] sm:$0xff]  ;;  %v583_v45 = vld [vmem:[%s2037_s4 + $0x338] sm:$0xff]  ;;  %v1478_v47 = vpack.c.bf16 %v564_v39, %v548_v38  ;;  %v1494_v48 = vpack.c.bf16 %v566_v42, %v550_v40  ;;  %v580_v50 = vld [vmem:[%s2037_s4 + $0x320] sm:$0xff] }
  0x78   : > { %651 = vmatpush1.msra.mxu0 %v608_v6  ;;  %v597_v44 = vld [vmem:[%s2037_s4 + $0x3a8] sm:$0xff]  ;;  %v599_v46 = vld [vmem:[%s2037_s4 + $0x3b8] sm:$0xff]  ;;  %v596_v51 = vld [vmem:[%s2037_s4 + $0x3a0] sm:$0xff] }
  0x79   : > { %722 = vmatpush1.msra.mxu1 %v610_v18  ;;  %1409 = vmatmul.mubr.msk.f32.vlgmr.msra.gmra.mrb[0].mxu0 %vm630_vm0, %v2081_v10  ;;  %v1480_v49 = vpack.c.bf16 %v597_v44, %v581_v43  ;;  %v1496_v52 = vpack.c.bf16 %v599_v46, %v583_v45  ;;  %v582_v53 = vld [vmem:[%s2037_s4 + $0x330] sm:$0xff]  ;;  %v1482_v55 = vpack.c.bf16 %v596_v51, %v580_v50  ;;  %v613_v57 = vld [vmem:[%s2037_s4 + $0x428] sm:$0xff]  ;;  %v615_v58 = vld [vmem:[%s2037_s4 + $0x438] sm:$0xff] }
  0x7a   : > { %1410 = vmatmul.mubr.msk.f32.vlgmr.msra.gmra.mrb[0].mxu1 %vm630_vm0, %v2081_v10  ;;  %1469 = vmatprep.subr.bf16.mxu0 %v1468_v19  ;;  %v598_v54 = vld [vmem:[%s2037_s4 + $0x3b0] sm:$0xff]  ;;  %v489_v59 = vld [vmem:[%s2037_s4 + $0x48] sm:$0xff]  ;;  %v612_v60 = vld [vmem:[%s2037_s4 + $0x420] sm:$0xff] }
  0x7b   : > { %1485 = vmatprep.subr.bf16.mxu1 %v1484_v22  ;;  %1471 = vmatpush1.bf16.msra.mxu0 %v1470_v23  ;;  %v1498_v56 = vpack.c.bf16 %v598_v54, %v582_v53  ;;  %v505_v61 = vld [vmem:[%s2037_s4 + $0xc8] sm:$0xff]  ;;  %v491_v62 = vld [vmem:[%s2037_s4 + $0x58] sm:$0xff]  ;;  %v488_v0 = vld [vmem:[%s2037_s4 + $0x40] sm:$0xff] }
  0x7c   : > { %1487 = vmatpush1.bf16.msra.mxu1 %v1486_v24  ;;  %1473 = vmatprep.subr.bf16.mxu0 %v1472_v25  ;;  %v507_v63 = vld [vmem:[%s2037_s4 + $0xd8] sm:$0xff]  ;;  %v504_v1 = vld [vmem:[%s2037_s4 + $0xc0] sm:$0xff]  ;;  %v490_v2 = vld [vmem:[%s2037_s4 + $0x50] sm:$0xff]  ;;  %v1500_v7 = vpack.c.bf16 %v505_v61, %v489_v59 }
  0x7d   : > { %1489 = vmatprep.subr.bf16.mxu1 %v1488_v29  ;;  %840 = vmatprep.mubr.f32.mxu0 %v1681_v16  ;;  %v506_v3 = vld [vmem:[%s2037_s4 + $0xd0] sm:$0xff]  ;;  %v521_v4 = vld [vmem:[%s2037_s4 + $0x148] sm:$0xff]  ;;  %v523_v8 = vld [vmem:[%s2037_s4 + $0x158] sm:$0xff]  ;;  %v1516_v11 = vpack.c.bf16 %v507_v63, %v491_v62  ;;  %v1502_v12 = vpack.c.bf16 %v504_v1, %v488_v0 }
  0x7e   : > { %911 = vmatprep.mubr.f32.mxu1 %v1681_v16  ;;  %v537_v5 = vld [vmem:[%s2037_s4 + $0x1c8] sm:$0xff]  ;;  %v614_v6 = vld [vmem:[%s2037_s4 + $0x430] sm:$0xff]  ;;  %v539_v9 = vld [vmem:[%s2037_s4 + $0x1d8] sm:$0xff]  ;;  %v1518_v13 = vpack.c.bf16 %v506_v3, %v490_v2 }
  0x7f   : > { %1475 = vmatpush1.bf16.msra.mxu0 %v1474_v35  ;;  %v1504_v14 = vpack.c.bf16 %v537_v5, %v521_v4  ;;  %v520_v15 = vld [vmem:[%s2037_s4 + $0x140] sm:$0xff]  ;;  %v522_v18 = vld [vmem:[%s2037_s4 + $0x150] sm:$0xff]  ;;  %v1520_v19 = vpack.c.bf16 %v539_v9, %v523_v8  ;;  %v553_v21 = vld [vmem:[%s2037_s4 + $0x248] sm:$0xff] }
  0x80   : > { %1491 = vmatpush1.bf16.msra.mxu1 %v1490_v36  ;;  %1477 = vmatprep.subr.bf16.mxu0 %v1476_v37  ;;  %v536_v17 = vld [vmem:[%s2037_s4 + $0x1c0] sm:$0xff]  ;;  %v538_v20 = vld [vmem:[%s2037_s4 + $0x1d0] sm:$0xff]  ;;  %v569_v22 = vld [vmem:[%s2037_s4 + $0x2c8] sm:$0xff] }
  0x81   : > { %1493 = vmatprep.subr.bf16.mxu1 %v1492_v41  ;;  %v555_v23 = vld [vmem:[%s2037_s4 + $0x258] sm:$0xff]  ;;  %v1506_v25 = vpack.c.bf16 %v536_v17, %v520_v15  ;;  %v1522_v26 = vpack.c.bf16 %v538_v20, %v522_v18  ;;  %v1508_v27 = vpack.c.bf16 %v569_v22, %v553_v21  ;;  %v552_v28 = vld [vmem:[%s2037_s4 + $0x240] sm:$0xff]  ;;  %v554_v30 = vld [vmem:[%s2037_s4 + $0x250] sm:$0xff] }
  0x82   : > { %v571_v24 = vld [vmem:[%s2037_s4 + $0x2d8] sm:$0xff]  ;;  %v568_v29 = vld [vmem:[%s2037_s4 + $0x2c0] sm:$0xff]  ;;  %v570_v32 = vld [vmem:[%s2037_s4 + $0x2d0] sm:$0xff] }
  0x83   : > { %1479 = vmatpush1.bf16.msra.mxu0 %v1478_v47  ;;  %v1524_v31 = vpack.c.bf16 %v571_v24, %v555_v23  ;;  %v585_v33 = vld [vmem:[%s2037_s4 + $0x348] sm:$0xff]  ;;  %v587_v35 = vld [vmem:[%s2037_s4 + $0x358] sm:$0xff]  ;;  %v1510_v37 = vpack.c.bf16 %v568_v29, %v552_v28  ;;  %v1526_v38 = vpack.c.bf16 %v570_v32, %v554_v30  ;;  %v584_v40 = vld [vmem:[%s2037_s4 + $0x340] sm:$0xff] }
  0x84   : > { %1495 = vmatpush1.bf16.msra.mxu1 %v1494_v48  ;;  %1481 = vmatprep.subr.bf16.mxu0 %v1480_v49  ;;  %v601_v34 = vld [vmem:[%s2037_s4 + $0x3c8] sm:$0xff]  ;;  %v603_v36 = vld [vmem:[%s2037_s4 + $0x3d8] sm:$0xff]  ;;  %v600_v41 = vld [vmem:[%s2037_s4 + $0x3c0] sm:$0xff] }
  0x85   : > { %1497 = vmatprep.subr.bf16.mxu1 %v1496_v52  ;;  %v1512_v39 = vpack.c.bf16 %v601_v34, %v585_v33  ;;  %v1528_v42 = vpack.c.bf16 %v603_v36, %v587_v35  ;;  %v586_v43 = vld [vmem:[%s2037_s4 + $0x350] sm:$0xff]  ;;  %v1514_v45 = vpack.c.bf16 %v600_v41, %v584_v40  ;;  %v617_v47 = vld [vmem:[%s2037_s4 + $0x448] sm:$0xff]  ;;  %v619_v48 = vld [vmem:[%s2037_s4 + $0x458] sm:$0xff] }
  0x86   : > { %v602_v44 = vld [vmem:[%s2037_s4 + $0x3d0] sm:$0xff]  ;;  %v493_v49 = vld [vmem:[%s2037_s4 + $0x68] sm:$0xff]  ;;  %v616_v50 = vld [vmem:[%s2037_s4 + $0x440] sm:$0xff] }
  0x87   : > { %1483 = vmatpush1.bf16.msra.mxu0 %v1482_v55  ;;  %v1530_v46 = vpack.c.bf16 %v602_v44, %v586_v43  ;;  %v509_v51 = vld [vmem:[%s2037_s4 + $0xe8] sm:$0xff]  ;;  %v495_v52 = vld [vmem:[%s2037_s4 + $0x78] sm:$0xff]  ;;  %v492_v54 = vld [vmem:[%s2037_s4 + $0x60] sm:$0xff] }
  0x88   : > { %1499 = vmatpush1.bf16.msra.mxu1 %v1498_v56  ;;  %792 = vmatprep.subr.mxu0 %v613_v57  ;;  %v511_v53 = vld [vmem:[%s2037_s4 + $0xf8] sm:$0xff]  ;;  %v508_v55 = vld [vmem:[%s2037_s4 + $0xe0] sm:$0xff]  ;;  %v494_v56 = vld [vmem:[%s2037_s4 + $0x70] sm:$0xff]  ;;  %v1532_v61 = vpack.c.bf16 %v509_v51, %v493_v49 }
  0x89   : > { %863 = vmatprep.subr.mxu1 %v615_v58  ;;  %v510_v57 = vld [vmem:[%s2037_s4 + $0xf0] sm:$0xff]  ;;  %v525_v58 = vld [vmem:[%s2037_s4 + $0x168] sm:$0xff]  ;;  %v527_v62 = vld [vmem:[%s2037_s4 + $0x178] sm:$0xff]  ;;  %v1548_v0 = vpack.c.bf16 %v511_v53, %v495_v52  ;;  %v1534_v1 = vpack.c.bf16 %v508_v55, %v492_v54 }
  0x8a   : > { %v541_v59 = vld [vmem:[%s2037_s4 + $0x1e8] sm:$0xff]  ;;  %v543_v63 = vld [vmem:[%s2037_s4 + $0x1f8] sm:$0xff]  ;;  %v1550_v2 = vpack.c.bf16 %v510_v57, %v494_v56  ;;  %v524_v4 = vld [vmem:[%s2037_s4 + $0x160] sm:$0xff] }
  0x8b   : > { %793 = vmatpush1.msra.mxu0 %v612_v60  ;;  %v618_v60 = vld [vmem:[%s2037_s4 + $0x450] sm:$0xff]  ;;  %v1536_v3 = vpack.c.bf16 %v541_v59, %v525_v58  ;;  %v540_v5 = vld [vmem:[%s2037_s4 + $0x1e0] sm:$0xff]  ;;  %v557_v9 = vld [vmem:[%s2037_s4 + $0x268] sm:$0xff] }
  0x8c   : > { %864 = vmatpush1.msra.mxu1 %v614_v6  ;;  %1411 = vmatmul.mubr.msk.f32.vlgmr.msra.gmra.mrb[2].mxu0 %vm630_vm0, %v2081_v10  ;;  %v526_v6 = vld [vmem:[%s2037_s4 + $0x170] sm:$0xff]  ;;  %v556_v18 = vld [vmem:[%s2037_s4 + $0x260] sm:$0xff]  ;;  %v589_v23 = vld [vmem:[%s2037_s4 + $0x368] sm:$0xff] }
  0x8d   : > { %1412 = vmatmul.mubr.msk.f32.vlgmr.msra.gmra.mrb[2].mxu1 %vm630_vm0, %v2081_v10  ;;  %1501 = vmatprep.subr.bf16.mxu0 %v1500_v7  ;;  %v1552_v7 = vpack.c.bf16 %v543_v63, %v527_v62  ;;  %v542_v8 = vld [vmem:[%s2037_s4 + $0x1f0] sm:$0xff]  ;;  %v605_v24 = vld [vmem:[%s2037_s4 + $0x3e8] sm:$0xff]  ;;  %v588_v30 = vld [vmem:[%s2037_s4 + $0x360] sm:$0xff] }
  0x8e   : > { %1517 = vmatprep.subr.bf16.mxu1 %v1516_v11  ;;  %1503 = vmatpush1.bf16.msra.mxu0 %v1502_v12  ;;  %v573_v11 = vld [vmem:[%s2037_s4 + $0x2e8] sm:$0xff]  ;;  %v559_v12 = vld [vmem:[%s2037_s4 + $0x278] sm:$0xff]  ;;  %v1554_v15 = vpack.c.bf16 %v542_v8, %v526_v6  ;;  %v558_v20 = vld [vmem:[%s2037_s4 + $0x270] sm:$0xff]  ;;  %v1544_v29 = vpack.c.bf16 %v605_v24, %v589_v23 }
  0x8f   : > { %1519 = vmatpush1.bf16.msra.mxu1 %v1518_v13  ;;  %1505 = vmatprep.subr.bf16.mxu0 %v1504_v14  ;;  %v575_v13 = vld [vmem:[%s2037_s4 + $0x2f8] sm:$0xff]  ;;  %v1538_v14 = vpack.c.bf16 %v540_v5, %v524_v4  ;;  %v1540_v17 = vpack.c.bf16 %v573_v11, %v557_v9  ;;  %v574_v22 = vld [vmem:[%s2037_s4 + $0x2f0] sm:$0xff]  ;;  %v621_v36 = vld [vmem:[%s2037_s4 + $0x468] sm:$0xff] }
  0x90   : > { %1521 = vmatprep.subr.bf16.mxu1 %v1520_v19  ;;  %982 = vmatprep.mubr.f32.mxu0 %v1681_v16  ;;  %v572_v19 = vld [vmem:[%s2037_s4 + $0x2e0] sm:$0xff]  ;;  %v1556_v21 = vpack.c.bf16 %v575_v13, %v559_v12  ;;  %v1558_v28 = vpack.c.bf16 %v574_v22, %v558_v20  ;;  %v590_v33 = vld [vmem:[%s2037_s4 + $0x370] sm:$0xff] }
  0x91   : > { %1053 = vmatprep.mubr.f32.mxu1 %v1681_v16  ;;  %v606_v34 = vld [vmem:[%s2037_s4 + $0x3f0] sm:$0xff] }
  0x92   : > { %1507 = vmatpush1.bf16.msra.mxu0 %v1506_v25  ;;  %v591_v25 = vld [vmem:[%s2037_s4 + $0x378] sm:$0xff] }
  0x93   : > { %1523 = vmatpush1.bf16.msra.mxu1 %v1522_v26  ;;  %1509 = vmatprep.subr.bf16.mxu0 %v1508_v27  ;;  %v607_v26 = vld [vmem:[%s2037_s4 + $0x3f8] sm:$0xff]  ;;  %v1542_v27 = vpack.c.bf16 %v572_v19, %v556_v18 }
  0x94   : > { %1525 = vmatprep.subr.bf16.mxu1 %v1524_v31  ;;  %v604_v31 = vld [vmem:[%s2037_s4 + $0x3e0] sm:$0xff]  ;;  %v1560_v32 = vpack.c.bf16 %v607_v26, %v591_v25 }
  0x95   : > { %v1546_v35 = vpack.c.bf16 %v604_v31, %v588_v30 }
  0x96   : > { %1511 = vmatpush1.bf16.msra.mxu0 %v1510_v37  ;;  %v623_v37 = vld [vmem:[%s2037_s4 + $0x478] sm:$0xff] }
  0x97   : > { %1527 = vmatpush1.bf16.msra.mxu1 %v1526_v38  ;;  %1513 = vmatprep.subr.bf16.mxu0 %v1512_v39  ;;  %v620_v38 = vld [vmem:[%s2037_s4 + $0x460] sm:$0xff]  ;;  %v622_v39 = vld [vmem:[%s2037_s4 + $0x470] sm:$0xff] }
  0x98   : > { %1529 = vmatprep.subr.bf16.mxu1 %v1528_v42 }
  0x9a   : > { %1515 = vmatpush1.bf16.msra.mxu0 %v1514_v45 }
  0x9b   : > { %1531 = vmatpush1.bf16.msra.mxu1 %v1530_v46  ;;  %934 = vmatprep.subr.mxu0 %v617_v47 }
  0x9c   : > { %1005 = vmatprep.subr.mxu1 %v619_v48 }
  0x9e   : > { %935 = vmatpush1.msra.mxu0 %v616_v50 }
  0x9f   : > { %1006 = vmatpush1.msra.mxu1 %v618_v60  ;;  %1413 = vmatmul.mubr.msk.f32.vlgmr.msra.gmra.mrb[4].mxu0 %vm630_vm0, %v2081_v10 }
  0xa0   : > { %1414 = vmatmul.mubr.msk.f32.vlgmr.msra.gmra.mrb[4].mxu1 %vm630_vm0, %v2081_v10  ;;  %1533 = vmatprep.subr.bf16.mxu0 %v1532_v61 }
  0xa1   : > { %1549 = vmatprep.subr.bf16.mxu1 %v1548_v0  ;;  %1535 = vmatpush1.bf16.msra.mxu0 %v1534_v1 }
  0xa2   : > { %1551 = vmatpush1.bf16.msra.mxu1 %v1550_v2  ;;  %1537 = vmatprep.subr.bf16.mxu0 %v1536_v3 }
  0xa3   : > { %1553 = vmatprep.subr.bf16.mxu1 %v1552_v7  ;;  %1124 = vmatprep.mubr.f32.mxu0 %v1681_v16 }
  0xa4   : > { %1195 = vmatprep.mubr.f32.mxu1 %v1681_v16  ;;  %v1562_v16 = vpack.c.bf16 %v606_v34, %v590_v33 }
  0xa5   : > { %1539 = vmatpush1.bf16.msra.mxu0 %v1538_v14 }
  0xa6   : > { %1555 = vmatpush1.bf16.msra.mxu1 %v1554_v15  ;;  %1541 = vmatprep.subr.bf16.mxu0 %v1540_v17 }
  0xa7   : > { %1557 = vmatprep.subr.bf16.mxu1 %v1556_v21 }
  0xa9   : > { %1543 = vmatpush1.bf16.msra.mxu0 %v1542_v27 }
  0xaa   : > { %1559 = vmatpush1.bf16.msra.mxu1 %v1558_v28  ;;  %1545 = vmatprep.subr.bf16.mxu0 %v1544_v29 }
  0xab   : > { %1561 = vmatprep.subr.bf16.mxu1 %v1560_v32 }
  0xad   : > { %1547 = vmatpush1.bf16.msra.mxu0 %v1546_v35 }
  0xae   : > { %1563 = vmatpush1.bf16.msra.mxu1 %v1562_v16  ;;  %1076 = vmatprep.subr.mxu0 %v621_v36 }
  0xaf   : > { %1147 = vmatprep.subr.mxu1 %v623_v37 }
  0xb1   : > { %1077 = vmatpush1.msra.mxu0 %v620_v38 }
  0xb2   : > { %1148 = vmatpush1.msra.mxu1 %v622_v39  ;;  %1415 = vmatmul.mubr.msk.f32.vlgmr.msra.gmra.mrb[6].mxu0 %vm630_vm0, %v2081_v10 }
  0xb3   : > { %1416 = vmatmul.mubr.msk.f32.vlgmr.msra.gmra.mrb[6].mxu1 %vm630_vm0, %v2081_v10 }
  0xe0   : > { %v2210_v40 = vpop.permute.xlu0 %627 }
 0x14c   : > { %v700_v41 = vpop.f32.mrb[0].mxu0 }
 0x14d   : > { %v771_v42 = vpop.f32.mrb[0].mxu1  ;;  %v701_v43 = vadd.f32 %v700_v41, %v2210_v40  ;;  %v702_v44 = vpop.f32.mrb[1].mxu0 }
 0x14e   : > { %v703_v45 = vadd.f32 %v702_v44, %v2210_v40  ;;  %v772_v46 = vadd.f32 %v771_v42, %v2210_v40  ;;  %v773_v47 = vpop.f32.mrb[1].mxu1 }
 0x14f   : > { %v1417_v48 = vmul.f32 -1.442695, %v701_v43  ;;  %v774_v49 = vadd.f32 %v773_v47, %v2210_v40 }
 0x150   : > { %v1418_v50 = vmul.f32 -1.442695, %v703_v45  ;;  %v1419_v51 = vmul.f32 -1.442695, %v772_v46 }
 0x151   : > { %1593 = vpow2.f32 %v1417_v48  ;;  %v1420_v10 = vmul.f32 -1.442695, %v774_v49 }
 0x152   : > { %1595 = vpow2.f32 %v1418_v50 }
 0x153   : > { %1597 = vpow2.f32 %v1419_v51 }
 0x154   : > { %1599 = vpow2.f32 %v1420_v10 }
 0x15b   : > { %v1594_v52 = vpop.eup %1593 }
 0x15c   : > { %v1596_v53 = vpop.eup %1595  ;;  %v1250_v54 = vadd.f32 1.0, %v1594_v52 }
 0x15d   : > { %v1598_v55 = vpop.eup %1597  ;;  %v1251_v56 = vadd.f32 1.0, %v1596_v53 }
 0x15e   : > { %v1600_v57 = vpop.eup %1599  ;;  %1601 = vrcp.f32 %v1250_v54  ;;  %v1252_v58 = vadd.f32 1.0, %v1598_v55 }
 0x15f   : > { %1603 = vrcp.f32 %v1251_v56  ;;  %v1253_v59 = vadd.f32 1.0, %v1600_v57  ;;  %v842_v60 = vpop.f32.mrb[2].mxu0 }
 0x160   : > { %1605 = vrcp.f32 %v1252_v58  ;;  %v843_v61 = vadd.f32 %v842_v60, %v2210_v40  ;;  %v913_v62 = vpop.f32.mrb[2].mxu1  ;;  %v844_v63 = vpop.f32.mrb[3].mxu0 }
 0x161   : > { %1607 = vrcp.f32 %v1253_v59  ;;  %v914_v0 = vadd.f32 %v913_v62, %v2210_v40  ;;  %v845_v1 = vadd.f32 %v844_v63, %v2210_v40  ;;  %v915_v2 = vpop.f32.mrb[3].mxu1 }
 0x162   : > { %v1421_v3 = vmul.f32 -1.442695, %v843_v61  ;;  %v916_v4 = vadd.f32 %v915_v2, %v2210_v40 }
 0x163   : > { %v1423_v5 = vmul.f32 -1.442695, %v914_v0  ;;  %v1422_v6 = vmul.f32 -1.442695, %v845_v1 }
 0x164   : > { %1609 = vpow2.f32 %v1421_v3  ;;  %v1424_v7 = vmul.f32 -1.442695, %v916_v4 }
 0x165   : > { %1611 = vpow2.f32 %v1423_v5 }
 0x166   : > { %1613 = vpow2.f32 %v1422_v6 }
 0x167   : > { %1615 = vpow2.f32 %v1424_v7 }
 0x168   : > { %v1602_v8 = vpop.eup %1601 }
 0x169   : > { %v1604_v9 = vpop.eup %1603 }
 0x16a   : > { %v1606_v11 = vpop.eup %1605  ;;  %v1314_v12 = vcombine.low %v1602_v8, %v1604_v9 }
 0x16b   : > { %v1608_v13 = vpop.eup %1607 }
 0x16c   : > { %1330 = vst [vmem:[%s2226_s11] sm:$0x77] %v1314_v12  ;;  %v1315_v14 = vcombine.low %v1606_v11, %v1608_v13 }
 0x16e   : > { %v1610_v15 = vpop.eup %1609  ;;  %1331 = vst [vmem:[%s2226_s11 + $0x8] sm:$0x77] %v1315_v14 }
 0x16f   : > { %v1612_v17 = vpop.eup %1611  ;;  %v1254_v18 = vadd.f32 1.0, %v1610_v15 }
 0x170   : > { %v1614_v19 = vpop.eup %1613  ;;  %v1256_v20 = vadd.f32 1.0, %v1612_v17 }
 0x171   : > { %v1616_v21 = vpop.eup %1615  ;;  %1617 = vrcp.f32 %v1254_v18  ;;  %v1255_v22 = vadd.f32 1.0, %v1614_v19 }
 0x172   : > { %1619 = vrcp.f32 %v1256_v20  ;;  %v1257_v23 = vadd.f32 1.0, %v1616_v21  ;;  %v984_v24 = vpop.f32.mrb[4].mxu0 }
 0x173   : > { %1621 = vrcp.f32 %v1255_v22  ;;  %v985_v25 = vadd.f32 %v984_v24, %v2210_v40  ;;  %v1055_v26 = vpop.f32.mrb[4].mxu1  ;;  %v986_v27 = vpop.f32.mrb[5].mxu0 }
 0x174   : > { %1623 = vrcp.f32 %v1257_v23  ;;  %v1056_v28 = vadd.f32 %v1055_v26, %v2210_v40  ;;  %v987_v29 = vadd.f32 %v986_v27, %v2210_v40  ;;  %v1057_v30 = vpop.f32.mrb[5].mxu1 }
 0x175   : > { %v1425_v31 = vmul.f32 -1.442695, %v985_v25  ;;  %v1058_v32 = vadd.f32 %v1057_v30, %v2210_v40 }
 0x176   : > { %v1427_v33 = vmul.f32 -1.442695, %v1056_v28  ;;  %v1426_v34 = vmul.f32 -1.442695, %v987_v29 }
 0x177   : > { %1625 = vpow2.f32 %v1425_v31  ;;  %v1428_v35 = vmul.f32 -1.442695, %v1058_v32 }
 0x178   : > { %1627 = vpow2.f32 %v1427_v33 }
 0x179   : > { %1629 = vpow2.f32 %v1426_v34 }
 0x17a   : > { %1631 = vpow2.f32 %v1428_v35 }
 0x17b   : > { %v1618_v16 = vpop.eup %1617 }
 0x17c   : > { %v1620_v36 = vpop.eup %1619 }
 0x17d   : > { %v1622_v37 = vpop.eup %1621 }
 0x17e   : > { %v1624_v38 = vpop.eup %1623  ;;  %v1316_v39 = vcombine.low %v1618_v16, %v1622_v37 }
 0x17f   : > { %v1317_v41 = vcombine.low %v1620_v36, %v1624_v38 }
 0x180   : > { %1332 = vst [vmem:[%s2226_s11 + $0x10] sm:$0x77] %v1316_v39 }
 0x181   : > { %v1626_v42 = vpop.eup %1625  ;;  %1333 = vst [vmem:[%s2226_s11 + $0x18] sm:$0x77] %v1317_v41 }
 0x182   : > { %v1628_v43 = vpop.eup %1627  ;;  %v1258_v44 = vadd.f32 1.0, %v1626_v42 }
 0x183   : > { %v1630_v45 = vpop.eup %1629  ;;  %v1260_v46 = vadd.f32 1.0, %v1628_v43 }
 0x184   : > { %v1632_v47 = vpop.eup %1631  ;;  %1633 = vrcp.f32 %v1258_v44  ;;  %v1259_v48 = vadd.f32 1.0, %v1630_v45 }
 0x185   : > { %1635 = vrcp.f32 %v1260_v46  ;;  %v1261_v49 = vadd.f32 1.0, %v1632_v47  ;;  %v1126_v50 = vpop.f32.mrb[6].mxu0 }
 0x186   : > { %1637 = vrcp.f32 %v1259_v48  ;;  %v1127_v51 = vadd.f32 %v1126_v50, %v2210_v40  ;;  %v1197_v10 = vpop.f32.mrb[6].mxu1  ;;  %v1128_v52 = vpop.f32.mrb[7].mxu0 }
 0x187   : > { %1639 = vrcp.f32 %v1261_v49  ;;  %v1198_v53 = vadd.f32 %v1197_v10, %v2210_v40  ;;  %v1129_v54 = vadd.f32 %v1128_v52, %v2210_v40  ;;  %v1199_v55 = vpop.f32.mrb[7].mxu1 }
 0x188   : > { %v1429_v56 = vmul.f32 -1.442695, %v1127_v51  ;;  %v1200_v57 = vadd.f32 %v1199_v55, %v2210_v40 }
 0x189   : > { %v1431_v58 = vmul.f32 -1.442695, %v1198_v53  ;;  %v1430_v59 = vmul.f32 -1.442695, %v1129_v54 }
 0x18a   : > { %1641 = vpow2.f32 %v1429_v56  ;;  %v1432_v60 = vmul.f32 -1.442695, %v1200_v57 }
 0x18b   : > { %1643 = vpow2.f32 %v1431_v58 }
 0x18c   : > { %1645 = vpow2.f32 %v1430_v59 }
 0x18d   : > { %1647 = vpow2.f32 %v1432_v60 }
 0x18e   : > { %v1634_v61 = vpop.eup %1633 }
 0x18f   : > { %v1636_v62 = vpop.eup %1635 }
 0x190   : > { %v1638_v63 = vpop.eup %1637 }
 0x191   : > { %v1640_v0 = vpop.eup %1639  ;;  %v1318_v1 = vcombine.low %v1634_v61, %v1638_v63 }
 0x192   : > { %v1319_v2 = vcombine.low %v1636_v62, %v1640_v0 }
 0x193   : > { %1334 = vst [vmem:[%s2226_s11 + $0x20] sm:$0x77] %v1318_v1 }
 0x194   : > { %v1642_v3 = vpop.eup %1641  ;;  %1335 = vst [vmem:[%s2226_s11 + $0x28] sm:$0x77] %v1319_v2 }
 0x195   : > { %v1644_v4 = vpop.eup %1643  ;;  %v1262_v5 = vadd.f32 1.0, %v1642_v3 }
 0x196   : > { %v1646_v40 = vpop.eup %1645  ;;  %v1264_v6 = vadd.f32 1.0, %v1644_v4 }
 0x197   : > { %v1648_v7 = vpop.eup %1647  ;;  %1649 = vrcp.f32 %v1262_v5  ;;  %v1263_v8 = vadd.f32 1.0, %v1646_v40 }
 0x198   : > { %1651 = vrcp.f32 %v1264_v6  ;;  %v1265_v9 = vadd.f32 1.0, %v1648_v7 }
 0x199   : > { %1653 = vrcp.f32 %v1263_v8 }
 0x19a   : > { %1655 = vrcp.f32 %v1265_v9 }
 0x1a1   : > { %v1650_v11 = vpop.eup %1649 }
 0x1a2   : > { %v1652_v12 = vpop.eup %1651 }
 0x1a3   : > { %v1654_v13 = vpop.eup %1653 }
 0x1a4   : > { %v1656_v14 = vpop.eup %1655  ;;  %v1320_v15 = vcombine.low %v1650_v11, %v1654_v13 }
 0x1a5   : > { %v1321_v17 = vcombine.low %v1652_v12, %v1656_v14 }
 0x1a6   : > { %1336 = vst [vmem:[%s2226_s11 + $0x30] sm:$0x77] %v1320_v15 }
 0x1a7   : > { %1337 = vst [vmem:[%s2226_s11 + $0x38] sm:$0x77] %v1321_v17 }
 0x1a8 PF: > { %p10_p9 = scmp.ge.s32.totalorder %s1720_s16, 4   ;;  %s2258_s12 = smov %s1675_s13 }
 0x1a9   : > { %s2259_s13 = smov %s1729_s19  ;;  %s2260_s14 = smov %s1720_s16 }
 0x1aa   :  { %12 = sbr.rel (!%p10_p9) target bundleno = 2 (0x2), region = 90 }

</bundles_post_ra>
